<compile_context>
chip_gen: v6e
topology: v6e:2x2x1
jax: 0.10.0
libtpu: 0.0.40
codegen_flags: <defaults>
</compile_context>

<pallas_src>
import jax
import jax.numpy as jnp
import numpy as np
from jax import lax
from jax.experimental import pallas as pl
from jax.experimental.pallas import tpu as pltpu


# ----------------------------------------------------------------------------
# Pallas kernels
# ----------------------------------------------------------------------------
def _conv1_pool_kernel(p_ref, w_ref, b_ref, o_ref):
    """Fused conv1 + bias + ReLU + 2x2 max-pool for one tile of pooled pixels.

    p_ref: (TM, 36)        6x6 / stride-2 input patches (one row per POOLED px)
    w_ref: (36, 4*Cout)    conv kernel embedded at the 4 pool offsets,
                           columns ordered (pool_offset, cout)
    b_ref: (1, Cout)
    o_ref: (TM, Cout)      pooled NHWC rows, ordered (b, ph, pw)
    """
    cout = o_ref.shape[-1]
    # ONE matmul for all 4 pool offsets (review item 1).
    z = jnp.dot(p_ref[...], w_ref[...], preferred_element_type=jnp.float32)
    m = jnp.maximum(jnp.maximum(z[:, 0:cout], z[:, cout:2 * cout]),
                    jnp.maximum(z[:, 2 * cout:3 * cout], z[:, 3 * cout:4 * cout]))
    # max_k relu(conv_k + b) == relu(max_k(conv_k) + b)   (constant bias, monotone relu)
    o_ref[...] = jnp.maximum(m + b_ref[...], 0.0).astype(o_ref.dtype)


def _stage2_fc_kernel(y_ref, w2_ref, b2_ref, w1_ref, b1_ref,
                      wf2_ref, bf2_ref, w3_ref, b3_ref, o_ref):
    """Fused conv2 + ReLU + pool + fc1 + ReLU + fc2 + ReLU + fc3, per batch tile.

    y_ref  : (TB, 1176)    per-image stage-1 activations, (h, w, c)-flattened
    w2_ref : (1176, 1600)  block-Toeplitz conv2 weights, cols = (k, pos, cout)
    b2_ref : (1, 400)      conv2 bias tiled over the 25 pooled positions
    w1_ref : (400, 120)  b1_ref : (1, 120)
    wf2_ref: (120, 84)   bf2_ref: (1, 84)
    w3_ref : (1, 84)     b3_ref : (1, 1)
    o_ref  : (TB, 1)
    """
    g = w2_ref.shape[-1] // 4                                   # 400
    # conv2 at all 4 pool offsets in ONE matmul (block-Toeplitz weights).
    z = jnp.dot(y_ref[...], w2_ref[...], preferred_element_type=jnp.float32)
    m = jnp.maximum(jnp.maximum(z[:, 0:g], z[:, g:2 * g]),
                    jnp.maximum(z[:, 2 * g:3 * g], z[:, 3 * g:4 * g]))
    h = jnp.maximum(m + b2_ref[...], 0.0)                       # (TB, 400) pooled, HWC
    h = jnp.dot(h, w1_ref[...], preferred_element_type=jnp.float32)
    h = jnp.maximum(h + b1_ref[...], 0.0)                       # (TB, 120)
    h = jnp.dot(h, wf2_ref[...], preferred_element_type=jnp.float32)
    h = jnp.maximum(h + bf2_ref[...], 0.0)                      # (TB, 84)
    # fc3 has a single output column -> VPU multiply + lane reduction (review #8).
    o = jnp.sum(h * w3_ref[...], axis=-1, keepdims=True) + b3_ref[...]
    o_ref[...] = o.astype(o_ref.dtype)


# ----------------------------------------------------------------------------
# pallas_call wrappers
# ----------------------------------------------------------------------------
def _row_tile(m, max_rows):
    # Full extent (no (8,128) divisibility requirement) when it fits; otherwise
    # a multiple-of-8 tile — Pallas masks the ragged last block's stores.
    return m if m <= max_rows else max_rows


def conv1_pool_stage(patches, w_cat, b2d, *, max_rows=8192):
    """relu(maxpool2x2(conv1(x)+b)); one matmul + lane-group max per tile."""
    m, k = patches.shape
    cout4 = w_cat.shape[-1]
    cout = cout4 // 4
    tm = _row_tile(m, max_rows)
    return pl.pallas_call(
        _conv1_pool_kernel,
        grid=(pl.cdiv(m, tm),),
        out_shape=jax.ShapeDtypeStruct((m, cout), jnp.float32),
        in_specs=[
            pl.BlockSpec((tm, k), lambda i: (i, 0)),
            pl.BlockSpec((k, cout4), lambda i: (0, 0)),
            pl.BlockSpec((1, cout), lambda i: (0, 0)),
        ],
        out_specs=pl.BlockSpec((tm, cout), lambda i: (i, 0)),
        compiler_params=pltpu.CompilerParams(
            dimension_semantics=("parallel",)),
    )(patches, w_cat, b2d)


def stage2_fc_head(y_rows, w2big, b2, w1, b1, w2f, b2f, w3, b3, *, max_rows=512):
    """Fused conv2+pool+fc1+fc2+fc3, tiled over batch images."""
    bsz, din = y_rows.shape
    n4 = w2big.shape[1]
    nh = n4 // 4
    h1, h2 = w1.shape[1], w2f.shape[1]
    tb = _row_tile(bsz, max_rows)
    return pl.pallas_call(
        _stage2_fc_kernel,
        grid=(pl.cdiv(bsz, tb),),
        out_shape=jax.ShapeDtypeStruct((bsz, 1), jnp.float32),
        in_specs=[
            pl.BlockSpec((tb, din), lambda i: (i, 0)),
            pl.BlockSpec((din, n4), lambda i: (0, 0)),
            pl.BlockSpec((1, nh), lambda i: (0, 0)),
            pl.BlockSpec((nh, h1), lambda i: (0, 0)),
            pl.BlockSpec((1, h1), lambda i: (0, 0)),
            pl.BlockSpec((h1, h2), lambda i: (0, 0)),
            pl.BlockSpec((1, h2), lambda i: (0, 0)),
            pl.BlockSpec((1, h2), lambda i: (0, 0)),
            pl.BlockSpec((1, 1), lambda i: (0, 0)),
        ],
        out_specs=pl.BlockSpec((tb, 1), lambda i: (i, 0)),
        compiler_params=pltpu.CompilerParams(
            dimension_semantics=("parallel",),
            # ~7.5 MB of resident conv2 weights (double-buffered) plus input
            # blocks exceed v5e's 16 MiB default scoped VMEM; raise the limit.
            vmem_limit_bytes=64 * 1024 * 1024),
    )(y_rows, w2big, b2, w1, b1, w2f, b2f, w3, b3)


# ----------------------------------------------------------------------------
# Minimal XLA glue: stage-1 pooled-receptive-field patch extraction (im2col)
# ----------------------------------------------------------------------------
def _pool_window_patches(x):
    """6x6 / stride-2 patches of the input image -> one 36-wide row per pooled
    output pixel (rows ordered (b, ph, pw))."""
    p = lax.conv_general_dilated_patches(
        x, filter_shape=(6, 6), window_strides=(2, 2), padding="VALID",
        dimension_numbers=("NCHW", "OIHW", "NHWC"))
    b, ph, pw, f = p.shape
    return p.reshape(b * ph * pw, f), ph, pw


# ----------------------------------------------------------------------------
# Parameters (PyTorch layout) and one-time layout preparation
# ----------------------------------------------------------------------------
def init_params(key):
    """PyTorch-layout params, PyTorch's default uniform(-1/sqrt(fan_in))."""
    def lin(k, out_f, in_f):
        k1, k2 = jax.random.split(k)
        bound = 1.0 / float(in_f) ** 0.5
        w = jax.random.uniform(k1, (out_f, in_f), jnp.float32, -bound, bound)
        b = jax.random.uniform(k2, (out_f,), jnp.float32, -bound, bound)
        return w, b

    keys = jax.random.split(key, 5)
    w1, b1 = lin(keys[0], 6, 1 * 5 * 5)
    w2, b2 = lin(keys[1], 16, 6 * 5 * 5)
    w3, b3 = lin(keys[2], 120, 16 * 5 * 5)
    w4, b4 = lin(keys[3], 84, 120)
    w5, b5 = lin(keys[4], 1, 84)
    return {
        "conv1": (w1.reshape(6, 1, 5, 5), b1),
        "conv2": (w2.reshape(16, 6, 5, 5), b2),
        "fc1": (w3, b3),
        "fc2": (w4, b4),
        "fc3": (w5, b5),
    }


def _embed_pool_windows_cat(w):
    """(Cout, Cin, 5, 5) -> (Cin*36, 4*Cout): the 5x5 kernel zero-embedded at
    each of the 4 offsets of a 2x2 pool window inside a 6x6 stride-2 patch,
    CONCATENATED along the output dim (pool-offset major) -> one matmul."""
    cout = w.shape[0]
    mats = []
    for dh in (0, 1):
        for dw in (0, 1):
            wp = jnp.pad(w, ((0, 0), (0, 0), (dh, 1 - dh), (dw, 1 - dw)))
            mats.append(wp.reshape(cout, -1).T)          # (Cin*36, Cout)
    return jnp.concatenate(mats, axis=1)                 # (Cin*36, 4*Cout)


def _build_conv2_toeplitz(w, b):
    """conv2 (OIHW 16x6x5x5) -> block-Toeplitz (1176, 1600) matrix that maps
    one image's flattened (14,14,6) stage-1 activations directly to the
    pre-pool conv2 outputs at all (4 pool offsets) x (25 pooled pos) x (16 ch).

    Row index    f  = (h*14 + w)*6 + cin
    Column index c  = k*400 + (ph*5 + pw)*16 + cout,  k = dh*2 + dw
    """
    w = np.asarray(w, np.float32)
    cout, cin, kh, kw = w.shape                          # 16, 6, 5, 5
    H = W = 14
    P = 5
    w_hwio = np.transpose(w, (2, 3, 1, 0))               # (5, 5, cin, cout)
    big = np.zeros((H, W, cin, 4, P * P, cout), np.float32)
    for dh in (0, 1):
        for dw in (0, 1):
            k = dh * 2 + dw
            for ph in range(P):
                for pw in range(P):
                    i, j = 2 * ph + dh, 2 * pw + dw
                    big[i:i + kh, j:j + kw, :, k, ph * P + pw, :] = w_hwio
    big = big.reshape(H * W * cin, 4 * P * P * cout)      # (1176, 1600)
    b_tiled = np.tile(np.asarray(b, np.float32), P * P).reshape(1, P * P * cout)
    return jnp.asarray(big), jnp.asarray(b_tiled)


def prepare_params(params):
    """One-time (outside the jitted forward) weight-layout preparation."""
    w1, b1 = params["conv1"]
    w2, b2 = params["conv2"]
    wf1, bf1 = params["fc1"]
    wf2, bf2 = params["fc2"]
    wf3, bf3 = params["fc3"]
    # PyTorch flattens conv2's pooled output as (C=16, H=5, W=5); the fused
    # kernel produces it (H, W, C), so permute fc1's input columns once here.
    wf1_hwc = wf1.reshape(120, 16, 5, 5).transpose(0, 2, 3, 1).reshape(120, -1)
    conv2_big, conv2_b = _build_conv2_toeplitz(w2, b2)
    return {
        "conv1_w": _embed_pool_windows_cat(w1), "conv1_b": b1.reshape(1, -1),
        "conv2_w": conv2_big, "conv2_b": conv2_b,
        "fc1_w": wf1_hwc.T, "fc1_b": bf1.reshape(1, -1),
        "fc2_w": wf2.T, "fc2_b": bf2.reshape(1, -1),
        "fc3_w": wf3.reshape(1, -1), "fc3_b": bf3.reshape(1, -1),
    }


# ----------------------------------------------------------------------------
# Forward pass (2 pallas_calls total)
# ----------------------------------------------------------------------------
def kernnet_forward(x, p):
    """x: (B, 1, 32, 32) NCHW float32 -> (B, 1)."""
    bsz = x.shape[0]

    # stage 1: conv1(1->6, 5x5) + ReLU + maxpool2x2, fused in one kernel.
    p1, ph, pw = _pool_window_patches(x)                     # (B*196, 36)
    y1 = conv1_pool_stage(p1, p["conv1_w"], p["conv1_b"])    # (B*196, 6)

    # (B*196, 6) -> (B, 14*14*6): row-major compatible (free reshape); feeds
    # the fused stage-2 kernel with lane-dense per-image rows.
    y1_rows = y1.reshape(bsz, ph * pw * 6)                   # (B, 1176)

    # stage 2 + FC head fused in ONE kernel: conv2+ReLU+pool as one
    # block-Toeplitz matmul + 4-way lane-group max, then fc1 -> fc2 -> fc3.
    return stage2_fc_head(y1_rows, p["conv2_w"], p["conv2_b"],
                          p["fc1_w"], p["fc1_b"], p["fc2_w"], p["fc2_b"],
                          p["fc3_w"], p["fc3_b"])


# ----------------------------------------------------------------------------
# Pure-JAX reference (PyTorch semantics) for a correctness check
# ----------------------------------------------------------------------------
def _reference_forward(x, params):
    hi = lax.Precision.HIGHEST

    def conv(x, wb):
        w, b = wb
        y = lax.conv_general_dilated(
            x, w, (1, 1), "VALID",
            dimension_numbers=("NCHW", "OIHW", "NCHW"), precision=hi)
        return y + b.reshape(1, -1, 1, 1)

    def pool(x):
        return lax.reduce_window(x, -jnp.inf, lax.max,
                                 (1, 1, 2, 2), (1, 1, 2, 2), "VALID")

    y = pool(jax.nn.relu(conv(x, params["conv1"])))
    y = pool(jax.nn.relu(conv(y, params["conv2"])))
    f = y.reshape(y.shape[0], -1)
    h = jax.nn.relu(jnp.dot(f, params["fc1"][0].T, precision=hi) + params["fc1"][1])
    h = jax.nn.relu(jnp.dot(h, params["fc2"][0].T, precision=hi) + params["fc2"][1])
    return jnp.dot(h, params["fc3"][0].T, precision=hi) + params["fc3"][1]


if __name__ == "__main__":
    key = jax.random.PRNGKey(0)
    k_param, k_x = jax.random.split(key)
    params = init_params(k_param)
    prepared = prepare_params(params)      # one-time weight prep, outside jit
    # KernNet's fc1 expects 16*5*5 features, implying 32x32 inputs; batch = 2.
    x = jax.random.normal(k_x, (2, 1, 32, 32), dtype=jnp.float32)

    out = jax.jit(kernnet_forward)(x, prepared)
    out = jax.block_until_ready(out)
    assert out.shape == (2, 1), out.shape

    ref = _reference_forward(x, params)
    assert jnp.allclose(out, ref, atol=3e-2, rtol=3e-2), (
        float(jnp.max(jnp.abs(out - ref))))
    print("KERNEL_OK")
</pallas_src>

<mosaic_0001>
module attributes {stable_mosaic.version = 11 : i64} {
  func.func @_stage2_fc_kernel(%arg0: i32, %arg1: memref<2x1176xf32, #tpu.memory_space<vmem>>, %arg2: memref<1176x1600xf32, #tpu.memory_space<vmem>>, %arg3: memref<1x400xf32, #tpu.memory_space<vmem>>, %arg4: memref<400x120xf32, #tpu.memory_space<vmem>>, %arg5: memref<1x120xf32, #tpu.memory_space<vmem>>, %arg6: memref<120x84xf32, #tpu.memory_space<vmem>>, %arg7: memref<1x84xf32, #tpu.memory_space<vmem>>, %arg8: memref<1x84xf32, #tpu.memory_space<vmem>>, %arg9: memref<1x1xf32, #tpu.memory_space<vmem>>, %arg10: memref<2x1xf32, #tpu.memory_space<vmem>>) attributes {dimension_semantics = [#tpu.dimension_semantics<parallel>], iteration_bounds = array<i64: 1>, scalar_prefetch = 0 : i64, scratch_operands = 0 : i64, tpu.core_type = #tpu.core_type<tc>, window_params = [{transform_indices = @transform_0, window_bounds = array<i64: 2, 1176>}, {pipeline_mode = #tpu.pipeline_mode<synchronous>, transform_indices = @transform_1, window_bounds = array<i64: 1176, 1600>}, {pipeline_mode = #tpu.pipeline_mode<synchronous>, transform_indices = @transform_2, window_bounds = array<i64: 1, 400>}, {pipeline_mode = #tpu.pipeline_mode<synchronous>, transform_indices = @transform_3, window_bounds = array<i64: 400, 120>}, {pipeline_mode = #tpu.pipeline_mode<synchronous>, transform_indices = @transform_4, window_bounds = array<i64: 1, 120>}, {pipeline_mode = #tpu.pipeline_mode<synchronous>, transform_indices = @transform_5, window_bounds = array<i64: 120, 84>}, {pipeline_mode = #tpu.pipeline_mode<synchronous>, transform_indices = @transform_6, window_bounds = array<i64: 1, 84>}, {pipeline_mode = #tpu.pipeline_mode<synchronous>, transform_indices = @transform_7, window_bounds = array<i64: 1, 84>}, {pipeline_mode = #tpu.pipeline_mode<synchronous>, transform_indices = @transform_8, window_bounds = array<i64: 1, 1>}, {transform_indices = @transform_9, window_bounds = array<i64: 2, 1>}]} {
    %c0 = arith.constant 0 : index
    %c0_0 = arith.constant 0 : index
    %0 = vector.load %arg1[%c0, %c0_0] : memref<2x1176xf32, #tpu.memory_space<vmem>>, vector<2x1176xf32>
    %c0_1 = arith.constant 0 : index
    %c0_2 = arith.constant 0 : index
    %1 = vector.load %arg2[%c0_1, %c0_2] : memref<1176x1600xf32, #tpu.memory_space<vmem>>, vector<1176x1600xf32>
    %cst = arith.constant dense<0.000000e+00> : vector<2x1600xf32>
    %2 = tpu.matmul %0, %1, %cst {dimension_numbers = #tpu.dot_dimension_numbers<[1], [0], [0], [1], [0, 0, 1, 1], [], []>} : vector<2x1176xf32>, vector<1176x1600xf32>, vector<2x1600xf32> -> vector<2x1600xf32>
    %3 = vector.extract_strided_slice %2 {offsets = [0, 0], sizes = [2, 400], strides = [1, 1]} : vector<2x1600xf32> to vector<2x400xf32>
    %4 = vector.extract_strided_slice %2 {offsets = [0, 400], sizes = [2, 400], strides = [1, 1]} : vector<2x1600xf32> to vector<2x400xf32>
    %5 = arith.maximumf %3, %4 : vector<2x400xf32>
    %6 = vector.extract_strided_slice %2 {offsets = [0, 800], sizes = [2, 400], strides = [1, 1]} : vector<2x1600xf32> to vector<2x400xf32>
    %7 = vector.extract_strided_slice %2 {offsets = [0, 1200], sizes = [2, 400], strides = [1, 1]} : vector<2x1600xf32> to vector<2x400xf32>
    %8 = arith.maximumf %6, %7 : vector<2x400xf32>
    %9 = arith.maximumf %5, %8 : vector<2x400xf32>
    %c0_3 = arith.constant 0 : index
    %c0_4 = arith.constant 0 : index
    %10 = vector.load %arg3[%c0_3, %c0_4] : memref<1x400xf32, #tpu.memory_space<vmem>>, vector<1x400xf32>
    %11 = vector.broadcast %10 : vector<1x400xf32> to vector<2x400xf32>
    %12 = arith.addf %9, %11 : vector<2x400xf32>
    %cst_5 = arith.constant 0.000000e+00 : f32
    %13 = vector.broadcast %cst_5 : f32 to vector<2x400xf32>
    %14 = arith.maximumf %12, %13 : vector<2x400xf32>
    %c0_6 = arith.constant 0 : index
    %c0_7 = arith.constant 0 : index
    %15 = vector.load %arg4[%c0_6, %c0_7] : memref<400x120xf32, #tpu.memory_space<vmem>>, vector<400x120xf32>
    %cst_8 = arith.constant dense<0.000000e+00> : vector<2x120xf32>
    %16 = tpu.matmul %14, %15, %cst_8 {dimension_numbers = #tpu.dot_dimension_numbers<[1], [0], [0], [1], [0, 0, 1, 1], [], []>} : vector<2x400xf32>, vector<400x120xf32>, vector<2x120xf32> -> vector<2x120xf32>
    %c0_9 = arith.constant 0 : index
    %c0_10 = arith.constant 0 : index
    %17 = vector.load %arg5[%c0_9, %c0_10] : memref<1x120xf32, #tpu.memory_space<vmem>>, vector<1x120xf32>
    %18 = vector.broadcast %17 : vector<1x120xf32> to vector<2x120xf32>
    %19 = arith.addf %16, %18 : vector<2x120xf32>
    %cst_11 = arith.constant 0.000000e+00 : f32
    %20 = vector.broadcast %cst_11 : f32 to vector<2x120xf32>
    %21 = arith.maximumf %19, %20 : vector<2x120xf32>
    %c0_12 = arith.constant 0 : index
    %c0_13 = arith.constant 0 : index
    %22 = vector.load %arg6[%c0_12, %c0_13] : memref<120x84xf32, #tpu.memory_space<vmem>>, vector<120x84xf32>
    %cst_14 = arith.constant dense<0.000000e+00> : vector<2x84xf32>
    %23 = tpu.matmul %21, %22, %cst_14 {dimension_numbers = #tpu.dot_dimension_numbers<[1], [0], [0], [1], [0, 0, 1, 1], [], []>} : vector<2x120xf32>, vector<120x84xf32>, vector<2x84xf32> -> vector<2x84xf32>
    %c0_15 = arith.constant 0 : index
    %c0_16 = arith.constant 0 : index
    %24 = vector.load %arg7[%c0_15, %c0_16] : memref<1x84xf32, #tpu.memory_space<vmem>>, vector<1x84xf32>
    %25 = vector.broadcast %24 : vector<1x84xf32> to vector<2x84xf32>
    %26 = arith.addf %23, %25 : vector<2x84xf32>
    %cst_17 = arith.constant 0.000000e+00 : f32
    %27 = vector.broadcast %cst_17 : f32 to vector<2x84xf32>
    %28 = arith.maximumf %26, %27 : vector<2x84xf32>
    %c0_18 = arith.constant 0 : index
    %c0_19 = arith.constant 0 : index
    %29 = vector.load %arg8[%c0_18, %c0_19] : memref<1x84xf32, #tpu.memory_space<vmem>>, vector<1x84xf32>
    %30 = vector.broadcast %29 : vector<1x84xf32> to vector<2x84xf32>
    %31 = arith.mulf %28, %30 : vector<2x84xf32>
    %cst_20 = arith.constant dense<0.000000e+00> : vector<2xf32>
    %32 = vector.multi_reduction <add>, %31, %cst_20 [1] : vector<2x84xf32> to vector<2xf32>
    %33 = vector.shape_cast %32 : vector<2xf32> to vector<2x1xf32>
    %c0_21 = arith.constant 0 : index
    %c0_22 = arith.constant 0 : index
    %34 = vector.load %arg9[%c0_21, %c0_22] : memref<1x1xf32, #tpu.memory_space<vmem>>, vector<1x1xf32>
    %35 = vector.broadcast %34 : vector<1x1xf32> to vector<2x1xf32>
    %36 = arith.addf %33, %35 : vector<2x1xf32>
    %c0_23 = arith.constant 0 : index
    %c0_24 = arith.constant 0 : index
    %37 = vector.load %arg10[%c0_23, %c0_24] : memref<2x1xf32, #tpu.memory_space<vmem>>, vector<2x1xf32>
    tpu.vector_store %arg10[%c0_23, %c0_24], %36 {strides = array<i32>} : memref<2x1xf32, #tpu.memory_space<vmem>>, vector<2x1xf32>,
    return
  }
  func.func @transform_0(%arg0: i32) -> (i32, i32) {
    %c0_i32 = arith.constant 0 : i32
    %c0_i32_0 = arith.constant 0 : i32
    return %arg0, %c0_i32 : i32, i32
  }
  func.func @transform_1(%arg0: i32) -> (i32, i32) {
    %c0_i32 = arith.constant 0 : i32
    %c0_i32_0 = arith.constant 0 : i32
    %c0_i32_1 = arith.constant 0 : i32
    return %c0_i32, %c0_i32_0 : i32, i32
  }
  func.func @transform_2(%arg0: i32) -> (i32, i32) {
    %c0_i32 = arith.constant 0 : i32
    %c0_i32_0 = arith.constant 0 : i32
    %c0_i32_1 = arith.constant 0 : i32
    return %c0_i32, %c0_i32_0 : i32, i32
  }
  func.func @transform_3(%arg0: i32) -> (i32, i32) {
    %c0_i32 = arith.constant 0 : i32
    %c0_i32_0 = arith.constant 0 : i32
    %c0_i32_1 = arith.constant 0 : i32
    return %c0_i32, %c0_i32_0 : i32, i32
  }
  func.func @transform_4(%arg0: i32) -> (i32, i32) {
    %c0_i32 = arith.constant 0 : i32
    %c0_i32_0 = arith.constant 0 : i32
    %c0_i32_1 = arith.constant 0 : i32
    return %c0_i32, %c0_i32_0 : i32, i32
  }
  func.func @transform_5(%arg0: i32) -> (i32, i32) {
    %c0_i32 = arith.constant 0 : i32
    %c0_i32_0 = arith.constant 0 : i32
    %c0_i32_1 = arith.constant 0 : i32
    return %c0_i32, %c0_i32_0 : i32, i32
  }
  func.func @transform_6(%arg0: i32) -> (i32, i32) {
    %c0_i32 = arith.constant 0 : i32
    %c0_i32_0 = arith.constant 0 : i32
    %c0_i32_1 = arith.constant 0 : i32
    return %c0_i32, %c0_i32_0 : i32, i32
  }
  func.func @transform_7(%arg0: i32) -> (i32, i32) {
    %c0_i32 = arith.constant 0 : i32
    %c0_i32_0 = arith.constant 0 : i32
    %c0_i32_1 = arith.constant 0 : i32
    return %c0_i32, %c0_i32_0 : i32, i32
  }
  func.func @transform_8(%arg0: i32) -> (i32, i32) {
    %c0_i32 = arith.constant 0 : i32
    %c0_i32_0 = arith.constant 0 : i32
    %c0_i32_1 = arith.constant 0 : i32
    return %c0_i32, %c0_i32_0 : i32, i32
  }
  func.func @transform_9(%arg0: i32) -> (i32, i32) {
    %c0_i32 = arith.constant 0 : i32
    %c0_i32_0 = arith.constant 0 : i32
    return %arg0, %c0_i32 : i32, i32
  }
}

module attributes {stable_mosaic.version = 11 : i64} {
  func.func @_conv1_pool_kernel(%arg0: i32, %arg1: memref<392x36xf32, #tpu.memory_space<vmem>>, %arg2: memref<36x24xf32, #tpu.memory_space<vmem>>, %arg3: memref<1x6xf32, #tpu.memory_space<vmem>>, %arg4: memref<392x6xf32, #tpu.memory_space<vmem>>) attributes {dimension_semantics = [#tpu.dimension_semantics<parallel>], iteration_bounds = array<i64: 1>, scalar_prefetch = 0 : i64, scratch_operands = 0 : i64, tpu.core_type = #tpu.core_type<tc>, window_params = [{transform_indices = @transform_0, window_bounds = array<i64: 392, 36>}, {pipeline_mode = #tpu.pipeline_mode<synchronous>, transform_indices = @transform_1, window_bounds = array<i64: 36, 24>}, {pipeline_mode = #tpu.pipeline_mode<synchronous>, transform_indices = @transform_2, window_bounds = array<i64: 1, 6>}, {transform_indices = @transform_3, window_bounds = array<i64: 392, 6>}]} {
    %c0 = arith.constant 0 : index
    %c0_0 = arith.constant 0 : index
    %0 = vector.load %arg1[%c0, %c0_0] : memref<392x36xf32, #tpu.memory_space<vmem>>, vector<392x36xf32>
    %c0_1 = arith.constant 0 : index
    %c0_2 = arith.constant 0 : index
    %1 = vector.load %arg2[%c0_1, %c0_2] : memref<36x24xf32, #tpu.memory_space<vmem>>, vector<36x24xf32>
    %cst = arith.constant dense<0.000000e+00> : vector<392x24xf32>
    %2 = tpu.matmul %0, %1, %cst {dimension_numbers = #tpu.dot_dimension_numbers<[1], [0], [0], [1], [0, 0, 1, 1], [], []>} : vector<392x36xf32>, vector<36x24xf32>, vector<392x24xf32> -> vector<392x24xf32>
    %3 = vector.extract_strided_slice %2 {offsets = [0, 0], sizes = [392, 6], strides = [1, 1]} : vector<392x24xf32> to vector<392x6xf32>
    %4 = vector.extract_strided_slice %2 {offsets = [0, 6], sizes = [392, 6], strides = [1, 1]} : vector<392x24xf32> to vector<392x6xf32>
    %5 = arith.maximumf %3, %4 : vector<392x6xf32>
    %6 = vector.extract_strided_slice %2 {offsets = [0, 12], sizes = [392, 6], strides = [1, 1]} : vector<392x24xf32> to vector<392x6xf32>
    %7 = vector.extract_strided_slice %2 {offsets = [0, 18], sizes = [392, 6], strides = [1, 1]} : vector<392x24xf32> to vector<392x6xf32>
    %8 = arith.maximumf %6, %7 : vector<392x6xf32>
    %9 = arith.maximumf %5, %8 : vector<392x6xf32>
    %c0_3 = arith.constant 0 : index
    %c0_4 = arith.constant 0 : index
    %10 = vector.load %arg3[%c0_3, %c0_4] : memref<1x6xf32, #tpu.memory_space<vmem>>, vector<1x6xf32>
    %11 = vector.broadcast %10 : vector<1x6xf32> to vector<392x6xf32>
    %12 = arith.addf %9, %11 : vector<392x6xf32>
    %cst_5 = arith.constant 0.000000e+00 : f32
    %13 = vector.broadcast %cst_5 : f32 to vector<392x6xf32>
    %14 = arith.maximumf %12, %13 : vector<392x6xf32>
    %c0_6 = arith.constant 0 : index
    %c0_7 = arith.constant 0 : index
    %15 = vector.load %arg4[%c0_6, %c0_7] : memref<392x6xf32, #tpu.memory_space<vmem>>, vector<392x6xf32>
    tpu.vector_store %arg4[%c0_6, %c0_7], %14 {strides = array<i32>} : memref<392x6xf32, #tpu.memory_space<vmem>>, vector<392x6xf32>,
    return
  }
  func.func @transform_0(%arg0: i32) -> (i32, i32) {
    %c0_i32 = arith.constant 0 : i32
    %c0_i32_0 = arith.constant 0 : i32
    return %arg0, %c0_i32 : i32, i32
  }
  func.func @transform_1(%arg0: i32) -> (i32, i32) {
    %c0_i32 = arith.constant 0 : i32
    %c0_i32_0 = arith.constant 0 : i32
    %c0_i32_1 = arith.constant 0 : i32
    return %c0_i32, %c0_i32_0 : i32, i32
  }
  func.func @transform_2(%arg0: i32) -> (i32, i32) {
    %c0_i32 = arith.constant 0 : i32
    %c0_i32_0 = arith.constant 0 : i32
    %c0_i32_1 = arith.constant 0 : i32
    return %c0_i32, %c0_i32_0 : i32, i32
  }
  func.func @transform_3(%arg0: i32) -> (i32, i32) {
    %c0_i32 = arith.constant 0 : i32
    %c0_i32_0 = arith.constant 0 : i32
    return %arg0, %c0_i32 : i32, i32
  }
}

</mosaic_0001>

<bundles_post_ra>
// kernel: kernnet_forward.2
= control target key start
LH: loop header
LB: loop body
LE: loop exit
PB: predicated region body
PF: predicated region fallthrough
CT: control target
= control target key end

     0   :  { %8 = vsyncpa [#allocation3], 0  ;;  %s1491_s12 = smov [#allocation2]   ;;  %s2575_s0 = inlined_call_operand.vmem [shape: f32[392,36], index: 0, kind: input, shape index: {}]   ;;  %s2576_s1 = inlined_call_operand.vmem [shape: f32[36,24], index: 1, kind: input, shape index: {}]   ;;  %s2577_s2 = inlined_call_operand.hbm [shape: f32[1,6], index: 2, kind: input, shape index: {}]   ;;  %s2578_s3 = inlined_call_operand.vmem [shape: f32[392,6], index: 3, kind: output, shape index: {}]  }
   0x1   :  { %s19_s13 = sshll.u32 %s1491_s12, 4  ;;  %s20_s13 = int_to_ptr.vmem [resolvable:$true] %s19_s13 }
   0x2   :  { %s1477_s14 = scalar_lea.vmem %s20_s13, 16  ;;  %s1481_s15 = scalar_lea.vmem %s20_s13, 32 }
   0x3   :  { %p1478_p0 = scmp.ne.s32.totalorder %s20_s13, %s1477_s14  ;;  %p1482_p1 = scmp.lt.s32.totalorder %s20_s13, %s20_s13 }
   0x4   :  { %p1483_p2 = scmp.lt.s32.totalorder %s1481_s15, %s1477_s14 }
   0x6   :  { %p1484_p3 = por %p1483_p2, %p1482_p1 }
   0x8   :  { %p1485_p4 = pnand %p1484_p3, %p1478_p0 }
   0xa   :  { %1488 = shalt.err (!%p1485_p4)
}
   0xb   :  { %22 = dma.hbm_to_vmem [thread:$0]  %s2577_s2, 16, %s20_s13, [#allocation3]  }
   0xc   :  { %1489 = dma.done.wait [#allocation3], 16  }
   0xd   :  { %1490 = vsyncadd [#allocation3], 4294967280  ;;  %v1492_v0 = vmov 0.0   ;;  %vm1493_vm0 = vmmov 0   ;;  %vm228_vm1 = vcmask 1043456   ;;  %v78_v2 = vld [vmem:[%s2576_s1 + $0x18] sm:$0xff] }
   0xe   :  { %1297 = vmatprep.subr.mxu0 %v1492_v0  ;;  %1454 = vmatprep.subr.mxu1 %v1492_v0  ;;  %v79_v1 = vld [vmem:[%s2576_s1 + $0x20] sm:$0xf]  ;;  %v77_v3 = vld [vmem:[%s2576_s1 + $0x10] sm:$0xff]  ;;  %v76_v4 = vld [vmem:[%s2576_s1 + $0x8] sm:$0xff]  ;;  %vm80_vm2 = vcmask 293888   ;;  %s1494_s10 = smov 122  }
   0xf   :  { %1307 = vmatprep.mubr.msk.f32.mxu0 %vm1493_vm0, %v1492_v0  ;;  %1382 = vmatprep.mubr.msk.f32.mxu1 %vm1493_vm0, %v1492_v0  ;;  %v75_v5 = vld [vmem:[%s2576_s1] sm:$0xff]  ;;  %v51_v7 = vld [vmem:[%s2575_s0 + $0xc8] sm:$0xff]  ;;  %v52_v9 = vld [vmem:[%s2575_s0 + $0xd0] sm:$0xff]  ;;  %vm1137_vm3 = vcmask 48128  }
  0x10   :  { %1298 = vmatpush3.msk.msra.mxu0 %vm228_vm1, %v79_v1  ;;  %1459 = vmatpush3.msk.msra.mxu1 %vm228_vm1, %v79_v1  ;;  %v26_v6 = vld [vmem:[%s2575_s0] sm:$0xff]  ;;  %v27_v8 = vld [vmem:[%s2575_s0 + $0x8] sm:$0xff]  ;;  %v28_v10 = vld [vmem:[%s2575_s0 + $0x10] sm:$0xff] }
  0x11   :  { %1299 = vmatprep.subr.mxu0 %v1492_v0  ;;  %1455 = vmatprep.subr.mxu1 %v1492_v0  ;;  %v53_v11 = vld [vmem:[%s2575_s0 + $0xd8] sm:$0xff]  ;;  %v54_v13 = vld [vmem:[%s2575_s0 + $0xe0] sm:$0xff]  ;;  %v55_v15 = vld [vmem:[%s2575_s0 + $0xe8] sm:$0xff] }
  0x12   :  { %1300 = vmatpush3.msra.mxu0 %v78_v2  ;;  %1460 = vmatpush3.msra.mxu1 %v78_v2  ;;  %v29_v12 = vld [vmem:[%s2575_s0 + $0x18] sm:$0xff]  ;;  %v30_v14 = vld [vmem:[%s2575_s0 + $0x20] sm:$0xff]  ;;  %v31_v16 = vld [vmem:[%s2575_s0 + $0x28] sm:$0xff] }
  0x13   :  { %1301 = vmatprep.subr.mxu0 %v1492_v0  ;;  %1456 = vmatprep.subr.mxu1 %v1492_v0  ;;  %v56_v17 = vld [vmem:[%s2575_s0 + $0xf0] sm:$0xff]  ;;  %v57_v19 = vld [vmem:[%s2575_s0 + $0xf8] sm:$0xff]  ;;  %v58_v21 = vld [vmem:[%s2575_s0 + $0x100] sm:$0xff] }
  0x14   :  { %1302 = vmatpush3.msra.mxu0 %v77_v3  ;;  %1461 = vmatpush3.msra.mxu1 %v77_v3  ;;  %v32_v18 = vld [vmem:[%s2575_s0 + $0x30] sm:$0xff]  ;;  %v33_v20 = vld [vmem:[%s2575_s0 + $0x38] sm:$0xff]  ;;  %v34_v22 = vld [vmem:[%s2575_s0 + $0x40] sm:$0xff] }
  0x15   :  { %1303 = vmatprep.subr.mxu0 %v1492_v0  ;;  %1457 = vmatprep.subr.mxu1 %v1492_v0  ;;  %v59_v23 = vld [vmem:[%s2575_s0 + $0x108] sm:$0xff]  ;;  %v60_v25 = vld [vmem:[%s2575_s0 + $0x110] sm:$0xff]  ;;  %v61_v27 = vld [vmem:[%s2575_s0 + $0x118] sm:$0xff] }
  0x16   :  { %1304 = vmatpush3.msra.mxu0 %v76_v4  ;;  %1462 = vmatpush3.msra.mxu1 %v76_v4  ;;  %v35_v24 = vld [vmem:[%s2575_s0 + $0x48] sm:$0xff]  ;;  %v36_v26 = vld [vmem:[%s2575_s0 + $0x50] sm:$0xff]  ;;  %v37_v28 = vld [vmem:[%s2575_s0 + $0x58] sm:$0xff] }
  0x17   :  { %1305 = vmatprep.subr.mxu0 %v1492_v0  ;;  %1458 = vmatprep.subr.mxu1 %v1492_v0  ;;  %v62_v29 = vld [vmem:[%s2575_s0 + $0x120] sm:$0xff]  ;;  %v63_v31 = vld [vmem:[%s2575_s0 + $0x128] sm:$0xff]  ;;  %v64_v33 = vld [vmem:[%s2575_s0 + $0x130] sm:$0xff] }
  0x18   :  { %1306 = vmatpush3.msra.mxu0 %v75_v5  ;;  %1463 = vmatpush3.msra.mxu1 %v75_v5  ;;  %v38_v30 = vld [vmem:[%s2575_s0 + $0x60] sm:$0xff]  ;;  %v39_v32 = vld [vmem:[%s2575_s0 + $0x68] sm:$0xff]  ;;  %v40_v34 = vld [vmem:[%s2575_s0 + $0x70] sm:$0xff] }
  0x19   :  { %1308 = vmatmul.mubr.msk.f32.vlgmr.msra.gmra.mxu0 %vm80_vm2, %v26_v6  ;;  %1383 = vmatmul.mubr.msk.f32.vlgmr.msra.gmra.mxu1 %vm80_vm2, %v51_v7  ;;  %v65_v35 = vld [vmem:[%s2575_s0 + $0x138] sm:$0xff]  ;;  %v66_v37 = vld [vmem:[%s2575_s0 + $0x140] sm:$0xff]  ;;  %v67_v39 = vld [vmem:[%s2575_s0 + $0x148] sm:$0xff] }
  0x1a   :  { %1310 = vmatprep.mubr.msk.f32.mxu0 %vm1493_vm0, %v1492_v0  ;;  %1385 = vmatprep.mubr.msk.f32.mxu1 %vm1493_vm0, %v1492_v0  ;;  %v41_v36 = vld [vmem:[%s2575_s0 + $0x78] sm:$0xff]  ;;  %v42_v38 = vld [vmem:[%s2575_s0 + $0x80] sm:$0xff]  ;;  %v43_v40 = vld [vmem:[%s2575_s0 + $0x88] sm:$0xff] }
  0x1b   :  { %v68_v41 = vld [vmem:[%s2575_s0 + $0x150] sm:$0xff]  ;;  %v69_v43 = vld [vmem:[%s2575_s0 + $0x158] sm:$0xff]  ;;  %v70_v45 = vld [vmem:[%s2575_s0 + $0x160] sm:$0xff] }
  0x1c   :  { %v44_v42 = vld [vmem:[%s2575_s0 + $0x90] sm:$0xff]  ;;  %v45_v44 = vld [vmem:[%s2575_s0 + $0x98] sm:$0xff]  ;;  %v46_v46 = vld [vmem:[%s2575_s0 + $0xa0] sm:$0xff] }
  0x1d   :  { %1311 = vmatmul.mubr.msk.f32.gmra.mxu0 %vm80_vm2, %v27_v8  ;;  %1386 = vmatmul.mubr.msk.f32.gmra.mxu1 %vm80_vm2, %v52_v9  ;;  %v71_v47 = vld [vmem:[%s2575_s0 + $0x168] sm:$0xff]  ;;  %v72_v49 = vld [vmem:[%s2575_s0 + $0x170] sm:$0xff]  ;;  %v73_v51 = vld [vmem:[%s2575_s0 + $0x178] sm:$0xff] }
  0x1e   :  { %1313 = vmatprep.mubr.msk.f32.mxu0 %vm1493_vm0, %v1492_v0  ;;  %1388 = vmatprep.mubr.msk.f32.mxu1 %vm1493_vm0, %v1492_v0  ;;  %v47_v48 = vld [vmem:[%s2575_s0 + $0xa8] sm:$0xff]  ;;  %v48_v50 = vld [vmem:[%s2575_s0 + $0xb0] sm:$0xff]  ;;  %v49_v52 = vld [vmem:[%s2575_s0 + $0xb8] sm:$0xff] }
  0x1f   :  { %v74_v53 = vld [vmem:[%s2575_s0 + $0x180] sm:$0xff] }
  0x20   :  { %v50_v54 = vld [vmem:[%s2575_s0 + $0xc0] sm:$0xff]  ;;  %s1495_s0 = smov 116  }
  0x21   :  { %1314 = vmatmul.mubr.msk.f32.gmra.mxu0 %vm80_vm2, %v28_v10  ;;  %1389 = vmatmul.mubr.msk.f32.gmra.mxu1 %vm80_vm2, %v53_v11 }
  0x22   :  { %1316 = vmatprep.mubr.msk.f32.mxu0 %vm1493_vm0, %v1492_v0  ;;  %1391 = vmatprep.mubr.msk.f32.mxu1 %vm1493_vm0, %v1492_v0 }
  0x25   :  { %1317 = vmatmul.mubr.msk.f32.gmra.mxu0 %vm80_vm2, %v29_v12  ;;  %1392 = vmatmul.mubr.msk.f32.gmra.mxu1 %vm80_vm2, %v54_v13 }
  0x26   :  { %1319 = vmatprep.mubr.msk.f32.mxu0 %vm1493_vm0, %v1492_v0  ;;  %1394 = vmatprep.mubr.msk.f32.mxu1 %vm1493_vm0, %v1492_v0 }
  0x29   :  { %1320 = vmatmul.mubr.msk.f32.gmra.mxu0 %vm80_vm2, %v30_v14  ;;  %1395 = vmatmul.mubr.msk.f32.gmra.mxu1 %vm80_vm2, %v55_v15 }
  0x2a   :  { %1322 = vmatprep.mubr.msk.f32.mxu0 %vm1493_vm0, %v1492_v0  ;;  %1397 = vmatprep.mubr.msk.f32.mxu1 %vm1493_vm0, %v1492_v0 }
  0x2d   :  { %1323 = vmatmul.mubr.msk.f32.gmra.mxu0 %vm80_vm2, %v31_v16  ;;  %1398 = vmatmul.mubr.msk.f32.gmra.mxu1 %vm80_vm2, %v56_v17 }
  0x2e   :  { %1325 = vmatprep.mubr.msk.f32.mxu0 %vm1493_vm0, %v1492_v0  ;;  %1400 = vmatprep.mubr.msk.f32.mxu1 %vm1493_vm0, %v1492_v0 }
  0x31   :  { %1326 = vmatmul.mubr.msk.f32.gmra.mxu0 %vm80_vm2, %v32_v18  ;;  %1401 = vmatmul.mubr.msk.f32.gmra.mxu1 %vm80_vm2, %v57_v19 }
  0x32   :  { %1328 = vmatprep.mubr.msk.f32.mxu0 %vm1493_vm0, %v1492_v0  ;;  %1403 = vmatprep.mubr.msk.f32.mxu1 %vm1493_vm0, %v1492_v0 }
  0x35   :  { %1329 = vmatmul.mubr.msk.f32.gmra.mxu0 %vm80_vm2, %v33_v20  ;;  %1404 = vmatmul.mubr.msk.f32.gmra.mxu1 %vm80_vm2, %v58_v21 }
  0x36   :  { %1331 = vmatprep.mubr.msk.f32.mxu0 %vm1493_vm0, %v1492_v0  ;;  %1406 = vmatprep.mubr.msk.f32.mxu1 %vm1493_vm0, %v1492_v0 }
  0x39   :  { %1332 = vmatmul.mubr.msk.f32.gmra.mxu0 %vm80_vm2, %v34_v22  ;;  %1407 = vmatmul.mubr.msk.f32.gmra.mxu1 %vm80_vm2, %v59_v23 }
  0x3a   :  { %1334 = vmatprep.mubr.msk.f32.mxu0 %vm1493_vm0, %v1492_v0  ;;  %1409 = vmatprep.mubr.msk.f32.mxu1 %vm1493_vm0, %v1492_v0 }
  0x3d   :  { %1335 = vmatmul.mubr.msk.f32.gmra.mxu0 %vm80_vm2, %v35_v24  ;;  %1410 = vmatmul.mubr.msk.f32.gmra.mxu1 %vm80_vm2, %v60_v25 }
  0x3e   :  { %1337 = vmatprep.mubr.msk.f32.mxu0 %vm1493_vm0, %v1492_v0  ;;  %1412 = vmatprep.mubr.msk.f32.mxu1 %vm1493_vm0, %v1492_v0 }
  0x41   :  { %1338 = vmatmul.mubr.msk.f32.gmra.mxu0 %vm80_vm2, %v36_v26  ;;  %1413 = vmatmul.mubr.msk.f32.gmra.mxu1 %vm80_vm2, %v61_v27 }
  0x42   :  { %1340 = vmatprep.mubr.msk.f32.mxu0 %vm1493_vm0, %v1492_v0  ;;  %1415 = vmatprep.mubr.msk.f32.mxu1 %vm1493_vm0, %v1492_v0 }
  0x45   :  { %1341 = vmatmul.mubr.msk.f32.gmra.mxu0 %vm80_vm2, %v37_v28  ;;  %1416 = vmatmul.mubr.msk.f32.gmra.mxu1 %vm80_vm2, %v62_v29 }
  0x46   :  { %1343 = vmatprep.mubr.msk.f32.mxu0 %vm1493_vm0, %v1492_v0  ;;  %1418 = vmatprep.mubr.msk.f32.mxu1 %vm1493_vm0, %v1492_v0 }
  0x49   :  { %1344 = vmatmul.mubr.msk.f32.gmra.mxu0 %vm80_vm2, %v38_v30  ;;  %1419 = vmatmul.mubr.msk.f32.gmra.mxu1 %vm80_vm2, %v63_v31 }
  0x4a   :  { %1346 = vmatprep.mubr.msk.f32.mxu0 %vm1493_vm0, %v1492_v0  ;;  %1421 = vmatprep.mubr.msk.f32.mxu1 %vm1493_vm0, %v1492_v0 }
  0x4d   :  { %1347 = vmatmul.mubr.msk.f32.gmra.mxu0 %vm80_vm2, %v39_v32  ;;  %1422 = vmatmul.mubr.msk.f32.gmra.mxu1 %vm80_vm2, %v64_v33 }
  0x4e   :  { %1349 = vmatprep.mubr.msk.f32.mxu0 %vm1493_vm0, %v1492_v0  ;;  %1424 = vmatprep.mubr.msk.f32.mxu1 %vm1493_vm0, %v1492_v0 }
  0x51   :  { %1350 = vmatmul.mubr.msk.f32.gmra.mxu0 %vm80_vm2, %v40_v34  ;;  %1425 = vmatmul.mubr.msk.f32.gmra.mxu1 %vm80_vm2, %v65_v35 }
  0x52   :  { %1352 = vmatprep.mubr.msk.f32.mxu0 %vm1493_vm0, %v1492_v0  ;;  %1427 = vmatprep.mubr.msk.f32.mxu1 %vm1493_vm0, %v1492_v0 }
  0x55   :  { %1353 = vmatmul.mubr.msk.f32.gmra.mxu0 %vm80_vm2, %v41_v36  ;;  %1428 = vmatmul.mubr.msk.f32.gmra.mxu1 %vm80_vm2, %v66_v37 }
  0x56   :  { %1355 = vmatprep.mubr.msk.f32.mxu0 %vm1493_vm0, %v1492_v0  ;;  %1430 = vmatprep.mubr.msk.f32.mxu1 %vm1493_vm0, %v1492_v0 }
  0x59   :  { %1356 = vmatmul.mubr.msk.f32.gmra.mxu0 %vm80_vm2, %v42_v38  ;;  %1431 = vmatmul.mubr.msk.f32.gmra.mxu1 %vm80_vm2, %v67_v39 }
  0x5a   :  { %1358 = vmatprep.mubr.msk.f32.mxu0 %vm1493_vm0, %v1492_v0  ;;  %1433 = vmatprep.mubr.msk.f32.mxu1 %vm1493_vm0, %v1492_v0 }
  0x5d   :  { %1359 = vmatmul.mubr.msk.f32.gmra.mxu0 %vm80_vm2, %v43_v40  ;;  %1434 = vmatmul.mubr.msk.f32.gmra.mxu1 %vm80_vm2, %v68_v41 }
  0x5e   :  { %1361 = vmatprep.mubr.msk.f32.mxu0 %vm1493_vm0, %v1492_v0  ;;  %1436 = vmatprep.mubr.msk.f32.mxu1 %vm1493_vm0, %v1492_v0 }
  0x61   :  { %1362 = vmatmul.mubr.msk.f32.gmra.mxu0 %vm80_vm2, %v44_v42  ;;  %1437 = vmatmul.mubr.msk.f32.gmra.mxu1 %vm80_vm2, %v69_v43 }
  0x62   :  { %1364 = vmatprep.mubr.msk.f32.mxu0 %vm1493_vm0, %v1492_v0  ;;  %1439 = vmatprep.mubr.msk.f32.mxu1 %vm1493_vm0, %v1492_v0 }
  0x65   :  { %1365 = vmatmul.mubr.msk.f32.gmra.mxu0 %vm80_vm2, %v45_v44  ;;  %1440 = vmatmul.mubr.msk.f32.gmra.mxu1 %vm80_vm2, %v70_v45 }
  0x66   :  { %1367 = vmatprep.mubr.msk.f32.mxu0 %vm1493_vm0, %v1492_v0  ;;  %1442 = vmatprep.mubr.msk.f32.mxu1 %vm1493_vm0, %v1492_v0 }
  0x69   :  { %1368 = vmatmul.mubr.msk.f32.gmra.mxu0 %vm80_vm2, %v46_v46  ;;  %1443 = vmatmul.mubr.msk.f32.gmra.mxu1 %vm80_vm2, %v71_v47 }
  0x6a   :  { %1370 = vmatprep.mubr.msk.f32.mxu0 %vm1493_vm0, %v1492_v0  ;;  %1445 = vmatprep.mubr.msk.f32.mxu1 %vm1493_vm0, %v1492_v0 }
  0x6d   :  { %1371 = vmatmul.mubr.msk.f32.gmra.mxu0 %vm80_vm2, %v47_v48  ;;  %1446 = vmatmul.mubr.msk.f32.gmra.mxu1 %vm80_vm2, %v72_v49 }
  0x6e   :  { %1373 = vmatprep.mubr.msk.f32.mxu0 %vm1493_vm0, %v1492_v0  ;;  %1448 = vmatprep.mubr.msk.f32.mxu1 %vm1493_vm0, %v1492_v0 }
  0x71   :  { %1374 = vmatmul.mubr.msk.f32.gmra.mxu0 %vm80_vm2, %v48_v50  ;;  %1449 = vmatmul.mubr.msk.f32.gmra.mxu1 %vm80_vm2, %v73_v51 }
  0x72   :  { %1376 = vmatprep.mubr.msk.f32.mxu0 %vm1493_vm0, %v1492_v0  ;;  %1451 = vmatprep.mubr.msk.f32.mxu1 %vm1493_vm0, %v1492_v0 }
  0x75   :  { %1377 = vmatmul.mubr.msk.f32.gmra.mxu0 %vm80_vm2, %v49_v52  ;;  %1452 = vmatmul.mubr.msk.f32.gmra.mxu1 %vm80_vm2, %v74_v53 }
  0x76   :  { %1379 = vmatprep.mubr.msk.f32.mxu0 %vm1493_vm0, %v1492_v0 }
  0x79   :  { %1380 = vmatmul.mubr.msk.f32.gmra.mxu0 %vm80_vm2, %v50_v54 }
  0xd9   :  { %v1838_v55 = vpop.f32.mrf.mxu0  ;;  %v1840_v56 = vpop.f32.mrf.mxu1 }
  0xda   :  { %641 = vrot.lane.b32.xlu1 %v1840_v56, %s1494_s10  ;;  %591 = vrot.lane.b32.xlu0 %v1838_v55, %s1494_s10 }
  0xdb   :  { %v1309_v57 = vpop.f32.mrf.mxu0  ;;  %v1384_v58 = vpop.f32.mrf.mxu1 }
  0xdd   :  { %v1846_v59 = vpop.f32.mrf.mxu0  ;;  %v1848_v60 = vpop.f32.mrf.mxu1 }
  0xde   :  { %593 = vrot.lane.b32.xlu0 %v1846_v59, %s1494_s10 }
  0xdf   :  { %v1312_v61 = vpop.f32.mrf.mxu0  ;;  %v1387_v62 = vpop.f32.mrf.mxu1 }
  0xe1   :  { %v1852_v63 = vpop.f32.mrf.mxu0  ;;  %v1854_v0 = vpop.f32.mrf.mxu1 }
  0xe2   :  { %643 = vrot.lane.b32.xlu0 %v1848_v60, %s1494_s10  ;;  %595 = vrot.lane.b32.xlu1 %v1852_v63, %s1494_s10 }
  0xe3   :  { %v1315_v1 = vpop.f32.mrf.mxu0  ;;  %v1390_v2 = vpop.f32.mrf.mxu1 }
  0xe5   :  { %v1860_v3 = vpop.f32.mrf.mxu0  ;;  %v1862_v4 = vpop.f32.mrf.mxu1 }
  0xe6   :  { %647 = vrot.lane.b32.xlu0 %v1862_v4, %s1494_s10  ;;  %645 = vrot.lane.b32.xlu1 %v1854_v0, %s1494_s10 }
  0xe7   :  { %v1318_v5 = vpop.f32.mrf.mxu0  ;;  %v1393_v6 = vpop.f32.mrf.mxu1 }
  0xe9   :  { %v1868_v7 = vpop.f32.mrf.mxu0  ;;  %v1870_v8 = vpop.f32.mrf.mxu1 }
  0xea   :  { %597 = vrot.lane.b32.xlu1 %v1860_v3, %s1494_s10  ;;  %599 = vrot.lane.b32.xlu0 %v1868_v7, %s1494_s10 }
  0xeb   :  { %v1321_v9 = vpop.f32.mrf.mxu0  ;;  %v1396_v10 = vpop.f32.mrf.mxu1 }
  0xed   :  { %v1876_v11 = vpop.f32.mrf.mxu0  ;;  %v1878_v12 = vpop.f32.mrf.mxu1 }
  0xee   :  { %649 = vrot.lane.b32.xlu1 %v1870_v8, %s1494_s10  ;;  %651 = vrot.lane.b32.xlu0 %v1878_v12, %s1494_s10 }
  0xef   :  { %v1324_v13 = vpop.f32.mrf.mxu0  ;;  %v1399_v14 = vpop.f32.mrf.mxu1 }
  0xf1   :  { %v1884_v15 = vpop.f32.mrf.mxu0  ;;  %v1886_v16 = vpop.f32.mrf.mxu1 }
  0xf2   :  { %601 = vrot.lane.b32.xlu1 %v1876_v11, %s1494_s10  ;;  %603 = vrot.lane.b32.xlu0 %v1884_v15, %s1494_s10 }
  0xf3   :  { %v1327_v17 = vpop.f32.mrf.mxu0  ;;  %v1402_v18 = vpop.f32.mrf.mxu1 }
  0xf5   :  { %v1892_v19 = vpop.f32.mrf.mxu0  ;;  %v1894_v20 = vpop.f32.mrf.mxu1 }
  0xf6   :  { %653 = vrot.lane.b32.xlu1 %v1886_v16, %s1494_s10  ;;  %655 = vrot.lane.b32.xlu0 %v1894_v20, %s1494_s10 }
  0xf7   :  { %v1330_v21 = vpop.f32.mrf.mxu0  ;;  %v1405_v22 = vpop.f32.mrf.mxu1 }
  0xf9   :  { %v1900_v23 = vpop.f32.mrf.mxu0  ;;  %v1902_v24 = vpop.f32.mrf.mxu1 }
  0xfa   :  { %605 = vrot.lane.b32.xlu1 %v1892_v19, %s1494_s10  ;;  %607 = vrot.lane.b32.xlu0 %v1900_v23, %s1494_s10 }
  0xfb   :  { %v1333_v25 = vpop.f32.mrf.mxu0  ;;  %v1408_v26 = vpop.f32.mrf.mxu1 }
  0xfd   :  { %v1908_v27 = vpop.f32.mrf.mxu0  ;;  %v1910_v28 = vpop.f32.mrf.mxu1 }
  0xfe   :  { %657 = vrot.lane.b32.xlu1 %v1902_v24, %s1494_s10  ;;  %659 = vrot.lane.b32.xlu0 %v1910_v28, %s1494_s10 }
  0xff   :  { %v1336_v29 = vpop.f32.mrf.mxu0  ;;  %v1411_v30 = vpop.f32.mrf.mxu1 }
 0x101   :  { %v1916_v31 = vpop.f32.mrf.mxu0  ;;  %v1918_v32 = vpop.f32.mrf.mxu1 }
 0x102   :  { %609 = vrot.lane.b32.xlu1 %v1908_v27, %s1494_s10  ;;  %611 = vrot.lane.b32.xlu0 %v1916_v31, %s1494_s10 }
 0x103   :  { %v1339_v33 = vpop.f32.mrf.mxu0  ;;  %v1414_v34 = vpop.f32.mrf.mxu1 }
 0x105   :  { %v1924_v35 = vpop.f32.mrf.mxu0  ;;  %v1926_v36 = vpop.f32.mrf.mxu1 }
 0x106   :  { %661 = vrot.lane.b32.xlu1 %v1918_v32, %s1494_s10  ;;  %663 = vrot.lane.b32.xlu0 %v1926_v36, %s1494_s10 }
 0x107   :  { %v1342_v37 = vpop.f32.mrf.mxu0  ;;  %v1417_v38 = vpop.f32.mrf.mxu1 }
 0x109   :  { %v1932_v39 = vpop.f32.mrf.mxu0  ;;  %v1934_v40 = vpop.f32.mrf.mxu1 }
 0x10a   :  { %613 = vrot.lane.b32.xlu1 %v1924_v35, %s1494_s10  ;;  %615 = vrot.lane.b32.xlu0 %v1932_v39, %s1494_s10 }
 0x10b   :  { %v1345_v41 = vpop.f32.mrf.mxu0  ;;  %v1420_v42 = vpop.f32.mrf.mxu1 }
 0x10d   :  { %v1940_v43 = vpop.f32.mrf.mxu0  ;;  %v1942_v44 = vpop.f32.mrf.mxu1 }
 0x10e   :  { %665 = vrot.lane.b32.xlu1 %v1934_v40, %s1494_s10  ;;  %667 = vrot.lane.b32.xlu0 %v1942_v44, %s1494_s10 }
 0x10f   :  { %v1348_v45 = vpop.f32.mrf.mxu0  ;;  %v1423_v46 = vpop.f32.mrf.mxu1 }
 0x111   :  { %v1948_v47 = vpop.f32.mrf.mxu0  ;;  %v1950_v48 = vpop.f32.mrf.mxu1 }
 0x112   :  { %617 = vrot.lane.b32.xlu1 %v1940_v43, %s1494_s10  ;;  %619 = vrot.lane.b32.xlu0 %v1948_v47, %s1494_s10 }
 0x113   :  { %v1351_v49 = vpop.f32.mrf.mxu0  ;;  %v1426_v50 = vpop.f32.mrf.mxu1 }
 0x115   :  { %v1956_v51 = vpop.f32.mrf.mxu0  ;;  %v1958_v52 = vpop.f32.mrf.mxu1 }
 0x116   :  { %669 = vrot.lane.b32.xlu1 %v1950_v48, %s1494_s10  ;;  %671 = vrot.lane.b32.xlu0 %v1958_v52, %s1494_s10 }
 0x117   :  { %v1354_v53 = vpop.f32.mrf.mxu0  ;;  %v1429_v54 = vpop.f32.mrf.mxu1 }
 0x119   :  { %v1964_v57 = vpop.f32.mrf.mxu0  ;;  %v1966_v58 = vpop.f32.mrf.mxu1 }
 0x11a   :  { %621 = vrot.lane.b32.xlu1 %v1956_v51, %s1494_s10  ;;  %623 = vrot.lane.b32.xlu0 %v1964_v57, %s1494_s10 }
 0x11b   :  { %v1357_v61 = vpop.f32.mrf.mxu0  ;;  %v1432_v62 = vpop.f32.mrf.mxu1 }
 0x11d   :  { %v1972_v1 = vpop.f32.mrf.mxu0  ;;  %v1974_v2 = vpop.f32.mrf.mxu1 }
 0x11e   :  { %673 = vrot.lane.b32.xlu1 %v1966_v58, %s1494_s10  ;;  %675 = vrot.lane.b32.xlu0 %v1974_v2, %s1494_s10 }
 0x11f   :  { %v1360_v5 = vpop.f32.mrf.mxu0  ;;  %v1435_v6 = vpop.f32.mrf.mxu1 }
 0x121   :  { %v1980_v9 = vpop.f32.mrf.mxu0  ;;  %v1982_v10 = vpop.f32.mrf.mxu1 }
 0x122   :  { %625 = vrot.lane.b32.xlu1 %v1972_v1, %s1494_s10  ;;  %627 = vrot.lane.b32.xlu0 %v1980_v9, %s1494_s10 }
 0x123   :  { %v1363_v13 = vpop.f32.mrf.mxu0  ;;  %v1438_v14 = vpop.f32.mrf.mxu1 }
 0x125   :  { %v1988_v17 = vpop.f32.mrf.mxu0  ;;  %v1990_v18 = vpop.f32.mrf.mxu1 }
 0x126   :  { %677 = vrot.lane.b32.xlu1 %v1982_v10, %s1494_s10  ;;  %679 = vrot.lane.b32.xlu0 %v1990_v18, %s1494_s10 }
 0x127   :  { %v1366_v21 = vpop.f32.mrf.mxu0  ;;  %v1441_v22 = vpop.f32.mrf.mxu1 }
 0x129   :  { %v1996_v25 = vpop.f32.mrf.mxu0  ;;  %v1998_v26 = vpop.f32.mrf.mxu1 }
 0x12a   :  { %629 = vrot.lane.b32.xlu1 %v1988_v17, %s1494_s10  ;;  %631 = vrot.lane.b32.xlu0 %v1996_v25, %s1494_s10 }
 0x12b   :  { %v1369_v29 = vpop.f32.mrf.mxu0  ;;  %v1444_v30 = vpop.f32.mrf.mxu1 }
 0x12d   :  { %v2004_v33 = vpop.f32.mrf.mxu0  ;;  %v2006_v34 = vpop.f32.mrf.mxu1 }
 0x12e   :  { %681 = vrot.lane.b32.xlu1 %v1998_v26, %s1494_s10  ;;  %683 = vrot.lane.b32.xlu0 %v2006_v34, %s1494_s10 }
 0x12f   :  { %v1372_v37 = vpop.f32.mrf.mxu0  ;;  %v1447_v38 = vpop.f32.mrf.mxu1 }
 0x131   :  { %v2012_v41 = vpop.f32.mrf.mxu0  ;;  %v2014_v42 = vpop.f32.mrf.mxu1 }
 0x132   :  { %633 = vrot.lane.b32.xlu1 %v2004_v33, %s1494_s10  ;;  %635 = vrot.lane.b32.xlu0 %v2012_v41, %s1494_s10 }
 0x133   :  { %v1375_v45 = vpop.f32.mrf.mxu0  ;;  %v1450_v46 = vpop.f32.mrf.mxu1 }
 0x135   :  { %v2020_v49 = vpop.f32.mrf.mxu0  ;;  %v2022_v50 = vpop.f32.mrf.mxu1 }
 0x136   :  { %685 = vrot.lane.b32.xlu1 %v2014_v42, %s1494_s10  ;;  %687 = vrot.lane.b32.xlu0 %v2022_v50, %s1494_s10 }
 0x137   :  { %v1378_v53 = vpop.f32.mrf.mxu0  ;;  %v1453_v54 = vpop.f32.mrf.mxu1 }
 0x139   :  { %v2028_v61 = vpop.f32.mrf.mxu0 }
 0x13a   :  { %637 = vrot.lane.b32.xlu1 %v2020_v49, %s1494_s10  ;;  %639 = vrot.lane.b32.xlu0 %v2028_v61, %s1494_s10 }
 0x13b   :  { %v1381_v62 = vpop.f32.mrf.mxu0 }
 0x14c   :  { %v642_v5 = vpop.permute.xlu1 %641  ;;  %v592_v6 = vpop.permute.xlu0 %591 }
 0x14d   :  { %v2035_v13 = vmax.f32 %v1840_v56, %v642_v5  ;;  %v2038_v14 = vmax.f32 %v1838_v55, %v592_v6 }
 0x14f   :  { %836 = vrot.lane.b32.xlu1 %v2038_v14, %s1495_s0  ;;  %886 = vrot.lane.b32.xlu0 %v2035_v13, %s1495_s0 }
 0x150   :  { %v594_v21 = vpop.permute.xlu0 %593 }
 0x151   :  { %v2045_v22 = vmax.f32 %v1846_v59, %v594_v21 }
 0x153   :  { %838 = vrot.lane.b32.xlu0 %v2045_v22, %s1495_s0 }
 0x154   :  { %v644_v29 = vpop.permute.xlu0 %643  ;;  %v596_v56 = vpop.permute.xlu1 %595 }
 0x155   :  { %v2050_v30 = vmax.f32 %v1848_v60, %v644_v29  ;;  %v2055_v38 = vmax.f32 %v1852_v63, %v596_v56 }
 0x157   :  { %888 = vrot.lane.b32.xlu1 %v2050_v30, %s1495_s0 }
 0x158   :  { %v648_v55 = vpop.permute.xlu0 %647  ;;  %v646_v37 = vpop.permute.xlu1 %645 }
 0x159   :  { %v2058_v45 = vmax.f32 %v1854_v0, %v646_v37  ;;  %v2065_v46 = vmax.f32 %v1862_v4, %v648_v55 }
 0x15b   :  { %840 = vrot.lane.b32.xlu1 %v2055_v38, %s1495_s0  ;;  %890 = vrot.lane.b32.xlu0 %v2058_v45, %s1495_s0 }
 0x15c   :  { %v598_v59 = vpop.permute.xlu1 %597  ;;  %v600_v60 = vpop.permute.xlu0 %599 }
 0x15d   :  { %v2068_v53 = vmax.f32 %v1860_v3, %v598_v59  ;;  %v2075_v54 = vmax.f32 %v1868_v7, %v600_v60 }
 0x15f   :  { %892 = vrot.lane.b32.xlu1 %v2065_v46, %s1495_s0  ;;  %842 = vrot.lane.b32.xlu0 %v2068_v53, %s1495_s0 }
 0x160   :  { %v650_v63 = vpop.permute.xlu1 %649  ;;  %v652_v0 = vpop.permute.xlu0 %651 }
 0x161   :  { %v2078_v62 = vmax.f32 %v1870_v8, %v650_v63  ;;  %v2085_v5 = vmax.f32 %v1878_v12, %v652_v0 }
 0x163   :  { %844 = vrot.lane.b32.xlu1 %v2075_v54, %s1495_s0  ;;  %894 = vrot.lane.b32.xlu0 %v2078_v62, %s1495_s0 }
 0x164   :  { %v602_v3 = vpop.permute.xlu1 %601  ;;  %v604_v4 = vpop.permute.xlu0 %603 }
 0x165   :  { %v2088_v6 = vmax.f32 %v1876_v11, %v602_v3  ;;  %v2095_v21 = vmax.f32 %v1884_v15, %v604_v4 }
 0x167   :  { %896 = vrot.lane.b32.xlu1 %v2085_v5, %s1495_s0  ;;  %846 = vrot.lane.b32.xlu0 %v2088_v6, %s1495_s0 }
 0x168   :  { %v654_v7 = vpop.permute.xlu1 %653  ;;  %v656_v8 = vpop.permute.xlu0 %655 }
 0x169   :  { %v2098_v29 = vmax.f32 %v1886_v16, %v654_v7  ;;  %v2105_v56 = vmax.f32 %v1894_v20, %v656_v8 }
 0x16b   :  { %848 = vrot.lane.b32.xlu1 %v2095_v21, %s1495_s0  ;;  %898 = vrot.lane.b32.xlu0 %v2098_v29, %s1495_s0 }
 0x16c   :  { %v606_v11 = vpop.permute.xlu1 %605  ;;  %v608_v12 = vpop.permute.xlu0 %607 }
 0x16d   :  { %v2108_v55 = vmax.f32 %v1892_v19, %v606_v11  ;;  %v2115_v37 = vmax.f32 %v1900_v23, %v608_v12 }
 0x16f   :  { %900 = vrot.lane.b32.xlu1 %v2105_v56, %s1495_s0  ;;  %850 = vrot.lane.b32.xlu0 %v2108_v55, %s1495_s0 }
 0x170   :  { %v658_v15 = vpop.permute.xlu1 %657  ;;  %v660_v16 = vpop.permute.xlu0 %659 }
 0x171   :  { %v2118_v59 = vmax.f32 %v1902_v24, %v658_v15  ;;  %v2125_v60 = vmax.f32 %v1910_v28, %v660_v16 }
 0x173   :  { %852 = vrot.lane.b32.xlu1 %v2115_v37, %s1495_s0  ;;  %902 = vrot.lane.b32.xlu0 %v2118_v59, %s1495_s0 }
 0x174   :  { %v610_v19 = vpop.permute.xlu1 %609  ;;  %v612_v20 = vpop.permute.xlu0 %611 }
 0x175   :  { %v2128_v63 = vmax.f32 %v1908_v27, %v610_v19  ;;  %v2135_v0 = vmax.f32 %v1916_v31, %v612_v20 }
 0x177   :  { %904 = vrot.lane.b32.xlu1 %v2125_v60, %s1495_s0  ;;  %854 = vrot.lane.b32.xlu0 %v2128_v63, %s1495_s0 }
 0x178   :  { %v662_v23 = vpop.permute.xlu1 %661  ;;  %v664_v24 = vpop.permute.xlu0 %663 }
 0x179   :  { %v2138_v3 = vmax.f32 %v1918_v32, %v662_v23  ;;  %v2145_v4 = vmax.f32 %v1926_v36, %v664_v24 }
 0x17b   :  { %856 = vrot.lane.b32.xlu1 %v2135_v0, %s1495_s0  ;;  %906 = vrot.lane.b32.xlu0 %v2138_v3, %s1495_s0 }
 0x17c   :  { %v614_v27 = vpop.permute.xlu1 %613  ;;  %v616_v28 = vpop.permute.xlu0 %615 }
 0x17d   :  { %v2148_v7 = vmax.f32 %v1924_v35, %v614_v27  ;;  %v2155_v8 = vmax.f32 %v1932_v39, %v616_v28 }
 0x17f   :  { %908 = vrot.lane.b32.xlu1 %v2145_v4, %s1495_s0  ;;  %858 = vrot.lane.b32.xlu0 %v2148_v7, %s1495_s0 }
 0x180   :  { %v666_v31 = vpop.permute.xlu1 %665  ;;  %v668_v32 = vpop.permute.xlu0 %667 }
 0x181   :  { %v2158_v11 = vmax.f32 %v1934_v40, %v666_v31  ;;  %v2165_v12 = vmax.f32 %v1942_v44, %v668_v32 }
 0x183   :  { %860 = vrot.lane.b32.xlu1 %v2155_v8, %s1495_s0  ;;  %910 = vrot.lane.b32.xlu0 %v2158_v11, %s1495_s0 }
 0x184   :  { %v618_v35 = vpop.permute.xlu1 %617  ;;  %v620_v36 = vpop.permute.xlu0 %619 }
 0x185   :  { %v2168_v15 = vmax.f32 %v1940_v43, %v618_v35  ;;  %v2175_v16 = vmax.f32 %v1948_v47, %v620_v36 }
 0x187   :  { %912 = vrot.lane.b32.xlu1 %v2165_v12, %s1495_s0  ;;  %862 = vrot.lane.b32.xlu0 %v2168_v15, %s1495_s0 }
 0x188   :  { %v670_v39 = vpop.permute.xlu1 %669  ;;  %v672_v40 = vpop.permute.xlu0 %671 }
 0x189   :  { %v2178_v19 = vmax.f32 %v1950_v48, %v670_v39  ;;  %v2185_v20 = vmax.f32 %v1958_v52, %v672_v40 }
 0x18b   :  { %864 = vrot.lane.b32.xlu1 %v2175_v16, %s1495_s0  ;;  %914 = vrot.lane.b32.xlu0 %v2178_v19, %s1495_s0 }
 0x18c   :  { %v622_v43 = vpop.permute.xlu1 %621  ;;  %v624_v44 = vpop.permute.xlu0 %623 }
 0x18d   :  { %v2188_v23 = vmax.f32 %v1956_v51, %v622_v43  ;;  %v2195_v24 = vmax.f32 %v1964_v57, %v624_v44 }
 0x18f   :  { %916 = vrot.lane.b32.xlu1 %v2185_v20, %s1495_s0  ;;  %866 = vrot.lane.b32.xlu0 %v2188_v23, %s1495_s0 }
 0x190   :  { %v674_v47 = vpop.permute.xlu1 %673  ;;  %v676_v48 = vpop.permute.xlu0 %675 }
 0x191   :  { %v2198_v27 = vmax.f32 %v1966_v58, %v674_v47  ;;  %v2205_v28 = vmax.f32 %v1974_v2, %v676_v48 }
 0x193   :  { %868 = vrot.lane.b32.xlu1 %v2195_v24, %s1495_s0  ;;  %918 = vrot.lane.b32.xlu0 %v2198_v27, %s1495_s0 }
 0x194   :  { %v626_v51 = vpop.permute.xlu1 %625  ;;  %v628_v52 = vpop.permute.xlu0 %627 }
 0x195   :  { %v2208_v31 = vmax.f32 %v1972_v1, %v626_v51  ;;  %v2215_v32 = vmax.f32 %v1980_v9, %v628_v52 }
 0x197   :  { %920 = vrot.lane.b32.xlu1 %v2205_v28, %s1495_s0  ;;  %870 = vrot.lane.b32.xlu0 %v2208_v31, %s1495_s0 }
 0x198   :  { %v678_v57 = vpop.permute.xlu1 %677  ;;  %v680_v58 = vpop.permute.xlu0 %679 }
 0x199   :  { %v2218_v35 = vmax.f32 %v1982_v10, %v678_v57  ;;  %v2225_v36 = vmax.f32 %v1990_v18, %v680_v58 }
 0x19b   :  { %872 = vrot.lane.b32.xlu1 %v2215_v32, %s1495_s0  ;;  %922 = vrot.lane.b32.xlu0 %v2218_v35, %s1495_s0 }
 0x19c   :  { %v630_v1 = vpop.permute.xlu1 %629  ;;  %v632_v2 = vpop.permute.xlu0 %631 }
 0x19d   :  { %v2228_v39 = vmax.f32 %v1988_v17, %v630_v1  ;;  %v2235_v40 = vmax.f32 %v1996_v25, %v632_v2 }
 0x19f   :  { %924 = vrot.lane.b32.xlu1 %v2225_v36, %s1495_s0  ;;  %874 = vrot.lane.b32.xlu0 %v2228_v39, %s1495_s0 }
 0x1a0   :  { %v682_v9 = vpop.permute.xlu1 %681  ;;  %v684_v10 = vpop.permute.xlu0 %683 }
 0x1a1   :  { %v2238_v43 = vmax.f32 %v1998_v26, %v682_v9  ;;  %v2245_v44 = vmax.f32 %v2006_v34, %v684_v10 }
 0x1a3   :  { %876 = vrot.lane.b32.xlu1 %v2235_v40, %s1495_s0  ;;  %926 = vrot.lane.b32.xlu0 %v2238_v43, %s1495_s0 }
 0x1a4   :  { %v634_v17 = vpop.permute.xlu1 %633  ;;  %v636_v18 = vpop.permute.xlu0 %635 }
 0x1a5   :  { %v2248_v47 = vmax.f32 %v2004_v33, %v634_v17  ;;  %v2255_v48 = vmax.f32 %v2012_v41, %v636_v18 }
 0x1a7   :  { %928 = vrot.lane.b32.xlu1 %v2245_v44, %s1495_s0  ;;  %878 = vrot.lane.b32.xlu0 %v2248_v47, %s1495_s0 }
 0x1a8   :  { %v686_v25 = vpop.permute.xlu1 %685  ;;  %v688_v26 = vpop.permute.xlu0 %687 }
 0x1a9   :  { %v2270_v41 = vmax.f32 %v2014_v42, %v686_v25  ;;  %v2273_v57 = vmax.f32 %v2022_v50, %v688_v26 }
 0x1ab   :  { %880 = vrot.lane.b32.xlu1 %v2255_v48, %s1495_s0 }
 0x1ac   :  { %v638_v51 = vpop.permute.xlu1 %637  ;;  %v640_v34 = vpop.permute.xlu0 %639 }
 0x1ad   :  { %v2260_v52 = vmax.f32 %v2020_v49, %v638_v51  ;;  %v2263_v33 = vmax.f32 %v2028_v61, %v640_v34  ;;  %v2279_v49 = vld [vmem:[#allocation2] ss:$0 sm:$0xff] }
 0x1af   :  { %882 = vrot.lane.b32.xlu0 %v2260_v52, %s1495_s0  ;;  %884 = vrot.lane.b32.xlu1 %v2263_v33, %s1495_s0 }
 0x1b3   :  { %930 = vrot.lane.b32.xlu0 %v2270_v41, %s1495_s0  ;;  %932 = vrot.lane.b32.xlu1 %v2273_v57, %s1495_s0 }
 0x1c1   :  { %v837_v61 = vpop.permute.xlu1 %836  ;;  %v887_v58 = vpop.permute.xlu0 %886 }
 0x1c2   :  { %v983_v1 = vmax.f32 %v2038_v14, %v837_v61  ;;  %v1008_v2 = vmax.f32 %v2035_v13, %v887_v58 }
 0x1c4   :  { %v1039_v42 = vadd.f32 %v2279_v49, %v983_v1  ;;  %v1064_v9 = vadd.f32 %v2279_v49, %v1008_v2 }
 0x1c5   :  { %v839_v50 = vpop.permute.xlu0 %838 }
 0x1c6   :  { %v1088_v10 = vmax.f32 %v1039_v42, 0.0  ;;  %v1113_v17 = vmax.f32 %v1064_v9, 0.0  ;;  %v984_v18 = vmax.f32 %v2045_v22, %v839_v50 }
 0x1c8   :  { %1138 = vst.msk [vmem:[%s2578_s3] sm:$0xff] %vm1137_vm3, %v1088_v10  ;;  %1163 = vst.msk [vmem:[%s2578_s3 + $0xc8] sm:$0xff] %vm1137_vm3, %v1113_v17  ;;  %v1040_v13 = vadd.f32 %v2279_v49, %v984_v18 }
 0x1c9   :  { %v889_v14 = vpop.permute.xlu1 %888 }
 0x1ca   :  { %v1089_v25 = vmax.f32 %v1040_v13, 0.0  ;;  %v1009_v26 = vmax.f32 %v2050_v30, %v889_v14 }
 0x1cc   :  { %1139 = vst.msk [vmem:[%s2578_s3 + $0x8] sm:$0xff] %vm1137_vm3, %v1089_v25  ;;  %v1065_v22 = vadd.f32 %v2279_v49, %v1009_v26 }
 0x1cd   :  { %v841_v51 = vpop.permute.xlu1 %840  ;;  %v891_v34 = vpop.permute.xlu0 %890 }
 0x1ce   :  { %v1114_v61 = vmax.f32 %v1065_v22, 0.0  ;;  %v985_v58 = vmax.f32 %v2055_v38, %v841_v51  ;;  %v1010_v1 = vmax.f32 %v2058_v45, %v891_v34 }
 0x1d0   :  { %1164 = vst.msk [vmem:[%s2578_s3 + $0xd0] sm:$0xff] %vm1137_vm3, %v1114_v61  ;;  %v1041_v30 = vadd.f32 %v2279_v49, %v985_v58  ;;  %v1066_v2 = vadd.f32 %v2279_v49, %v1010_v1 }
 0x1d1   :  { %v893_v42 = vpop.permute.xlu1 %892  ;;  %v843_v9 = vpop.permute.xlu0 %842 }
 0x1d2   :  { %v1090_v50 = vmax.f32 %v1041_v30, 0.0  ;;  %v1115_v10 = vmax.f32 %v1066_v2, 0.0  ;;  %v1011_v17 = vmax.f32 %v2065_v46, %v893_v42  ;;  %v986_v18 = vmax.f32 %v2068_v53, %v843_v9 }
 0x1d4   :  { %1140 = vst.msk [vmem:[%s2578_s3 + $0x10] sm:$0xff] %vm1137_vm3, %v1090_v50  ;;  %1165 = vst.msk [vmem:[%s2578_s3 + $0xd8] sm:$0xff] %vm1137_vm3, %v1115_v10  ;;  %v1067_v38 = vadd.f32 %v2279_v49, %v1011_v17  ;;  %v1042_v45 = vadd.f32 %v2279_v49, %v986_v18 }
 0x1d5   :  { %v845_v13 = vpop.permute.xlu1 %844  ;;  %v895_v14 = vpop.permute.xlu0 %894 }
 0x1d6   :  { %v1116_v25 = vmax.f32 %v1067_v38, 0.0  ;;  %v1091_v46 = vmax.f32 %v1042_v45, 0.0  ;;  %v987_v53 = vmax.f32 %v2075_v54, %v845_v13  ;;  %v1012_v26 = vmax.f32 %v2078_v62, %v895_v14 }
 0x1d8   :  { %1166 = vst.msk [vmem:[%s2578_s3 + $0xe0] sm:$0xff] %vm1137_vm3, %v1116_v25  ;;  %1141 = vst.msk [vmem:[%s2578_s3 + $0x18] sm:$0xff] %vm1137_vm3, %v1091_v46  ;;  %v1043_v22 = vadd.f32 %v2279_v49, %v987_v53  ;;  %v1068_v51 = vadd.f32 %v2279_v49, %v1012_v26 }
 0x1d9   :  { %v897_v34 = vpop.permute.xlu1 %896  ;;  %v847_v61 = vpop.permute.xlu0 %846 }
 0x1da   :  { %v1092_v58 = vmax.f32 %v1043_v22, 0.0  ;;  %v1117_v54 = vmax.f32 %v1068_v51, 0.0  ;;  %v1013_v62 = vmax.f32 %v2085_v5, %v897_v34  ;;  %v988_v1 = vmax.f32 %v2088_v6, %v847_v61 }
 0x1dc   :  { %1142 = vst.msk [vmem:[%s2578_s3 + $0x20] sm:$0xff] %vm1137_vm3, %v1092_v58  ;;  %1167 = vst.msk [vmem:[%s2578_s3 + $0xe8] sm:$0xff] %vm1137_vm3, %v1117_v54  ;;  %v1069_v30 = vadd.f32 %v2279_v49, %v1013_v62  ;;  %v1044_v2 = vadd.f32 %v2279_v49, %v988_v1 }
 0x1dd   :  { %v849_v42 = vpop.permute.xlu1 %848  ;;  %v899_v9 = vpop.permute.xlu0 %898 }
 0x1de   :  { %v1118_v50 = vmax.f32 %v1069_v30, 0.0  ;;  %v1093_v5 = vmax.f32 %v1044_v2, 0.0  ;;  %v989_v6 = vmax.f32 %v2095_v21, %v849_v42  ;;  %v1014_v10 = vmax.f32 %v2098_v29, %v899_v9 }
 0x1e0   :  { %1168 = vst.msk [vmem:[%s2578_s3 + $0xf0] sm:$0xff] %vm1137_vm3, %v1118_v50  ;;  %1143 = vst.msk [vmem:[%s2578_s3 + $0x28] sm:$0xff] %vm1137_vm3, %v1093_v5  ;;  %v1045_v17 = vadd.f32 %v2279_v49, %v989_v6  ;;  %v1070_v18 = vadd.f32 %v2279_v49, %v1014_v10 }
 0x1e1   :  { %v901_v38 = vpop.permute.xlu1 %900  ;;  %v851_v45 = vpop.permute.xlu0 %850 }
 0x1e2   :  { %v1094_v13 = vmax.f32 %v1045_v17, 0.0  ;;  %v1119_v21 = vmax.f32 %v1070_v18, 0.0  ;;  %v1015_v29 = vmax.f32 %v2105_v56, %v901_v38  ;;  %v990_v14 = vmax.f32 %v2108_v55, %v851_v45 }
 0x1e4   :  { %1144 = vst.msk [vmem:[%s2578_s3 + $0x30] sm:$0xff] %vm1137_vm3, %v1094_v13  ;;  %1169 = vst.msk [vmem:[%s2578_s3 + $0xf8] sm:$0xff] %vm1137_vm3, %v1119_v21  ;;  %v1071_v25 = vadd.f32 %v2279_v49, %v1015_v29  ;;  %v1046_v46 = vadd.f32 %v2279_v49, %v990_v14 }
 0x1e5   :  { %v853_v53 = vpop.permute.xlu1 %852  ;;  %v903_v26 = vpop.permute.xlu0 %902 }
 0x1e6   :  { %v1120_v22 = vmax.f32 %v1071_v25, 0.0  ;;  %v1095_v56 = vmax.f32 %v1046_v46, 0.0  ;;  %v991_v55 = vmax.f32 %v2115_v37, %v853_v53  ;;  %v1016_v51 = vmax.f32 %v2118_v59, %v903_v26 }
 0x1e8   :  { %1170 = vst.msk [vmem:[%s2578_s3 + $0x100] sm:$0xff] %vm1137_vm3, %v1120_v22  ;;  %1145 = vst.msk [vmem:[%s2578_s3 + $0x38] sm:$0xff] %vm1137_vm3, %v1095_v56  ;;  %v1047_v34 = vadd.f32 %v2279_v49, %v991_v55  ;;  %v1072_v61 = vadd.f32 %v2279_v49, %v1016_v51 }
 0x1e9   :  { %v905_v58 = vpop.permute.xlu1 %904  ;;  %v855_v54 = vpop.permute.xlu0 %854 }
 0x1ea   :  { %v1096_v62 = vmax.f32 %v1047_v34, 0.0  ;;  %v1121_v37 = vmax.f32 %v1072_v61, 0.0  ;;  %v1017_v59 = vmax.f32 %v2125_v60, %v905_v58  ;;  %v992_v1 = vmax.f32 %v2128_v63, %v855_v54 }
 0x1ec   :  { %1146 = vst.msk [vmem:[%s2578_s3 + $0x40] sm:$0xff] %vm1137_vm3, %v1096_v62  ;;  %1171 = vst.msk [vmem:[%s2578_s3 + $0x108] sm:$0xff] %vm1137_vm3, %v1121_v37  ;;  %v1073_v30 = vadd.f32 %v2279_v49, %v1017_v59  ;;  %v1048_v2 = vadd.f32 %v2279_v49, %v992_v1 }
 0x1ed   :  { %v857_v42 = vpop.permute.xlu1 %856  ;;  %v907_v9 = vpop.permute.xlu0 %906 }
 0x1ee   :  { %v1122_v50 = vmax.f32 %v1073_v30, 0.0  ;;  %v1097_v60 = vmax.f32 %v1048_v2, 0.0  ;;  %v993_v63 = vmax.f32 %v2135_v0, %v857_v42  ;;  %v1018_v5 = vmax.f32 %v2138_v3, %v907_v9 }
 0x1f0   :  { %1172 = vst.msk [vmem:[%s2578_s3 + $0x110] sm:$0xff] %vm1137_vm3, %v1122_v50  ;;  %1147 = vst.msk [vmem:[%s2578_s3 + $0x48] sm:$0xff] %vm1137_vm3, %v1097_v60  ;;  %v1049_v6 = vadd.f32 %v2279_v49, %v993_v63  ;;  %v1074_v10 = vadd.f32 %v2279_v49, %v1018_v5 }
 0x1f1   :  { %v909_v17 = vpop.permute.xlu1 %908  ;;  %v859_v18 = vpop.permute.xlu0 %858 }
 0x1f2   :  { %v1098_v38 = vmax.f32 %v1049_v6, 0.0  ;;  %v1123_v0 = vmax.f32 %v1074_v10, 0.0  ;;  %v1019_v3 = vmax.f32 %v2145_v4, %v909_v17  ;;  %v994_v45 = vmax.f32 %v2148_v7, %v859_v18 }
 0x1f4   :  { %1148 = vst.msk [vmem:[%s2578_s3 + $0x50] sm:$0xff] %vm1137_vm3, %v1098_v38  ;;  %1173 = vst.msk [vmem:[%s2578_s3 + $0x118] sm:$0xff] %vm1137_vm3, %v1123_v0  ;;  %v1075_v13 = vadd.f32 %v2279_v49, %v1019_v3  ;;  %v1050_v21 = vadd.f32 %v2279_v49, %v994_v45 }
 0x1f5   :  { %v861_v29 = vpop.permute.xlu1 %860  ;;  %v911_v14 = vpop.permute.xlu0 %910 }
 0x1f6   :  { %v1124_v25 = vmax.f32 %v1075_v13, 0.0  ;;  %v1099_v4 = vmax.f32 %v1050_v21, 0.0  ;;  %v995_v7 = vmax.f32 %v2155_v8, %v861_v29  ;;  %v1020_v46 = vmax.f32 %v2158_v11, %v911_v14 }
 0x1f8   :  { %1174 = vst.msk [vmem:[%s2578_s3 + $0x120] sm:$0xff] %vm1137_vm3, %v1124_v25  ;;  %1149 = vst.msk [vmem:[%s2578_s3 + $0x58] sm:$0xff] %vm1137_vm3, %v1099_v4  ;;  %v1051_v53 = vadd.f32 %v2279_v49, %v995_v7  ;;  %v1076_v26 = vadd.f32 %v2279_v49, %v1020_v46 }
 0x1f9   :  { %v913_v22 = vpop.permute.xlu1 %912  ;;  %v863_v56 = vpop.permute.xlu0 %862 }
 0x1fa   :  { %v1100_v55 = vmax.f32 %v1051_v53, 0.0  ;;  %v1125_v8 = vmax.f32 %v1076_v26, 0.0  ;;  %v1021_v11 = vmax.f32 %v2165_v12, %v913_v22  ;;  %v996_v51 = vmax.f32 %v2168_v15, %v863_v56 }
 0x1fc   :  { %1150 = vst.msk [vmem:[%s2578_s3 + $0x60] sm:$0xff] %vm1137_vm3, %v1100_v55  ;;  %1175 = vst.msk [vmem:[%s2578_s3 + $0x128] sm:$0xff] %vm1137_vm3, %v1125_v8  ;;  %v1077_v34 = vadd.f32 %v2279_v49, %v1021_v11  ;;  %v1052_v61 = vadd.f32 %v2279_v49, %v996_v51 }
 0x1fd   :  { %v865_v58 = vpop.permute.xlu1 %864  ;;  %v915_v54 = vpop.permute.xlu0 %914 }
 0x1fe   :  { %v1126_v62 = vmax.f32 %v1077_v34, 0.0  ;;  %v1101_v12 = vmax.f32 %v1052_v61, 0.0  ;;  %v997_v15 = vmax.f32 %v2175_v16, %v865_v58  ;;  %v1022_v37 = vmax.f32 %v2178_v19, %v915_v54 }
 0x200   :  { %1176 = vst.msk [vmem:[%s2578_s3 + $0x130] sm:$0xff] %vm1137_vm3, %v1126_v62  ;;  %1151 = vst.msk [vmem:[%s2578_s3 + $0x68] sm:$0xff] %vm1137_vm3, %v1101_v12  ;;  %v1053_v59 = vadd.f32 %v2279_v49, %v997_v15  ;;  %v1078_v1 = vadd.f32 %v2279_v49, %v1022_v37 }
 0x201   :  { %v917_v30 = vpop.permute.xlu1 %916  ;;  %v867_v2 = vpop.permute.xlu0 %866 }
 0x202   :  { %v1102_v42 = vmax.f32 %v1053_v59, 0.0  ;;  %v1127_v16 = vmax.f32 %v1078_v1, 0.0  ;;  %v1023_v19 = vmax.f32 %v2185_v20, %v917_v30  ;;  %v998_v9 = vmax.f32 %v2188_v23, %v867_v2 }
 0x204   :  { %1152 = vst.msk [vmem:[%s2578_s3 + $0x70] sm:$0xff] %vm1137_vm3, %v1102_v42  ;;  %1177 = vst.msk [vmem:[%s2578_s3 + $0x138] sm:$0xff] %vm1137_vm3, %v1127_v16  ;;  %v1079_v50 = vadd.f32 %v2279_v49, %v1023_v19  ;;  %v1054_v60 = vadd.f32 %v2279_v49, %v998_v9 }
 0x205   :  { %v869_v63 = vpop.permute.xlu1 %868  ;;  %v919_v5 = vpop.permute.xlu0 %918 }
 0x206   :  { %v1128_v6 = vmax.f32 %v1079_v50, 0.0  ;;  %v1103_v20 = vmax.f32 %v1054_v60, 0.0  ;;  %v999_v23 = vmax.f32 %v2195_v24, %v869_v63  ;;  %v1024_v10 = vmax.f32 %v2198_v27, %v919_v5 }
 0x208   :  { %1178 = vst.msk [vmem:[%s2578_s3 + $0x140] sm:$0xff] %vm1137_vm3, %v1128_v6  ;;  %1153 = vst.msk [vmem:[%s2578_s3 + $0x78] sm:$0xff] %vm1137_vm3, %v1103_v20  ;;  %v1055_v17 = vadd.f32 %v2279_v49, %v999_v23  ;;  %v1080_v18 = vadd.f32 %v2279_v49, %v1024_v10 }
 0x209   :  { %v921_v38 = vpop.permute.xlu1 %920  ;;  %v871_v0 = vpop.permute.xlu0 %870 }
 0x20a   :  { %v1104_v3 = vmax.f32 %v1055_v17, 0.0  ;;  %v1129_v24 = vmax.f32 %v1080_v18, 0.0  ;;  %v1025_v27 = vmax.f32 %v2205_v28, %v921_v38  ;;  %v1000_v45 = vmax.f32 %v2208_v31, %v871_v0 }
 0x20c   :  { %1154 = vst.msk [vmem:[%s2578_s3 + $0x80] sm:$0xff] %vm1137_vm3, %v1104_v3  ;;  %1179 = vst.msk [vmem:[%s2578_s3 + $0x148] sm:$0xff] %vm1137_vm3, %v1129_v24  ;;  %v1081_v13 = vadd.f32 %v2279_v49, %v1025_v27  ;;  %v1056_v21 = vadd.f32 %v2279_v49, %v1000_v45 }
 0x20d   :  { %v873_v29 = vpop.permute.xlu1 %872  ;;  %v923_v14 = vpop.permute.xlu0 %922 }
 0x20e   :  { %v1130_v25 = vmax.f32 %v1081_v13, 0.0  ;;  %v1105_v28 = vmax.f32 %v1056_v21, 0.0  ;;  %v1001_v31 = vmax.f32 %v2215_v32, %v873_v29  ;;  %v1026_v4 = vmax.f32 %v2218_v35, %v923_v14 }
 0x210   :  { %1180 = vst.msk [vmem:[%s2578_s3 + $0x150] sm:$0xff] %vm1137_vm3, %v1130_v25  ;;  %1155 = vst.msk [vmem:[%s2578_s3 + $0x88] sm:$0xff] %vm1137_vm3, %v1105_v28  ;;  %v1057_v7 = vadd.f32 %v2279_v49, %v1001_v31  ;;  %v1082_v46 = vadd.f32 %v2279_v49, %v1026_v4 }
 0x211   :  { %v925_v53 = vpop.permute.xlu1 %924  ;;  %v875_v26 = vpop.permute.xlu0 %874 }
 0x212   :  { %v1106_v22 = vmax.f32 %v1057_v7, 0.0  ;;  %v1131_v32 = vmax.f32 %v1082_v46, 0.0  ;;  %v1027_v35 = vmax.f32 %v2225_v36, %v925_v53  ;;  %v1002_v56 = vmax.f32 %v2228_v39, %v875_v26 }
 0x214   :  { %1156 = vst.msk [vmem:[%s2578_s3 + $0x90] sm:$0xff] %vm1137_vm3, %v1106_v22  ;;  %1181 = vst.msk [vmem:[%s2578_s3 + $0x158] sm:$0xff] %vm1137_vm3, %v1131_v32  ;;  %v1083_v55 = vadd.f32 %v2279_v49, %v1027_v35  ;;  %v1058_v8 = vadd.f32 %v2279_v49, %v1002_v56 }
 0x215   :  { %v877_v11 = vpop.permute.xlu1 %876  ;;  %v927_v51 = vpop.permute.xlu0 %926 }
 0x216   :  { %v1132_v34 = vmax.f32 %v1083_v55, 0.0  ;;  %v1107_v36 = vmax.f32 %v1058_v8, 0.0  ;;  %v1003_v39 = vmax.f32 %v2235_v40, %v877_v11  ;;  %v1028_v61 = vmax.f32 %v2238_v43, %v927_v51 }
 0x218   :  { %1182 = vst.msk [vmem:[%s2578_s3 + $0x160] sm:$0xff] %vm1137_vm3, %v1132_v34  ;;  %1157 = vst.msk [vmem:[%s2578_s3 + $0x98] sm:$0xff] %vm1137_vm3, %v1107_v36  ;;  %v1059_v58 = vadd.f32 %v2279_v49, %v1003_v39  ;;  %v1084_v54 = vadd.f32 %v2279_v49, %v1028_v61 }
 0x219   :  { %v929_v62 = vpop.permute.xlu1 %928  ;;  %v879_v12 = vpop.permute.xlu0 %878 }
 0x21a   :  { %v1108_v15 = vmax.f32 %v1059_v58, 0.0  ;;  %v1133_v40 = vmax.f32 %v1084_v54, 0.0  ;;  %v1029_v43 = vmax.f32 %v2245_v44, %v929_v62  ;;  %v1004_v37 = vmax.f32 %v2248_v47, %v879_v12 }
 0x21c   :  { %1158 = vst.msk [vmem:[%s2578_s3 + $0xa0] sm:$0xff] %vm1137_vm3, %v1108_v15  ;;  %1183 = vst.msk [vmem:[%s2578_s3 + $0x168] sm:$0xff] %vm1137_vm3, %v1133_v40  ;;  %v1085_v59 = vadd.f32 %v2279_v49, %v1029_v43  ;;  %v1060_v1 = vadd.f32 %v2279_v49, %v1004_v37 }
 0x21d   :  { %v881_v30 = vpop.permute.xlu1 %880 }
 0x21e   :  { %v1134_v2 = vmax.f32 %v1085_v59, 0.0  ;;  %v1109_v42 = vmax.f32 %v1060_v1, 0.0  ;;  %v1005_v44 = vmax.f32 %v2255_v48, %v881_v30 }
 0x220   :  { %1184 = vst.msk [vmem:[%s2578_s3 + $0x170] sm:$0xff] %vm1137_vm3, %v1134_v2  ;;  %1159 = vst.msk [vmem:[%s2578_s3 + $0xa8] sm:$0xff] %vm1137_vm3, %v1109_v42  ;;  %v1061_v47 = vadd.f32 %v2279_v49, %v1005_v44 }
 0x221   :  { %v885_v16 = vpop.permute.xlu1 %884  ;;  %v883_v19 = vpop.permute.xlu0 %882 }
 0x222   :  { %v1110_v9 = vmax.f32 %v1061_v47, 0.0  ;;  %v1007_v50 = vmax.f32 %v2263_v33, %v885_v16  ;;  %v1006_v60 = vmax.f32 %v2260_v52, %v883_v19 }
 0x224   :  { %1160 = vst.msk [vmem:[%s2578_s3 + $0xb0] sm:$0xff] %vm1137_vm3, %v1110_v9  ;;  %v1063_v48 = vadd.f32 %v2279_v49, %v1007_v50  ;;  %v1062_v63 = vadd.f32 %v2279_v49, %v1006_v60 }
 0x225   :  { %v933_v5 = vpop.permute.xlu1 %932  ;;  %v931_v6 = vpop.permute.xlu0 %930 }
 0x226   :  { %v1112_v20 = vmax.f32 %v1063_v48, 0.0  ;;  %v1111_v23 = vmax.f32 %v1062_v63, 0.0  ;;  %v1031_v10 = vmax.f32 %v2273_v57, %v933_v5  ;;  %v1030_v17 = vmax.f32 %v2270_v41, %v931_v6 }
 0x228   :  { %1162 = vst.msk [vmem:[%s2578_s3 + $0xc0] sm:$0xff] %vm1137_vm3, %v1112_v20  ;;  %1161 = vst.msk [vmem:[%s2578_s3 + $0xb8] sm:$0xff] %vm1137_vm3, %v1111_v23  ;;  %v1087_v52 = vadd.f32 %v2279_v49, %v1031_v10  ;;  %v1086_v33 = vadd.f32 %v2279_v49, %v1030_v17 }
 0x22a   :  { %v1136_v18 = vmax.f32 %v1087_v52, 0.0  ;;  %v1135_v38 = vmax.f32 %v1086_v33, 0.0 }
 0x22c   :  { %1186 = vst.msk [vmem:[%s2578_s3 + $0x180] sm:$0xff] %vm1137_vm3, %v1136_v18  ;;  %1185 = vst.msk [vmem:[%s2578_s3 + $0x178] sm:$0xff] %vm1137_vm3, %v1135_v38 }
 0x22d   :  { %1191 = vsyncpa [#allocation3], 1 }

// kernel: kernnet_forward.3
= control target key start
LH: loop header
LB: loop body
LE: loop exit
PB: predicated region body
PF: predicated region fallthrough
CT: control target
= control target key end

     0   :  { %s5848_s0 = inlined_call_operand.vmem [shape: f32[2,1176], index: 0, kind: input, shape index: {}]   ;;  %s5849_s1 = inlined_call_operand.hbm [shape: f32[1176,1600], index: 1, kind: input, shape index: {}]   ;;  %s5850_s2 = inlined_call_operand.hbm [shape: f32[1,400], index: 2, kind: input, shape index: {}]   ;;  %s5851_s3 = inlined_call_operand.hbm [shape: f32[400,120], index: 3, kind: input, shape index: {}]   ;;  %s5852_s4 = inlined_call_operand.hbm [shape: f32[1,120], index: 4, kind: input, shape index: {}]   ;;  %s5853_s5 = inlined_call_operand.vmem [shape: f32[120,84], index: 5, kind: input, shape index: {}]   ;;  %s5854_s6 = inlined_call_operand.hbm [shape: f32[1,84], index: 6, kind: input, shape index: {}]   ;;  %s5855_s7 = inlined_call_operand.hbm [shape: f32[1,84], index: 7, kind: input, shape index: {}]   ;;  %s5856_s8 = inlined_call_operand.<no memory space> [shape: f32[1,1], index: 8, kind: input, shape index: {}]   ;;  %s5857_s9 = inlined_call_operand.vmem [shape: f32[2,1], index: 9, kind: output, shape index: {}]  }
   0x1   :  { %v14_v0 = vstv %s5856_s8 }
   0x2   :  { %15 = vst [vmem:[#allocation2] sm:$0x1] %v14_v0 }
   0x3   :  { %16 = vsyncpa [#allocation4], 0 }
   0x4   :  { %17 = vsyncpa [#allocation6], 0 }
   0x5   :  { %18 = vsyncpa [#allocation9], 0 }
   0x6   :  { %19 = vsyncpa [#allocation12], 0  ;;  %s5377_s11 = smov [#allocation5]   ;;  %s5378_s13 = smov [#allocation8]  }
   0x7   :  { %s40_s12 = sshll.u32 %s5377_s11, 4  ;;  %s62_s14 = sshll.u32 %s5378_s13, 4  ;;  %s41_s12 = int_to_ptr.vmem [resolvable:$true] %s40_s12  ;;  %s63_s14 = int_to_ptr.vmem [resolvable:$true] %s62_s14 }
   0x8   :  { %s5257_s15 = scalar_lea.vmem %s41_s12, 64  ;;  %p5262_p1 = scmp.lt.s32.totalorder %s41_s12, %s41_s12 }
   0x9   :  { %p5258_p0 = scmp.ne.s32.totalorder %s41_s12, %s5257_s15  ;;  %p5263_p2 = scmp.lt.s32.totalorder %s5257_s15, %s5257_s15 }
   0xb   :  { %p5264_p3 = por %p5263_p2, %p5262_p1 }
   0xd   :  { %p5265_p4 = pnand %p5264_p3, %p5258_p0 }
   0xf   :  { %5268 = shalt.err (!%p5265_p4)
}
  0x10   :  { %43 = dma.hbm_to_vmem [thread:$0]  %s5850_s2, 64, %s41_s12, [#allocation6]  }
  0x11   :  { %s5277_s17 = scalar_lea.vmem %s63_s14, 16  ;;  %s5281_s18 = scalar_lea.vmem %s63_s14, 32 }
  0x12   :  { %p5278_p5 = scmp.ne.s32.totalorder %s63_s14, %s5277_s17  ;;  %p5282_p6 = scmp.lt.s32.totalorder %s63_s14, %s63_s14 }
  0x13   :  { %p5283_p7 = scmp.lt.s32.totalorder %s5281_s18, %s5277_s17 }
  0x15   :  { %p5284_p8 = por %p5283_p7, %p5282_p6 }
  0x17   :  { %p5285_p9 = pnand %p5284_p8, %p5278_p5 }
  0x19   :  { %5288 = shalt.err (!%p5285_p9)
}
  0x1a   :  { %65 = dma.hbm_to_vmem [thread:$0]  %s5852_s4, 16, %s63_s14, [#allocation9]  }
  0x1b   :  { %s5379_s21 = smov [#allocation3]  }
  0x1c   :  { %s27_s22 = sshll.u32 %s5379_s21, 4  ;;  %s28_s22 = int_to_ptr.vmem [resolvable:$true] %s27_s22 }
  0x1d   :  { %s5297_s23 = scalar_lea.vmem %s28_s22, 244608  ;;  %p5302_p11 = scmp.lt.s32.totalorder %s28_s22, %s28_s22 }
  0x1e   :  { %p5298_p10 = scmp.ne.s32.totalorder %s28_s22, %s5297_s23  ;;  %p5303_p12 = scmp.lt.s32.totalorder %s5297_s23, %s5297_s23 }
  0x20   :  { %p5304_p13 = por %p5303_p12, %p5302_p11 }
  0x22   :  { %p5305_p0 = pnand %p5304_p13, %p5298_p10 }
  0x24   :  { %5308 = shalt.err (!%p5305_p0)
}
  0x25   :  { %s5380_s2 = smov 1664   ;;  %s5381_s24 = smov 104  }
  0x26   :  { %33 = dma.hbm_to_vmem [thread:$0]  %s5849_s1, 244608, %s28_s22, [#allocation4], %s5380_s2, %s5380_s2, %s5381_s24  }
  0x27   :  { %s5382_s27 = smov [#allocation7]  }
  0x28   :  { %s49_s28 = sshll.u32 %s5382_s27, 4  ;;  %s50_s28 = int_to_ptr.vmem [resolvable:$true] %s49_s28 }
  0x29   :  { %s5317_s4 = scalar_lea.vmem %s50_s28, 6400  ;;  %p5322_p2 = scmp.lt.s32.totalorder %s50_s28, %s50_s28 }
  0x2a   :  { %p5318_p1 = scmp.ne.s32.totalorder %s50_s28, %s5317_s4  ;;  %p5323_p3 = scmp.lt.s32.totalorder %s5317_s4, %s5317_s4 }
  0x2c   :  { %p5324_p4 = por %p5323_p3, %p5322_p2 }
  0x2e   :  { %p5325_p5 = pnand %p5324_p4, %p5318_p1 }
  0x30   :  { %5328 = shalt.err (!%p5325_p5)
}
  0x31   :  { %s5383_s29 = smov 128   ;;  %s5384_s30 = smov 8  }
  0x32   :  { %55 = dma.hbm_to_vmem [thread:$0]  %s5851_s3, 6400, %s50_s28, [#allocation6], %s5383_s29, %s5383_s29, %s5384_s30  }
  0x33   :  { %s5385_s12 = smov [#allocation10]   ;;  %s5386_s14 = smov [#allocation11]  }
  0x34   :  { %s74_s13 = sshll.u32 %s5385_s12, 4  ;;  %s84_s1 = sshll.u32 %s5386_s14, 4  ;;  %s75_s13 = int_to_ptr.vmem [resolvable:$true] %s74_s13  ;;  %s85_s1 = int_to_ptr.vmem [resolvable:$true] %s84_s1 }
  0x35   :  { %s5337_s15 = scalar_lea.vmem %s75_s13, 16  ;;  %s5341_s16 = scalar_lea.vmem %s75_s13, 32 }
  0x36   :  { %p5338_p6 = scmp.ne.s32.totalorder %s75_s13, %s5337_s15  ;;  %p5342_p7 = scmp.lt.s32.totalorder %s75_s13, %s75_s13 }
  0x37   :  { %p5343_p8 = scmp.lt.s32.totalorder %s5341_s16, %s5337_s15 }
  0x39   :  { %p5344_p9 = por %p5343_p8, %p5342_p7 }
  0x3b   :  { %p5345_p10 = pnand %p5344_p9, %p5338_p6 }
  0x3d   :  { %5348 = shalt.err (!%p5345_p10)
}
  0x3e   :  { %77 = dma.hbm_to_vmem [thread:$0]  %s5854_s6, 16, %s75_s13, [#allocation9]  }
  0x3f   :  { %s5357_s18 = scalar_lea.vmem %s85_s1, 16  ;;  %s5361_s3 = scalar_lea.vmem %s85_s1, 32 }
  0x40   :  { %p5358_p11 = scmp.ne.s32.totalorder %s85_s1, %s5357_s18  ;;  %p5362_p12 = scmp.lt.s32.totalorder %s85_s1, %s85_s1 }
  0x41   :  { %p5363_p13 = scmp.lt.s32.totalorder %s5361_s3, %s5357_s18 }
  0x43   :  { %p5364_p0 = por %p5363_p13, %p5362_p12 }
  0x45   :  { %p5365_p1 = pnand %p5364_p0, %p5358_p11 }
  0x47   :  { %5368 = shalt.err (!%p5365_p1)
}
  0x48   :  { %87 = dma.hbm_to_vmem [thread:$0]  %s5855_s7, 16, %s85_s1, [#allocation12]  }
  0x49   :  { %5369 = dma.done.wait [#allocation4], 244608  }
  0x4a   :  { %5370 = vsyncadd [#allocation4], 4294722688 }
  0x4b   :  { %5371 = dma.done.wait [#allocation6], 6464  }
  0x4c   :  { %5372 = vsyncadd [#allocation6], 4294960832 }
  0x4d   :  { %5373 = dma.done.wait [#allocation9], 32  }
  0x4e   :  { %5374 = vsyncadd [#allocation9], 4294967264 }
  0x4f   :  { %5375 = dma.done.wait [#allocation12], 16  }
  0x50   :  { %5376 = vsyncadd [#allocation12], 4294967280  ;;  %v307_v1 = vld [vmem:[#allocation3 + $0x620] sm:$0xff]  ;;  %v306_v3 = vld [vmem:[#allocation3 + $0x618] sm:$0xff]  ;;  %vm2076_vm0 = vcmask 195584   ;;  %vm4571_vm1 = vcmask 916480  }
  0x51   :  { %v723_v2 = vld [vmem:[#allocation3 + $0x1320] sm:$0xff]  ;;  %2079 = vmatprep.subr.mxu0 %v307_v1  ;;  %v722_v4 = vld [vmem:[#allocation3 + $0x1318] sm:$0xff]  ;;  %v293_v7 = vld [vmem:[#allocation3 + $0x5b0] sm:$0xff]  ;;  %s5390_s12 = smov 96   ;;  %vm4618_vm2 = vcmask 785408   ;;  %vm4717_vm3 = vcmask 130048  }
  0x52   :  { %2150 = vmatprep.subr.mxu1 %v723_v2  ;;  %v294_v5 = vld [vmem:[#allocation3 + $0x5b8] sm:$0xff]  ;;  %2080 = vmatpush1.msra.mxu0 %v306_v3  ;;  %v709_v8 = vld [vmem:[#allocation3 + $0x12b0] sm:$0xff]  ;;  %v280_v11 = vld [vmem:[#allocation3 + $0x548] sm:$0xff]  ;;  %vm5391_vm4 = vmmov 0   ;;  %vm4884_vm5 = vcmask 982016   ;;  %vm4967_vm6 = vcmask 680960  }
  0x53   :  { %v710_v6 = vld [vmem:[#allocation3 + $0x12b8] sm:$0xff]  ;;  %2151 = vmatpush1.msra.mxu1 %v722_v4  ;;  %v281_v9 = vld [vmem:[#allocation3 + $0x550] sm:$0xff]  ;;  %2081 = vmatprep.subr.mxu0 %v294_v5  ;;  %v696_v12 = vld [vmem:[#allocation3 + $0x1248] sm:$0xff]  ;;  %vm4979_vm7 = vcmask 1024  }
  0x54   :  { %2152 = vmatprep.subr.mxu1 %v710_v6  ;;  %v697_v10 = vld [vmem:[#allocation3 + $0x1250] sm:$0xff]  ;;  %2082 = vmatpush1.msra.mxu0 %v293_v7  ;;  %v268_v13 = vld [vmem:[#allocation3 + $0x4e8] sm:$0xff]  ;;  %v267_v15 = vld [vmem:[#allocation3 + $0x4e0] sm:$0xff] }
  0x55   :  { %2153 = vmatpush1.msra.mxu1 %v709_v8  ;;  %v684_v14 = vld [vmem:[#allocation3 + $0x11e8] sm:$0xff]  ;;  %2083 = vmatprep.subr.mxu0 %v281_v9  ;;  %v683_v16 = vld [vmem:[#allocation3 + $0x11e0] sm:$0xff]  ;;  %v254_v19 = vld [vmem:[#allocation3 + $0x478] sm:$0xff] }
  0x56   :  { %2154 = vmatprep.subr.mxu1 %v697_v10  ;;  %2084 = vmatpush1.msra.mxu0 %v280_v11  ;;  %v255_v17 = vld [vmem:[#allocation3 + $0x480] sm:$0xff]  ;;  %v670_v20 = vld [vmem:[#allocation3 + $0x1178] sm:$0xff]  ;;  %v241_v23 = vld [vmem:[#allocation3 + $0x410] sm:$0xff] }
  0x57   :  { %2155 = vmatpush1.msra.mxu1 %v696_v12  ;;  %v671_v18 = vld [vmem:[#allocation3 + $0x1180] sm:$0xff]  ;;  %2085 = vmatprep.subr.mxu0 %v268_v13  ;;  %v242_v21 = vld [vmem:[#allocation3 + $0x418] sm:$0xff]  ;;  %v657_v24 = vld [vmem:[#allocation3 + $0x1110] sm:$0xff] }
  0x58   :  { %2156 = vmatprep.subr.mxu1 %v684_v14  ;;  %2086 = vmatpush1.msra.mxu0 %v267_v15  ;;  %v658_v22 = vld [vmem:[#allocation3 + $0x1118] sm:$0xff]  ;;  %v229_v25 = vld [vmem:[#allocation3 + $0x3b0] sm:$0xff]  ;;  %v228_v27 = vld [vmem:[#allocation3 + $0x3a8] sm:$0xff] }
  0x59   :  { %2157 = vmatpush1.msra.mxu1 %v683_v16  ;;  %2087 = vmatprep.subr.mxu0 %v255_v17  ;;  %v645_v26 = vld [vmem:[#allocation3 + $0x10b0] sm:$0xff]  ;;  %v644_v28 = vld [vmem:[#allocation3 + $0x10a8] sm:$0xff]  ;;  %v215_v31 = vld [vmem:[#allocation3 + $0x340] sm:$0xff] }
  0x5a   :  { %2158 = vmatprep.subr.mxu1 %v671_v18  ;;  %2088 = vmatpush1.msra.mxu0 %v254_v19  ;;  %v216_v29 = vld [vmem:[#allocation3 + $0x348] sm:$0xff]  ;;  %v631_v32 = vld [vmem:[#allocation3 + $0x1040] sm:$0xff]  ;;  %v202_v35 = vld [vmem:[#allocation3 + $0x2d8] sm:$0xff] }
  0x5b   :  { %2159 = vmatpush1.msra.mxu1 %v670_v20  ;;  %2089 = vmatprep.subr.mxu0 %v242_v21  ;;  %v632_v30 = vld [vmem:[#allocation3 + $0x1048] sm:$0xff]  ;;  %v203_v33 = vld [vmem:[#allocation3 + $0x2e0] sm:$0xff]  ;;  %v618_v36 = vld [vmem:[#allocation3 + $0xfd8] sm:$0xff] }
  0x5c   :  { %2160 = vmatprep.subr.mxu1 %v658_v22  ;;  %2090 = vmatpush1.msra.mxu0 %v241_v23  ;;  %v619_v34 = vld [vmem:[#allocation3 + $0xfe0] sm:$0xff]  ;;  %v190_v37 = vld [vmem:[#allocation3 + $0x278] sm:$0xff]  ;;  %v189_v39 = vld [vmem:[#allocation3 + $0x270] sm:$0xff] }
  0x5d   :  { %2161 = vmatpush1.msra.mxu1 %v657_v24  ;;  %2091 = vmatprep.subr.mxu0 %v229_v25  ;;  %v606_v38 = vld [vmem:[#allocation3 + $0xf78] sm:$0xff]  ;;  %v605_v40 = vld [vmem:[#allocation3 + $0xf70] sm:$0xff]  ;;  %v176_v43 = vld [vmem:[#allocation3 + $0x208] sm:$0xff] }
  0x5e   :  { %2162 = vmatprep.subr.mxu1 %v645_v26  ;;  %2092 = vmatpush1.msra.mxu0 %v228_v27  ;;  %v177_v41 = vld [vmem:[#allocation3 + $0x210] sm:$0xff]  ;;  %v592_v44 = vld [vmem:[#allocation3 + $0xf08] sm:$0xff]  ;;  %v163_v47 = vld [vmem:[#allocation3 + $0x1a0] sm:$0xff] }
  0x5f   :  { %2163 = vmatpush1.msra.mxu1 %v644_v28  ;;  %2093 = vmatprep.subr.mxu0 %v216_v29  ;;  %v593_v42 = vld [vmem:[#allocation3 + $0xf10] sm:$0xff]  ;;  %v164_v45 = vld [vmem:[#allocation3 + $0x1a8] sm:$0xff]  ;;  %v579_v48 = vld [vmem:[#allocation3 + $0xea0] sm:$0xff] }
  0x60   :  { %2164 = vmatprep.subr.mxu1 %v632_v30  ;;  %2094 = vmatpush1.msra.mxu0 %v215_v31  ;;  %v580_v46 = vld [vmem:[#allocation3 + $0xea8] sm:$0xff]  ;;  %v151_v49 = vld [vmem:[#allocation3 + $0x140] sm:$0xff]  ;;  %v150_v51 = vld [vmem:[#allocation3 + $0x138] sm:$0xff]  ;;  %v5387_v31 = vmov 1983009808  }
  0x61   :  { %2165 = vmatpush1.msra.mxu1 %v631_v32  ;;  %2095 = vmatprep.subr.mxu0 %v203_v33  ;;  %v567_v50 = vld [vmem:[#allocation3 + $0xe40] sm:$0xff]  ;;  %v566_v52 = vld [vmem:[#allocation3 + $0xe38] sm:$0xff]  ;;  %v137_v55 = vld [vmem:[#allocation3 + $0xd0] sm:$0xff]  ;;  %v2027_v32 = vunpack.c.l.s4 %v5387_v31  ;;  %v2029_v33 = vlaneseq }
  0x62   :  { %2166 = vmatprep.subr.mxu1 %v619_v34  ;;  %2096 = vmatpush1.msra.mxu0 %v202_v35  ;;  %v138_v53 = vld [vmem:[#allocation3 + $0xd8] sm:$0xff]  ;;  %v553_v56 = vld [vmem:[#allocation3 + $0xdd0] sm:$0xff]  ;;  %v124_v59 = vld [vmem:[#allocation3 + $0x68] sm:$0xff] }
  0x63   :  { %2167 = vmatpush1.msra.mxu1 %v618_v36  ;;  %2097 = vmatprep.subr.mxu0 %v190_v37  ;;  %v554_v54 = vld [vmem:[#allocation3 + $0xdd8] sm:$0xff]  ;;  %v125_v57 = vld [vmem:[#allocation3 + $0x70] sm:$0xff]  ;;  %v540_v60 = vld [vmem:[#allocation3 + $0xd68] sm:$0xff] }
  0x64   :  { %2168 = vmatprep.subr.mxu1 %v606_v38  ;;  %2098 = vmatpush1.msra.mxu0 %v189_v39  ;;  %v541_v58 = vld [vmem:[#allocation3 + $0xd70] sm:$0xff]  ;;  %v112_v61 = vld [vmem:[#allocation3 + $0x8] sm:$0xff]  ;;  %v111_v63 = vld [vmem:[#allocation3] sm:$0xff] }
  0x65   :  { %2169 = vmatpush1.msra.mxu1 %v605_v40  ;;  %2099 = vmatprep.subr.mxu0 %v177_v41  ;;  %v528_v62 = vld [vmem:[#allocation3 + $0xd08] sm:$0xff]  ;;  %v527_v0 = vld [vmem:[#allocation3 + $0xd00] sm:$0xff]  ;;  %v514_v3 = vld [vmem:[#allocation3 + $0xc98] sm:$0xff] }
  0x66   :  { %2170 = vmatprep.subr.mxu1 %v593_v42  ;;  %2100 = vmatpush1.msra.mxu0 %v176_v43  ;;  %v515_v1 = vld [vmem:[#allocation3 + $0xca0] sm:$0xff]  ;;  %v930_v4 = vld [vmem:[#allocation3 + $0x1998] sm:$0xff]  ;;  %v501_v7 = vld [vmem:[#allocation3 + $0xc30] sm:$0xff]  ;;  %v2028_v42 = vunpack.c.0.s8 %v2027_v32  ;;  %v5463_v43 = vshrl.u32 %v2029_v33, 7 }
  0x67   :  { %2171 = vmatpush1.msra.mxu1 %v592_v44  ;;  %2101 = vmatprep.subr.mxu0 %v164_v45  ;;  %v931_v2 = vld [vmem:[#allocation3 + $0x19a0] sm:$0xff]  ;;  %v502_v5 = vld [vmem:[#allocation3 + $0xc38] sm:$0xff]  ;;  %v917_v8 = vld [vmem:[#allocation3 + $0x1930] sm:$0xff] }
  0x68   :  { %2172 = vmatprep.subr.mxu1 %v580_v46  ;;  %2102 = vmatpush1.msra.mxu0 %v163_v47  ;;  %v918_v6 = vld [vmem:[#allocation3 + $0x1938] sm:$0xff]  ;;  %v489_v9 = vld [vmem:[#allocation3 + $0xbd0] sm:$0xff]  ;;  %v488_v11 = vld [vmem:[#allocation3 + $0xbc8] sm:$0xff] }
  0x69   :  { %2173 = vmatpush1.msra.mxu1 %v579_v48  ;;  %2103 = vmatprep.subr.mxu0 %v151_v49  ;;  %v905_v10 = vld [vmem:[#allocation3 + $0x18d0] sm:$0xff]  ;;  %v904_v12 = vld [vmem:[#allocation3 + $0x18c8] sm:$0xff]  ;;  %v475_v15 = vld [vmem:[#allocation3 + $0xb60] sm:$0xff] }
  0x6a   :  { %2174 = vmatprep.subr.mxu1 %v567_v50  ;;  %2104 = vmatpush1.msra.mxu0 %v150_v51  ;;  %v476_v13 = vld [vmem:[#allocation3 + $0xb68] sm:$0xff]  ;;  %v891_v16 = vld [vmem:[#allocation3 + $0x1860] sm:$0xff]  ;;  %v462_v19 = vld [vmem:[#allocation3 + $0xaf8] sm:$0xff] }
  0x6b   :  { %2175 = vmatpush1.msra.mxu1 %v566_v52  ;;  %2105 = vmatprep.subr.mxu0 %v138_v53  ;;  %v892_v14 = vld [vmem:[#allocation3 + $0x1868] sm:$0xff]  ;;  %v463_v17 = vld [vmem:[#allocation3 + $0xb00] sm:$0xff]  ;;  %v878_v20 = vld [vmem:[#allocation3 + $0x17f8] sm:$0xff]  ;;  %v5469_v53 = vsub.s32 %v2028_v42, %v5463_v43 }
  0x6c   :  { %2176 = vmatprep.subr.mxu1 %v554_v54  ;;  %2106 = vmatpush1.msra.mxu0 %v137_v55  ;;  %v879_v18 = vld [vmem:[#allocation3 + $0x1800] sm:$0xff]  ;;  %v450_v21 = vld [vmem:[#allocation3 + $0xa98] sm:$0xff]  ;;  %v449_v23 = vld [vmem:[#allocation3 + $0xa90] sm:$0xff] }
  0x6d   :  { %2177 = vmatpush1.msra.mxu1 %v553_v56  ;;  %2107 = vmatprep.subr.mxu0 %v125_v57  ;;  %v866_v22 = vld [vmem:[#allocation3 + $0x1798] sm:$0xff]  ;;  %v865_v24 = vld [vmem:[#allocation3 + $0x1790] sm:$0xff]  ;;  %v436_v27 = vld [vmem:[#allocation3 + $0xa28] sm:$0xff] }
  0x6e   :  { %2178 = vmatprep.subr.mxu1 %v541_v58  ;;  %2108 = vmatpush1.msra.mxu0 %v124_v59  ;;  %v437_v25 = vld [vmem:[#allocation3 + $0xa30] sm:$0xff]  ;;  %v852_v28 = vld [vmem:[#allocation3 + $0x1728] sm:$0xff]  ;;  %v423_v34 = vld [vmem:[#allocation3 + $0x9c0] sm:$0xff] }
  0x6f   :  { %2179 = vmatpush1.msra.mxu1 %v540_v60  ;;  %2109 = vmatprep.subr.mxu0 %v112_v61  ;;  %v853_v26 = vld [vmem:[#allocation3 + $0x1730] sm:$0xff]  ;;  %v424_v29 = vld [vmem:[#allocation3 + $0x9c8] sm:$0xff]  ;;  %v839_v35 = vld [vmem:[#allocation3 + $0x16c0] sm:$0xff] }
  0x70   :  { %2180 = vmatprep.subr.mxu1 %v528_v62  ;;  %2110 = vmatpush1.msra.mxu0 %v111_v63  ;;  %v840_v30 = vld [vmem:[#allocation3 + $0x16c8] sm:$0xff]  ;;  %v411_v36 = vld [vmem:[#allocation3 + $0x960] sm:$0xff]  ;;  %v410_v38 = vld [vmem:[#allocation3 + $0x958] sm:$0xff] }
  0x71   :  { %2181 = vmatpush1.msra.mxu1 %v527_v0  ;;  %2111 = vmatprep.subr.mxu0 %v515_v1  ;;  %v827_v37 = vld [vmem:[#allocation3 + $0x1660] sm:$0xff]  ;;  %v826_v39 = vld [vmem:[#allocation3 + $0x1658] sm:$0xff]  ;;  %v397_v44 = vld [vmem:[#allocation3 + $0x8f0] sm:$0xff] }
  0x72   :  { %2182 = vmatprep.subr.mxu1 %v931_v2  ;;  %2112 = vmatpush2.msra.mxu0 %v514_v3  ;;  %v398_v40 = vld [vmem:[#allocation3 + $0x8f8] sm:$0xff]  ;;  %v813_v45 = vld [vmem:[#allocation3 + $0x15f0] sm:$0xff]  ;;  %v384_v49 = vld [vmem:[#allocation3 + $0x888] sm:$0xff] }
  0x73   :  { %2183 = vmatpush2.msra.mxu1 %v930_v4  ;;  %2113 = vmatprep.subr.mxu0 %v502_v5  ;;  %v814_v41 = vld [vmem:[#allocation3 + $0x15f8] sm:$0xff]  ;;  %v385_v46 = vld [vmem:[#allocation3 + $0x890] sm:$0xff]  ;;  %v800_v50 = vld [vmem:[#allocation3 + $0x1588] sm:$0xff] }
  0x74   :  { %2184 = vmatprep.subr.mxu1 %v918_v6  ;;  %2114 = vmatpush2.msra.mxu0 %v501_v7  ;;  %v801_v47 = vld [vmem:[#allocation3 + $0x1590] sm:$0xff]  ;;  %v108_v48 = vld [vmem:[%s5848_s0] sm:$0xff]  ;;  %v372_v51 = vld [vmem:[#allocation3 + $0x828] sm:$0xff] }
  0x75   :  { %2185 = vmatpush2.msra.mxu1 %v917_v8  ;;  %2115 = vmatprep.subr.mxu0 %v489_v9  ;;  %v788_v52 = vld [vmem:[#allocation3 + $0x1528] sm:$0xff]  ;;  %v371_v54 = vld [vmem:[#allocation3 + $0x820] sm:$0xff]  ;;  %v2025_v56 = vcombine.high %v108_v48, %v108_v48  ;;  %v358_v59 = vld [vmem:[#allocation3 + $0x7b8] sm:$0xff]  ;;  %v5472_v63 = vrot.slane %v108_v48, %v5469_v53 }
  0x76   :  { %2186 = vmatprep.subr.mxu1 %v905_v10  ;;  %2116 = vmatpush2.msra.mxu0 %v488_v11  ;;  %v787_v55 = vld [vmem:[#allocation3 + $0x1520] sm:$0xff]  ;;  %v774_v60 = vld [vmem:[#allocation3 + $0x14b8] sm:$0xff]  ;;  %v345_v0 = vld [vmem:[#allocation3 + $0x750] sm:$0xff] }
  0x77   :  { %2187 = vmatpush2.msra.mxu1 %v904_v12  ;;  %2117 = vmatprep.subr.mxu0 %v476_v13  ;;  %v359_v57 = vld [vmem:[#allocation3 + $0x7c0] sm:$0xff]  ;;  %v346_v61 = vld [vmem:[#allocation3 + $0x758] sm:$0xff]  ;;  %v761_v1 = vld [vmem:[#allocation3 + $0x1450] sm:$0xff]  ;;  %v5475_v2 = vrot.slane %v2025_v56, %v5469_v53  ;;  %v5479_v9 = vcombine.high %v5472_v63, %v5472_v63 }
  0x78   :  { %2188 = vmatprep.subr.mxu1 %v892_v14  ;;  %2118 = vmatpush2.msra.mxu0 %v475_v15  ;;  %v775_v58 = vld [vmem:[#allocation3 + $0x14c0] sm:$0xff]  ;;  %v762_v62 = vld [vmem:[#allocation3 + $0x1458] sm:$0xff]  ;;  %v333_v3 = vld [vmem:[#allocation3 + $0x6f0] sm:$0xff] }
  0x79   :  { %2189 = vmatpush2.msra.mxu1 %v891_v16  ;;  %2119 = vmatprep.subr.mxu0 %v463_v17  ;;  %v749_v4 = vld [vmem:[#allocation3 + $0x13f0] sm:$0xff]  ;;  %v332_v5 = vld [vmem:[#allocation3 + $0x6e8] sm:$0xff]  ;;  %v319_v10 = vld [vmem:[#allocation3 + $0x680] sm:$0xff]  ;;  %v5483_v11 = vcombine.high %v5475_v2, %v5475_v2 }
  0x7a   :  { %2190 = vmatprep.subr.mxu1 %v879_v18  ;;  %2120 = vmatpush2.msra.mxu0 %v462_v19  ;;  %v748_v6 = vld [vmem:[#allocation3 + $0x13e8] sm:$0xff]  ;;  %v735_v12 = vld [vmem:[#allocation3 + $0x1380] sm:$0xff]  ;;  %v1138_v15 = vld [vmem:[#allocation3 + $0x2018] sm:$0xff] }
  0x7b   :  { %2191 = vmatpush2.msra.mxu1 %v878_v20  ;;  %2121 = vmatprep.subr.mxu0 %v450_v21  ;;  %v320_v7 = vld [vmem:[#allocation3 + $0x688] sm:$0xff]  ;;  %v1139_v13 = vld [vmem:[#allocation3 + $0x2020] sm:$0xff]  ;;  %v1554_v16 = vld [vmem:[#allocation3 + $0x2d18] sm:$0xff] }
  0x7c   :  { %2192 = vmatprep.subr.mxu1 %v866_v22  ;;  %2122 = vmatpush2.msra.mxu0 %v449_v23  ;;  %v736_v8 = vld [vmem:[#allocation3 + $0x1388] sm:$0xff]  ;;  %v1555_v14 = vld [vmem:[#allocation3 + $0x2d20] sm:$0xff]  ;;  %v1126_v17 = vld [vmem:[#allocation3 + $0x1fb8] sm:$0xff] }
  0x7d   :  { %2193 = vmatpush2.msra.mxu1 %v865_v24  ;;  %2123 = vmatprep.subr.mxu0 %v437_v25  ;;  %v1542_v18 = vld [vmem:[#allocation3 + $0x2cb8] sm:$0xff]  ;;  %v1125_v19 = vld [vmem:[#allocation3 + $0x1fb0] sm:$0xff]  ;;  %v1112_v23 = vld [vmem:[#allocation3 + $0x1f48] sm:$0xff] }
  0x7e   :  { %2194 = vmatprep.subr.mxu1 %v853_v26  ;;  %2124 = vmatpush2.msra.mxu0 %v436_v27  ;;  %v1541_v20 = vld [vmem:[#allocation3 + $0x2cb0] sm:$0xff]  ;;  %v1528_v24 = vld [vmem:[#allocation3 + $0x2c48] sm:$0xff]  ;;  %v1099_v27 = vld [vmem:[#allocation3 + $0x1ee0] sm:$0xff] }
  0x7f   :  { %2195 = vmatpush2.msra.mxu1 %v852_v28  ;;  %2125 = vmatprep.subr.mxu0 %v424_v29  ;;  %v1113_v21 = vld [vmem:[#allocation3 + $0x1f50] sm:$0xff]  ;;  %v1100_v25 = vld [vmem:[#allocation3 + $0x1ee8] sm:$0xff]  ;;  %v1515_v28 = vld [vmem:[#allocation3 + $0x2be0] sm:$0xff] }
  0x80   :  { %2196 = vmatprep.subr.mxu1 %v840_v30  ;;  %2126 = vmatpush2.msra.mxu0 %v423_v34  ;;  %v1529_v22 = vld [vmem:[#allocation3 + $0x2c50] sm:$0xff]  ;;  %v1516_v26 = vld [vmem:[#allocation3 + $0x2be8] sm:$0xff]  ;;  %v1087_v29 = vld [vmem:[#allocation3 + $0x1e80] sm:$0xff] }
  0x81   :  { %2197 = vmatpush2.msra.mxu1 %v839_v35  ;;  %2127 = vmatprep.subr.mxu0 %v411_v36  ;;  %v1503_v30 = vld [vmem:[#allocation3 + $0x2b80] sm:$0xff]  ;;  %v1086_v31 = vld [vmem:[#allocation3 + $0x1e78] sm:$0xff]  ;;  %v1073_v35 = vld [vmem:[#allocation3 + $0x1e10] sm:$0xff] }
  0x82   :  { %2198 = vmatprep.subr.mxu1 %v827_v37  ;;  %2128 = vmatpush2.msra.mxu0 %v410_v38  ;;  %v1502_v32 = vld [vmem:[#allocation3 + $0x2b78] sm:$0xff]  ;;  %v1489_v36 = vld [vmem:[#allocation3 + $0x2b10] sm:$0xff]  ;;  %v1464_v42 = vld [vmem:[#allocation3 + $0x2a48] sm:$0xff] }
  0x83   :  { %2199 = vmatpush2.msra.mxu1 %v826_v39  ;;  %2129 = vmatprep.subr.mxu0 %v398_v40  ;;  %v1074_v33 = vld [vmem:[#allocation3 + $0x1e18] sm:$0xff]  ;;  %v1061_v37 = vld [vmem:[#allocation3 + $0x1db0] sm:$0xff]  ;;  %v1060_v39 = vld [vmem:[#allocation3 + $0x1da8] sm:$0xff] }
  0x84   :  { %2200 = vmatprep.subr.mxu1 %v814_v41  ;;  %2130 = vmatpush2.msra.mxu0 %v397_v44  ;;  %v1490_v34 = vld [vmem:[#allocation3 + $0x2b18] sm:$0xff]  ;;  %v1477_v38 = vld [vmem:[#allocation3 + $0x2ab0] sm:$0xff]  ;;  %v1476_v40 = vld [vmem:[#allocation3 + $0x2aa8] sm:$0xff] }
  0x85   :  { %2201 = vmatpush2.msra.mxu1 %v813_v45  ;;  %2131 = vmatprep.subr.mxu0 %v385_v46  ;;  %v1048_v41 = vld [vmem:[#allocation3 + $0x1d48] sm:$0xff]  ;;  %v1047_v44 = vld [vmem:[#allocation3 + $0x1d40] sm:$0xff]  ;;  %v1034_v48 = vld [vmem:[#allocation3 + $0x1cd8] sm:$0xff] }
  0x86   :  { %2202 = vmatprep.subr.mxu1 %v801_v47  ;;  %2132 = vmatpush2.msra.mxu0 %v384_v49  ;;  %v1463_v45 = vld [vmem:[#allocation3 + $0x2a40] sm:$0xff]  ;;  %v1450_v49 = vld [vmem:[#allocation3 + $0x29d8] sm:$0xff]  ;;  %v1425_v56 = vld [vmem:[#allocation3 + $0x2910] sm:$0xff] }
  0x87   :  { %2203 = vmatpush2.msra.mxu1 %v800_v50  ;;  %2133 = vmatprep.subr.mxu0 %v372_v51  ;;  %v1035_v46 = vld [vmem:[#allocation3 + $0x1ce0] sm:$0xff]  ;;  %v1022_v50 = vld [vmem:[#allocation3 + $0x1c78] sm:$0xff] }
  0x88   :  { %2204 = vmatprep.subr.mxu1 %v788_v52  ;;  %2134 = vmatpush2.msra.mxu0 %v371_v54  ;;  %v1451_v47 = vld [vmem:[#allocation3 + $0x29e0] sm:$0xff]  ;;  %v1438_v51 = vld [vmem:[#allocation3 + $0x2978] sm:$0xff]  ;;  %v1021_v52 = vld [vmem:[#allocation3 + $0x1c70] sm:$0xff] }
  0x89   :  { %2205 = vmatpush2.msra.mxu1 %v787_v55  ;;  %2135 = vmatprep.subr.mxu0 %v359_v57  ;;  %v1437_v54 = vld [vmem:[#allocation3 + $0x2970] sm:$0xff]  ;;  %v1008_v57 = vld [vmem:[#allocation3 + $0x1c08] sm:$0xff] }
  0x8a   :  { %2206 = vmatprep.subr.mxu1 %v775_v58  ;;  %2136 = vmatpush2.msra.mxu0 %v358_v59  ;;  %v1009_v55 = vld [vmem:[#allocation3 + $0x1c10] sm:$0xff]  ;;  %v1424_v58 = vld [vmem:[#allocation3 + $0x2908] sm:$0xff] }
  0x8b   :  { %2207 = vmatpush2.msra.mxu1 %v774_v60  ;;  %2137 = vmatprep.subr.mxu0 %v346_v61  ;;  %v996_v59 = vld [vmem:[#allocation3 + $0x1ba8] sm:$0xff]  ;;  %v995_v61 = vld [vmem:[#allocation3 + $0x1ba0] sm:$0xff] }
  0x8c   :  { %2208 = vmatprep.subr.mxu1 %v762_v62  ;;  %2138 = vmatpush2.msra.mxu0 %v345_v0  ;;  %v1412_v60 = vld [vmem:[#allocation3 + $0x28a8] sm:$0xff]  ;;  %v1411_v62 = vld [vmem:[#allocation3 + $0x28a0] sm:$0xff] }
  0x8d   :  { %2209 = vmatpush2.msra.mxu1 %v761_v1  ;;  %2139 = vmatprep.subr.mxu0 %v333_v3  ;;  %v983_v0 = vld [vmem:[#allocation3 + $0x1b40] sm:$0xff]  ;;  %v982_v3 = vld [vmem:[#allocation3 + $0x1b38] sm:$0xff] }
  0x8e   :  { %2210 = vmatprep.subr.mxu1 %v749_v4  ;;  %2140 = vmatpush2.msra.mxu0 %v332_v5  ;;  %v1399_v1 = vld [vmem:[#allocation3 + $0x2840] sm:$0xff]  ;;  %v1398_v4 = vld [vmem:[#allocation3 + $0x2838] sm:$0xff] }
  0x8f   :  { %2211 = vmatpush2.msra.mxu1 %v748_v6  ;;  %2141 = vmatprep.subr.mxu0 %v320_v7  ;;  %v970_v5 = vld [vmem:[#allocation3 + $0x1ad8] sm:$0xff]  ;;  %v969_v7 = vld [vmem:[#allocation3 + $0x1ad0] sm:$0xff] }
  0x90   :  { %2212 = vmatprep.subr.mxu1 %v736_v8  ;;  %2142 = vmatpush2.msra.mxu0 %v319_v10  ;;  %v1386_v6 = vld [vmem:[#allocation3 + $0x27d8] sm:$0xff]  ;;  %v1385_v8 = vld [vmem:[#allocation3 + $0x27d0] sm:$0xff] }
  0x91   :  { %2143 = vmatprep.mubr.f32.mxu0 %v5479_v9  ;;  %2213 = vmatpush2.msra.mxu1 %v735_v12  ;;  %v957_v10 = vld [vmem:[#allocation3 + $0x1a70] sm:$0xff] }
  0x92   :  { %2214 = vmatprep.mubr.f32.mxu1 %v5483_v11  ;;  %2144 = vmatmul.mubr.f32.vlgmr.msra.gmra.mxu0 %v5472_v63  ;;  %v1373_v12 = vld [vmem:[#allocation3 + $0x2770] sm:$0xff] }
  0x93   :  { %2215 = vmatmul.mubr.f32.vlgmr.msra.gmra.mxu1 %v5475_v2  ;;  %2221 = vmatprep.subr.mxu0 %v1139_v13  ;;  %v956_v13 = vld [vmem:[#allocation3 + $0x1a68] sm:$0xff] }
  0x94   :  { %2292 = vmatprep.subr.mxu1 %v1555_v14  ;;  %2222 = vmatpush1.msra.mxu0 %v1138_v15  ;;  %v1372_v14 = vld [vmem:[#allocation3 + $0x2768] sm:$0xff] }
  0x95   :  { %2293 = vmatpush1.msra.mxu1 %v1554_v16  ;;  %2223 = vmatprep.subr.mxu0 %v1126_v17  ;;  %v944_v15 = vld [vmem:[#allocation3 + $0x1a08] sm:$0xff]  ;;  %v943_v17 = vld [vmem:[#allocation3 + $0x1a00] sm:$0xff] }
  0x96   :  { %2294 = vmatprep.subr.mxu1 %v1542_v18  ;;  %2224 = vmatpush1.msra.mxu0 %v1125_v19  ;;  %v1360_v16 = vld [vmem:[#allocation3 + $0x2708] sm:$0xff]  ;;  %v1359_v18 = vld [vmem:[#allocation3 + $0x2700] sm:$0xff] }
  0x97   :  { %2295 = vmatpush1.msra.mxu1 %v1541_v20  ;;  %2225 = vmatprep.subr.mxu0 %v1113_v21  ;;  %v1347_v19 = vld [vmem:[#allocation3 + $0x26a0] sm:$0xff]  ;;  %v1346_v21 = vld [vmem:[#allocation3 + $0x2698] sm:$0xff] }
  0x98   :  { %2296 = vmatprep.subr.mxu1 %v1529_v22  ;;  %2226 = vmatpush1.msra.mxu0 %v1112_v23  ;;  %v1763_v20 = vld [vmem:[#allocation3 + $0x33a0] sm:$0xff]  ;;  %v1762_v22 = vld [vmem:[#allocation3 + $0x3398] sm:$0xff] }
  0x99   :  { %2297 = vmatpush1.msra.mxu1 %v1528_v24  ;;  %2227 = vmatprep.subr.mxu0 %v1100_v25  ;;  %v1334_v23 = vld [vmem:[#allocation3 + $0x2638] sm:$0xff]  ;;  %v1333_v25 = vld [vmem:[#allocation3 + $0x2630] sm:$0xff] }
  0x9a   :  { %2298 = vmatprep.subr.mxu1 %v1516_v26  ;;  %2228 = vmatpush1.msra.mxu0 %v1099_v27  ;;  %v1750_v24 = vld [vmem:[#allocation3 + $0x3338] sm:$0xff]  ;;  %v1749_v26 = vld [vmem:[#allocation3 + $0x3330] sm:$0xff] }
  0x9b   :  { %2299 = vmatpush1.msra.mxu1 %v1515_v28  ;;  %2229 = vmatprep.subr.mxu0 %v1087_v29  ;;  %v1321_v27 = vld [vmem:[#allocation3 + $0x25d0] sm:$0xff]  ;;  %v1320_v29 = vld [vmem:[#allocation3 + $0x25c8] sm:$0xff] }
  0x9c   :  { %2300 = vmatprep.subr.mxu1 %v1503_v30  ;;  %2230 = vmatpush1.msra.mxu0 %v1086_v31  ;;  %v1737_v28 = vld [vmem:[#allocation3 + $0x32d0] sm:$0xff]  ;;  %v1736_v30 = vld [vmem:[#allocation3 + $0x32c8] sm:$0xff] }
  0x9d   :  { %2301 = vmatpush1.msra.mxu1 %v1502_v32  ;;  %2231 = vmatprep.subr.mxu0 %v1074_v33  ;;  %v1308_v31 = vld [vmem:[#allocation3 + $0x2568] sm:$0xff]  ;;  %v1307_v33 = vld [vmem:[#allocation3 + $0x2560] sm:$0xff] }
  0x9e   :  { %2302 = vmatprep.subr.mxu1 %v1490_v34  ;;  %2232 = vmatpush1.msra.mxu0 %v1073_v35  ;;  %v1724_v32 = vld [vmem:[#allocation3 + $0x3268] sm:$0xff]  ;;  %v1723_v34 = vld [vmem:[#allocation3 + $0x3260] sm:$0xff] }
  0x9f   :  { %2303 = vmatpush1.msra.mxu1 %v1489_v36  ;;  %2233 = vmatprep.subr.mxu0 %v1061_v37  ;;  %v1295_v35 = vld [vmem:[#allocation3 + $0x2500] sm:$0xff]  ;;  %v1294_v37 = vld [vmem:[#allocation3 + $0x24f8] sm:$0xff] }
  0xa0   :  { %2304 = vmatprep.subr.mxu1 %v1477_v38  ;;  %2234 = vmatpush1.msra.mxu0 %v1060_v39  ;;  %v1711_v36 = vld [vmem:[#allocation3 + $0x3200] sm:$0xff]  ;;  %v1710_v38 = vld [vmem:[#allocation3 + $0x31f8] sm:$0xff] }
  0xa1   :  { %2305 = vmatpush1.msra.mxu1 %v1476_v40  ;;  %2235 = vmatprep.subr.mxu0 %v1048_v41  ;;  %v1282_v39 = vld [vmem:[#allocation3 + $0x2498] sm:$0xff]  ;;  %v1281_v41 = vld [vmem:[#allocation3 + $0x2490] sm:$0xff] }
  0xa2   :  { %2306 = vmatprep.subr.mxu1 %v1464_v42  ;;  %2236 = vmatpush1.msra.mxu0 %v1047_v44  ;;  %v1698_v40 = vld [vmem:[#allocation3 + $0x3198] sm:$0xff]  ;;  %v1697_v42 = vld [vmem:[#allocation3 + $0x3190] sm:$0xff] }
  0xa3   :  { %2307 = vmatpush1.msra.mxu1 %v1463_v45  ;;  %2237 = vmatprep.subr.mxu0 %v1035_v46  ;;  %v1269_v44 = vld [vmem:[#allocation3 + $0x2430] sm:$0xff]  ;;  %v1268_v46 = vld [vmem:[#allocation3 + $0x2428] sm:$0xff] }
  0xa4   :  { %2308 = vmatprep.subr.mxu1 %v1451_v47  ;;  %2238 = vmatpush1.msra.mxu0 %v1034_v48  ;;  %v1685_v45 = vld [vmem:[#allocation3 + $0x3130] sm:$0xff]  ;;  %v1684_v47 = vld [vmem:[#allocation3 + $0x3128] sm:$0xff] }
  0xa5   :  { %2309 = vmatpush1.msra.mxu1 %v1450_v49  ;;  %2239 = vmatprep.subr.mxu0 %v1022_v50  ;;  %v1256_v48 = vld [vmem:[#allocation3 + $0x23c8] sm:$0xff]  ;;  %v1255_v50 = vld [vmem:[#allocation3 + $0x23c0] sm:$0xff] }
  0xa6   :  { %2310 = vmatprep.subr.mxu1 %v1438_v51  ;;  %2240 = vmatpush1.msra.mxu0 %v1021_v52  ;;  %v1672_v49 = vld [vmem:[#allocation3 + $0x30c8] sm:$0xff]  ;;  %v1671_v51 = vld [vmem:[#allocation3 + $0x30c0] sm:$0xff] }
  0xa7   :  { %2311 = vmatpush1.msra.mxu1 %v1437_v54  ;;  %2241 = vmatprep.subr.mxu0 %v1009_v55  ;;  %v1243_v52 = vld [vmem:[#allocation3 + $0x2360] sm:$0xff]  ;;  %v1242_v55 = vld [vmem:[#allocation3 + $0x2358] sm:$0xff] }
  0xa8   :  { %2312 = vmatprep.subr.mxu1 %v1425_v56  ;;  %2242 = vmatpush1.msra.mxu0 %v1008_v57  ;;  %v1659_v54 = vld [vmem:[#allocation3 + $0x3060] sm:$0xff]  ;;  %v1658_v56 = vld [vmem:[#allocation3 + $0x3058] sm:$0xff] }
  0xa9   :  { %2313 = vmatpush1.msra.mxu1 %v1424_v58  ;;  %2243 = vmatprep.subr.mxu0 %v996_v59  ;;  %v1230_v57 = vld [vmem:[#allocation3 + $0x22f8] sm:$0xff]  ;;  %v1229_v59 = vld [vmem:[#allocation3 + $0x22f0] sm:$0xff] }
  0xaa   :  { %2314 = vmatprep.subr.mxu1 %v1412_v60  ;;  %2244 = vmatpush1.msra.mxu0 %v995_v61  ;;  %v1646_v58 = vld [vmem:[#allocation3 + $0x2ff8] sm:$0xff]  ;;  %v1645_v60 = vld [vmem:[#allocation3 + $0x2ff0] sm:$0xff] }
  0xab   :  { %2315 = vmatpush1.msra.mxu1 %v1411_v62  ;;  %2245 = vmatprep.subr.mxu0 %v983_v0  ;;  %v1217_v61 = vld [vmem:[#allocation3 + $0x2290] sm:$0xff]  ;;  %v1216_v0 = vld [vmem:[#allocation3 + $0x2288] sm:$0xff] }
  0xac   :  { %2316 = vmatprep.subr.mxu1 %v1399_v1  ;;  %2246 = vmatpush1.msra.mxu0 %v982_v3  ;;  %v1633_v62 = vld [vmem:[#allocation3 + $0x2f90] sm:$0xff]  ;;  %v1632_v1 = vld [vmem:[#allocation3 + $0x2f88] sm:$0xff] }
  0xad   :  { %2317 = vmatpush1.msra.mxu1 %v1398_v4  ;;  %2247 = vmatprep.subr.mxu0 %v970_v5  ;;  %v109_v3 = vld [vmem:[%s5848_s0 + $0x8] sm:$0xff] }
  0xae   :  { %2318 = vmatprep.subr.mxu1 %v1386_v6  ;;  %2248 = vmatpush1.msra.mxu0 %v969_v7  ;;  %v1204_v4 = vld [vmem:[#allocation3 + $0x2228] sm:$0xff]  ;;  %v1203_v6 = vld [vmem:[#allocation3 + $0x2220] sm:$0xff] }
  0xaf   :  { %2319 = vmatpush1.msra.mxu1 %v1385_v8  ;;  %2249 = vmatprep.subr.mxu0 %v957_v10  ;;  %v1620_v5 = vld [vmem:[#allocation3 + $0x2f28] sm:$0xff]  ;;  %v1619_v7 = vld [vmem:[#allocation3 + $0x2f20] sm:$0xff] }
  0xb0   :  { %2320 = vmatprep.subr.mxu1 %v1373_v12  ;;  %2250 = vmatpush1.msra.mxu0 %v956_v13  ;;  %v1191_v8 = vld [vmem:[#allocation3 + $0x21c0] sm:$0xff]  ;;  %v2042_v12 = vcombine.high %v109_v3, %v109_v3  ;;  %v1190_v13 = vld [vmem:[#allocation3 + $0x21b8] sm:$0xff] }
  0xb1   :  { %2321 = vmatpush1.msra.mxu1 %v1372_v14  ;;  %2251 = vmatprep.subr.mxu0 %v944_v15  ;;  %v1607_v10 = vld [vmem:[#allocation3 + $0x2ec0] sm:$0xff]  ;;  %v1606_v14 = vld [vmem:[#allocation3 + $0x2eb8] sm:$0xff] }
  0xb2   :  { %2322 = vmatprep.subr.mxu1 %v1360_v16  ;;  %2252 = vmatpush1.msra.mxu0 %v943_v17  ;;  %v1178_v15 = vld [vmem:[#allocation3 + $0x2158] sm:$0xff]  ;;  %v5493_v17 = vrot.slane %v109_v3, %v5469_v53  ;;  %v205_v3 = vld [vmem:[#allocation3 + $0x2f0] sm:$0xff] }
  0xb3   :  { %2323 = vmatpush1.msra.mxu1 %v1359_v18  ;;  %2253 = vmatprep.subr.mxu0 %v1347_v19  ;;  %v1594_v16 = vld [vmem:[#allocation3 + $0x2e58] sm:$0xff]  ;;  %v1177_v18 = vld [vmem:[#allocation3 + $0x2150] sm:$0xff] }
  0xb4   :  { %2324 = vmatprep.subr.mxu1 %v1763_v20  ;;  %2254 = vmatpush2.msra.mxu0 %v1346_v21  ;;  %v1593_v19 = vld [vmem:[#allocation3 + $0x2e50] sm:$0xff] }
  0xb5   :  { %2325 = vmatpush2.msra.mxu1 %v1762_v22  ;;  %2255 = vmatprep.subr.mxu0 %v1334_v23  ;;  %v1165_v20 = vld [vmem:[#allocation3 + $0x20f0] sm:$0xff]  ;;  %v5496_v22 = vrot.slane %v2042_v12, %v5469_v53  ;;  %v1164_v23 = vld [vmem:[#allocation3 + $0x20e8] sm:$0xff] }
  0xb6   :  { %2326 = vmatprep.subr.mxu1 %v1750_v24  ;;  %2256 = vmatpush2.msra.mxu0 %v1333_v25  ;;  %v1581_v21 = vld [vmem:[#allocation3 + $0x2df0] sm:$0xff]  ;;  %v1580_v24 = vld [vmem:[#allocation3 + $0x2de8] sm:$0xff] }
  0xb7   :  { %2327 = vmatpush2.msra.mxu1 %v1749_v26  ;;  %2257 = vmatprep.subr.mxu0 %v1321_v27  ;;  %v1152_v25 = vld [vmem:[#allocation3 + $0x2088] sm:$0xff]  ;;  %v5500_v27 = vcombine.high %v5493_v17, %v5493_v17  ;;  %v5504_v53 = vcombine.high %v5496_v22, %v5496_v22  ;;  %v1841_v12 = vld [vmem:[#allocation3 + $0x3610] sm:$0xff] }
  0xb8   :  { %2328 = vmatprep.subr.mxu1 %v1737_v28  ;;  %2258 = vmatpush2.msra.mxu0 %v1320_v29  ;;  %v1568_v26 = vld [vmem:[#allocation3 + $0x2d88] sm:$0xff]  ;;  %v1151_v28 = vld [vmem:[#allocation3 + $0x2080] sm:$0xff] }
  0xb9   :  { %2329 = vmatpush2.msra.mxu1 %v1736_v30  ;;  %2259 = vmatprep.subr.mxu0 %v1308_v31  ;;  %v1567_v29 = vld [vmem:[#allocation3 + $0x2d80] sm:$0xff]  ;;  %v309_v31 = vld [vmem:[#allocation3 + $0x630] sm:$0xff] }
  0xba   :  { %2330 = vmatprep.subr.mxu1 %v1724_v32  ;;  %2260 = vmatpush2.msra.mxu0 %v1307_v33  ;;  %v1971_v30 = vld [vmem:[#allocation3 + $0x3a20] sm:$0xff]  ;;  %v1970_v32 = vld [vmem:[#allocation3 + $0x3a18] sm:$0xff]  ;;  %v308_v33 = vld [vmem:[#allocation3 + $0x628] sm:$0xff] }
  0xbb   :  { %2331 = vmatpush2.msra.mxu1 %v1723_v34  ;;  %2261 = vmatprep.subr.mxu0 %v1295_v35  ;;  %v1958_v34 = vld [vmem:[#allocation3 + $0x39b8] sm:$0xff]  ;;  %v296_v35 = vld [vmem:[#allocation3 + $0x5c8] sm:$0xff] }
  0xbc   :  { %2332 = vmatprep.subr.mxu1 %v1711_v36  ;;  %2262 = vmatpush2.msra.mxu0 %v1294_v37  ;;  %v1957_v36 = vld [vmem:[#allocation3 + $0x39b0] sm:$0xff]  ;;  %v295_v37 = vld [vmem:[#allocation3 + $0x5c0] sm:$0xff] }
  0xbd   :  { %2333 = vmatpush2.msra.mxu1 %v1710_v38  ;;  %2263 = vmatprep.subr.mxu0 %v1282_v39  ;;  %v1945_v38 = vld [vmem:[#allocation3 + $0x3950] sm:$0xff]  ;;  %v283_v39 = vld [vmem:[#allocation3 + $0x560] sm:$0xff] }
  0xbe   :  { %2334 = vmatprep.subr.mxu1 %v1698_v40  ;;  %2264 = vmatpush2.msra.mxu0 %v1281_v41  ;;  %v1944_v40 = vld [vmem:[#allocation3 + $0x3948] sm:$0xff]  ;;  %v282_v41 = vld [vmem:[#allocation3 + $0x558] sm:$0xff] }
  0xbf   :  { %2335 = vmatpush2.msra.mxu1 %v1697_v42  ;;  %2265 = vmatprep.subr.mxu0 %v1269_v44  ;;  %v1932_v42 = vld [vmem:[#allocation3 + $0x38e8] sm:$0xff]  ;;  %v270_v44 = vld [vmem:[#allocation3 + $0x4f8] sm:$0xff] }
  0xc0   :  { %2336 = vmatprep.subr.mxu1 %v1685_v45  ;;  %2266 = vmatpush2.msra.mxu0 %v1268_v46  ;;  %v1931_v45 = vld [vmem:[#allocation3 + $0x38e0] sm:$0xff]  ;;  %v269_v46 = vld [vmem:[#allocation3 + $0x4f0] sm:$0xff] }
  0xc1   :  { %2337 = vmatpush2.msra.mxu1 %v1684_v47  ;;  %2267 = vmatprep.subr.mxu0 %v1256_v48  ;;  %v1919_v47 = vld [vmem:[#allocation3 + $0x3880] sm:$0xff]  ;;  %v257_v48 = vld [vmem:[#allocation3 + $0x490] sm:$0xff] }
  0xc2   :  { %2338 = vmatprep.subr.mxu1 %v1672_v49  ;;  %2268 = vmatpush2.msra.mxu0 %v1255_v50  ;;  %v1918_v49 = vld [vmem:[#allocation3 + $0x3878] sm:$0xff]  ;;  %v256_v50 = vld [vmem:[#allocation3 + $0x488] sm:$0xff] }
  0xc3   :  { %2339 = vmatpush2.msra.mxu1 %v1671_v51  ;;  %2269 = vmatprep.subr.mxu0 %v1243_v52  ;;  %v1906_v51 = vld [vmem:[#allocation3 + $0x3818] sm:$0xff]  ;;  %v244_v52 = vld [vmem:[#allocation3 + $0x428] sm:$0xff] }
  0xc4   :  { %2340 = vmatprep.subr.mxu1 %v1659_v54  ;;  %2270 = vmatpush2.msra.mxu0 %v1242_v55  ;;  %v1905_v54 = vld [vmem:[#allocation3 + $0x3810] sm:$0xff]  ;;  %v243_v55 = vld [vmem:[#allocation3 + $0x420] sm:$0xff] }
  0xc5   :  { %2341 = vmatpush2.msra.mxu1 %v1658_v56  ;;  %2271 = vmatprep.subr.mxu0 %v1230_v57  ;;  %v1893_v56 = vld [vmem:[#allocation3 + $0x37b0] sm:$0xff]  ;;  %v231_v57 = vld [vmem:[#allocation3 + $0x3c0] sm:$0xff] }
  0xc6   :  { %2342 = vmatprep.subr.mxu1 %v1646_v58  ;;  %2272 = vmatpush2.msra.mxu0 %v1229_v59  ;;  %v1892_v58 = vld [vmem:[#allocation3 + $0x37a8] sm:$0xff]  ;;  %v230_v59 = vld [vmem:[#allocation3 + $0x3b8] sm:$0xff] }
  0xc7   :  { %2343 = vmatpush2.msra.mxu1 %v1645_v60  ;;  %2273 = vmatprep.subr.mxu0 %v1217_v61  ;;  %v1880_v60 = vld [vmem:[#allocation3 + $0x3748] sm:$0xff]  ;;  %v218_v61 = vld [vmem:[#allocation3 + $0x358] sm:$0xff] }
  0xc8   :  { %2344 = vmatprep.subr.mxu1 %v1633_v62  ;;  %2274 = vmatpush2.msra.mxu0 %v1216_v0  ;;  %v1879_v62 = vld [vmem:[#allocation3 + $0x3740] sm:$0xff]  ;;  %v217_v0 = vld [vmem:[#allocation3 + $0x350] sm:$0xff] }
  0xc9   :  { %2345 = vmatpush2.msra.mxu1 %v1632_v1  ;;  %2275 = vmatprep.subr.mxu0 %v1204_v4  ;;  %v1867_v1 = vld [vmem:[#allocation3 + $0x36e0] sm:$0xff]  ;;  %v1866_v4 = vld [vmem:[#allocation3 + $0x36d8] sm:$0xff] }
  0xca   :  { %2346 = vmatprep.subr.mxu1 %v1620_v5  ;;  %2276 = vmatpush2.msra.mxu0 %v1203_v6  ;;  %v204_v5 = vld [vmem:[#allocation3 + $0x2e8] sm:$0xff]  ;;  %v1854_v6 = vld [vmem:[#allocation3 + $0x3678] sm:$0xff] }
  0xcb   :  { %2347 = vmatpush2.msra.mxu1 %v1619_v7  ;;  %2277 = vmatprep.subr.mxu0 %v1191_v8  ;;  %v192_v7 = vld [vmem:[#allocation3 + $0x288] sm:$0xff]  ;;  %v1853_v8 = vld [vmem:[#allocation3 + $0x3670] sm:$0xff] }
  0xcc   :  { %2348 = vmatprep.subr.mxu1 %v1607_v10  ;;  %2278 = vmatpush2.msra.mxu0 %v1190_v13  ;;  %v191_v10 = vld [vmem:[#allocation3 + $0x280] sm:$0xff] }
  0xcd   :  { %2349 = vmatpush2.msra.mxu1 %v1606_v14  ;;  %2279 = vmatprep.subr.mxu0 %v1178_v15  ;;  %v179_v13 = vld [vmem:[#allocation3 + $0x220] sm:$0xff]  ;;  %v1840_v14 = vld [vmem:[#allocation3 + $0x3608] sm:$0xff]  ;;  %v178_v15 = vld [vmem:[#allocation3 + $0x218] sm:$0xff] }
  0xce   :  { %2350 = vmatprep.subr.mxu1 %v1594_v16  ;;  %2280 = vmatpush2.msra.mxu0 %v1177_v18  ;;  %v1828_v16 = vld [vmem:[#allocation3 + $0x35a8] sm:$0xff]  ;;  %v166_v18 = vld [vmem:[#allocation3 + $0x1b8] sm:$0xff] }
  0xcf   :  { %2351 = vmatpush2.msra.mxu1 %v1593_v19  ;;  %2281 = vmatprep.subr.mxu0 %v1165_v20  ;;  %v1827_v19 = vld [vmem:[#allocation3 + $0x35a0] sm:$0xff]  ;;  %v165_v20 = vld [vmem:[#allocation3 + $0x1b0] sm:$0xff] }
  0xd0   :  { %2352 = vmatprep.subr.mxu1 %v1581_v21  ;;  %2282 = vmatpush2.msra.mxu0 %v1164_v23  ;;  %v1815_v21 = vld [vmem:[#allocation3 + $0x3540] sm:$0xff]  ;;  %v153_v23 = vld [vmem:[#allocation3 + $0x150] sm:$0xff] }
  0xd1   :  { %2353 = vmatpush2.msra.mxu1 %v1580_v24  ;;  %2283 = vmatprep.subr.mxu0 %v1152_v25  ;;  %v1814_v24 = vld [vmem:[#allocation3 + $0x3538] sm:$0xff]  ;;  %v152_v25 = vld [vmem:[#allocation3 + $0x148] sm:$0xff] }
  0xd2   :  { %2354 = vmatprep.subr.mxu1 %v1568_v26  ;;  %2284 = vmatpush2.msra.mxu0 %v1151_v28  ;;  %v1802_v26 = vld [vmem:[#allocation3 + $0x34d8] sm:$0xff]  ;;  %v140_v28 = vld [vmem:[#allocation3 + $0xe8] sm:$0xff] }
  0xd3   :  { %2285 = vmatprep.mubr.f32.mxu0 %v5500_v27  ;;  %2355 = vmatpush2.msra.mxu1 %v1567_v29  ;;  %v1801_v29 = vld [vmem:[#allocation3 + $0x34d0] sm:$0xff] }
  0xd4   :  { %2286 = vmatmul.mubr.f32.vlgmr.msra.gmra.mxu0 %v5493_v17  ;;  %2356 = vmatprep.mubr.f32.mxu1 %v5504_v53 }
  0xd5   :  { %2363 = vmatprep.subr.mxu0 %v1971_v30  ;;  %2434 = vmatprep.subr.mxu1 %v309_v31  ;;  %v139_v30 = vld [vmem:[#allocation3 + $0xe0] sm:$0xff]  ;;  %v1789_v31 = vld [vmem:[#allocation3 + $0x3470] sm:$0xff] }
  0xd6   :  { %2357 = vmatmul.mubr.f32.vlgmr.msra.gmra.mxu1 %v5496_v22  ;;  %2364 = vmatpush1.msra.mxu0 %v1970_v32  ;;  %v127_v32 = vld [vmem:[#allocation3 + $0x80] sm:$0xff] }
  0xd7   :  { %2435 = vmatpush1.msra.mxu1 %v308_v33  ;;  %2365 = vmatprep.subr.mxu0 %v1958_v34  ;;  %v1788_v33 = vld [vmem:[#allocation3 + $0x3468] sm:$0xff]  ;;  %v126_v34 = vld [vmem:[#allocation3 + $0x78] sm:$0xff] }
  0xd8   :  { %2436 = vmatprep.subr.mxu1 %v296_v35  ;;  %2366 = vmatpush1.msra.mxu0 %v1957_v36  ;;  %v1776_v35 = vld [vmem:[#allocation3 + $0x3408] sm:$0xff]  ;;  %v114_v36 = vld [vmem:[#allocation3 + $0x18] sm:$0xff] }
  0xd9   :  { %2437 = vmatpush1.msra.mxu1 %v295_v37  ;;  %2367 = vmatprep.subr.mxu0 %v1945_v38  ;;  %v1775_v37 = vld [vmem:[#allocation3 + $0x3400] sm:$0xff]  ;;  %v113_v38 = vld [vmem:[#allocation3 + $0x10] sm:$0xff] }
  0xda   :  { %2438 = vmatprep.subr.mxu1 %v283_v39  ;;  %2368 = vmatpush1.msra.mxu0 %v1944_v40  ;;  %v2010_v39 = vld [vmem:[#allocation3 + $0x3b58] sm:$0xff]  ;;  %v517_v40 = vld [vmem:[#allocation3 + $0xcb0] sm:$0xff] }
  0xdb   :  { %2439 = vmatpush1.msra.mxu1 %v282_v41  ;;  %2369 = vmatprep.subr.mxu0 %v1932_v42  ;;  %v2009_v41 = vld [vmem:[#allocation3 + $0x3b50] sm:$0xff]  ;;  %v516_v42 = vld [vmem:[#allocation3 + $0xca8] sm:$0xff] }
  0xdc   :  { %2440 = vmatprep.subr.mxu1 %v270_v44  ;;  %2370 = vmatpush1.msra.mxu0 %v1931_v45  ;;  %v4989_v44 = vld.sshfl [vmem:[%s5848_s0 + $0x10] sm:$0x33 pattern:$0x76325410] }
  0xdd   :  { %2441 = vmatpush1.msra.mxu1 %v269_v46  ;;  %2371 = vmatprep.subr.mxu0 %v1919_v47  ;;  %v1997_v45 = vld [vmem:[#allocation3 + $0x3af0] sm:$0xff]  ;;  %v504_v46 = vld [vmem:[#allocation3 + $0xc48] sm:$0xff] }
  0xde   :  { %2442 = vmatprep.subr.mxu1 %v257_v48  ;;  %2372 = vmatpush1.msra.mxu0 %v1918_v49  ;;  %v1996_v47 = vld [vmem:[#allocation3 + $0x3ae8] sm:$0xff]  ;;  %v503_v48 = vld [vmem:[#allocation3 + $0xc40] sm:$0xff] }
  0xdf   :  { %2443 = vmatpush1.msra.mxu1 %v256_v50  ;;  %2373 = vmatprep.subr.mxu0 %v1906_v51  ;;  %v1984_v49 = vld [vmem:[#allocation3 + $0x3a88] sm:$0xff]  ;;  %v491_v50 = vld [vmem:[#allocation3 + $0xbe0] sm:$0xff]  ;;  %v5513_v51 = vcombine.high %v4989_v44, %v4989_v44 }
  0xe0   :  { %2444 = vmatprep.subr.mxu1 %v244_v52  ;;  %2374 = vmatpush1.msra.mxu0 %v1905_v54  ;;  %v1983_v52 = vld [vmem:[#allocation3 + $0x3a80] sm:$0xff]  ;;  %v490_v54 = vld [vmem:[#allocation3 + $0xbd8] sm:$0xff] }
  0xe1   :  { %2445 = vmatpush1.msra.mxu1 %v243_v55  ;;  %2375 = vmatprep.subr.mxu0 %v1893_v56  ;;  %v478_v55 = vld [vmem:[#allocation3 + $0xb78] sm:$0xff]  ;;  %v725_v56 = vld [vmem:[#allocation3 + $0x1330] sm:$0xff] }
  0xe2   :  { %2446 = vmatprep.subr.mxu1 %v231_v57  ;;  %2376 = vmatpush1.msra.mxu0 %v1892_v58  ;;  %v477_v57 = vld [vmem:[#allocation3 + $0xb70] sm:$0xff]  ;;  %v724_v58 = vld [vmem:[#allocation3 + $0x1328] sm:$0xff] }
  0xe3   :  { %2447 = vmatpush1.msra.mxu1 %v230_v59  ;;  %2377 = vmatprep.subr.mxu0 %v1880_v60  ;;  %v465_v59 = vld [vmem:[#allocation3 + $0xb10] sm:$0xff]  ;;  %v712_v60 = vld [vmem:[#allocation3 + $0x12c8] sm:$0xff] }
  0xe4   :  { %2448 = vmatprep.subr.mxu1 %v218_v61  ;;  %2378 = vmatpush1.msra.mxu0 %v1879_v62  ;;  %v464_v61 = vld [vmem:[#allocation3 + $0xb08] sm:$0xff]  ;;  %v711_v62 = vld [vmem:[#allocation3 + $0x12c0] sm:$0xff] }
  0xe5   :  { %2449 = vmatpush1.msra.mxu1 %v217_v0  ;;  %2379 = vmatprep.subr.mxu0 %v1867_v1  ;;  %v452_v0 = vld [vmem:[#allocation3 + $0xaa8] sm:$0xff]  ;;  %v699_v1 = vld [vmem:[#allocation3 + $0x1260] sm:$0xff] }
  0xe6   :  { %2450 = vmatprep.subr.mxu1 %v205_v3  ;;  %2380 = vmatpush1.msra.mxu0 %v1866_v4  ;;  %v451_v3 = vld [vmem:[#allocation3 + $0xaa0] sm:$0xff]  ;;  %v698_v4 = vld [vmem:[#allocation3 + $0x1258] sm:$0xff] }
  0xe7   :  { %2451 = vmatpush1.msra.mxu1 %v204_v5  ;;  %2381 = vmatprep.subr.mxu0 %v1854_v6  ;;  %v439_v5 = vld [vmem:[#allocation3 + $0xa40] sm:$0xff]  ;;  %v686_v6 = vld [vmem:[#allocation3 + $0x11f8] sm:$0xff] }
  0xe8   :  { %2452 = vmatprep.subr.mxu1 %v192_v7  ;;  %2382 = vmatpush1.msra.mxu0 %v1853_v8  ;;  %v438_v7 = vld [vmem:[#allocation3 + $0xa38] sm:$0xff]  ;;  %v685_v8 = vld [vmem:[#allocation3 + $0x11f0] sm:$0xff] }
  0xe9   :  { %2453 = vmatpush1.msra.mxu1 %v191_v10  ;;  %2383 = vmatprep.subr.mxu0 %v1841_v12  ;;  %v426_v10 = vld [vmem:[#allocation3 + $0x9d8] sm:$0xff]  ;;  %v673_v12 = vld [vmem:[#allocation3 + $0x1190] sm:$0xff] }
  0xea   :  { %2454 = vmatprep.subr.mxu1 %v179_v13  ;;  %2384 = vmatpush1.msra.mxu0 %v1840_v14  ;;  %v425_v13 = vld [vmem:[#allocation3 + $0x9d0] sm:$0xff]  ;;  %v672_v14 = vld [vmem:[#allocation3 + $0x1188] sm:$0xff] }
  0xeb   :  { %2455 = vmatpush1.msra.mxu1 %v178_v15  ;;  %2385 = vmatprep.subr.mxu0 %v1828_v16  ;;  %v413_v15 = vld [vmem:[#allocation3 + $0x970] sm:$0xff]  ;;  %v660_v16 = vld [vmem:[#allocation3 + $0x1128] sm:$0xff] }
  0xec   :  { %2456 = vmatprep.subr.mxu1 %v166_v18  ;;  %2386 = vmatpush1.msra.mxu0 %v1827_v19  ;;  %v412_v18 = vld [vmem:[#allocation3 + $0x968] sm:$0xff]  ;;  %v659_v19 = vld [vmem:[#allocation3 + $0x1120] sm:$0xff] }
  0xed   :  { %2457 = vmatpush1.msra.mxu1 %v165_v20  ;;  %2387 = vmatprep.subr.mxu0 %v1815_v21  ;;  %v400_v20 = vld [vmem:[#allocation3 + $0x908] sm:$0xff]  ;;  %v647_v21 = vld [vmem:[#allocation3 + $0x10c0] sm:$0xff] }
  0xee   :  { %2458 = vmatprep.subr.mxu1 %v153_v23  ;;  %2388 = vmatpush1.msra.mxu0 %v1814_v24  ;;  %v399_v23 = vld [vmem:[#allocation3 + $0x900] sm:$0xff]  ;;  %v646_v24 = vld [vmem:[#allocation3 + $0x10b8] sm:$0xff] }
  0xef   :  { %2459 = vmatpush1.msra.mxu1 %v152_v25  ;;  %2389 = vmatprep.subr.mxu0 %v1802_v26  ;;  %v387_v25 = vld [vmem:[#allocation3 + $0x8a0] sm:$0xff]  ;;  %v634_v26 = vld [vmem:[#allocation3 + $0x1058] sm:$0xff] }
  0xf0   :  { %2460 = vmatprep.subr.mxu1 %v140_v28  ;;  %2390 = vmatpush1.msra.mxu0 %v1801_v29  ;;  %v386_v28 = vld [vmem:[#allocation3 + $0x898] sm:$0xff]  ;;  %v633_v29 = vld [vmem:[#allocation3 + $0x1050] sm:$0xff] }
  0xf1   :  { %2461 = vmatpush1.msra.mxu1 %v139_v30  ;;  %2391 = vmatprep.subr.mxu0 %v1789_v31  ;;  %v374_v30 = vld [vmem:[#allocation3 + $0x838] sm:$0xff]  ;;  %v621_v31 = vld [vmem:[#allocation3 + $0xff0] sm:$0xff] }
  0xf2   :  { %2462 = vmatprep.subr.mxu1 %v127_v32  ;;  %2392 = vmatpush1.msra.mxu0 %v1788_v33  ;;  %v373_v32 = vld [vmem:[#allocation3 + $0x830] sm:$0xff]  ;;  %v620_v33 = vld [vmem:[#allocation3 + $0xfe8] sm:$0xff] }
  0xf3   :  { %2463 = vmatpush1.msra.mxu1 %v126_v34  ;;  %2393 = vmatprep.subr.mxu0 %v1776_v35  ;;  %v361_v34 = vld [vmem:[#allocation3 + $0x7d0] sm:$0xff]  ;;  %v608_v35 = vld [vmem:[#allocation3 + $0xf88] sm:$0xff] }
  0xf4   :  { %2464 = vmatprep.subr.mxu1 %v114_v36  ;;  %2394 = vmatpush1.msra.mxu0 %v1775_v37  ;;  %v360_v36 = vld [vmem:[#allocation3 + $0x7c8] sm:$0xff]  ;;  %v607_v37 = vld [vmem:[#allocation3 + $0xf80] sm:$0xff] }
  0xf5   :  { %2465 = vmatpush1.msra.mxu1 %v113_v38  ;;  %2421 = vmatprep.subr.mxu0 %v2010_v39  ;;  %v348_v38 = vld [vmem:[#allocation3 + $0x768] sm:$0xff]  ;;  %v595_v39 = vld [vmem:[#allocation3 + $0xf20] sm:$0xff] }
  0xf6   :  { %2466 = vmatprep.subr.mxu1 %v517_v40  ;;  %2422 = vmatpush2.msra.mxu0 %v2009_v41  ;;  %v347_v40 = vld [vmem:[#allocation3 + $0x760] sm:$0xff]  ;;  %v594_v41 = vld [vmem:[#allocation3 + $0xf18] sm:$0xff] }
  0xf7   :  { %2467 = vmatpush2.msra.mxu1 %v516_v42  ;;  %2423 = vmatprep.subr.mxu0 %v1997_v45  ;;  %v335_v42 = vld [vmem:[#allocation3 + $0x700] sm:$0xff]  ;;  %v334_v45 = vld [vmem:[#allocation3 + $0x6f8] sm:$0xff] }
  0xf8   :  { %2468 = vmatprep.subr.mxu1 %v504_v46  ;;  %2424 = vmatpush2.msra.mxu0 %v1996_v47  ;;  %v581_v46 = vld [vmem:[#allocation3 + $0xeb0] sm:$0xff]  ;;  %v322_v47 = vld [vmem:[#allocation3 + $0x698] sm:$0xff] }
  0xf9   :  { %2469 = vmatpush2.msra.mxu1 %v503_v48  ;;  %2425 = vmatprep.subr.mxu0 %v1984_v49  ;;  %v569_v48 = vld [vmem:[#allocation3 + $0xe50] sm:$0xff] }
  0xfa   :  { %2470 = vmatprep.subr.mxu1 %v491_v50  ;;  %2426 = vmatpush2.msra.mxu0 %v1983_v52  ;;  %v321_v49 = vld [vmem:[#allocation3 + $0x690] sm:$0xff]  ;;  %v568_v50 = vld [vmem:[#allocation3 + $0xe48] sm:$0xff] }
  0xfb   :  { %4990 = vmatprep.mubr.msk.f32.mxu0 %vm2076_vm0, %v5513_v51  ;;  %2471 = vmatpush2.msra.mxu1 %v490_v54  ;;  %v556_v52 = vld [vmem:[#allocation3 + $0xde8] sm:$0xff]  ;;  %v1141_v54 = vld [vmem:[#allocation3 + $0x2030] sm:$0xff] }
  0xfc   :  { %2428 = vmatmul.mubr.f32.vlgmr.msra.gmra.mxu0 %v4989_v44  ;;  %2472 = vmatprep.subr.mxu1 %v478_v55  ;;  %v582_v44 = vld [vmem:[#allocation3 + $0xeb8] sm:$0xff]  ;;  %v555_v55 = vld [vmem:[#allocation3 + $0xde0] sm:$0xff] }
  0xfd   :  { %2505 = vmatprep.subr.mxu0 %v725_v56  ;;  %2473 = vmatpush2.msra.mxu1 %v477_v57  ;;  %v1140_v56 = vld [vmem:[#allocation3 + $0x2028] sm:$0xff]  ;;  %v543_v57 = vld [vmem:[#allocation3 + $0xd80] sm:$0xff] }
  0xfe   :  { %2506 = vmatpush1.msra.mxu0 %v724_v58  ;;  %2474 = vmatprep.subr.mxu1 %v465_v59  ;;  %v1128_v58 = vld [vmem:[#allocation3 + $0x1fc8] sm:$0xff]  ;;  %v542_v59 = vld [vmem:[#allocation3 + $0xd78] sm:$0xff] }
  0xff   :  { %2507 = vmatprep.subr.mxu0 %v712_v60  ;;  %2475 = vmatpush2.msra.mxu1 %v464_v61  ;;  %v1127_v60 = vld [vmem:[#allocation3 + $0x1fc0] sm:$0xff]  ;;  %v530_v61 = vld [vmem:[#allocation3 + $0xd18] sm:$0xff] }
 0x100   :  { %2508 = vmatpush1.msra.mxu0 %v711_v62  ;;  %2476 = vmatprep.subr.mxu1 %v452_v0  ;;  %v1115_v62 = vld [vmem:[#allocation3 + $0x1f60] sm:$0xff]  ;;  %v529_v0 = vld [vmem:[#allocation3 + $0xd10] sm:$0xff] }
 0x101   :  { %2509 = vmatprep.subr.mxu0 %v699_v1  ;;  %2477 = vmatpush2.msra.mxu1 %v451_v3  ;;  %v1114_v1 = vld [vmem:[#allocation3 + $0x1f58] sm:$0xff]  ;;  %v933_v3 = vld [vmem:[#allocation3 + $0x19b0] sm:$0xff] }
 0x102   :  { %2510 = vmatpush1.msra.mxu0 %v698_v4  ;;  %2478 = vmatprep.subr.mxu1 %v439_v5  ;;  %v1102_v4 = vld [vmem:[#allocation3 + $0x1ef8] sm:$0xff]  ;;  %v932_v5 = vld [vmem:[#allocation3 + $0x19a8] sm:$0xff] }
 0x103   :  { %2511 = vmatprep.subr.mxu0 %v686_v6  ;;  %2479 = vmatpush2.msra.mxu1 %v438_v7  ;;  %v1101_v6 = vld [vmem:[#allocation3 + $0x1ef0] sm:$0xff]  ;;  %v920_v7 = vld [vmem:[#allocation3 + $0x1948] sm:$0xff] }
 0x104   :  { %2512 = vmatpush1.msra.mxu0 %v685_v8  ;;  %2480 = vmatprep.subr.mxu1 %v426_v10  ;;  %v1089_v8 = vld [vmem:[#allocation3 + $0x1e90] sm:$0xff]  ;;  %v919_v10 = vld [vmem:[#allocation3 + $0x1940] sm:$0xff] }
 0x105   :  { %2513 = vmatprep.subr.mxu0 %v673_v12  ;;  %2481 = vmatpush2.msra.mxu1 %v425_v13  ;;  %v1088_v12 = vld [vmem:[#allocation3 + $0x1e88] sm:$0xff]  ;;  %v907_v13 = vld [vmem:[#allocation3 + $0x18e0] sm:$0xff] }
 0x106   :  { %2514 = vmatpush1.msra.mxu0 %v672_v14  ;;  %2482 = vmatprep.subr.mxu1 %v413_v15  ;;  %v1076_v14 = vld [vmem:[#allocation3 + $0x1e28] sm:$0xff]  ;;  %v906_v15 = vld [vmem:[#allocation3 + $0x18d8] sm:$0xff] }
 0x107   :  { %2515 = vmatprep.subr.mxu0 %v660_v16  ;;  %2483 = vmatpush2.msra.mxu1 %v412_v18  ;;  %v1075_v16 = vld [vmem:[#allocation3 + $0x1e20] sm:$0xff]  ;;  %v894_v18 = vld [vmem:[#allocation3 + $0x1878] sm:$0xff] }
 0x108   :  { %2516 = vmatpush1.msra.mxu0 %v659_v19  ;;  %2484 = vmatprep.subr.mxu1 %v400_v20  ;;  %v1063_v19 = vld [vmem:[#allocation3 + $0x1dc0] sm:$0xff]  ;;  %v893_v20 = vld [vmem:[#allocation3 + $0x1870] sm:$0xff] }
 0x109   :  { %2517 = vmatprep.subr.mxu0 %v647_v21  ;;  %2485 = vmatpush2.msra.mxu1 %v399_v23  ;;  %v1062_v21 = vld [vmem:[#allocation3 + $0x1db8] sm:$0xff]  ;;  %v881_v23 = vld [vmem:[#allocation3 + $0x1810] sm:$0xff] }
 0x10a   :  { %2518 = vmatpush1.msra.mxu0 %v646_v24  ;;  %2486 = vmatprep.subr.mxu1 %v387_v25  ;;  %v1050_v24 = vld [vmem:[#allocation3 + $0x1d58] sm:$0xff]  ;;  %v880_v25 = vld [vmem:[#allocation3 + $0x1808] sm:$0xff] }
 0x10b   :  { %2519 = vmatprep.subr.mxu0 %v634_v26  ;;  %2487 = vmatpush2.msra.mxu1 %v386_v28  ;;  %v1049_v26 = vld [vmem:[#allocation3 + $0x1d50] sm:$0xff]  ;;  %v868_v28 = vld [vmem:[#allocation3 + $0x17a8] sm:$0xff] }
 0x10c   :  { %2520 = vmatpush1.msra.mxu0 %v633_v29  ;;  %2488 = vmatprep.subr.mxu1 %v374_v30  ;;  %v1037_v29 = vld [vmem:[#allocation3 + $0x1cf0] sm:$0xff]  ;;  %v867_v30 = vld [vmem:[#allocation3 + $0x17a0] sm:$0xff] }
 0x10d   :  { %2521 = vmatprep.subr.mxu0 %v621_v31  ;;  %2489 = vmatpush2.msra.mxu1 %v373_v32  ;;  %v1036_v31 = vld [vmem:[#allocation3 + $0x1ce8] sm:$0xff]  ;;  %v855_v32 = vld [vmem:[#allocation3 + $0x1740] sm:$0xff] }
 0x10e   :  { %2522 = vmatpush1.msra.mxu0 %v620_v33  ;;  %2490 = vmatprep.subr.mxu1 %v361_v34  ;;  %v1024_v33 = vld [vmem:[#allocation3 + $0x1c88] sm:$0xff]  ;;  %v854_v34 = vld [vmem:[#allocation3 + $0x1738] sm:$0xff] }
 0x10f   :  { %2523 = vmatprep.subr.mxu0 %v608_v35  ;;  %2491 = vmatpush2.msra.mxu1 %v360_v36  ;;  %v1023_v35 = vld [vmem:[#allocation3 + $0x1c80] sm:$0xff]  ;;  %v842_v36 = vld [vmem:[#allocation3 + $0x16d8] sm:$0xff] }
 0x110   :  { %2524 = vmatpush1.msra.mxu0 %v607_v37  ;;  %2492 = vmatprep.subr.mxu1 %v348_v38  ;;  %v1011_v37 = vld [vmem:[#allocation3 + $0x1c20] sm:$0xff]  ;;  %v841_v38 = vld [vmem:[#allocation3 + $0x16d0] sm:$0xff] }
 0x111   :  { %2525 = vmatprep.subr.mxu0 %v595_v39  ;;  %2493 = vmatpush2.msra.mxu1 %v347_v40  ;;  %v1010_v39 = vld [vmem:[#allocation3 + $0x1c18] sm:$0xff]  ;;  %v829_v40 = vld [vmem:[#allocation3 + $0x1670] sm:$0xff] }
 0x112   :  { %2526 = vmatpush1.msra.mxu0 %v594_v41  ;;  %2494 = vmatprep.subr.mxu1 %v335_v42  ;;  %v998_v41 = vld [vmem:[#allocation3 + $0x1bb8] sm:$0xff]  ;;  %v828_v42 = vld [vmem:[#allocation3 + $0x1668] sm:$0xff] }
 0x113   :  { %2527 = vmatprep.subr.mxu0 %v582_v44  ;;  %2495 = vmatpush2.msra.mxu1 %v334_v45  ;;  %v997_v44 = vld [vmem:[#allocation3 + $0x1bb0] sm:$0xff]  ;;  %v816_v45 = vld [vmem:[#allocation3 + $0x1608] sm:$0xff] }
 0x114   :  { %2528 = vmatpush1.msra.mxu0 %v581_v46  ;;  %2496 = vmatprep.subr.mxu1 %v322_v47  ;;  %v985_v46 = vld [vmem:[#allocation3 + $0x1b50] sm:$0xff]  ;;  %v815_v47 = vld [vmem:[#allocation3 + $0x1600] sm:$0xff] }
 0x115   :  { %2529 = vmatprep.subr.mxu0 %v569_v48  ;;  %2497 = vmatpush2.msra.mxu1 %v321_v49  ;;  %v984_v48 = vld [vmem:[#allocation3 + $0x1b48] sm:$0xff]  ;;  %v803_v49 = vld [vmem:[#allocation3 + $0x15a0] sm:$0xff] }
 0x116   :  { %2530 = vmatpush1.msra.mxu0 %v568_v50  ;;  %2498 = vmatprep.mubr.f32.mxu1 %v5479_v9  ;;  %v972_v50 = vld [vmem:[#allocation3 + $0x1ae8] sm:$0xff] }
 0x117   :  { %2531 = vmatprep.subr.mxu0 %v556_v52  ;;  %2576 = vmatprep.subr.mxu1 %v1141_v54  ;;  %v802_v52 = vld [vmem:[#allocation3 + $0x1598] sm:$0xff]  ;;  %v971_v54 = vld [vmem:[#allocation3 + $0x1ae0] sm:$0xff] }
 0x118   :  { %2499 = vmatmul.mubr.f32.vlgmr.msra.gmra.mxu1 %v5472_v63  ;;  %2532 = vmatpush1.msra.mxu0 %v555_v55  ;;  %v790_v55 = vld [vmem:[#allocation3 + $0x1538] sm:$0xff] }
 0x119   :  { %2577 = vmatpush1.msra.mxu1 %v1140_v56  ;;  %2533 = vmatprep.subr.mxu0 %v543_v57  ;;  %v959_v56 = vld [vmem:[#allocation3 + $0x1a80] sm:$0xff]  ;;  %v789_v57 = vld [vmem:[#allocation3 + $0x1530] sm:$0xff] }
 0x11a   :  { %2578 = vmatprep.subr.mxu1 %v1128_v58  ;;  %2534 = vmatpush1.msra.mxu0 %v542_v59  ;;  %v958_v58 = vld [vmem:[#allocation3 + $0x1a78] sm:$0xff]  ;;  %v777_v59 = vld [vmem:[#allocation3 + $0x14d0] sm:$0xff] }
 0x11b   :  { %2579 = vmatpush1.msra.mxu1 %v1127_v60  ;;  %2535 = vmatprep.subr.mxu0 %v530_v61  ;;  %v946_v60 = vld [vmem:[#allocation3 + $0x1a18] sm:$0xff]  ;;  %v776_v61 = vld [vmem:[#allocation3 + $0x14c8] sm:$0xff] }
 0x11c   :  { %2580 = vmatprep.subr.mxu1 %v1115_v62  ;;  %2536 = vmatpush1.msra.mxu0 %v529_v0  ;;  %v945_v62 = vld [vmem:[#allocation3 + $0x1a10] sm:$0xff]  ;;  %v764_v0 = vld [vmem:[#allocation3 + $0x1468] sm:$0xff] }
 0x11d   :  { %2581 = vmatpush1.msra.mxu1 %v1114_v1  ;;  %2537 = vmatprep.subr.mxu0 %v933_v3  ;;  %v1349_v1 = vld [vmem:[#allocation3 + $0x26b0] sm:$0xff]  ;;  %v763_v3 = vld [vmem:[#allocation3 + $0x1460] sm:$0xff] }
 0x11e   :  { %2582 = vmatprep.subr.mxu1 %v1102_v4  ;;  %2538 = vmatpush2.msra.mxu0 %v932_v5  ;;  %v1348_v4 = vld [vmem:[#allocation3 + $0x26a8] sm:$0xff]  ;;  %v751_v5 = vld [vmem:[#allocation3 + $0x1400] sm:$0xff] }
 0x11f   :  { %2583 = vmatpush1.msra.mxu1 %v1101_v6  ;;  %2539 = vmatprep.subr.mxu0 %v920_v7  ;;  %v1336_v6 = vld [vmem:[#allocation3 + $0x2648] sm:$0xff]  ;;  %v750_v7 = vld [vmem:[#allocation3 + $0x13f8] sm:$0xff] }
 0x120   :  { %2584 = vmatprep.subr.mxu1 %v1089_v8  ;;  %2540 = vmatpush2.msra.mxu0 %v919_v10  ;;  %v1335_v8 = vld [vmem:[#allocation3 + $0x2640] sm:$0xff]  ;;  %v738_v10 = vld [vmem:[#allocation3 + $0x1398] sm:$0xff] }
 0x121   :  { %2585 = vmatpush1.msra.mxu1 %v1088_v12  ;;  %2541 = vmatprep.subr.mxu0 %v907_v13  ;;  %v1323_v12 = vld [vmem:[#allocation3 + $0x25e0] sm:$0xff]  ;;  %v737_v13 = vld [vmem:[#allocation3 + $0x1390] sm:$0xff] }
 0x122   :  { %2586 = vmatprep.subr.mxu1 %v1076_v14  ;;  %2542 = vmatpush2.msra.mxu0 %v906_v15  ;;  %v1322_v14 = vld [vmem:[#allocation3 + $0x25d8] sm:$0xff] }
 0x123   :  { %2587 = vmatpush1.msra.mxu1 %v1075_v16  ;;  %2543 = vmatprep.subr.mxu0 %v894_v18  ;;  %v1310_v15 = vld [vmem:[#allocation3 + $0x2578] sm:$0xff]  ;;  %v1557_v16 = vld [vmem:[#allocation3 + $0x2d30] sm:$0xff] }
 0x124   :  { %2588 = vmatprep.subr.mxu1 %v1063_v19  ;;  %2544 = vmatpush2.msra.mxu0 %v893_v20  ;;  %v1309_v18 = vld [vmem:[#allocation3 + $0x2570] sm:$0xff]  ;;  %v1556_v19 = vld [vmem:[#allocation3 + $0x2d28] sm:$0xff] }
 0x125   :  { %2589 = vmatpush1.msra.mxu1 %v1062_v21  ;;  %2545 = vmatprep.subr.mxu0 %v881_v23  ;;  %v1297_v20 = vld [vmem:[#allocation3 + $0x2510] sm:$0xff]  ;;  %v1544_v21 = vld [vmem:[#allocation3 + $0x2cc8] sm:$0xff] }
 0x126   :  { %2590 = vmatprep.subr.mxu1 %v1050_v24  ;;  %2546 = vmatpush2.msra.mxu0 %v880_v25  ;;  %v1296_v23 = vld [vmem:[#allocation3 + $0x2508] sm:$0xff]  ;;  %v1543_v24 = vld [vmem:[#allocation3 + $0x2cc0] sm:$0xff] }
 0x127   :  { %2591 = vmatpush1.msra.mxu1 %v1049_v26  ;;  %2547 = vmatprep.subr.mxu0 %v868_v28  ;;  %v1284_v25 = vld [vmem:[#allocation3 + $0x24a8] sm:$0xff]  ;;  %v1531_v26 = vld [vmem:[#allocation3 + $0x2c60] sm:$0xff] }
 0x128   :  { %2592 = vmatprep.subr.mxu1 %v1037_v29  ;;  %2548 = vmatpush2.msra.mxu0 %v867_v30  ;;  %v1283_v28 = vld [vmem:[#allocation3 + $0x24a0] sm:$0xff]  ;;  %v1530_v29 = vld [vmem:[#allocation3 + $0x2c58] sm:$0xff] }
 0x129   :  { %2593 = vmatpush1.msra.mxu1 %v1036_v31  ;;  %2549 = vmatprep.subr.mxu0 %v855_v32  ;;  %v1271_v30 = vld [vmem:[#allocation3 + $0x2440] sm:$0xff]  ;;  %v1518_v31 = vld [vmem:[#allocation3 + $0x2bf8] sm:$0xff] }
 0x12a   :  { %2594 = vmatprep.subr.mxu1 %v1024_v33  ;;  %2550 = vmatpush2.msra.mxu0 %v854_v34  ;;  %v1270_v32 = vld [vmem:[#allocation3 + $0x2438] sm:$0xff]  ;;  %v1517_v33 = vld [vmem:[#allocation3 + $0x2bf0] sm:$0xff] }
 0x12b   :  { %2595 = vmatpush1.msra.mxu1 %v1023_v35  ;;  %2551 = vmatprep.subr.mxu0 %v842_v36  ;;  %v1258_v34 = vld [vmem:[#allocation3 + $0x23d8] sm:$0xff]  ;;  %v1505_v35 = vld [vmem:[#allocation3 + $0x2b90] sm:$0xff] }
 0x12c   :  { %2596 = vmatprep.subr.mxu1 %v1011_v37  ;;  %2552 = vmatpush2.msra.mxu0 %v841_v38  ;;  %v1257_v36 = vld [vmem:[#allocation3 + $0x23d0] sm:$0xff]  ;;  %v1504_v37 = vld [vmem:[#allocation3 + $0x2b88] sm:$0xff] }
 0x12d   :  { %2597 = vmatpush1.msra.mxu1 %v1010_v39  ;;  %2553 = vmatprep.subr.mxu0 %v829_v40  ;;  %v1245_v38 = vld [vmem:[#allocation3 + $0x2370] sm:$0xff]  ;;  %v1492_v39 = vld [vmem:[#allocation3 + $0x2b28] sm:$0xff] }
 0x12e   :  { %2598 = vmatprep.subr.mxu1 %v998_v41  ;;  %2554 = vmatpush2.msra.mxu0 %v828_v42  ;;  %v1244_v40 = vld [vmem:[#allocation3 + $0x2368] sm:$0xff]  ;;  %v1491_v41 = vld [vmem:[#allocation3 + $0x2b20] sm:$0xff] }
 0x12f   :  { %2599 = vmatpush1.msra.mxu1 %v997_v44  ;;  %2555 = vmatprep.subr.mxu0 %v816_v45  ;;  %v1232_v42 = vld [vmem:[#allocation3 + $0x2308] sm:$0xff]  ;;  %v1479_v44 = vld [vmem:[#allocation3 + $0x2ac0] sm:$0xff] }
 0x130   :  { %2600 = vmatprep.subr.mxu1 %v985_v46  ;;  %2556 = vmatpush2.msra.mxu0 %v815_v47  ;;  %v1231_v45 = vld [vmem:[#allocation3 + $0x2300] sm:$0xff]  ;;  %v1478_v46 = vld [vmem:[#allocation3 + $0x2ab8] sm:$0xff] }
 0x131   :  { %2601 = vmatpush1.msra.mxu1 %v984_v48  ;;  %2557 = vmatprep.subr.mxu0 %v803_v49  ;;  %v1219_v47 = vld [vmem:[#allocation3 + $0x22a0] sm:$0xff]  ;;  %v1466_v48 = vld [vmem:[#allocation3 + $0x2a58] sm:$0xff] }
 0x132   :  { %2602 = vmatprep.subr.mxu1 %v972_v50  ;;  %2558 = vmatpush2.msra.mxu0 %v802_v52  ;;  %v1218_v49 = vld [vmem:[#allocation3 + $0x2298] sm:$0xff]  ;;  %v1465_v50 = vld [vmem:[#allocation3 + $0x2a50] sm:$0xff] }
 0x133   :  { %2603 = vmatpush1.msra.mxu1 %v971_v54  ;;  %2559 = vmatprep.subr.mxu0 %v790_v55  ;;  %v1206_v52 = vld [vmem:[#allocation3 + $0x2238] sm:$0xff]  ;;  %v1453_v54 = vld [vmem:[#allocation3 + $0x29f0] sm:$0xff] }
 0x134   :  { %2604 = vmatprep.subr.mxu1 %v959_v56  ;;  %2560 = vmatpush2.msra.mxu0 %v789_v57  ;;  %v1205_v55 = vld [vmem:[#allocation3 + $0x2230] sm:$0xff]  ;;  %v1452_v56 = vld [vmem:[#allocation3 + $0x29e8] sm:$0xff] }
 0x135   :  { %2605 = vmatpush1.msra.mxu1 %v958_v58  ;;  %2561 = vmatprep.subr.mxu0 %v777_v59  ;;  %v1193_v57 = vld [vmem:[#allocation3 + $0x21d0] sm:$0xff]  ;;  %v1440_v58 = vld [vmem:[#allocation3 + $0x2988] sm:$0xff] }
 0x136   :  { %2606 = vmatprep.subr.mxu1 %v946_v60  ;;  %2562 = vmatpush2.msra.mxu0 %v776_v61  ;;  %v1192_v59 = vld [vmem:[#allocation3 + $0x21c8] sm:$0xff]  ;;  %v1439_v60 = vld [vmem:[#allocation3 + $0x2980] sm:$0xff] }
 0x137   :  { %2607 = vmatpush1.msra.mxu1 %v945_v62  ;;  %2563 = vmatprep.subr.mxu0 %v764_v0  ;;  %v1180_v61 = vld [vmem:[#allocation3 + $0x2168] sm:$0xff]  ;;  %v1427_v62 = vld [vmem:[#allocation3 + $0x2920] sm:$0xff] }
 0x138   :  { %2608 = vmatprep.subr.mxu1 %v1349_v1  ;;  %2564 = vmatpush2.msra.mxu0 %v763_v3  ;;  %v1179_v0 = vld [vmem:[#allocation3 + $0x2160] sm:$0xff]  ;;  %v1426_v1 = vld [vmem:[#allocation3 + $0x2918] sm:$0xff] }
 0x139   :  { %2609 = vmatpush2.msra.mxu1 %v1348_v4  ;;  %2565 = vmatprep.subr.mxu0 %v751_v5  ;;  %v1167_v3 = vld [vmem:[#allocation3 + $0x2100] sm:$0xff]  ;;  %v1414_v4 = vld [vmem:[#allocation3 + $0x28b8] sm:$0xff] }
 0x13a   :  { %2610 = vmatprep.subr.mxu1 %v1336_v6  ;;  %2566 = vmatpush2.msra.mxu0 %v750_v7  ;;  %v1166_v5 = vld [vmem:[#allocation3 + $0x20f8] sm:$0xff]  ;;  %v1413_v6 = vld [vmem:[#allocation3 + $0x28b0] sm:$0xff] }
 0x13b   :  { %2611 = vmatpush2.msra.mxu1 %v1335_v8  ;;  %2567 = vmatprep.subr.mxu0 %v738_v10  ;;  %v1154_v10 = vld [vmem:[#allocation3 + $0x2098] sm:$0xff] }
 0x13c   :  { %2612 = vmatprep.subr.mxu1 %v1323_v12  ;;  %2568 = vmatpush2.msra.mxu0 %v737_v13  ;;  %v1401_v12 = vld [vmem:[#allocation3 + $0x2850] sm:$0xff] }
 0x13d   :  { %2569 = vmatprep.mubr.f32.mxu0 %v5483_v11  ;;  %2613 = vmatpush2.msra.mxu1 %v1322_v14  ;;  %v1153_v14 = vld [vmem:[#allocation3 + $0x2090] sm:$0xff] }
 0x13e   :  { %2570 = vmatmul.mubr.f32.vlgmr.msra.gmra.mxu0 %v5475_v2  ;;  %2614 = vmatprep.subr.mxu1 %v1310_v15 }
 0x13f   :  { %2647 = vmatprep.subr.mxu0 %v1557_v16  ;;  %2615 = vmatpush2.msra.mxu1 %v1309_v18  ;;  %v1400_v18 = vld [vmem:[#allocation3 + $0x2848] sm:$0xff] }
 0x140   :  { %2648 = vmatpush1.msra.mxu0 %v1556_v19  ;;  %2616 = vmatprep.subr.mxu1 %v1297_v20  ;;  %v1388_v20 = vld [vmem:[#allocation3 + $0x27e8] sm:$0xff] }
 0x141   :  { %2649 = vmatprep.subr.mxu0 %v1544_v21  ;;  %2617 = vmatpush2.msra.mxu1 %v1296_v23  ;;  %v1973_v21 = vld [vmem:[#allocation3 + $0x3a30] sm:$0xff]  ;;  %v1387_v23 = vld [vmem:[#allocation3 + $0x27e0] sm:$0xff] }
 0x142   :  { %2650 = vmatpush1.msra.mxu0 %v1543_v24  ;;  %2618 = vmatprep.subr.mxu1 %v1284_v25  ;;  %v1972_v24 = vld [vmem:[#allocation3 + $0x3a28] sm:$0xff]  ;;  %v1375_v25 = vld [vmem:[#allocation3 + $0x2780] sm:$0xff] }
 0x143   :  { %2651 = vmatprep.subr.mxu0 %v1531_v26  ;;  %2619 = vmatpush2.msra.mxu1 %v1283_v28  ;;  %v1960_v26 = vld [vmem:[#allocation3 + $0x39c8] sm:$0xff]  ;;  %v1374_v28 = vld [vmem:[#allocation3 + $0x2778] sm:$0xff] }
 0x144   :  { %2652 = vmatpush1.msra.mxu0 %v1530_v29  ;;  %2620 = vmatprep.subr.mxu1 %v1271_v30  ;;  %v1959_v29 = vld [vmem:[#allocation3 + $0x39c0] sm:$0xff]  ;;  %v1362_v30 = vld [vmem:[#allocation3 + $0x2718] sm:$0xff] }
 0x145   :  { %2653 = vmatprep.subr.mxu0 %v1518_v31  ;;  %2621 = vmatpush2.msra.mxu1 %v1270_v32  ;;  %v1947_v31 = vld [vmem:[#allocation3 + $0x3960] sm:$0xff]  ;;  %v1361_v32 = vld [vmem:[#allocation3 + $0x2710] sm:$0xff] }
 0x146   :  { %2654 = vmatpush1.msra.mxu0 %v1517_v33  ;;  %2622 = vmatprep.subr.mxu1 %v1258_v34  ;;  %v1946_v33 = vld [vmem:[#allocation3 + $0x3958] sm:$0xff]  ;;  %v1765_v34 = vld [vmem:[#allocation3 + $0x33b0] sm:$0xff] }
 0x147   :  { %2655 = vmatprep.subr.mxu0 %v1505_v35  ;;  %2623 = vmatpush2.msra.mxu1 %v1257_v36  ;;  %v1934_v35 = vld [vmem:[#allocation3 + $0x38f8] sm:$0xff]  ;;  %v1764_v36 = vld [vmem:[#allocation3 + $0x33a8] sm:$0xff] }
 0x148   :  { %2656 = vmatpush1.msra.mxu0 %v1504_v37  ;;  %2624 = vmatprep.subr.mxu1 %v1245_v38  ;;  %v1933_v37 = vld [vmem:[#allocation3 + $0x38f0] sm:$0xff]  ;;  %v1752_v38 = vld [vmem:[#allocation3 + $0x3348] sm:$0xff] }
 0x149   :  { %2657 = vmatprep.subr.mxu0 %v1492_v39  ;;  %2625 = vmatpush2.msra.mxu1 %v1244_v40  ;;  %v1921_v39 = vld [vmem:[#allocation3 + $0x3890] sm:$0xff]  ;;  %v1751_v40 = vld [vmem:[#allocation3 + $0x3340] sm:$0xff] }
 0x14a   :  { %2658 = vmatpush1.msra.mxu0 %v1491_v41  ;;  %2626 = vmatprep.subr.mxu1 %v1232_v42  ;;  %v1920_v41 = vld [vmem:[#allocation3 + $0x3888] sm:$0xff]  ;;  %v1739_v42 = vld [vmem:[#allocation3 + $0x32e0] sm:$0xff] }
 0x14b   :  { %2659 = vmatprep.subr.mxu0 %v1479_v44  ;;  %2627 = vmatpush2.msra.mxu1 %v1231_v45  ;;  %v1908_v44 = vld [vmem:[#allocation3 + $0x3828] sm:$0xff]  ;;  %v1738_v45 = vld [vmem:[#allocation3 + $0x32d8] sm:$0xff] }
 0x14c   :  { %2660 = vmatpush1.msra.mxu0 %v1478_v46  ;;  %2628 = vmatprep.subr.mxu1 %v1219_v47  ;;  %v1907_v46 = vld [vmem:[#allocation3 + $0x3820] sm:$0xff]  ;;  %v1726_v47 = vld [vmem:[#allocation3 + $0x3278] sm:$0xff] }
 0x14d   :  { %2661 = vmatprep.subr.mxu0 %v1466_v48  ;;  %2629 = vmatpush2.msra.mxu1 %v1218_v49  ;;  %v1895_v48 = vld [vmem:[#allocation3 + $0x37c0] sm:$0xff]  ;;  %v1725_v49 = vld [vmem:[#allocation3 + $0x3270] sm:$0xff] }
 0x14e   :  { %2662 = vmatpush1.msra.mxu0 %v1465_v50  ;;  %2630 = vmatprep.subr.mxu1 %v1206_v52  ;;  %v1894_v50 = vld [vmem:[#allocation3 + $0x37b8] sm:$0xff]  ;;  %v1713_v52 = vld [vmem:[#allocation3 + $0x3210] sm:$0xff] }
 0x14f   :  { %2663 = vmatprep.subr.mxu0 %v1453_v54  ;;  %2631 = vmatpush2.msra.mxu1 %v1205_v55  ;;  %v1882_v54 = vld [vmem:[#allocation3 + $0x3758] sm:$0xff]  ;;  %v1712_v55 = vld [vmem:[#allocation3 + $0x3208] sm:$0xff] }
 0x150   :  { %2664 = vmatpush1.msra.mxu0 %v1452_v56  ;;  %2632 = vmatprep.subr.mxu1 %v1193_v57  ;;  %v1881_v56 = vld [vmem:[#allocation3 + $0x3750] sm:$0xff]  ;;  %v1700_v57 = vld [vmem:[#allocation3 + $0x31a8] sm:$0xff] }
 0x151   :  { %2665 = vmatprep.subr.mxu0 %v1440_v58  ;;  %2633 = vmatpush2.msra.mxu1 %v1192_v59  ;;  %v1869_v58 = vld [vmem:[#allocation3 + $0x36f0] sm:$0xff]  ;;  %v1699_v59 = vld [vmem:[#allocation3 + $0x31a0] sm:$0xff] }
 0x152   :  { %2666 = vmatpush1.msra.mxu0 %v1439_v60  ;;  %2634 = vmatprep.subr.mxu1 %v1180_v61  ;;  %v2145_v7 = vpop.f32.mrf.mxu0  ;;  %v1868_v60 = vld [vmem:[#allocation3 + $0x36e8] sm:$0xff]  ;;  %v1687_v61 = vld [vmem:[#allocation3 + $0x3140] sm:$0xff] }
 0x153   :  { %2667 = vmatprep.subr.mxu0 %v1427_v62  ;;  %v2216_v8 = vpop.f32.mrf.mxu1  ;;  %2635 = vmatpush2.msra.mxu1 %v1179_v0  ;;  %v1856_v62 = vld [vmem:[#allocation3 + $0x3688] sm:$0xff]  ;;  %v1686_v0 = vld [vmem:[#allocation3 + $0x3138] sm:$0xff] }
 0x154   :  { %2668 = vmatpush1.msra.mxu0 %v1426_v1  ;;  %v5521_v13 = vadd.f32 %v2216_v8, %v2145_v7  ;;  %2636 = vmatprep.subr.mxu1 %v1167_v3  ;;  %v2147_v15 = vpop.f32.mrf.mxu0  ;;  %v1855_v1 = vld [vmem:[#allocation3 + $0x3680] sm:$0xff]  ;;  %v1674_v3 = vld [vmem:[#allocation3 + $0x30d8] sm:$0xff]  ;;  %v1661_v7 = vld [vmem:[#allocation3 + $0x3070] sm:$0xff] }
 0x155   :  { %2669 = vmatprep.subr.mxu0 %v1414_v4  ;;  %v2218_v16 = vpop.f32.mrf.mxu1  ;;  %2637 = vmatpush2.msra.mxu1 %v1166_v5  ;;  %v1843_v4 = vld [vmem:[#allocation3 + $0x3620] sm:$0xff]  ;;  %v1673_v5 = vld [vmem:[#allocation3 + $0x30d0] sm:$0xff]  ;;  %v1830_v8 = vld [vmem:[#allocation3 + $0x35b8] sm:$0xff] }
 0x156   :  { %2670 = vmatpush1.msra.mxu0 %v1413_v6  ;;  %v5523_v19 = vadd.f32 %v2218_v16, %v2147_v15  ;;  %2638 = vmatprep.subr.mxu1 %v1154_v10  ;;  %v1842_v6 = vld [vmem:[#allocation3 + $0x3618] sm:$0xff]  ;;  %v1660_v10 = vld [vmem:[#allocation3 + $0x3068] sm:$0xff]  ;;  %v1817_v15 = vld [vmem:[#allocation3 + $0x3550] sm:$0xff] }
 0x157   :  { %2671 = vmatprep.subr.mxu0 %v1401_v12  ;;  %2639 = vmatpush2.msra.mxu1 %v1153_v14  ;;  %v1829_v12 = vld [vmem:[#allocation3 + $0x35b0] sm:$0xff]  ;;  %v1648_v14 = vld [vmem:[#allocation3 + $0x3008] sm:$0xff]  ;;  %v1647_v16 = vld [vmem:[#allocation3 + $0x3000] sm:$0xff] }
 0x158   :  { %2640 = vmatprep.mubr.f32.mxu1 %v5500_v27  ;;  %2672 = vmatpush1.msra.mxu0 %v1400_v18  ;;  %v1816_v18 = vld [vmem:[#allocation3 + $0x3548] sm:$0xff] }
 0x159   :  { %2641 = vmatmul.mubr.f32.vlgmr.msra.gmra.mxu1 %v5493_v17  ;;  %2673 = vmatprep.subr.mxu0 %v1388_v20  ;;  %v1635_v20 = vld [vmem:[#allocation3 + $0x2fa0] sm:$0xff] }
 0x15a   :  { %2718 = vmatprep.subr.mxu1 %v1973_v21  ;;  %2674 = vmatpush1.msra.mxu0 %v1387_v23  ;;  %v1804_v21 = vld [vmem:[#allocation3 + $0x34e8] sm:$0xff]  ;;  %v1634_v23 = vld [vmem:[#allocation3 + $0x2f98] sm:$0xff] }
 0x15b   :  { %2719 = vmatpush1.msra.mxu1 %v1972_v24  ;;  %2675 = vmatprep.subr.mxu0 %v1375_v25  ;;  %v1803_v24 = vld [vmem:[#allocation3 + $0x34e0] sm:$0xff]  ;;  %v1622_v25 = vld [vmem:[#allocation3 + $0x2f38] sm:$0xff] }
 0x15c   :  { %2720 = vmatprep.subr.mxu1 %v1960_v26  ;;  %2676 = vmatpush1.msra.mxu0 %v1374_v28  ;;  %v1791_v26 = vld [vmem:[#allocation3 + $0x3480] sm:$0xff]  ;;  %v1621_v28 = vld [vmem:[#allocation3 + $0x2f30] sm:$0xff] }
 0x15d   :  { %2721 = vmatpush1.msra.mxu1 %v1959_v29  ;;  %2677 = vmatprep.subr.mxu0 %v1362_v30  ;;  %v1790_v29 = vld [vmem:[#allocation3 + $0x3478] sm:$0xff]  ;;  %v1609_v30 = vld [vmem:[#allocation3 + $0x2ed0] sm:$0xff] }
 0x15e   :  { %2722 = vmatprep.subr.mxu1 %v1947_v31  ;;  %2678 = vmatpush1.msra.mxu0 %v1361_v32  ;;  %v1778_v31 = vld [vmem:[#allocation3 + $0x3418] sm:$0xff]  ;;  %v1608_v32 = vld [vmem:[#allocation3 + $0x2ec8] sm:$0xff] }
 0x15f   :  { %2723 = vmatpush1.msra.mxu1 %v1946_v33  ;;  %2679 = vmatprep.subr.mxu0 %v1765_v34  ;;  %v1777_v33 = vld [vmem:[#allocation3 + $0x3410] sm:$0xff]  ;;  %v1596_v34 = vld [vmem:[#allocation3 + $0x2e68] sm:$0xff] }
 0x160   :  { %2724 = vmatprep.subr.mxu1 %v1934_v35  ;;  %2680 = vmatpush2.msra.mxu0 %v1764_v36  ;;  %v2012_v35 = vld [vmem:[#allocation3 + $0x3b68] sm:$0xff]  ;;  %v1595_v36 = vld [vmem:[#allocation3 + $0x2e60] sm:$0xff] }
 0x161   :  { %2725 = vmatpush1.msra.mxu1 %v1933_v37  ;;  %2681 = vmatprep.subr.mxu0 %v1752_v38  ;;  %v2011_v37 = vld [vmem:[#allocation3 + $0x3b60] sm:$0xff] }
 0x162   :  { %2726 = vmatprep.subr.mxu1 %v1921_v39  ;;  %2682 = vmatpush2.msra.mxu0 %v1751_v40  ;;  %v1583_v38 = vld [vmem:[#allocation3 + $0x2e00] sm:$0xff]  ;;  %v1582_v40 = vld [vmem:[#allocation3 + $0x2df8] sm:$0xff] }
 0x163   :  { %2727 = vmatpush1.msra.mxu1 %v1920_v41  ;;  %2683 = vmatprep.subr.mxu0 %v1739_v42  ;;  %v1999_v39 = vld [vmem:[#allocation3 + $0x3b00] sm:$0xff]  ;;  %v1998_v41 = vld [vmem:[#allocation3 + $0x3af8] sm:$0xff] }
 0x164   :  { %2728 = vmatprep.subr.mxu1 %v1908_v44  ;;  %2684 = vmatpush2.msra.mxu0 %v1738_v45  ;;  %v1570_v42 = vld [vmem:[#allocation3 + $0x2d98] sm:$0xff]  ;;  %v1569_v45 = vld [vmem:[#allocation3 + $0x2d90] sm:$0xff] }
 0x165   :  { %2729 = vmatpush1.msra.mxu1 %v1907_v46  ;;  %2685 = vmatprep.subr.mxu0 %v1726_v47  ;;  %v1986_v44 = vld [vmem:[#allocation3 + $0x3a98] sm:$0xff]  ;;  %v1985_v46 = vld [vmem:[#allocation3 + $0x3a90] sm:$0xff]  ;;  %v311_v47 = vld [vmem:[#allocation3 + $0x640] sm:$0xff] }
 0x166   :  { %2730 = vmatprep.subr.mxu1 %v1895_v48  ;;  %2686 = vmatpush2.msra.mxu0 %v1725_v49  ;;  %v727_v48 = vld [vmem:[#allocation3 + $0x1340] sm:$0xff]  ;;  %v310_v49 = vld [vmem:[#allocation3 + $0x638] sm:$0xff] }
 0x167   :  { %2731 = vmatpush1.msra.mxu1 %v1894_v50  ;;  %2687 = vmatprep.subr.mxu0 %v1713_v52  ;;  %v726_v50 = vld [vmem:[#allocation3 + $0x1338] sm:$0xff] }
 0x168   :  { %2732 = vmatprep.subr.mxu1 %v1882_v54  ;;  %2688 = vmatpush2.msra.mxu0 %v1712_v55  ;;  %v298_v52 = vld [vmem:[#allocation3 + $0x5d8] sm:$0xff]  ;;  %v5244_v55 = vld.sshfl [vmem:[%s5848_s0 + $0x10] sm:$0x33 pattern:$0x76325410] }
 0x169   :  { %2733 = vmatpush1.msra.mxu1 %v1881_v56  ;;  %2689 = vmatprep.subr.mxu0 %v1700_v57  ;;  %v714_v54 = vld [vmem:[#allocation3 + $0x12d8] sm:$0xff]  ;;  %v297_v56 = vld [vmem:[#allocation3 + $0x5d0] sm:$0xff] }
 0x16a   :  { %2734 = vmatprep.subr.mxu1 %v1869_v58  ;;  %2690 = vmatpush2.msra.mxu0 %v1699_v59  ;;  %v713_v57 = vld [vmem:[#allocation3 + $0x12d0] sm:$0xff] }
 0x16b   :  { %2735 = vmatpush1.msra.mxu1 %v1868_v60  ;;  %2691 = vmatprep.subr.mxu0 %v1687_v61  ;;  %v285_v58 = vld [vmem:[#allocation3 + $0x570] sm:$0xff]  ;;  %v284_v60 = vld [vmem:[#allocation3 + $0x568] sm:$0xff] }
 0x16c   :  { %2736 = vmatprep.subr.mxu1 %v1856_v62  ;;  %2692 = vmatpush2.msra.mxu0 %v1686_v0  ;;  %v701_v59 = vld [vmem:[#allocation3 + $0x1270] sm:$0xff]  ;;  %v700_v61 = vld [vmem:[#allocation3 + $0x1268] sm:$0xff] }
 0x16d   :  { %2737 = vmatpush1.msra.mxu1 %v1855_v1  ;;  %2693 = vmatprep.subr.mxu0 %v1674_v3  ;;  %v272_v62 = vld [vmem:[#allocation3 + $0x508] sm:$0xff]  ;;  %v271_v1 = vld [vmem:[#allocation3 + $0x500] sm:$0xff] }
 0x16e   :  { %2738 = vmatprep.subr.mxu1 %v1843_v4  ;;  %2694 = vmatpush2.msra.mxu0 %v1673_v5  ;;  %v688_v0 = vld [vmem:[#allocation3 + $0x1208] sm:$0xff]  ;;  %v687_v3 = vld [vmem:[#allocation3 + $0x1200] sm:$0xff] }
 0x16f   :  { %2739 = vmatpush1.msra.mxu1 %v1842_v6  ;;  %2695 = vmatprep.subr.mxu0 %v1661_v7  ;;  %v259_v4 = vld [vmem:[#allocation3 + $0x4a0] sm:$0xff]  ;;  %v258_v6 = vld [vmem:[#allocation3 + $0x498] sm:$0xff] }
 0x170   :  { %2740 = vmatprep.subr.mxu1 %v1830_v8  ;;  %2696 = vmatpush2.msra.mxu0 %v1660_v10  ;;  %v675_v5 = vld [vmem:[#allocation3 + $0x11a0] sm:$0xff]  ;;  %v674_v7 = vld [vmem:[#allocation3 + $0x1198] sm:$0xff] }
 0x171   :  { %2741 = vmatpush1.msra.mxu1 %v1829_v12  ;;  %2697 = vmatprep.subr.mxu0 %v1648_v14  ;;  %v246_v8 = vld [vmem:[#allocation3 + $0x438] sm:$0xff]  ;;  %v245_v12 = vld [vmem:[#allocation3 + $0x430] sm:$0xff] }
 0x172   :  { %2742 = vmatprep.subr.mxu1 %v1817_v15  ;;  %2698 = vmatpush2.msra.mxu0 %v1647_v16  ;;  %v662_v10 = vld [vmem:[#allocation3 + $0x1138] sm:$0xff]  ;;  %v661_v14 = vld [vmem:[#allocation3 + $0x1130] sm:$0xff] }
 0x173   :  { %2743 = vmatpush1.msra.mxu1 %v1816_v18  ;;  %2699 = vmatprep.subr.mxu0 %v1635_v20  ;;  %v233_v15 = vld [vmem:[#allocation3 + $0x3d0] sm:$0xff]  ;;  %v232_v18 = vld [vmem:[#allocation3 + $0x3c8] sm:$0xff] }
 0x174   :  { %2744 = vmatprep.subr.mxu1 %v1804_v21  ;;  %2700 = vmatpush2.msra.mxu0 %v1634_v23  ;;  %v649_v16 = vld [vmem:[#allocation3 + $0x10d0] sm:$0xff]  ;;  %v648_v20 = vld [vmem:[#allocation3 + $0x10c8] sm:$0xff] }
 0x175   :  { %2745 = vmatpush1.msra.mxu1 %v1803_v24  ;;  %2701 = vmatprep.subr.mxu0 %v1622_v25  ;;  %v220_v21 = vld [vmem:[#allocation3 + $0x368] sm:$0xff]  ;;  %v219_v24 = vld [vmem:[#allocation3 + $0x360] sm:$0xff] }
 0x176   :  { %2746 = vmatprep.subr.mxu1 %v1791_v26  ;;  %2702 = vmatpush2.msra.mxu0 %v1621_v28  ;;  %v636_v23 = vld [vmem:[#allocation3 + $0x1068] sm:$0xff]  ;;  %v635_v25 = vld [vmem:[#allocation3 + $0x1060] sm:$0xff] }
 0x177   :  { %2747 = vmatpush1.msra.mxu1 %v1790_v29  ;;  %2703 = vmatprep.subr.mxu0 %v1609_v30  ;;  %v207_v26 = vld [vmem:[#allocation3 + $0x300] sm:$0xff]  ;;  %v206_v29 = vld [vmem:[#allocation3 + $0x2f8] sm:$0xff] }
 0x178   :  { %2748 = vmatprep.subr.mxu1 %v1778_v31  ;;  %2704 = vmatpush2.msra.mxu0 %v1608_v32  ;;  %v623_v28 = vld [vmem:[#allocation3 + $0x1000] sm:$0xff]  ;;  %v622_v30 = vld [vmem:[#allocation3 + $0xff8] sm:$0xff] }
 0x179   :  { %2749 = vmatpush1.msra.mxu1 %v1777_v33  ;;  %2705 = vmatprep.subr.mxu0 %v1596_v34  ;;  %v194_v31 = vld [vmem:[#allocation3 + $0x298] sm:$0xff]  ;;  %v193_v33 = vld [vmem:[#allocation3 + $0x290] sm:$0xff] }
 0x17a   :  { %2776 = vmatprep.subr.mxu1 %v2012_v35  ;;  %2706 = vmatpush2.msra.mxu0 %v1595_v36  ;;  %v610_v32 = vld [vmem:[#allocation3 + $0xf98] sm:$0xff]  ;;  %v609_v34 = vld [vmem:[#allocation3 + $0xf90] sm:$0xff] }
 0x17b   :  { %2777 = vmatpush2.msra.mxu1 %v2011_v37  ;;  %2707 = vmatprep.subr.mxu0 %v1583_v38  ;;  %v181_v35 = vld [vmem:[#allocation3 + $0x230] sm:$0xff]  ;;  %v180_v37 = vld [vmem:[#allocation3 + $0x228] sm:$0xff] }
 0x17c   :  { %2778 = vmatprep.subr.mxu1 %v1999_v39  ;;  %2708 = vmatpush2.msra.mxu0 %v1582_v40  ;;  %v597_v36 = vld [vmem:[#allocation3 + $0xf30] sm:$0xff]  ;;  %v596_v38 = vld [vmem:[#allocation3 + $0xf28] sm:$0xff] }
 0x17d   :  { %2779 = vmatpush2.msra.mxu1 %v1998_v41  ;;  %2709 = vmatprep.subr.mxu0 %v1570_v42  ;;  %v168_v40 = vld [vmem:[#allocation3 + $0x1c8] sm:$0xff] }
 0x17e   :  { %2780 = vmatprep.subr.mxu1 %v1986_v44  ;;  %2710 = vmatpush2.msra.mxu0 %v1569_v45  ;;  %v584_v41 = vld [vmem:[#allocation3 + $0xec8] sm:$0xff]  ;;  %v167_v44 = vld [vmem:[#allocation3 + $0x1c0] sm:$0xff] }
 0x17f   :  { %2711 = vmatprep.mubr.f32.mxu0 %v5504_v53  ;;  %2781 = vmatpush2.msra.mxu1 %v1985_v46  ;;  %v583_v45 = vld [vmem:[#allocation3 + $0xec0] sm:$0xff] }
 0x180   :  { %2712 = vmatmul.mubr.f32.vlgmr.msra.gmra.mxu0 %v5496_v22  ;;  %4991 = vmatprep.mubr.msk.f32.mxu1 %vm2076_vm0, %v5513_v51 }
 0x181   :  { %2789 = vmatprep.subr.mxu0 %v311_v47  ;;  %2860 = vmatprep.subr.mxu1 %v727_v48  ;;  %v155_v48 = vld [vmem:[#allocation3 + $0x160] sm:$0xff] }
 0x182   :  { %2783 = vmatmul.mubr.f32.vlgmr.msra.gmra.mxu1 %v5244_v55  ;;  %2790 = vmatpush1.msra.mxu0 %v310_v49  ;;  %v571_v49 = vld [vmem:[#allocation3 + $0xe60] sm:$0xff]  ;;  %v570_v55 = vld [vmem:[#allocation3 + $0xe58] sm:$0xff] }
 0x183   :  { %2861 = vmatpush1.msra.mxu1 %v726_v50  ;;  %2791 = vmatprep.subr.mxu0 %v298_v52 }
 0x184   :  { %2862 = vmatprep.subr.mxu1 %v714_v54  ;;  %2792 = vmatpush1.msra.mxu0 %v297_v56  ;;  %v154_v54 = vld [vmem:[#allocation3 + $0x158] sm:$0xff] }
 0x185   :  { %2863 = vmatpush1.msra.mxu1 %v713_v57  ;;  %2793 = vmatprep.subr.mxu0 %v285_v58  ;;  %v558_v57 = vld [vmem:[#allocation3 + $0xdf8] sm:$0xff] }
 0x186   :  { %2864 = vmatprep.subr.mxu1 %v701_v59  ;;  %2794 = vmatpush1.msra.mxu0 %v284_v60  ;;  %v141_v59 = vld [vmem:[#allocation3 + $0xf0] sm:$0xff] }
 0x187   :  { %2865 = vmatpush1.msra.mxu1 %v700_v61  ;;  %2795 = vmatprep.subr.mxu0 %v272_v62  ;;  %v557_v60 = vld [vmem:[#allocation3 + $0xdf0] sm:$0xff]  ;;  %v128_v62 = vld [vmem:[#allocation3 + $0x88] sm:$0xff] }
 0x188   :  { %2866 = vmatprep.subr.mxu1 %v688_v0  ;;  %2796 = vmatpush1.msra.mxu0 %v271_v1  ;;  %v545_v61 = vld [vmem:[#allocation3 + $0xd90] sm:$0xff]  ;;  %v544_v0 = vld [vmem:[#allocation3 + $0xd88] sm:$0xff] }
 0x189   :  { %2867 = vmatpush1.msra.mxu1 %v687_v3  ;;  %2797 = vmatprep.subr.mxu0 %v259_v4  ;;  %v116_v1 = vld [vmem:[#allocation3 + $0x28] sm:$0xff]  ;;  %v115_v4 = vld [vmem:[#allocation3 + $0x20] sm:$0xff] }
 0x18a   :  { %2868 = vmatprep.subr.mxu1 %v675_v5  ;;  %2798 = vmatpush1.msra.mxu0 %v258_v6  ;;  %v532_v3 = vld [vmem:[#allocation3 + $0xd28] sm:$0xff]  ;;  %v531_v5 = vld [vmem:[#allocation3 + $0xd20] sm:$0xff] }
 0x18b   :  { %2869 = vmatpush1.msra.mxu1 %v674_v7  ;;  %2799 = vmatprep.subr.mxu0 %v246_v8  ;;  %v519_v6 = vld [vmem:[#allocation3 + $0xcc0] sm:$0xff]  ;;  %v518_v8 = vld [vmem:[#allocation3 + $0xcb8] sm:$0xff] }
 0x18c   :  { %2870 = vmatprep.subr.mxu1 %v662_v10  ;;  %2800 = vmatpush1.msra.mxu0 %v245_v12  ;;  %v935_v7 = vld [vmem:[#allocation3 + $0x19c0] sm:$0xff]  ;;  %v934_v10 = vld [vmem:[#allocation3 + $0x19b8] sm:$0xff] }
 0x18d   :  { %2871 = vmatpush1.msra.mxu1 %v661_v14  ;;  %2801 = vmatprep.subr.mxu0 %v233_v15  ;;  %v506_v12 = vld [vmem:[#allocation3 + $0xc58] sm:$0xff]  ;;  %v505_v15 = vld [vmem:[#allocation3 + $0xc50] sm:$0xff] }
 0x18e   :  { %2872 = vmatprep.subr.mxu1 %v649_v16  ;;  %2802 = vmatpush1.msra.mxu0 %v232_v18  ;;  %v922_v14 = vld [vmem:[#allocation3 + $0x1958] sm:$0xff]  ;;  %v921_v16 = vld [vmem:[#allocation3 + $0x1950] sm:$0xff] }
 0x18f   :  { %2873 = vmatpush1.msra.mxu1 %v648_v20  ;;  %2803 = vmatprep.subr.mxu0 %v220_v21  ;;  %v493_v18 = vld [vmem:[#allocation3 + $0xbf0] sm:$0xff]  ;;  %v492_v21 = vld [vmem:[#allocation3 + $0xbe8] sm:$0xff] }
 0x190   :  { %2874 = vmatprep.subr.mxu1 %v636_v23  ;;  %2804 = vmatpush1.msra.mxu0 %v219_v24  ;;  %v909_v20 = vld [vmem:[#allocation3 + $0x18f0] sm:$0xff]  ;;  %v908_v23 = vld [vmem:[#allocation3 + $0x18e8] sm:$0xff] }
 0x191   :  { %2875 = vmatpush1.msra.mxu1 %v635_v25  ;;  %2805 = vmatprep.subr.mxu0 %v207_v26  ;;  %v480_v24 = vld [vmem:[#allocation3 + $0xb88] sm:$0xff]  ;;  %v479_v26 = vld [vmem:[#allocation3 + $0xb80] sm:$0xff] }
 0x192   :  { %2876 = vmatprep.subr.mxu1 %v623_v28  ;;  %2806 = vmatpush1.msra.mxu0 %v206_v29  ;;  %v896_v25 = vld [vmem:[#allocation3 + $0x1888] sm:$0xff]  ;;  %v895_v28 = vld [vmem:[#allocation3 + $0x1880] sm:$0xff] }
 0x193   :  { %2877 = vmatpush1.msra.mxu1 %v622_v30  ;;  %2807 = vmatprep.subr.mxu0 %v194_v31  ;;  %v467_v29 = vld [vmem:[#allocation3 + $0xb20] sm:$0xff]  ;;  %v466_v31 = vld [vmem:[#allocation3 + $0xb18] sm:$0xff] }
 0x194   :  { %2878 = vmatprep.subr.mxu1 %v610_v32  ;;  %v2287_v39 = vpop.f32.mrf.mxu0  ;;  %2808 = vmatpush1.msra.mxu0 %v193_v33  ;;  %v883_v30 = vld [vmem:[#allocation3 + $0x1820] sm:$0xff]  ;;  %v882_v32 = vld [vmem:[#allocation3 + $0x1818] sm:$0xff] }
 0x195   :  { %2879 = vmatpush1.msra.mxu1 %v609_v34  ;;  %v2288_v42 = vadd.f32 %v2287_v39, %v5521_v13  ;;  %2809 = vmatprep.subr.mxu0 %v181_v35  ;;  %v142_v13 = vld [vmem:[#allocation3 + $0xf8] sm:$0xff]  ;;  %v453_v35 = vld [vmem:[#allocation3 + $0xab0] sm:$0xff]  ;;  %v440_v39 = vld [vmem:[#allocation3 + $0xa48] sm:$0xff] }
 0x196   :  { %2880 = vmatprep.subr.mxu1 %v597_v36  ;;  %v2289_v46 = vpop.f32.mrf.mxu0  ;;  %v2358_v47 = vpop.f32.mrf.mxu1  ;;  %2810 = vmatpush1.msra.mxu0 %v180_v37  ;;  %v454_v33 = vld [vmem:[#allocation3 + $0xab8] sm:$0xff]  ;;  %v869_v36 = vld [vmem:[#allocation3 + $0x17b0] sm:$0xff] }
 0x197   :  { %2881 = vmatpush1.msra.mxu1 %v596_v38  ;;  %v2290_v50 = vadd.f32 %v2289_v46, %v5523_v19  ;;  %v5536_v52 = vadd.f32 %v2358_v47, %v2288_v42  ;;  %2811 = vmatprep.subr.mxu0 %v168_v40  ;;  %v129_v19 = vld [vmem:[#allocation3 + $0x90] sm:$0xff]  ;;  %v870_v34 = vld [vmem:[#allocation3 + $0x17b8] sm:$0xff]  ;;  %v856_v40 = vld [vmem:[#allocation3 + $0x1748] sm:$0xff] }
 0x198   :  { %2882 = vmatprep.subr.mxu1 %v584_v41  ;;  %v2360_v56 = vpop.f32.mrf.mxu1  ;;  %2812 = vmatpush1.msra.mxu0 %v167_v44  ;;  %v441_v37 = vld [vmem:[#allocation3 + $0xa50] sm:$0xff]  ;;  %v428_v41 = vld [vmem:[#allocation3 + $0x9e8] sm:$0xff]  ;;  %v427_v44 = vld [vmem:[#allocation3 + $0x9e0] sm:$0xff] }
 0x199   :  { %2883 = vmatpush1.msra.mxu1 %v583_v45  ;;  %v5538_v58 = vadd.f32 %v2360_v56, %v2290_v50  ;;  %2813 = vmatprep.subr.mxu0 %v155_v48  ;;  %v857_v38 = vld [vmem:[#allocation3 + $0x1750] sm:$0xff]  ;;  %v844_v42 = vld [vmem:[#allocation3 + $0x16e8] sm:$0xff]  ;;  %v843_v45 = vld [vmem:[#allocation3 + $0x16e0] sm:$0xff] }
 0x19a   :  { %2884 = vmatprep.subr.mxu1 %v571_v49  ;;  %2814 = vmatpush1.msra.mxu0 %v154_v54  ;;  %v415_v46 = vld [vmem:[#allocation3 + $0x980] sm:$0xff]  ;;  %v414_v48 = vld [vmem:[#allocation3 + $0x978] sm:$0xff]  ;;  %v817_v56 = vld [vmem:[#allocation3 + $0x1610] sm:$0xff] }
 0x19b   :  { %2885 = vmatpush1.msra.mxu1 %v570_v55  ;;  %2815 = vmatprep.subr.mxu0 %v142_v13  ;;  %v831_v47 = vld [vmem:[#allocation3 + $0x1680] sm:$0xff]  ;;  %v830_v49 = vld [vmem:[#allocation3 + $0x1678] sm:$0xff]  ;;  %v401_v55 = vld [vmem:[#allocation3 + $0x910] sm:$0xff] }
 0x19c   :  { %2886 = vmatprep.subr.mxu1 %v558_v57  ;;  %2816 = vmatpush1.msra.mxu0 %v141_v59  ;;  %v402_v50 = vld [vmem:[#allocation3 + $0x918] sm:$0xff]  ;;  %v389_v13 = vld [vmem:[#allocation3 + $0x8b0] sm:$0xff]  ;;  %v388_v59 = vld [vmem:[#allocation3 + $0x8a8] sm:$0xff] }
 0x19d   :  { %2887 = vmatpush1.msra.mxu1 %v557_v60  ;;  %2817 = vmatprep.subr.mxu0 %v129_v19  ;;  %v818_v54 = vld [vmem:[#allocation3 + $0x1618] sm:$0xff]  ;;  %v805_v57 = vld [vmem:[#allocation3 + $0x15b0] sm:$0xff]  ;;  %v804_v60 = vld [vmem:[#allocation3 + $0x15a8] sm:$0xff] }
 0x19e   :  { %2888 = vmatprep.subr.mxu1 %v545_v61  ;;  %2818 = vmatpush1.msra.mxu0 %v128_v62  ;;  %v376_v19 = vld [vmem:[#allocation3 + $0x848] sm:$0xff]  ;;  %v375_v62 = vld [vmem:[#allocation3 + $0x840] sm:$0xff] }
 0x19f   :  { %2889 = vmatpush1.msra.mxu1 %v544_v0  ;;  %2819 = vmatprep.subr.mxu0 %v116_v1  ;;  %v792_v61 = vld [vmem:[#allocation3 + $0x1548] sm:$0xff]  ;;  %v791_v0 = vld [vmem:[#allocation3 + $0x1540] sm:$0xff] }
 0x1a0   :  { %2890 = vmatprep.subr.mxu1 %v532_v3  ;;  %2820 = vmatpush1.msra.mxu0 %v115_v4  ;;  %v363_v1 = vld [vmem:[#allocation3 + $0x7e0] sm:$0xff]  ;;  %v362_v4 = vld [vmem:[#allocation3 + $0x7d8] sm:$0xff] }
 0x1a1   :  { %2891 = vmatpush1.msra.mxu1 %v531_v5  ;;  %2821 = vmatprep.subr.mxu0 %v519_v6  ;;  %v779_v3 = vld [vmem:[#allocation3 + $0x14e0] sm:$0xff]  ;;  %v778_v5 = vld [vmem:[#allocation3 + $0x14d8] sm:$0xff] }
 0x1a2   :  { %2892 = vmatprep.subr.mxu1 %v935_v7  ;;  %2822 = vmatpush2.msra.mxu0 %v518_v8  ;;  %v350_v6 = vld [vmem:[#allocation3 + $0x778] sm:$0xff]  ;;  %v349_v8 = vld [vmem:[#allocation3 + $0x770] sm:$0xff] }
 0x1a3   :  { %2893 = vmatpush2.msra.mxu1 %v934_v10  ;;  %2823 = vmatprep.subr.mxu0 %v506_v12  ;;  %v766_v7 = vld [vmem:[#allocation3 + $0x1478] sm:$0xff]  ;;  %v765_v10 = vld [vmem:[#allocation3 + $0x1470] sm:$0xff] }
 0x1a4   :  { %2894 = vmatprep.subr.mxu1 %v922_v14  ;;  %2824 = vmatpush2.msra.mxu0 %v505_v15  ;;  %v337_v12 = vld [vmem:[#allocation3 + $0x710] sm:$0xff]  ;;  %v336_v15 = vld [vmem:[#allocation3 + $0x708] sm:$0xff] }
 0x1a5   :  { %2895 = vmatpush2.msra.mxu1 %v921_v16  ;;  %2825 = vmatprep.subr.mxu0 %v493_v18  ;;  %v753_v14 = vld [vmem:[#allocation3 + $0x1410] sm:$0xff]  ;;  %v752_v16 = vld [vmem:[#allocation3 + $0x1408] sm:$0xff] }
 0x1a6   :  { %2896 = vmatprep.subr.mxu1 %v909_v20  ;;  %2826 = vmatpush2.msra.mxu0 %v492_v21  ;;  %v324_v20 = vld [vmem:[#allocation3 + $0x6a8] sm:$0xff] }
 0x1a7   :  { %2897 = vmatpush2.msra.mxu1 %v908_v23  ;;  %2827 = vmatprep.subr.mxu0 %v480_v24  ;;  %v740_v21 = vld [vmem:[#allocation3 + $0x13a8] sm:$0xff]  ;;  %v323_v24 = vld [vmem:[#allocation3 + $0x6a0] sm:$0xff] }
 0x1a8   :  { %2898 = vmatprep.subr.mxu1 %v896_v25  ;;  %2828 = vmatpush2.msra.mxu0 %v479_v26  ;;  %v739_v26 = vld [vmem:[#allocation3 + $0x13a0] sm:$0xff] }
 0x1a9   :  { %2899 = vmatpush2.msra.mxu1 %v895_v28  ;;  %2829 = vmatprep.subr.mxu0 %v467_v29  ;;  %v1143_v29 = vld [vmem:[#allocation3 + $0x2040] sm:$0xff] }
 0x1aa   :  { %2900 = vmatprep.subr.mxu1 %v883_v30  ;;  %2830 = vmatpush2.msra.mxu0 %v466_v31  ;;  %v1559_v30 = vld [vmem:[#allocation3 + $0x2d40] sm:$0xff]  ;;  %v1558_v31 = vld [vmem:[#allocation3 + $0x2d38] sm:$0xff] }
 0x1ab   :  { %2901 = vmatpush2.msra.mxu1 %v882_v32  ;;  %2831 = vmatprep.subr.mxu0 %v454_v33  ;;  %v1130_v32 = vld [vmem:[#allocation3 + $0x1fd8] sm:$0xff] }
 0x1ac   :  { %2902 = vmatprep.subr.mxu1 %v870_v34  ;;  %2832 = vmatpush2.msra.mxu0 %v453_v35  ;;  %v1546_v33 = vld [vmem:[#allocation3 + $0x2cd8] sm:$0xff]  ;;  %v1545_v34 = vld [vmem:[#allocation3 + $0x2cd0] sm:$0xff] }
 0x1ad   :  { %2903 = vmatpush2.msra.mxu1 %v869_v36  ;;  %2833 = vmatprep.subr.mxu0 %v441_v37  ;;  %v1117_v35 = vld [vmem:[#allocation3 + $0x1f70] sm:$0xff]  ;;  %v1116_v37 = vld [vmem:[#allocation3 + $0x1f68] sm:$0xff] }
 0x1ae   :  { %2904 = vmatprep.subr.mxu1 %v857_v38  ;;  %2834 = vmatpush2.msra.mxu0 %v440_v39  ;;  %v1533_v36 = vld [vmem:[#allocation3 + $0x2c70] sm:$0xff]  ;;  %v1532_v38 = vld [vmem:[#allocation3 + $0x2c68] sm:$0xff] }
 0x1af   :  { %2905 = vmatpush2.msra.mxu1 %v856_v40  ;;  %2835 = vmatprep.subr.mxu0 %v428_v41  ;;  %v1104_v39 = vld [vmem:[#allocation3 + $0x1f08] sm:$0xff]  ;;  %v1103_v41 = vld [vmem:[#allocation3 + $0x1f00] sm:$0xff] }
 0x1b0   :  { %2906 = vmatprep.subr.mxu1 %v844_v42  ;;  %2836 = vmatpush2.msra.mxu0 %v427_v44  ;;  %v1520_v40 = vld [vmem:[#allocation3 + $0x2c08] sm:$0xff]  ;;  %v1519_v42 = vld [vmem:[#allocation3 + $0x2c00] sm:$0xff] }
 0x1b1   :  { %2907 = vmatpush2.msra.mxu1 %v843_v45  ;;  %2837 = vmatprep.subr.mxu0 %v415_v46  ;;  %v1091_v44 = vld [vmem:[#allocation3 + $0x1ea0] sm:$0xff]  ;;  %v1090_v46 = vld [vmem:[#allocation3 + $0x1e98] sm:$0xff] }
 0x1b2   :  { %2908 = vmatprep.subr.mxu1 %v831_v47  ;;  %2838 = vmatpush2.msra.mxu0 %v414_v48  ;;  %v1507_v45 = vld [vmem:[#allocation3 + $0x2ba0] sm:$0xff]  ;;  %v1506_v47 = vld [vmem:[#allocation3 + $0x2b98] sm:$0xff] }
 0x1b3   :  { %2909 = vmatpush2.msra.mxu1 %v830_v49  ;;  %2839 = vmatprep.subr.mxu0 %v402_v50  ;;  %v1078_v48 = vld [vmem:[#allocation3 + $0x1e38] sm:$0xff]  ;;  %v1077_v50 = vld [vmem:[#allocation3 + $0x1e30] sm:$0xff] }
 0x1b4   :  { %2910 = vmatprep.subr.mxu1 %v818_v54  ;;  %2840 = vmatpush2.msra.mxu0 %v401_v55  ;;  %v1494_v49 = vld [vmem:[#allocation3 + $0x2b38] sm:$0xff]  ;;  %v1493_v54 = vld [vmem:[#allocation3 + $0x2b30] sm:$0xff] }
 0x1b5   :  { %2911 = vmatpush2.msra.mxu1 %v817_v56  ;;  %2841 = vmatprep.subr.mxu0 %v389_v13  ;;  %v1065_v55 = vld [vmem:[#allocation3 + $0x1dd0] sm:$0xff]  ;;  %v1064_v13 = vld [vmem:[#allocation3 + $0x1dc8] sm:$0xff] }
 0x1b6   :  { %2912 = vmatprep.subr.mxu1 %v805_v57  ;;  %2842 = vmatpush2.msra.mxu0 %v388_v59  ;;  %v1481_v56 = vld [vmem:[#allocation3 + $0x2ad0] sm:$0xff]  ;;  %v1480_v57 = vld [vmem:[#allocation3 + $0x2ac8] sm:$0xff] }
 0x1b7   :  { %2913 = vmatpush2.msra.mxu1 %v804_v60  ;;  %2843 = vmatprep.subr.mxu0 %v376_v19  ;;  %v1052_v59 = vld [vmem:[#allocation3 + $0x1d68] sm:$0xff]  ;;  %v1051_v19 = vld [vmem:[#allocation3 + $0x1d60] sm:$0xff] }
 0x1b8   :  { %2914 = vmatprep.subr.mxu1 %v792_v61  ;;  %2844 = vmatpush2.msra.mxu0 %v375_v62  ;;  %v1468_v60 = vld [vmem:[#allocation3 + $0x2a68] sm:$0xff]  ;;  %v1467_v61 = vld [vmem:[#allocation3 + $0x2a60] sm:$0xff] }
 0x1b9   :  { %2915 = vmatpush2.msra.mxu1 %v791_v0  ;;  %2845 = vmatprep.subr.mxu0 %v363_v1  ;;  %v1039_v62 = vld [vmem:[#allocation3 + $0x1d00] sm:$0xff]  ;;  %v1038_v1 = vld [vmem:[#allocation3 + $0x1cf8] sm:$0xff] }
 0x1ba   :  { %2916 = vmatprep.subr.mxu1 %v779_v3  ;;  %2846 = vmatpush2.msra.mxu0 %v362_v4  ;;  %v1455_v0 = vld [vmem:[#allocation3 + $0x2a00] sm:$0xff]  ;;  %v1454_v3 = vld [vmem:[#allocation3 + $0x29f8] sm:$0xff] }
 0x1bb   :  { %2917 = vmatpush2.msra.mxu1 %v778_v5  ;;  %2847 = vmatprep.subr.mxu0 %v350_v6  ;;  %v1026_v4 = vld [vmem:[#allocation3 + $0x1c98] sm:$0xff]  ;;  %v1025_v6 = vld [vmem:[#allocation3 + $0x1c90] sm:$0xff] }
 0x1bc   :  { %2918 = vmatprep.subr.mxu1 %v766_v7  ;;  %v2429_v18 = vpop.f32.mrf.mxu0  ;;  %2848 = vmatpush2.msra.mxu0 %v349_v8  ;;  %v1442_v5 = vld [vmem:[#allocation3 + $0x2998] sm:$0xff]  ;;  %v1441_v7 = vld [vmem:[#allocation3 + $0x2990] sm:$0xff] }
 0x1bd   :  { %2919 = vmatpush2.msra.mxu1 %v765_v10  ;;  %v5541_v23 = vadd.f32 %v2429_v18, %v5536_v52  ;;  %2849 = vmatprep.subr.mxu0 %v337_v12  ;;  %v1142_v52 = vld [vmem:[#allocation3 + $0x2038] sm:$0xff]  ;;  %v1013_v8 = vld [vmem:[#allocation3 + $0x1c30] sm:$0xff]  ;;  %v1012_v12 = vld [vmem:[#allocation3 + $0x1c28] sm:$0xff] }
 0x1be   :  { %2920 = vmatprep.subr.mxu1 %v753_v14  ;;  %v2431_v25 = vpop.f32.mrf.mxu0  ;;  %2850 = vmatpush2.msra.mxu0 %v336_v15  ;;  %v1429_v10 = vld [vmem:[#allocation3 + $0x2930] sm:$0xff]  ;;  %v1428_v14 = vld [vmem:[#allocation3 + $0x2928] sm:$0xff]  ;;  %v999_v18 = vld [vmem:[#allocation3 + $0x1bc0] sm:$0xff] }
 0x1bf   :  { %2921 = vmatpush2.msra.mxu1 %v752_v16  ;;  %v5544_v28 = vadd.f32 %v2431_v25, %v5538_v58  ;;  %2851 = vmatprep.subr.mxu0 %v324_v20  ;;  %v1129_v58 = vld [vmem:[#allocation3 + $0x1fd0] sm:$0xff]  ;;  %v1000_v15 = vld [vmem:[#allocation3 + $0x1bc8] sm:$0xff]  ;;  %v1415_v20 = vld [vmem:[#allocation3 + $0x28c0] sm:$0xff] }
 0x1c0   :  { %2922 = vmatprep.subr.mxu1 %v740_v21  ;;  %2852 = vmatpush2.msra.mxu0 %v323_v24  ;;  %v1416_v16 = vld [vmem:[#allocation3 + $0x28c8] sm:$0xff]  ;;  %v987_v21 = vld [vmem:[#allocation3 + $0x1b60] sm:$0xff]  ;;  %v986_v25 = vld [vmem:[#allocation3 + $0x1b58] sm:$0xff] }
 0x1c1   :  { %2853 = vmatprep.mubr.f32.mxu0 %v5479_v9  ;;  %2923 = vmatpush2.msra.mxu1 %v739_v26  ;;  %v1403_v24 = vld [vmem:[#allocation3 + $0x2860] sm:$0xff]  ;;  %v1402_v26 = vld [vmem:[#allocation3 + $0x2858] sm:$0xff] }
 0x1c2   :  { %2924 = vmatprep.mubr.f32.mxu1 %v5483_v11  ;;  %2854 = vmatmul.mubr.f32.vlgmr.msra.gmra.mxu0 %v5472_v63 }
 0x1c3   :  { %2925 = vmatmul.mubr.f32.vlgmr.msra.gmra.mxu1 %v5475_v2  ;;  %2931 = vmatprep.subr.mxu0 %v1143_v29  ;;  %v974_v29 = vld [vmem:[#allocation3 + $0x1af8] sm:$0xff] }
 0x1c4   :  { %3002 = vmatprep.subr.mxu1 %v1559_v30  ;;  %2932 = vmatpush1.msra.mxu0 %v1142_v52  ;;  %v1390_v30 = vld [vmem:[#allocation3 + $0x27f8] sm:$0xff]  ;;  %v973_v52 = vld [vmem:[#allocation3 + $0x1af0] sm:$0xff] }
 0x1c5   :  { %3003 = vmatpush1.msra.mxu1 %v1558_v31  ;;  %2933 = vmatprep.subr.mxu0 %v1130_v32  ;;  %v1389_v31 = vld [vmem:[#allocation3 + $0x27f0] sm:$0xff] }
 0x1c6   :  { %3004 = vmatprep.subr.mxu1 %v1546_v33  ;;  %2934 = vmatpush1.msra.mxu0 %v1129_v58  ;;  %v961_v32 = vld [vmem:[#allocation3 + $0x1a90] sm:$0xff]  ;;  %v960_v58 = vld [vmem:[#allocation3 + $0x1a88] sm:$0xff] }
 0x1c7   :  { %3005 = vmatpush1.msra.mxu1 %v1545_v34  ;;  %2935 = vmatprep.subr.mxu0 %v1117_v35  ;;  %v1377_v33 = vld [vmem:[#allocation3 + $0x2790] sm:$0xff]  ;;  %v1376_v34 = vld [vmem:[#allocation3 + $0x2788] sm:$0xff] }
 0x1c8   :  { %3006 = vmatprep.subr.mxu1 %v1533_v36  ;;  %2936 = vmatpush1.msra.mxu0 %v1116_v37  ;;  %v948_v35 = vld [vmem:[#allocation3 + $0x1a28] sm:$0xff]  ;;  %v947_v37 = vld [vmem:[#allocation3 + $0x1a20] sm:$0xff] }
 0x1c9   :  { %3007 = vmatpush1.msra.mxu1 %v1532_v38  ;;  %2937 = vmatprep.subr.mxu0 %v1104_v39  ;;  %v1364_v36 = vld [vmem:[#allocation3 + $0x2728] sm:$0xff]  ;;  %v1363_v38 = vld [vmem:[#allocation3 + $0x2720] sm:$0xff] }
 0x1ca   :  { %3008 = vmatprep.subr.mxu1 %v1520_v40  ;;  %2938 = vmatpush1.msra.mxu0 %v1103_v41  ;;  %v1351_v39 = vld [vmem:[#allocation3 + $0x26c0] sm:$0xff]  ;;  %v1350_v41 = vld [vmem:[#allocation3 + $0x26b8] sm:$0xff] }
 0x1cb   :  { %3009 = vmatpush1.msra.mxu1 %v1519_v42  ;;  %2939 = vmatprep.subr.mxu0 %v1091_v44  ;;  %v1767_v40 = vld [vmem:[#allocation3 + $0x33c0] sm:$0xff]  ;;  %v1766_v42 = vld [vmem:[#allocation3 + $0x33b8] sm:$0xff] }
 0x1cc   :  { %3010 = vmatprep.subr.mxu1 %v1507_v45  ;;  %2940 = vmatpush1.msra.mxu0 %v1090_v46  ;;  %v1338_v44 = vld [vmem:[#allocation3 + $0x2658] sm:$0xff]  ;;  %v1337_v46 = vld [vmem:[#allocation3 + $0x2650] sm:$0xff] }
 0x1cd   :  { %3011 = vmatpush1.msra.mxu1 %v1506_v47  ;;  %2941 = vmatprep.subr.mxu0 %v1078_v48  ;;  %v1754_v45 = vld [vmem:[#allocation3 + $0x3358] sm:$0xff]  ;;  %v1753_v47 = vld [vmem:[#allocation3 + $0x3350] sm:$0xff] }
 0x1ce   :  { %3012 = vmatprep.subr.mxu1 %v1494_v49  ;;  %2942 = vmatpush1.msra.mxu0 %v1077_v50  ;;  %v1325_v48 = vld [vmem:[#allocation3 + $0x25f0] sm:$0xff]  ;;  %v1324_v50 = vld [vmem:[#allocation3 + $0x25e8] sm:$0xff] }
 0x1cf   :  { %3013 = vmatpush1.msra.mxu1 %v1493_v54  ;;  %2943 = vmatprep.subr.mxu0 %v1065_v55  ;;  %v1741_v49 = vld [vmem:[#allocation3 + $0x32f0] sm:$0xff]  ;;  %v1740_v54 = vld [vmem:[#allocation3 + $0x32e8] sm:$0xff] }
 0x1d0   :  { %3014 = vmatprep.subr.mxu1 %v1481_v56  ;;  %2944 = vmatpush1.msra.mxu0 %v1064_v13  ;;  %v1312_v55 = vld [vmem:[#allocation3 + $0x2588] sm:$0xff]  ;;  %v1311_v13 = vld [vmem:[#allocation3 + $0x2580] sm:$0xff] }
 0x1d1   :  { %3015 = vmatpush1.msra.mxu1 %v1480_v57  ;;  %2945 = vmatprep.subr.mxu0 %v1052_v59  ;;  %v1728_v56 = vld [vmem:[#allocation3 + $0x3288] sm:$0xff]  ;;  %v1727_v57 = vld [vmem:[#allocation3 + $0x3280] sm:$0xff] }
 0x1d2   :  { %3016 = vmatprep.subr.mxu1 %v1468_v60  ;;  %2946 = vmatpush1.msra.mxu0 %v1051_v19  ;;  %v1299_v59 = vld [vmem:[#allocation3 + $0x2520] sm:$0xff]  ;;  %v1298_v19 = vld [vmem:[#allocation3 + $0x2518] sm:$0xff] }
 0x1d3   :  { %3017 = vmatpush1.msra.mxu1 %v1467_v61  ;;  %2947 = vmatprep.subr.mxu0 %v1039_v62  ;;  %v1715_v60 = vld [vmem:[#allocation3 + $0x3220] sm:$0xff]  ;;  %v1714_v61 = vld [vmem:[#allocation3 + $0x3218] sm:$0xff] }
 0x1d4   :  { %3018 = vmatprep.subr.mxu1 %v1455_v0  ;;  %2948 = vmatpush1.msra.mxu0 %v1038_v1  ;;  %v1286_v62 = vld [vmem:[#allocation3 + $0x24b8] sm:$0xff]  ;;  %v1285_v1 = vld [vmem:[#allocation3 + $0x24b0] sm:$0xff] }
 0x1d5   :  { %3019 = vmatpush1.msra.mxu1 %v1454_v3  ;;  %2949 = vmatprep.subr.mxu0 %v1026_v4  ;;  %v1702_v0 = vld [vmem:[#allocation3 + $0x31b8] sm:$0xff]  ;;  %v1701_v3 = vld [vmem:[#allocation3 + $0x31b0] sm:$0xff] }
 0x1d6   :  { %3020 = vmatprep.subr.mxu1 %v1442_v5  ;;  %2950 = vmatpush1.msra.mxu0 %v1025_v6  ;;  %v1273_v4 = vld [vmem:[#allocation3 + $0x2450] sm:$0xff]  ;;  %v1272_v6 = vld [vmem:[#allocation3 + $0x2448] sm:$0xff] }
 0x1d7   :  { %3021 = vmatpush1.msra.mxu1 %v1441_v7  ;;  %2951 = vmatprep.subr.mxu0 %v1013_v8  ;;  %v1689_v5 = vld [vmem:[#allocation3 + $0x3150] sm:$0xff]  ;;  %v1688_v7 = vld [vmem:[#allocation3 + $0x3148] sm:$0xff] }
 0x1d8   :  { %3022 = vmatprep.subr.mxu1 %v1429_v10  ;;  %2952 = vmatpush1.msra.mxu0 %v1012_v12  ;;  %v1260_v8 = vld [vmem:[#allocation3 + $0x23e8] sm:$0xff]  ;;  %v1259_v12 = vld [vmem:[#allocation3 + $0x23e0] sm:$0xff] }
 0x1d9   :  { %3023 = vmatpush1.msra.mxu1 %v1428_v14  ;;  %2953 = vmatprep.subr.mxu0 %v1000_v15  ;;  %v1676_v10 = vld [vmem:[#allocation3 + $0x30e8] sm:$0xff]  ;;  %v1675_v14 = vld [vmem:[#allocation3 + $0x30e0] sm:$0xff] }
 0x1da   :  { %3024 = vmatprep.subr.mxu1 %v1416_v16  ;;  %2954 = vmatpush1.msra.mxu0 %v999_v18  ;;  %v1247_v15 = vld [vmem:[#allocation3 + $0x2380] sm:$0xff]  ;;  %v1246_v18 = vld [vmem:[#allocation3 + $0x2378] sm:$0xff] }
 0x1db   :  { %3025 = vmatpush1.msra.mxu1 %v1415_v20  ;;  %2955 = vmatprep.subr.mxu0 %v987_v21  ;;  %v1663_v16 = vld [vmem:[#allocation3 + $0x3080] sm:$0xff]  ;;  %v1662_v20 = vld [vmem:[#allocation3 + $0x3078] sm:$0xff] }
 0x1dc   :  { %3026 = vmatprep.subr.mxu1 %v1403_v24  ;;  %2956 = vmatpush1.msra.mxu0 %v986_v25  ;;  %v1234_v21 = vld [vmem:[#allocation3 + $0x2318] sm:$0xff]  ;;  %v1233_v25 = vld [vmem:[#allocation3 + $0x2310] sm:$0xff] }
 0x1dd   :  { %3027 = vmatpush1.msra.mxu1 %v1402_v26  ;;  %2957 = vmatprep.subr.mxu0 %v974_v29  ;;  %v1650_v24 = vld [vmem:[#allocation3 + $0x3018] sm:$0xff]  ;;  %v1649_v26 = vld [vmem:[#allocation3 + $0x3010] sm:$0xff] }
 0x1de   :  { %3028 = vmatprep.subr.mxu1 %v1390_v30  ;;  %2958 = vmatpush1.msra.mxu0 %v973_v52  ;;  %v1221_v29 = vld [vmem:[#allocation3 + $0x22b0] sm:$0xff]  ;;  %v1220_v52 = vld [vmem:[#allocation3 + $0x22a8] sm:$0xff] }
 0x1df   :  { %3029 = vmatpush1.msra.mxu1 %v1389_v31  ;;  %2959 = vmatprep.subr.mxu0 %v961_v32  ;;  %v1637_v30 = vld [vmem:[#allocation3 + $0x2fb0] sm:$0xff]  ;;  %v1636_v31 = vld [vmem:[#allocation3 + $0x2fa8] sm:$0xff] }
 0x1e0   :  { %3030 = vmatprep.subr.mxu1 %v1377_v33  ;;  %2960 = vmatpush1.msra.mxu0 %v960_v58  ;;  %v1208_v32 = vld [vmem:[#allocation3 + $0x2248] sm:$0xff]  ;;  %v1207_v58 = vld [vmem:[#allocation3 + $0x2240] sm:$0xff] }
 0x1e1   :  { %3031 = vmatpush1.msra.mxu1 %v1376_v34  ;;  %2961 = vmatprep.subr.mxu0 %v948_v35  ;;  %v1624_v33 = vld [vmem:[#allocation3 + $0x2f48] sm:$0xff]  ;;  %v1623_v34 = vld [vmem:[#allocation3 + $0x2f40] sm:$0xff] }
 0x1e2   :  { %3032 = vmatprep.subr.mxu1 %v1364_v36  ;;  %2962 = vmatpush1.msra.mxu0 %v947_v37  ;;  %v1195_v35 = vld [vmem:[#allocation3 + $0x21e0] sm:$0xff]  ;;  %v1194_v37 = vld [vmem:[#allocation3 + $0x21d8] sm:$0xff] }
 0x1e3   :  { %3033 = vmatpush1.msra.mxu1 %v1363_v38  ;;  %2963 = vmatprep.subr.mxu0 %v1351_v39  ;;  %v1611_v36 = vld [vmem:[#allocation3 + $0x2ee0] sm:$0xff]  ;;  %v1610_v38 = vld [vmem:[#allocation3 + $0x2ed8] sm:$0xff] }
 0x1e4   :  { %3034 = vmatprep.subr.mxu1 %v1767_v40  ;;  %2964 = vmatpush2.msra.mxu0 %v1350_v41  ;;  %v1182_v39 = vld [vmem:[#allocation3 + $0x2178] sm:$0xff]  ;;  %v1181_v41 = vld [vmem:[#allocation3 + $0x2170] sm:$0xff] }
 0x1e5   :  { %3035 = vmatpush2.msra.mxu1 %v1766_v42  ;;  %2965 = vmatprep.subr.mxu0 %v1338_v44  ;;  %v1598_v40 = vld [vmem:[#allocation3 + $0x2e78] sm:$0xff]  ;;  %v1597_v42 = vld [vmem:[#allocation3 + $0x2e70] sm:$0xff] }
 0x1e6   :  { %3036 = vmatprep.subr.mxu1 %v1754_v45  ;;  %2966 = vmatpush2.msra.mxu0 %v1337_v46  ;;  %v1169_v44 = vld [vmem:[#allocation3 + $0x2110] sm:$0xff]  ;;  %v2500_v46 = vpop.f32.mrf.mxu1 }
 0x1e7   :  { %3037 = vmatpush2.msra.mxu1 %v1753_v47  ;;  %2967 = vmatprep.subr.mxu0 %v1325_v48  ;;  %v1585_v45 = vld [vmem:[#allocation3 + $0x2e10] sm:$0xff]  ;;  %v1168_v47 = vld [vmem:[#allocation3 + $0x2108] sm:$0xff] }
 0x1e8   :  { %3038 = vmatprep.subr.mxu1 %v1741_v49  ;;  %2968 = vmatpush2.msra.mxu0 %v1324_v50  ;;  %v1584_v48 = vld [vmem:[#allocation3 + $0x2e08] sm:$0xff] }
 0x1e9   :  { %3039 = vmatpush2.msra.mxu1 %v1740_v54  ;;  %2969 = vmatprep.subr.mxu0 %v1312_v55  ;;  %v1156_v50 = vld [vmem:[#allocation3 + $0x20a8] sm:$0xff] }
 0x1ea   :  { %3040 = vmatprep.subr.mxu1 %v1728_v56  ;;  %2970 = vmatpush2.msra.mxu0 %v1311_v13  ;;  %v1572_v54 = vld [vmem:[#allocation3 + $0x2da8] sm:$0xff]  ;;  %v1155_v56 = vld [vmem:[#allocation3 + $0x20a0] sm:$0xff] }
 0x1eb   :  { %3041 = vmatpush2.msra.mxu1 %v1727_v57  ;;  %2971 = vmatprep.subr.mxu0 %v1299_v59  ;;  %v1571_v13 = vld [vmem:[#allocation3 + $0x2da0] sm:$0xff]  ;;  %v313_v59 = vld [vmem:[#allocation3 + $0x650] sm:$0xff] }
 0x1ec   :  { %3042 = vmatprep.subr.mxu1 %v1715_v60  ;;  %2972 = vmatpush2.msra.mxu0 %v1298_v19  ;;  %v1975_v57 = vld [vmem:[#allocation3 + $0x3a40] sm:$0xff]  ;;  %v1974_v60 = vld [vmem:[#allocation3 + $0x3a38] sm:$0xff]  ;;  %v312_v19 = vld [vmem:[#allocation3 + $0x648] sm:$0xff] }
 0x1ed   :  { %3043 = vmatpush2.msra.mxu1 %v1714_v61  ;;  %2973 = vmatprep.subr.mxu0 %v1286_v62  ;;  %v1962_v61 = vld [vmem:[#allocation3 + $0x39d8] sm:$0xff]  ;;  %v300_v62 = vld [vmem:[#allocation3 + $0x5e8] sm:$0xff] }
 0x1ee   :  { %3044 = vmatprep.subr.mxu1 %v1702_v0  ;;  %2974 = vmatpush2.msra.mxu0 %v1285_v1  ;;  %v1961_v0 = vld [vmem:[#allocation3 + $0x39d0] sm:$0xff]  ;;  %v299_v1 = vld [vmem:[#allocation3 + $0x5e0] sm:$0xff] }
 0x1ef   :  { %3045 = vmatpush2.msra.mxu1 %v1701_v3  ;;  %2975 = vmatprep.subr.mxu0 %v1273_v4  ;;  %v1949_v3 = vld [vmem:[#allocation3 + $0x3970] sm:$0xff]  ;;  %v287_v4 = vld [vmem:[#allocation3 + $0x580] sm:$0xff] }
 0x1f0   :  { %3046 = vmatprep.subr.mxu1 %v1689_v5  ;;  %2976 = vmatpush2.msra.mxu0 %v1272_v6  ;;  %v1948_v5 = vld [vmem:[#allocation3 + $0x3968] sm:$0xff]  ;;  %v286_v6 = vld [vmem:[#allocation3 + $0x578] sm:$0xff] }
 0x1f1   :  { %3047 = vmatpush2.msra.mxu1 %v1688_v7  ;;  %2977 = vmatprep.subr.mxu0 %v1260_v8  ;;  %v1936_v7 = vld [vmem:[#allocation3 + $0x3908] sm:$0xff]  ;;  %v274_v8 = vld [vmem:[#allocation3 + $0x518] sm:$0xff] }
 0x1f2   :  { %3048 = vmatprep.subr.mxu1 %v1676_v10  ;;  %2978 = vmatpush2.msra.mxu0 %v1259_v12  ;;  %v1935_v10 = vld [vmem:[#allocation3 + $0x3900] sm:$0xff]  ;;  %v273_v12 = vld [vmem:[#allocation3 + $0x510] sm:$0xff] }
 0x1f3   :  { %3049 = vmatpush2.msra.mxu1 %v1675_v14  ;;  %2979 = vmatprep.subr.mxu0 %v1247_v15  ;;  %v1923_v14 = vld [vmem:[#allocation3 + $0x38a0] sm:$0xff]  ;;  %v261_v15 = vld [vmem:[#allocation3 + $0x4b0] sm:$0xff] }
 0x1f4   :  { %3050 = vmatprep.subr.mxu1 %v1663_v16  ;;  %2980 = vmatpush2.msra.mxu0 %v1246_v18  ;;  %v1922_v16 = vld [vmem:[#allocation3 + $0x3898] sm:$0xff]  ;;  %v260_v18 = vld [vmem:[#allocation3 + $0x4a8] sm:$0xff] }
 0x1f5   :  { %3051 = vmatpush2.msra.mxu1 %v1662_v20  ;;  %2981 = vmatprep.subr.mxu0 %v1234_v21  ;;  %v1910_v20 = vld [vmem:[#allocation3 + $0x3838] sm:$0xff]  ;;  %v248_v21 = vld [vmem:[#allocation3 + $0x448] sm:$0xff] }
 0x1f6   :  { %3052 = vmatprep.subr.mxu1 %v1650_v24  ;;  %2982 = vmatpush2.msra.mxu0 %v1233_v25  ;;  %v1909_v24 = vld [vmem:[#allocation3 + $0x3830] sm:$0xff]  ;;  %v247_v25 = vld [vmem:[#allocation3 + $0x440] sm:$0xff] }
 0x1f7   :  { %3053 = vmatpush2.msra.mxu1 %v1649_v26  ;;  %2983 = vmatprep.subr.mxu0 %v1221_v29  ;;  %v1897_v26 = vld [vmem:[#allocation3 + $0x37d0] sm:$0xff]  ;;  %v235_v29 = vld [vmem:[#allocation3 + $0x3e0] sm:$0xff] }
 0x1f8   :  { %3054 = vmatprep.subr.mxu1 %v1637_v30  ;;  %2984 = vmatpush2.msra.mxu0 %v1220_v52  ;;  %v1896_v30 = vld [vmem:[#allocation3 + $0x37c8] sm:$0xff]  ;;  %v234_v52 = vld [vmem:[#allocation3 + $0x3d8] sm:$0xff] }
 0x1f9   :  { %3055 = vmatpush2.msra.mxu1 %v1636_v31  ;;  %2985 = vmatprep.subr.mxu0 %v1208_v32  ;;  %v1884_v31 = vld [vmem:[#allocation3 + $0x3768] sm:$0xff]  ;;  %v222_v32 = vld [vmem:[#allocation3 + $0x378] sm:$0xff] }
 0x1fa   :  { %3056 = vmatprep.subr.mxu1 %v1624_v33  ;;  %2986 = vmatpush2.msra.mxu0 %v1207_v58  ;;  %v1883_v33 = vld [vmem:[#allocation3 + $0x3760] sm:$0xff]  ;;  %v221_v58 = vld [vmem:[#allocation3 + $0x370] sm:$0xff] }
 0x1fb   :  { %3057 = vmatpush2.msra.mxu1 %v1623_v34  ;;  %2987 = vmatprep.subr.mxu0 %v1195_v35  ;;  %v1871_v34 = vld [vmem:[#allocation3 + $0x3700] sm:$0xff]  ;;  %v209_v35 = vld [vmem:[#allocation3 + $0x310] sm:$0xff] }
 0x1fc   :  { %3058 = vmatprep.subr.mxu1 %v1611_v36  ;;  %2988 = vmatpush2.msra.mxu0 %v1194_v37  ;;  %v1870_v36 = vld [vmem:[#allocation3 + $0x36f8] sm:$0xff]  ;;  %v208_v37 = vld [vmem:[#allocation3 + $0x308] sm:$0xff] }
 0x1fd   :  { %3059 = vmatpush2.msra.mxu1 %v1610_v38  ;;  %2989 = vmatprep.subr.mxu0 %v1182_v39  ;;  %v1858_v38 = vld [vmem:[#allocation3 + $0x3698] sm:$0xff]  ;;  %v196_v39 = vld [vmem:[#allocation3 + $0x2a8] sm:$0xff] }
 0x1fe   :  { %3060 = vmatprep.subr.mxu1 %v1598_v40  ;;  %v2571_v49 = vpop.f32.mrf.mxu0  ;;  %2990 = vmatpush2.msra.mxu0 %v1181_v41  ;;  %v1857_v40 = vld [vmem:[#allocation3 + $0x3690] sm:$0xff]  ;;  %v195_v41 = vld [vmem:[#allocation3 + $0x2a0] sm:$0xff] }
 0x1ff   :  { %3061 = vmatpush2.msra.mxu1 %v1597_v42  ;;  %v5550_v55 = vadd.f32 %v2571_v49, %v2500_v46  ;;  %2991 = vmatprep.subr.mxu0 %v1169_v44  ;;  %v5556_v42 = vpop.f32.mrf.mxu1  ;;  %v1845_v44 = vld [vmem:[#allocation3 + $0x3630] sm:$0xff]  ;;  %v1844_v46 = vld [vmem:[#allocation3 + $0x3628] sm:$0xff]  ;;  %v170_v49 = vld [vmem:[#allocation3 + $0x1d8] sm:$0xff] }
 0x200   :  { %3062 = vmatprep.subr.mxu1 %v1585_v45  ;;  %2992 = vmatpush2.msra.mxu0 %v1168_v47  ;;  %v183_v45 = vld [vmem:[#allocation3 + $0x240] sm:$0xff]  ;;  %v182_v47 = vld [vmem:[#allocation3 + $0x238] sm:$0xff] }
 0x201   :  { %3063 = vmatpush2.msra.mxu1 %v1584_v48  ;;  %2993 = vmatprep.subr.mxu0 %v1156_v50  ;;  %v1832_v48 = vld [vmem:[#allocation3 + $0x35c8] sm:$0xff] }
 0x202   :  { %3064 = vmatprep.subr.mxu1 %v1572_v54  ;;  %2994 = vmatpush2.msra.mxu0 %v1155_v56  ;;  %v1831_v54 = vld [vmem:[#allocation3 + $0x35c0] sm:$0xff]  ;;  %v169_v56 = vld [vmem:[#allocation3 + $0x1d0] sm:$0xff] }
 0x203   :  { %2995 = vmatprep.mubr.f32.mxu0 %v5500_v27  ;;  %3065 = vmatpush2.msra.mxu1 %v1571_v13 }
 0x204   :  { %2996 = vmatmul.mubr.f32.vlgmr.msra.gmra.mxu0 %v5493_v17  ;;  %3066 = vmatprep.mubr.f32.mxu1 %v5504_v53 }
 0x205   :  { %3073 = vmatprep.subr.mxu0 %v1975_v57  ;;  %3144 = vmatprep.subr.mxu1 %v313_v59  ;;  %v1819_v57 = vld [vmem:[#allocation3 + $0x3560] sm:$0xff]  ;;  %v157_v59 = vld [vmem:[#allocation3 + $0x170] sm:$0xff] }
 0x206   :  { %3067 = vmatmul.mubr.f32.vlgmr.msra.gmra.mxu1 %v5496_v22  ;;  %3074 = vmatpush1.msra.mxu0 %v1974_v60  ;;  %v1818_v60 = vld [vmem:[#allocation3 + $0x3558] sm:$0xff] }
 0x207   :  { %3145 = vmatpush1.msra.mxu1 %v312_v19  ;;  %3075 = vmatprep.subr.mxu0 %v1962_v61  ;;  %v156_v19 = vld [vmem:[#allocation3 + $0x168] sm:$0xff]  ;;  %v1806_v61 = vld [vmem:[#allocation3 + $0x34f8] sm:$0xff] }
 0x208   :  { %3146 = vmatprep.subr.mxu1 %v300_v62  ;;  %3076 = vmatpush1.msra.mxu0 %v1961_v0  ;;  %v144_v62 = vld [vmem:[#allocation3 + $0x108] sm:$0xff]  ;;  %v1805_v0 = vld [vmem:[#allocation3 + $0x34f0] sm:$0xff] }
 0x209   :  { %3147 = vmatpush1.msra.mxu1 %v299_v1  ;;  %3077 = vmatprep.subr.mxu0 %v1949_v3  ;;  %v143_v1 = vld [vmem:[#allocation3 + $0x100] sm:$0xff] }
 0x20a   :  { %3148 = vmatprep.subr.mxu1 %v287_v4  ;;  %3078 = vmatpush1.msra.mxu0 %v1948_v5  ;;  %v131_v3 = vld [vmem:[#allocation3 + $0xa0] sm:$0xff]  ;;  %v1792_v4 = vld [vmem:[#allocation3 + $0x3488] sm:$0xff]  ;;  %v130_v5 = vld [vmem:[#allocation3 + $0x98] sm:$0xff] }
 0x20b   :  { %3149 = vmatpush1.msra.mxu1 %v286_v6  ;;  %3079 = vmatprep.subr.mxu0 %v1936_v7  ;;  %v1780_v6 = vld [vmem:[#allocation3 + $0x3428] sm:$0xff]  ;;  %v118_v7 = vld [vmem:[#allocation3 + $0x38] sm:$0xff] }
 0x20c   :  { %3150 = vmatprep.subr.mxu1 %v274_v8  ;;  %3080 = vmatpush1.msra.mxu0 %v1935_v10  ;;  %v1779_v8 = vld [vmem:[#allocation3 + $0x3420] sm:$0xff]  ;;  %v117_v10 = vld [vmem:[#allocation3 + $0x30] sm:$0xff] }
 0x20d   :  { %3151 = vmatpush1.msra.mxu1 %v273_v12  ;;  %3081 = vmatprep.subr.mxu0 %v1923_v14  ;;  %v2014_v12 = vld [vmem:[#allocation3 + $0x3b78] sm:$0xff]  ;;  %v521_v14 = vld [vmem:[#allocation3 + $0xcd0] sm:$0xff] }
 0x20e   :  { %3152 = vmatprep.subr.mxu1 %v261_v15  ;;  %3082 = vmatpush1.msra.mxu0 %v1922_v16  ;;  %v2013_v15 = vld [vmem:[#allocation3 + $0x3b70] sm:$0xff]  ;;  %v520_v16 = vld [vmem:[#allocation3 + $0xcc8] sm:$0xff] }
 0x20f   :  { %3153 = vmatpush1.msra.mxu1 %v260_v18  ;;  %3083 = vmatprep.subr.mxu0 %v1910_v20  ;;  %v2001_v18 = vld [vmem:[#allocation3 + $0x3b10] sm:$0xff]  ;;  %v508_v20 = vld [vmem:[#allocation3 + $0xc68] sm:$0xff] }
 0x210   :  { %3154 = vmatprep.subr.mxu1 %v248_v21  ;;  %3084 = vmatpush1.msra.mxu0 %v1909_v24  ;;  %v2000_v21 = vld [vmem:[#allocation3 + $0x3b08] sm:$0xff]  ;;  %v507_v24 = vld [vmem:[#allocation3 + $0xc60] sm:$0xff] }
 0x211   :  { %3155 = vmatpush1.msra.mxu1 %v247_v25  ;;  %3085 = vmatprep.subr.mxu0 %v1897_v26  ;;  %v1988_v25 = vld [vmem:[#allocation3 + $0x3aa8] sm:$0xff]  ;;  %v495_v26 = vld [vmem:[#allocation3 + $0xc00] sm:$0xff] }
 0x212   :  { %3156 = vmatprep.subr.mxu1 %v235_v29  ;;  %3086 = vmatpush1.msra.mxu0 %v1896_v30  ;;  %v1987_v29 = vld [vmem:[#allocation3 + $0x3aa0] sm:$0xff]  ;;  %v494_v30 = vld [vmem:[#allocation3 + $0xbf8] sm:$0xff] }
 0x213   :  { %3157 = vmatpush1.msra.mxu1 %v234_v52  ;;  %3087 = vmatprep.subr.mxu0 %v1884_v31  ;;  %v482_v52 = vld [vmem:[#allocation3 + $0xb98] sm:$0xff]  ;;  %v729_v31 = vld [vmem:[#allocation3 + $0x1350] sm:$0xff] }
 0x214   :  { %3158 = vmatprep.subr.mxu1 %v222_v32  ;;  %3088 = vmatpush1.msra.mxu0 %v1883_v33  ;;  %v481_v32 = vld [vmem:[#allocation3 + $0xb90] sm:$0xff]  ;;  %v728_v33 = vld [vmem:[#allocation3 + $0x1348] sm:$0xff] }
 0x215   :  { %3159 = vmatpush1.msra.mxu1 %v221_v58  ;;  %3089 = vmatprep.subr.mxu0 %v1871_v34  ;;  %v5245_v58 = vld.sshfl [vmem:[%s5848_s0 + $0x10] sm:$0x33 pattern:$0x76325410] }
 0x216   :  { %3160 = vmatprep.subr.mxu1 %v209_v35  ;;  %3090 = vmatpush1.msra.mxu0 %v1870_v36  ;;  %v469_v34 = vld [vmem:[#allocation3 + $0xb30] sm:$0xff]  ;;  %v716_v35 = vld [vmem:[#allocation3 + $0x12e8] sm:$0xff] }
 0x217   :  { %3161 = vmatpush1.msra.mxu1 %v208_v37  ;;  %3091 = vmatprep.subr.mxu0 %v1858_v38  ;;  %v468_v36 = vld [vmem:[#allocation3 + $0xb28] sm:$0xff]  ;;  %v715_v37 = vld [vmem:[#allocation3 + $0x12e0] sm:$0xff] }
 0x218   :  { %3162 = vmatprep.subr.mxu1 %v196_v39  ;;  %3092 = vmatpush1.msra.mxu0 %v1857_v40  ;;  %v456_v38 = vld [vmem:[#allocation3 + $0xac8] sm:$0xff]  ;;  %v703_v39 = vld [vmem:[#allocation3 + $0x1280] sm:$0xff] }
 0x219   :  { %3163 = vmatpush1.msra.mxu1 %v195_v41  ;;  %v2642_v50 = vpop.f32.mrf.mxu1  ;;  %3093 = vmatprep.subr.mxu0 %v1845_v44  ;;  %v455_v40 = vld [vmem:[#allocation3 + $0xac0] sm:$0xff]  ;;  %v702_v41 = vld [vmem:[#allocation3 + $0x1278] sm:$0xff] }
 0x21a   :  { %3164 = vmatprep.subr.mxu1 %v183_v45  ;;  %v5559_v13 = vadd.f32 %v2642_v50, %v5550_v55  ;;  %3094 = vmatpush1.msra.mxu0 %v1844_v46  ;;  %v1793_v55 = vld [vmem:[#allocation3 + $0x3490] sm:$0xff]  ;;  %v443_v44 = vld [vmem:[#allocation3 + $0xa60] sm:$0xff]  ;;  %v690_v45 = vld [vmem:[#allocation3 + $0x1218] sm:$0xff] }
 0x21b   :  { %3165 = vmatpush1.msra.mxu1 %v182_v47  ;;  %3095 = vmatprep.subr.mxu0 %v1832_v48  ;;  %v442_v46 = vld [vmem:[#allocation3 + $0xa58] sm:$0xff]  ;;  %v689_v47 = vld [vmem:[#allocation3 + $0x1210] sm:$0xff] }
 0x21c   :  { %3166 = vmatprep.subr.mxu1 %v170_v49  ;;  %3096 = vmatpush1.msra.mxu0 %v1831_v54  ;;  %v430_v48 = vld [vmem:[#allocation3 + $0x9f8] sm:$0xff]  ;;  %v677_v49 = vld [vmem:[#allocation3 + $0x11b0] sm:$0xff]  ;;  %v676_v54 = vld [vmem:[#allocation3 + $0x11a8] sm:$0xff] }
 0x21d   :  { %3167 = vmatpush1.msra.mxu1 %v169_v56  ;;  %3097 = vmatprep.subr.mxu0 %v1819_v57  ;;  %v429_v50 = vld [vmem:[#allocation3 + $0x9f0] sm:$0xff]  ;;  %v664_v57 = vld [vmem:[#allocation3 + $0x1148] sm:$0xff] }
 0x21e   :  { %3168 = vmatprep.subr.mxu1 %v157_v59  ;;  %3098 = vmatpush1.msra.mxu0 %v1818_v60  ;;  %v417_v56 = vld [vmem:[#allocation3 + $0x990] sm:$0xff]  ;;  %v416_v59 = vld [vmem:[#allocation3 + $0x988] sm:$0xff]  ;;  %v663_v60 = vld [vmem:[#allocation3 + $0x1140] sm:$0xff] }
 0x21f   :  { %3169 = vmatpush1.msra.mxu1 %v156_v19  ;;  %3099 = vmatprep.subr.mxu0 %v1806_v61  ;;  %v404_v19 = vld [vmem:[#allocation3 + $0x928] sm:$0xff]  ;;  %v651_v61 = vld [vmem:[#allocation3 + $0x10e0] sm:$0xff] }
 0x220   :  { %3170 = vmatprep.subr.mxu1 %v144_v62  ;;  %3100 = vmatpush1.msra.mxu0 %v1805_v0  ;;  %v403_v62 = vld [vmem:[#allocation3 + $0x920] sm:$0xff]  ;;  %v650_v0 = vld [vmem:[#allocation3 + $0x10d8] sm:$0xff] }
 0x221   :  { %3171 = vmatpush1.msra.mxu1 %v143_v1  ;;  %3101 = vmatprep.subr.mxu0 %v1793_v55  ;;  %v391_v1 = vld [vmem:[#allocation3 + $0x8c0] sm:$0xff]  ;;  %v638_v55 = vld [vmem:[#allocation3 + $0x1078] sm:$0xff] }
 0x222   :  { %3172 = vmatprep.subr.mxu1 %v131_v3  ;;  %3102 = vmatpush1.msra.mxu0 %v1792_v4  ;;  %v390_v3 = vld [vmem:[#allocation3 + $0x8b8] sm:$0xff]  ;;  %v637_v4 = vld [vmem:[#allocation3 + $0x1070] sm:$0xff] }
 0x223   :  { %3173 = vmatpush1.msra.mxu1 %v130_v5  ;;  %3103 = vmatprep.subr.mxu0 %v1780_v6  ;;  %v378_v5 = vld [vmem:[#allocation3 + $0x858] sm:$0xff]  ;;  %v625_v6 = vld [vmem:[#allocation3 + $0x1010] sm:$0xff] }
 0x224   :  { %3174 = vmatprep.subr.mxu1 %v118_v7  ;;  %3104 = vmatpush1.msra.mxu0 %v1779_v8  ;;  %v377_v7 = vld [vmem:[#allocation3 + $0x850] sm:$0xff]  ;;  %v624_v8 = vld [vmem:[#allocation3 + $0x1008] sm:$0xff] }
 0x225   :  { %3175 = vmatpush1.msra.mxu1 %v117_v10  ;;  %3131 = vmatprep.subr.mxu0 %v2014_v12  ;;  %v365_v10 = vld [vmem:[#allocation3 + $0x7f0] sm:$0xff]  ;;  %v612_v12 = vld [vmem:[#allocation3 + $0xfa8] sm:$0xff] }
 0x226   :  { %3176 = vmatprep.subr.mxu1 %v521_v14  ;;  %3132 = vmatpush2.msra.mxu0 %v2013_v15  ;;  %v364_v14 = vld [vmem:[#allocation3 + $0x7e8] sm:$0xff]  ;;  %v611_v15 = vld [vmem:[#allocation3 + $0xfa0] sm:$0xff] }
 0x227   :  { %3177 = vmatpush2.msra.mxu1 %v520_v16  ;;  %3133 = vmatprep.subr.mxu0 %v2001_v18  ;;  %v5566_v16 = vpop.f32.mrf.mxu0  ;;  %v352_v18 = vld [vmem:[#allocation3 + $0x788] sm:$0xff] }
 0x228   :  { %3178 = vmatprep.subr.mxu1 %v508_v20  ;;  %3134 = vmatpush2.msra.mxu0 %v2000_v21  ;;  %v599_v20 = vld [vmem:[#allocation3 + $0xf40] sm:$0xff] }
 0x229   :  { %3179 = vmatpush2.msra.mxu1 %v507_v24  ;;  %3135 = vmatprep.subr.mxu0 %v1988_v25  ;;  %v351_v21 = vld [vmem:[#allocation3 + $0x780] sm:$0xff]  ;;  %v598_v24 = vld [vmem:[#allocation3 + $0xf38] sm:$0xff]  ;;  %v5568_v25 = vpop.f32.mrf.mxu1 }
 0x22a   :  { %3180 = vmatprep.subr.mxu1 %v495_v26  ;;  %3136 = vmatpush2.msra.mxu0 %v1987_v29  ;;  %v339_v26 = vld [vmem:[#allocation3 + $0x720] sm:$0xff]  ;;  %v586_v29 = vld [vmem:[#allocation3 + $0xed8] sm:$0xff] }
 0x22b   :  { %4992 = vmatprep.mubr.msk.f32.mxu0 %vm2076_vm0, %v5513_v51  ;;  %3181 = vmatpush2.msra.mxu1 %v494_v30 }
 0x22c   :  { %3138 = vmatmul.mubr.f32.vlgmr.msra.gmra.mxu0 %v5245_v58  ;;  %3182 = vmatprep.subr.mxu1 %v482_v52  ;;  %v338_v52 = vld [vmem:[#allocation3 + $0x718] sm:$0xff]  ;;  %v573_v58 = vld [vmem:[#allocation3 + $0xe70] sm:$0xff] }
 0x22d   :  { %3215 = vmatprep.subr.mxu0 %v729_v31  ;;  %3183 = vmatpush2.msra.mxu1 %v481_v32  ;;  %v585_v31 = vld [vmem:[#allocation3 + $0xed0] sm:$0xff] }
 0x22e   :  { %3216 = vmatpush1.msra.mxu0 %v728_v33  ;;  %3184 = vmatprep.subr.mxu1 %v469_v34  ;;  %v326_v33 = vld [vmem:[#allocation3 + $0x6b8] sm:$0xff] }
 0x22f   :  { %3217 = vmatprep.subr.mxu0 %v716_v35  ;;  %3185 = vmatpush2.msra.mxu1 %v468_v36  ;;  %v325_v35 = vld [vmem:[#allocation3 + $0x6b0] sm:$0xff]  ;;  %v572_v36 = vld [vmem:[#allocation3 + $0xe68] sm:$0xff] }
 0x230   :  { %3218 = vmatpush1.msra.mxu0 %v715_v37  ;;  %3186 = vmatprep.subr.mxu1 %v456_v38  ;;  %v560_v38 = vld [vmem:[#allocation3 + $0xe08] sm:$0xff] }
 0x231   :  { %3219 = vmatprep.subr.mxu0 %v703_v39  ;;  %3187 = vmatpush2.msra.mxu1 %v455_v40  ;;  %v1145_v39 = vld [vmem:[#allocation3 + $0x2050] sm:$0xff]  ;;  %v1144_v40 = vld [vmem:[#allocation3 + $0x2048] sm:$0xff] }
 0x232   :  { %3220 = vmatpush1.msra.mxu0 %v702_v41  ;;  %3188 = vmatprep.subr.mxu1 %v443_v44  ;;  %v547_v41 = vld [vmem:[#allocation3 + $0xda0] sm:$0xff]  ;;  %v1132_v44 = vld [vmem:[#allocation3 + $0x1fe8] sm:$0xff] }
 0x233   :  { %3221 = vmatprep.subr.mxu0 %v690_v45  ;;  %3189 = vmatpush2.msra.mxu1 %v442_v46  ;;  %v546_v45 = vld [vmem:[#allocation3 + $0xd98] sm:$0xff]  ;;  %v1131_v46 = vld [vmem:[#allocation3 + $0x1fe0] sm:$0xff] }
 0x234   :  { %3222 = vmatpush1.msra.mxu0 %v689_v47  ;;  %3190 = vmatprep.subr.mxu1 %v430_v48  ;;  %v534_v47 = vld [vmem:[#allocation3 + $0xd38] sm:$0xff]  ;;  %v1119_v48 = vld [vmem:[#allocation3 + $0x1f80] sm:$0xff] }
 0x235   :  { %3223 = vmatprep.subr.mxu0 %v677_v49  ;;  %3191 = vmatpush2.msra.mxu1 %v429_v50  ;;  %v533_v49 = vld [vmem:[#allocation3 + $0xd30] sm:$0xff]  ;;  %v1118_v50 = vld [vmem:[#allocation3 + $0x1f78] sm:$0xff] }
 0x236   :  { %3224 = vmatpush1.msra.mxu0 %v676_v54  ;;  %3192 = vmatprep.subr.mxu1 %v417_v56  ;;  %v937_v54 = vld [vmem:[#allocation3 + $0x19d0] sm:$0xff]  ;;  %v1106_v56 = vld [vmem:[#allocation3 + $0x1f18] sm:$0xff] }
 0x237   :  { %3225 = vmatprep.subr.mxu0 %v664_v57  ;;  %3193 = vmatpush2.msra.mxu1 %v416_v59  ;;  %v936_v57 = vld [vmem:[#allocation3 + $0x19c8] sm:$0xff]  ;;  %v1105_v59 = vld [vmem:[#allocation3 + $0x1f10] sm:$0xff] }
 0x238   :  { %3226 = vmatpush1.msra.mxu0 %v663_v60  ;;  %3194 = vmatprep.subr.mxu1 %v404_v19  ;;  %v924_v60 = vld [vmem:[#allocation3 + $0x1968] sm:$0xff]  ;;  %v1093_v19 = vld [vmem:[#allocation3 + $0x1eb0] sm:$0xff] }
 0x239   :  { %3227 = vmatprep.subr.mxu0 %v651_v61  ;;  %3195 = vmatpush2.msra.mxu1 %v403_v62  ;;  %v923_v61 = vld [vmem:[#allocation3 + $0x1960] sm:$0xff]  ;;  %v1092_v62 = vld [vmem:[#allocation3 + $0x1ea8] sm:$0xff] }
 0x23a   :  { %3228 = vmatpush1.msra.mxu0 %v650_v0  ;;  %3196 = vmatprep.subr.mxu1 %v391_v1  ;;  %v911_v0 = vld [vmem:[#allocation3 + $0x1900] sm:$0xff]  ;;  %v1080_v1 = vld [vmem:[#allocation3 + $0x1e48] sm:$0xff] }
 0x23b   :  { %3229 = vmatprep.subr.mxu0 %v638_v55  ;;  %3197 = vmatpush2.msra.mxu1 %v390_v3  ;;  %v910_v55 = vld [vmem:[#allocation3 + $0x18f8] sm:$0xff]  ;;  %v1079_v3 = vld [vmem:[#allocation3 + $0x1e40] sm:$0xff] }
 0x23c   :  { %3230 = vmatpush1.msra.mxu0 %v637_v4  ;;  %3198 = vmatprep.subr.mxu1 %v378_v5  ;;  %v898_v4 = vld [vmem:[#allocation3 + $0x1898] sm:$0xff]  ;;  %v1067_v5 = vld [vmem:[#allocation3 + $0x1de0] sm:$0xff] }
 0x23d   :  { %3231 = vmatprep.subr.mxu0 %v625_v6  ;;  %3199 = vmatpush2.msra.mxu1 %v377_v7  ;;  %v897_v6 = vld [vmem:[#allocation3 + $0x1890] sm:$0xff]  ;;  %v1066_v7 = vld [vmem:[#allocation3 + $0x1dd8] sm:$0xff] }
 0x23e   :  { %3232 = vmatpush1.msra.mxu0 %v624_v8  ;;  %3200 = vmatprep.subr.mxu1 %v365_v10  ;;  %v885_v8 = vld [vmem:[#allocation3 + $0x1830] sm:$0xff]  ;;  %v1054_v10 = vld [vmem:[#allocation3 + $0x1d78] sm:$0xff] }
 0x23f   :  { %3233 = vmatprep.subr.mxu0 %v612_v12  ;;  %3201 = vmatpush2.msra.mxu1 %v364_v14  ;;  %v884_v12 = vld [vmem:[#allocation3 + $0x1828] sm:$0xff]  ;;  %v1053_v14 = vld [vmem:[#allocation3 + $0x1d70] sm:$0xff] }
 0x240   :  { %3234 = vmatpush1.msra.mxu0 %v611_v15  ;;  %v2713_v30 = vpop.f32.mrf.mxu0  ;;  %3202 = vmatprep.subr.mxu1 %v352_v18  ;;  %v872_v15 = vld [vmem:[#allocation3 + $0x17c8] sm:$0xff]  ;;  %v1041_v18 = vld [vmem:[#allocation3 + $0x1d10] sm:$0xff] }
 0x241   :  { %3235 = vmatprep.subr.mxu0 %v599_v20  ;;  %v2714_v32 = vadd.f32 %v2713_v30, %v5559_v13  ;;  %3203 = vmatpush2.msra.mxu1 %v351_v21  ;;  %v559_v13 = vld [vmem:[#allocation3 + $0xe00] sm:$0xff]  ;;  %v1040_v21 = vld [vmem:[#allocation3 + $0x1d08] sm:$0xff] }
 0x242   :  { %3236 = vmatpush1.msra.mxu0 %v598_v24  ;;  %v2784_v34 = vpop.f32.mrf.mxu1  ;;  %3204 = vmatprep.subr.mxu1 %v339_v26  ;;  %v871_v20 = vld [vmem:[#allocation3 + $0x17c0] sm:$0xff]  ;;  %v1028_v26 = vld [vmem:[#allocation3 + $0x1ca8] sm:$0xff] }
 0x243   :  { %3237 = vmatprep.subr.mxu0 %v586_v29  ;;  %v5571_v37 = vadd.f32 %v2784_v34, %v2714_v32  ;;  %3205 = vmatpush2.msra.mxu1 %v338_v52  ;;  %v859_v24 = vld [vmem:[#allocation3 + $0x1760] sm:$0xff]  ;;  %v858_v29 = vld [vmem:[#allocation3 + $0x1758] sm:$0xff]  ;;  %v845_v32 = vld [vmem:[#allocation3 + $0x16f0] sm:$0xff] }
 0x244   :  { %3238 = vmatpush1.msra.mxu0 %v585_v31  ;;  %3206 = vmatprep.subr.mxu1 %v326_v33  ;;  %v1027_v30 = vld [vmem:[#allocation3 + $0x1ca0] sm:$0xff]  ;;  %v846_v52 = vld [vmem:[#allocation3 + $0x16f8] sm:$0xff] }
 0x245   :  { %3239 = vmatprep.subr.mxu0 %v573_v58  ;;  %3207 = vmatpush2.msra.mxu1 %v325_v35  ;;  %v1015_v31 = vld [vmem:[#allocation3 + $0x1c40] sm:$0xff]  ;;  %v1014_v33 = vld [vmem:[#allocation3 + $0x1c38] sm:$0xff]  ;;  %v833_v58 = vld [vmem:[#allocation3 + $0x1690] sm:$0xff] }
 0x246   :  { %3240 = vmatpush1.msra.mxu0 %v572_v36  ;;  %3208 = vmatprep.mubr.f32.mxu1 %v5479_v9  ;;  %v1002_v34 = vld [vmem:[#allocation3 + $0x1bd8] sm:$0xff]  ;;  %v832_v35 = vld [vmem:[#allocation3 + $0x1688] sm:$0xff]  ;;  %v1001_v36 = vld [vmem:[#allocation3 + $0x1bd0] sm:$0xff] }
 0x247   :  { %3241 = vmatprep.subr.mxu0 %v560_v38  ;;  %3286 = vmatprep.subr.mxu1 %v1145_v39  ;;  %v820_v38 = vld [vmem:[#allocation3 + $0x1628] sm:$0xff]  ;;  %v989_v39 = vld [vmem:[#allocation3 + $0x1b70] sm:$0xff] }
 0x248   :  { %3209 = vmatmul.mubr.f32.vlgmr.msra.gmra.mxu1 %v5472_v63  ;;  %3242 = vmatpush1.msra.mxu0 %v559_v13  ;;  %v819_v13 = vld [vmem:[#allocation3 + $0x1620] sm:$0xff] }
 0x249   :  { %3287 = vmatpush1.msra.mxu1 %v1144_v40  ;;  %3243 = vmatprep.subr.mxu0 %v547_v41  ;;  %v988_v40 = vld [vmem:[#allocation3 + $0x1b68] sm:$0xff]  ;;  %v807_v41 = vld [vmem:[#allocation3 + $0x15c0] sm:$0xff] }
 0x24a   :  { %3288 = vmatprep.subr.mxu1 %v1132_v44  ;;  %3244 = vmatpush1.msra.mxu0 %v546_v45  ;;  %v976_v44 = vld [vmem:[#allocation3 + $0x1b08] sm:$0xff]  ;;  %v806_v45 = vld [vmem:[#allocation3 + $0x15b8] sm:$0xff] }
 0x24b   :  { %3289 = vmatpush1.msra.mxu1 %v1131_v46  ;;  %3245 = vmatprep.subr.mxu0 %v534_v47  ;;  %v975_v46 = vld [vmem:[#allocation3 + $0x1b00] sm:$0xff]  ;;  %v794_v47 = vld [vmem:[#allocation3 + $0x1558] sm:$0xff] }
 0x24c   :  { %3290 = vmatprep.subr.mxu1 %v1119_v48  ;;  %3246 = vmatpush1.msra.mxu0 %v533_v49  ;;  %v963_v48 = vld [vmem:[#allocation3 + $0x1aa0] sm:$0xff]  ;;  %v793_v49 = vld [vmem:[#allocation3 + $0x1550] sm:$0xff] }
 0x24d   :  { %3291 = vmatpush1.msra.mxu1 %v1118_v50  ;;  %3247 = vmatprep.subr.mxu0 %v937_v54  ;;  %v962_v50 = vld [vmem:[#allocation3 + $0x1a98] sm:$0xff]  ;;  %v781_v54 = vld [vmem:[#allocation3 + $0x14f0] sm:$0xff] }
 0x24e   :  { %3292 = vmatprep.subr.mxu1 %v1106_v56  ;;  %3248 = vmatpush2.msra.mxu0 %v936_v57  ;;  %v950_v56 = vld [vmem:[#allocation3 + $0x1a38] sm:$0xff]  ;;  %v780_v57 = vld [vmem:[#allocation3 + $0x14e8] sm:$0xff] }
 0x24f   :  { %3293 = vmatpush1.msra.mxu1 %v1105_v59  ;;  %3249 = vmatprep.subr.mxu0 %v924_v60  ;;  %v949_v59 = vld [vmem:[#allocation3 + $0x1a30] sm:$0xff]  ;;  %v768_v60 = vld [vmem:[#allocation3 + $0x1488] sm:$0xff] }
 0x250   :  { %3294 = vmatprep.subr.mxu1 %v1093_v19  ;;  %3250 = vmatpush2.msra.mxu0 %v923_v61  ;;  %v1353_v19 = vld [vmem:[#allocation3 + $0x26d0] sm:$0xff]  ;;  %v767_v61 = vld [vmem:[#allocation3 + $0x1480] sm:$0xff] }
 0x251   :  { %3295 = vmatpush1.msra.mxu1 %v1092_v62  ;;  %3251 = vmatprep.subr.mxu0 %v911_v0  ;;  %v1352_v62 = vld [vmem:[#allocation3 + $0x26c8] sm:$0xff]  ;;  %v755_v0 = vld [vmem:[#allocation3 + $0x1420] sm:$0xff] }
 0x252   :  { %3296 = vmatprep.subr.mxu1 %v1080_v1  ;;  %3252 = vmatpush2.msra.mxu0 %v910_v55  ;;  %v1340_v1 = vld [vmem:[#allocation3 + $0x2668] sm:$0xff]  ;;  %v754_v55 = vld [vmem:[#allocation3 + $0x1418] sm:$0xff] }
 0x253   :  { %3297 = vmatpush1.msra.mxu1 %v1079_v3  ;;  %3253 = vmatprep.subr.mxu0 %v898_v4  ;;  %v1339_v3 = vld [vmem:[#allocation3 + $0x2660] sm:$0xff]  ;;  %v742_v4 = vld [vmem:[#allocation3 + $0x13b8] sm:$0xff] }
 0x254   :  { %3298 = vmatprep.subr.mxu1 %v1067_v5  ;;  %3254 = vmatpush2.msra.mxu0 %v897_v6  ;;  %v1327_v5 = vld [vmem:[#allocation3 + $0x2600] sm:$0xff]  ;;  %v741_v6 = vld [vmem:[#allocation3 + $0x13b0] sm:$0xff] }
 0x255   :  { %3299 = vmatpush1.msra.mxu1 %v1066_v7  ;;  %3255 = vmatprep.subr.mxu0 %v885_v8  ;;  %v1326_v7 = vld [vmem:[#allocation3 + $0x25f8] sm:$0xff] }
 0x256   :  { %3300 = vmatprep.subr.mxu1 %v1054_v10  ;;  %3256 = vmatpush2.msra.mxu0 %v884_v12  ;;  %v1314_v8 = vld [vmem:[#allocation3 + $0x2598] sm:$0xff]  ;;  %v1561_v10 = vld [vmem:[#allocation3 + $0x2d50] sm:$0xff] }
 0x257   :  { %3301 = vmatpush1.msra.mxu1 %v1053_v14  ;;  %3257 = vmatprep.subr.mxu0 %v872_v15  ;;  %v1313_v12 = vld [vmem:[#allocation3 + $0x2590] sm:$0xff]  ;;  %v1560_v14 = vld [vmem:[#allocation3 + $0x2d48] sm:$0xff] }
 0x258   :  { %3302 = vmatprep.subr.mxu1 %v1041_v18  ;;  %3258 = vmatpush2.msra.mxu0 %v871_v20  ;;  %v1301_v15 = vld [vmem:[#allocation3 + $0x2530] sm:$0xff]  ;;  %v1548_v18 = vld [vmem:[#allocation3 + $0x2ce8] sm:$0xff] }
 0x259   :  { %3303 = vmatpush1.msra.mxu1 %v1040_v21  ;;  %3259 = vmatprep.subr.mxu0 %v859_v24  ;;  %v1300_v20 = vld [vmem:[#allocation3 + $0x2528] sm:$0xff]  ;;  %v1547_v21 = vld [vmem:[#allocation3 + $0x2ce0] sm:$0xff] }
 0x25a   :  { %3304 = vmatprep.subr.mxu1 %v1028_v26  ;;  %3260 = vmatpush2.msra.mxu0 %v858_v29  ;;  %v1288_v24 = vld [vmem:[#allocation3 + $0x24c8] sm:$0xff]  ;;  %v1535_v26 = vld [vmem:[#allocation3 + $0x2c80] sm:$0xff] }
 0x25b   :  { %3305 = vmatpush1.msra.mxu1 %v1027_v30  ;;  %3261 = vmatprep.subr.mxu0 %v846_v52  ;;  %v1287_v29 = vld [vmem:[#allocation3 + $0x24c0] sm:$0xff]  ;;  %v1534_v30 = vld [vmem:[#allocation3 + $0x2c78] sm:$0xff] }
 0x25c   :  { %3306 = vmatprep.subr.mxu1 %v1015_v31  ;;  %3262 = vmatpush2.msra.mxu0 %v845_v32  ;;  %v1275_v52 = vld [vmem:[#allocation3 + $0x2460] sm:$0xff]  ;;  %v1522_v31 = vld [vmem:[#allocation3 + $0x2c18] sm:$0xff] }
 0x25d   :  { %3307 = vmatpush1.msra.mxu1 %v1014_v33  ;;  %3263 = vmatprep.subr.mxu0 %v833_v58  ;;  %v1274_v32 = vld [vmem:[#allocation3 + $0x2458] sm:$0xff]  ;;  %v1521_v33 = vld [vmem:[#allocation3 + $0x2c10] sm:$0xff] }
 0x25e   :  { %3308 = vmatprep.subr.mxu1 %v1002_v34  ;;  %3264 = vmatpush2.msra.mxu0 %v832_v35  ;;  %v1262_v58 = vld [vmem:[#allocation3 + $0x23f8] sm:$0xff]  ;;  %v1509_v34 = vld [vmem:[#allocation3 + $0x2bb0] sm:$0xff] }
 0x25f   :  { %3309 = vmatpush1.msra.mxu1 %v1001_v36  ;;  %3265 = vmatprep.subr.mxu0 %v820_v38  ;;  %v1261_v35 = vld [vmem:[#allocation3 + $0x23f0] sm:$0xff]  ;;  %v1508_v36 = vld [vmem:[#allocation3 + $0x2ba8] sm:$0xff] }
 0x260   :  { %3310 = vmatprep.subr.mxu1 %v989_v39  ;;  %3266 = vmatpush2.msra.mxu0 %v819_v13  ;;  %v1249_v38 = vld [vmem:[#allocation3 + $0x2390] sm:$0xff]  ;;  %v1496_v39 = vld [vmem:[#allocation3 + $0x2b48] sm:$0xff] }
 0x261   :  { %3311 = vmatpush1.msra.mxu1 %v988_v40  ;;  %3267 = vmatprep.subr.mxu0 %v807_v41  ;;  %v1248_v13 = vld [vmem:[#allocation3 + $0x2388] sm:$0xff]  ;;  %v1495_v40 = vld [vmem:[#allocation3 + $0x2b40] sm:$0xff] }
 0x262   :  { %3312 = vmatprep.subr.mxu1 %v976_v44  ;;  %3268 = vmatpush2.msra.mxu0 %v806_v45  ;;  %v1236_v41 = vld [vmem:[#allocation3 + $0x2328] sm:$0xff]  ;;  %v1483_v44 = vld [vmem:[#allocation3 + $0x2ae0] sm:$0xff] }
 0x263   :  { %3313 = vmatpush1.msra.mxu1 %v975_v46  ;;  %3269 = vmatprep.subr.mxu0 %v794_v47  ;;  %v1235_v45 = vld [vmem:[#allocation3 + $0x2320] sm:$0xff]  ;;  %v1482_v46 = vld [vmem:[#allocation3 + $0x2ad8] sm:$0xff] }
 0x264   :  { %3314 = vmatprep.subr.mxu1 %v963_v48  ;;  %3270 = vmatpush2.msra.mxu0 %v793_v49  ;;  %v1223_v47 = vld [vmem:[#allocation3 + $0x22c0] sm:$0xff]  ;;  %v1470_v48 = vld [vmem:[#allocation3 + $0x2a78] sm:$0xff] }
 0x265   :  { %3315 = vmatpush1.msra.mxu1 %v962_v50  ;;  %3271 = vmatprep.subr.mxu0 %v781_v54  ;;  %v1222_v49 = vld [vmem:[#allocation3 + $0x22b8] sm:$0xff]  ;;  %v1469_v50 = vld [vmem:[#allocation3 + $0x2a70] sm:$0xff] }
 0x266   :  { %3316 = vmatprep.subr.mxu1 %v950_v56  ;;  %3272 = vmatpush2.msra.mxu0 %v780_v57  ;;  %v1210_v54 = vld [vmem:[#allocation3 + $0x2258] sm:$0xff]  ;;  %v1457_v56 = vld [vmem:[#allocation3 + $0x2a10] sm:$0xff] }
 0x267   :  { %3317 = vmatpush1.msra.mxu1 %v949_v59  ;;  %3273 = vmatprep.subr.mxu0 %v768_v60  ;;  %v1209_v57 = vld [vmem:[#allocation3 + $0x2250] sm:$0xff]  ;;  %v1456_v59 = vld [vmem:[#allocation3 + $0x2a08] sm:$0xff] }
 0x268   :  { %3318 = vmatprep.subr.mxu1 %v1353_v19  ;;  %3274 = vmatpush2.msra.mxu0 %v767_v61  ;;  %v1197_v60 = vld [vmem:[#allocation3 + $0x21f0] sm:$0xff]  ;;  %v1444_v19 = vld [vmem:[#allocation3 + $0x29a8] sm:$0xff] }
 0x269   :  { %3319 = vmatpush2.msra.mxu1 %v1352_v62  ;;  %3275 = vmatprep.subr.mxu0 %v755_v0  ;;  %v1196_v61 = vld [vmem:[#allocation3 + $0x21e8] sm:$0xff]  ;;  %v1443_v62 = vld [vmem:[#allocation3 + $0x29a0] sm:$0xff] }
 0x26a   :  { %3320 = vmatprep.subr.mxu1 %v1340_v1  ;;  %3276 = vmatpush2.msra.mxu0 %v754_v55  ;;  %v1184_v0 = vld [vmem:[#allocation3 + $0x2188] sm:$0xff]  ;;  %v1431_v1 = vld [vmem:[#allocation3 + $0x2940] sm:$0xff]  ;;  %v5577_v55 = vpop.f32.mrf.mxu0 }
 0x26b   :  { %3321 = vmatpush2.msra.mxu1 %v1339_v3  ;;  %3277 = vmatprep.subr.mxu0 %v742_v4  ;;  %v5579_v3 = vpop.f32.mrf.mxu1  ;;  %v1183_v4 = vld [vmem:[#allocation3 + $0x2180] sm:$0xff] }
 0x26c   :  { %3322 = vmatprep.subr.mxu1 %v1327_v5  ;;  %3278 = vmatpush2.msra.mxu0 %v741_v6  ;;  %v1430_v5 = vld [vmem:[#allocation3 + $0x2938] sm:$0xff]  ;;  %v1171_v6 = vld [vmem:[#allocation3 + $0x2120] sm:$0xff] }
 0x26d   :  { %3279 = vmatprep.mubr.f32.mxu0 %v5483_v11  ;;  %3323 = vmatpush2.msra.mxu1 %v1326_v7  ;;  %v1418_v7 = vld [vmem:[#allocation3 + $0x28d8] sm:$0xff] }
 0x26e   :  { %3280 = vmatmul.mubr.f32.vlgmr.msra.gmra.mxu0 %v5475_v2  ;;  %3324 = vmatprep.subr.mxu1 %v1314_v8  ;;  %v1170_v8 = vld [vmem:[#allocation3 + $0x2118] sm:$0xff] }
 0x26f   :  { %3357 = vmatprep.subr.mxu0 %v1561_v10  ;;  %3325 = vmatpush2.msra.mxu1 %v1313_v12  ;;  %v1417_v10 = vld [vmem:[#allocation3 + $0x28d0] sm:$0xff] }
 0x270   :  { %3358 = vmatpush1.msra.mxu0 %v1560_v14  ;;  %3326 = vmatprep.subr.mxu1 %v1301_v15  ;;  %v1158_v15 = vld [vmem:[#allocation3 + $0x20b8] sm:$0xff] }
 0x271   :  { %3359 = vmatprep.subr.mxu0 %v1548_v18  ;;  %3327 = vmatpush2.msra.mxu1 %v1300_v20  ;;  %v1405_v18 = vld [vmem:[#allocation3 + $0x2870] sm:$0xff] }
 0x272   :  { %3360 = vmatpush1.msra.mxu0 %v1547_v21  ;;  %3328 = vmatprep.subr.mxu1 %v1288_v24  ;;  %v1157_v20 = vld [vmem:[#allocation3 + $0x20b0] sm:$0xff] }
 0x273   :  { %3361 = vmatprep.subr.mxu0 %v1535_v26  ;;  %3329 = vmatpush2.msra.mxu1 %v1287_v29  ;;  %v1404_v26 = vld [vmem:[#allocation3 + $0x2868] sm:$0xff] }
 0x274   :  { %3362 = vmatpush1.msra.mxu0 %v1534_v30  ;;  %3330 = vmatprep.subr.mxu1 %v1275_v52  ;;  %v1392_v30 = vld [vmem:[#allocation3 + $0x2808] sm:$0xff]  ;;  %v1977_v52 = vld [vmem:[#allocation3 + $0x3a50] sm:$0xff] }
 0x275   :  { %3363 = vmatprep.subr.mxu0 %v1522_v31  ;;  %3331 = vmatpush2.msra.mxu1 %v1274_v32  ;;  %v1391_v31 = vld [vmem:[#allocation3 + $0x2800] sm:$0xff]  ;;  %v1976_v32 = vld [vmem:[#allocation3 + $0x3a48] sm:$0xff] }
 0x276   :  { %3364 = vmatpush1.msra.mxu0 %v1521_v33  ;;  %3332 = vmatprep.subr.mxu1 %v1262_v58  ;;  %v1379_v33 = vld [vmem:[#allocation3 + $0x27a0] sm:$0xff]  ;;  %v1964_v58 = vld [vmem:[#allocation3 + $0x39e8] sm:$0xff] }
 0x277   :  { %3365 = vmatprep.subr.mxu0 %v1509_v34  ;;  %3333 = vmatpush2.msra.mxu1 %v1261_v35  ;;  %v1378_v34 = vld [vmem:[#allocation3 + $0x2798] sm:$0xff]  ;;  %v1963_v35 = vld [vmem:[#allocation3 + $0x39e0] sm:$0xff] }
 0x278   :  { %3366 = vmatpush1.msra.mxu0 %v1508_v36  ;;  %3334 = vmatprep.subr.mxu1 %v1249_v38  ;;  %v1366_v36 = vld [vmem:[#allocation3 + $0x2738] sm:$0xff]  ;;  %v1951_v38 = vld [vmem:[#allocation3 + $0x3980] sm:$0xff] }
 0x279   :  { %3367 = vmatprep.subr.mxu0 %v1496_v39  ;;  %3335 = vmatpush2.msra.mxu1 %v1248_v13  ;;  %v1365_v39 = vld [vmem:[#allocation3 + $0x2730] sm:$0xff]  ;;  %v1950_v13 = vld [vmem:[#allocation3 + $0x3978] sm:$0xff] }
 0x27a   :  { %3368 = vmatpush1.msra.mxu0 %v1495_v40  ;;  %3336 = vmatprep.subr.mxu1 %v1236_v41  ;;  %v1769_v40 = vld [vmem:[#allocation3 + $0x33d0] sm:$0xff]  ;;  %v1938_v41 = vld [vmem:[#allocation3 + $0x3918] sm:$0xff] }
 0x27b   :  { %3369 = vmatprep.subr.mxu0 %v1483_v44  ;;  %3337 = vmatpush2.msra.mxu1 %v1235_v45  ;;  %v1768_v44 = vld [vmem:[#allocation3 + $0x33c8] sm:$0xff]  ;;  %v1937_v45 = vld [vmem:[#allocation3 + $0x3910] sm:$0xff] }
 0x27c   :  { %3370 = vmatpush1.msra.mxu0 %v1482_v46  ;;  %3338 = vmatprep.subr.mxu1 %v1223_v47  ;;  %v1756_v46 = vld [vmem:[#allocation3 + $0x3368] sm:$0xff]  ;;  %v1925_v47 = vld [vmem:[#allocation3 + $0x38b0] sm:$0xff] }
 0x27d   :  { %3371 = vmatprep.subr.mxu0 %v1470_v48  ;;  %3339 = vmatpush2.msra.mxu1 %v1222_v49  ;;  %v1755_v48 = vld [vmem:[#allocation3 + $0x3360] sm:$0xff]  ;;  %v1924_v49 = vld [vmem:[#allocation3 + $0x38a8] sm:$0xff] }
 0x27e   :  { %3372 = vmatpush1.msra.mxu0 %v1469_v50  ;;  %3340 = vmatprep.subr.mxu1 %v1210_v54  ;;  %v1743_v50 = vld [vmem:[#allocation3 + $0x3300] sm:$0xff]  ;;  %v1912_v54 = vld [vmem:[#allocation3 + $0x3848] sm:$0xff] }
 0x27f   :  { %3373 = vmatprep.subr.mxu0 %v1457_v56  ;;  %3341 = vmatpush2.msra.mxu1 %v1209_v57  ;;  %v1742_v56 = vld [vmem:[#allocation3 + $0x32f8] sm:$0xff]  ;;  %v1911_v57 = vld [vmem:[#allocation3 + $0x3840] sm:$0xff] }
 0x280   :  { %3374 = vmatpush1.msra.mxu0 %v1456_v59  ;;  %3342 = vmatprep.subr.mxu1 %v1197_v60  ;;  %v1730_v59 = vld [vmem:[#allocation3 + $0x3298] sm:$0xff]  ;;  %v1899_v60 = vld [vmem:[#allocation3 + $0x37e0] sm:$0xff] }
 0x281   :  { %3375 = vmatprep.subr.mxu0 %v1444_v19  ;;  %3343 = vmatpush2.msra.mxu1 %v1196_v61  ;;  %v1729_v19 = vld [vmem:[#allocation3 + $0x3290] sm:$0xff]  ;;  %v1898_v61 = vld [vmem:[#allocation3 + $0x37d8] sm:$0xff] }
 0x282   :  { %3376 = vmatpush1.msra.mxu0 %v1443_v62  ;;  %3344 = vmatprep.subr.mxu1 %v1184_v0  ;;  %v5581_v12 = vpop.f32.mrf.mxu0  ;;  %v1717_v62 = vld [vmem:[#allocation3 + $0x3230] sm:$0xff]  ;;  %v1886_v0 = vld [vmem:[#allocation3 + $0x3778] sm:$0xff] }
 0x283   :  { %3377 = vmatprep.subr.mxu0 %v1431_v1  ;;  %v5583_v14 = vpop.f32.mrf.mxu1  ;;  %3345 = vmatpush2.msra.mxu1 %v1183_v4  ;;  %v1716_v1 = vld [vmem:[#allocation3 + $0x3228] sm:$0xff]  ;;  %v1885_v4 = vld [vmem:[#allocation3 + $0x3770] sm:$0xff] }
 0x284   :  { %3378 = vmatpush1.msra.mxu0 %v1430_v5  ;;  %3346 = vmatprep.subr.mxu1 %v1171_v6  ;;  %v2857_v21 = vpop.f32.mrf.mxu0  ;;  %v1704_v5 = vld [vmem:[#allocation3 + $0x31c8] sm:$0xff]  ;;  %v1873_v6 = vld [vmem:[#allocation3 + $0x3710] sm:$0xff] }
 0x285   :  { %3379 = vmatprep.subr.mxu0 %v1418_v7  ;;  %v2928_v24 = vpop.f32.mrf.mxu1  ;;  %3347 = vmatpush2.msra.mxu1 %v1170_v8  ;;  %v1703_v7 = vld [vmem:[#allocation3 + $0x31c0] sm:$0xff]  ;;  %v1872_v8 = vld [vmem:[#allocation3 + $0x3708] sm:$0xff] }
 0x286   :  { %3380 = vmatpush1.msra.mxu0 %v1417_v10  ;;  %v5585_v29 = vadd.f32 %v2928_v24, %v2857_v21  ;;  %3348 = vmatprep.subr.mxu1 %v1158_v15  ;;  %v1691_v10 = vld [vmem:[#allocation3 + $0x3160] sm:$0xff]  ;;  %v1860_v15 = vld [vmem:[#allocation3 + $0x36a8] sm:$0xff]  ;;  %v1678_v21 = vld [vmem:[#allocation3 + $0x30f8] sm:$0xff] }
 0x287   :  { %3381 = vmatprep.subr.mxu0 %v1405_v18  ;;  %3349 = vmatpush2.msra.mxu1 %v1157_v20  ;;  %v1690_v18 = vld [vmem:[#allocation3 + $0x3158] sm:$0xff]  ;;  %v1859_v20 = vld [vmem:[#allocation3 + $0x36a0] sm:$0xff] }
 0x288   :  { %3350 = vmatprep.mubr.f32.mxu1 %v5500_v27  ;;  %3382 = vmatpush1.msra.mxu0 %v1404_v26  ;;  %v1847_v24 = vld [vmem:[#allocation3 + $0x3640] sm:$0xff]  ;;  %v1677_v26 = vld [vmem:[#allocation3 + $0x30f0] sm:$0xff] }
 0x289   :  { %3351 = vmatmul.mubr.f32.vlgmr.msra.gmra.mxu1 %v5493_v17  ;;  %3383 = vmatprep.subr.mxu0 %v1392_v30  ;;  %v1846_v30 = vld [vmem:[#allocation3 + $0x3638] sm:$0xff] }
 0x28a   :  { %3428 = vmatprep.subr.mxu1 %v1977_v52  ;;  %3384 = vmatpush1.msra.mxu0 %v1391_v31  ;;  %v1665_v52 = vld [vmem:[#allocation3 + $0x3090] sm:$0xff]  ;;  %v1834_v31 = vld [vmem:[#allocation3 + $0x35d8] sm:$0xff] }
 0x28b   :  { %3429 = vmatpush1.msra.mxu1 %v1976_v32  ;;  %3385 = vmatprep.subr.mxu0 %v1379_v33  ;;  %v1664_v32 = vld [vmem:[#allocation3 + $0x3088] sm:$0xff]  ;;  %v1833_v33 = vld [vmem:[#allocation3 + $0x35d0] sm:$0xff] }
 0x28c   :  { %3430 = vmatprep.subr.mxu1 %v1964_v58  ;;  %3386 = vmatpush1.msra.mxu0 %v1378_v34  ;;  %v1652_v58 = vld [vmem:[#allocation3 + $0x3028] sm:$0xff]  ;;  %v1821_v34 = vld [vmem:[#allocation3 + $0x3570] sm:$0xff] }
 0x28d   :  { %3431 = vmatpush1.msra.mxu1 %v1963_v35  ;;  %3387 = vmatprep.subr.mxu0 %v1366_v36  ;;  %v1651_v35 = vld [vmem:[#allocation3 + $0x3020] sm:$0xff]  ;;  %v1820_v36 = vld [vmem:[#allocation3 + $0x3568] sm:$0xff] }
 0x28e   :  { %3432 = vmatprep.subr.mxu1 %v1951_v38  ;;  %3388 = vmatpush1.msra.mxu0 %v1365_v39  ;;  %v1639_v38 = vld [vmem:[#allocation3 + $0x2fc0] sm:$0xff]  ;;  %v1808_v39 = vld [vmem:[#allocation3 + $0x3508] sm:$0xff] }
 0x28f   :  { %3433 = vmatpush1.msra.mxu1 %v1950_v13  ;;  %3389 = vmatprep.subr.mxu0 %v1769_v40  ;;  %v1638_v13 = vld [vmem:[#allocation3 + $0x2fb8] sm:$0xff]  ;;  %v1807_v40 = vld [vmem:[#allocation3 + $0x3500] sm:$0xff] }
 0x290   :  { %3434 = vmatprep.subr.mxu1 %v1938_v41  ;;  %3390 = vmatpush2.msra.mxu0 %v1768_v44  ;;  %v1626_v41 = vld [vmem:[#allocation3 + $0x2f58] sm:$0xff]  ;;  %v1795_v44 = vld [vmem:[#allocation3 + $0x34a0] sm:$0xff] }
 0x291   :  { %3435 = vmatpush1.msra.mxu1 %v1937_v45  ;;  %3391 = vmatprep.subr.mxu0 %v1756_v46  ;;  %v1625_v45 = vld [vmem:[#allocation3 + $0x2f50] sm:$0xff]  ;;  %v1794_v46 = vld [vmem:[#allocation3 + $0x3498] sm:$0xff] }
 0x292   :  { %3436 = vmatprep.subr.mxu1 %v1925_v47  ;;  %3392 = vmatpush2.msra.mxu0 %v1755_v48  ;;  %v1613_v47 = vld [vmem:[#allocation3 + $0x2ef0] sm:$0xff]  ;;  %v1782_v48 = vld [vmem:[#allocation3 + $0x3438] sm:$0xff] }
 0x293   :  { %3437 = vmatpush1.msra.mxu1 %v1924_v49  ;;  %3393 = vmatprep.subr.mxu0 %v1743_v50  ;;  %v1612_v49 = vld [vmem:[#allocation3 + $0x2ee8] sm:$0xff]  ;;  %v1781_v50 = vld [vmem:[#allocation3 + $0x3430] sm:$0xff] }
 0x294   :  { %3438 = vmatprep.subr.mxu1 %v1912_v54  ;;  %3394 = vmatpush2.msra.mxu0 %v1742_v56  ;;  %v1600_v54 = vld [vmem:[#allocation3 + $0x2e88] sm:$0xff] }
 0x295   :  { %3439 = vmatpush1.msra.mxu1 %v1911_v57  ;;  %3395 = vmatprep.subr.mxu0 %v1730_v59  ;;  %v2016_v56 = vld [vmem:[#allocation3 + $0x3b88] sm:$0xff]  ;;  %v1599_v57 = vld [vmem:[#allocation3 + $0x2e80] sm:$0xff] }
 0x296   :  { %3440 = vmatprep.subr.mxu1 %v1899_v60  ;;  %3396 = vmatpush2.msra.mxu0 %v1729_v19  ;;  %v2015_v59 = vld [vmem:[#allocation3 + $0x3b80] sm:$0xff] }
 0x297   :  { %3441 = vmatpush1.msra.mxu1 %v1898_v61  ;;  %3397 = vmatprep.subr.mxu0 %v1717_v62  ;;  %v1587_v60 = vld [vmem:[#allocation3 + $0x2e20] sm:$0xff]  ;;  %v1586_v61 = vld [vmem:[#allocation3 + $0x2e18] sm:$0xff] }
 0x298   :  { %3442 = vmatprep.subr.mxu1 %v1886_v0  ;;  %3398 = vmatpush2.msra.mxu0 %v1716_v1  ;;  %v2003_v19 = vld [vmem:[#allocation3 + $0x3b20] sm:$0xff]  ;;  %v2002_v62 = vld [vmem:[#allocation3 + $0x3b18] sm:$0xff] }
 0x299   :  { %3443 = vmatpush1.msra.mxu1 %v1885_v4  ;;  %3399 = vmatprep.subr.mxu0 %v1704_v5  ;;  %v1574_v0 = vld [vmem:[#allocation3 + $0x2db8] sm:$0xff]  ;;  %v1573_v4 = vld [vmem:[#allocation3 + $0x2db0] sm:$0xff] }
 0x29a   :  { %3444 = vmatprep.subr.mxu1 %v1873_v6  ;;  %3400 = vmatpush2.msra.mxu0 %v1703_v7  ;;  %v1990_v1 = vld [vmem:[#allocation3 + $0x3ab8] sm:$0xff]  ;;  %v1989_v5 = vld [vmem:[#allocation3 + $0x3ab0] sm:$0xff]  ;;  %v315_v6 = vld [vmem:[#allocation3 + $0x660] sm:$0xff] }
 0x29b   :  { %3445 = vmatpush1.msra.mxu1 %v1872_v8  ;;  %3401 = vmatprep.subr.mxu0 %v1691_v10  ;;  %v731_v7 = vld [vmem:[#allocation3 + $0x1360] sm:$0xff]  ;;  %v314_v8 = vld [vmem:[#allocation3 + $0x658] sm:$0xff] }
 0x29c   :  { %3446 = vmatprep.subr.mxu1 %v1860_v15  ;;  %3402 = vmatpush2.msra.mxu0 %v1690_v18  ;;  %v730_v10 = vld [vmem:[#allocation3 + $0x1358] sm:$0xff] }
 0x29d   :  { %3447 = vmatpush1.msra.mxu1 %v1859_v20  ;;  %3403 = vmatprep.subr.mxu0 %v1678_v21  ;;  %v302_v15 = vld [vmem:[#allocation3 + $0x5f8] sm:$0xff]  ;;  %v5246_v20 = vld.sshfl [vmem:[%s5848_s0 + $0x10] sm:$0x33 pattern:$0x76325410] }
 0x29e   :  { %3448 = vmatprep.subr.mxu1 %v1847_v24  ;;  %3404 = vmatpush2.msra.mxu0 %v1677_v26  ;;  %v718_v18 = vld [vmem:[#allocation3 + $0x12f8] sm:$0xff]  ;;  %v301_v21 = vld [vmem:[#allocation3 + $0x5f0] sm:$0xff] }
 0x29f   :  { %3449 = vmatpush1.msra.mxu1 %v1846_v30  ;;  %3405 = vmatprep.subr.mxu0 %v1665_v52  ;;  %v717_v24 = vld [vmem:[#allocation3 + $0x12f0] sm:$0xff]  ;;  %v288_v52 = vld [vmem:[#allocation3 + $0x588] sm:$0xff] }
 0x2a0   :  { %3450 = vmatprep.subr.mxu1 %v1834_v31  ;;  %3406 = vmatpush2.msra.mxu0 %v1664_v32  ;;  %v289_v26 = vld [vmem:[#allocation3 + $0x590] sm:$0xff]  ;;  %v704_v31 = vld [vmem:[#allocation3 + $0x1288] sm:$0xff] }
 0x2a1   :  { %3451 = vmatpush1.msra.mxu1 %v1833_v33  ;;  %3407 = vmatprep.subr.mxu0 %v1652_v58  ;;  %v705_v30 = vld [vmem:[#allocation3 + $0x1290] sm:$0xff]  ;;  %v276_v32 = vld [vmem:[#allocation3 + $0x528] sm:$0xff]  ;;  %v275_v58 = vld [vmem:[#allocation3 + $0x520] sm:$0xff] }
 0x2a2   :  { %3452 = vmatprep.subr.mxu1 %v1821_v34  ;;  %3408 = vmatpush2.msra.mxu0 %v1651_v35  ;;  %v692_v33 = vld [vmem:[#allocation3 + $0x1228] sm:$0xff]  ;;  %v691_v34 = vld [vmem:[#allocation3 + $0x1220] sm:$0xff] }
 0x2a3   :  { %3453 = vmatpush1.msra.mxu1 %v1820_v36  ;;  %3409 = vmatprep.subr.mxu0 %v1639_v38  ;;  %v263_v35 = vld [vmem:[#allocation3 + $0x4c0] sm:$0xff]  ;;  %v262_v38 = vld [vmem:[#allocation3 + $0x4b8] sm:$0xff] }
 0x2a4   :  { %3454 = vmatprep.subr.mxu1 %v1808_v39  ;;  %3410 = vmatpush2.msra.mxu0 %v1638_v13  ;;  %v679_v36 = vld [vmem:[#allocation3 + $0x11c0] sm:$0xff]  ;;  %v678_v39 = vld [vmem:[#allocation3 + $0x11b8] sm:$0xff] }
 0x2a5   :  { %3455 = vmatpush1.msra.mxu1 %v1807_v40  ;;  %3411 = vmatprep.subr.mxu0 %v1626_v41  ;;  %v250_v13 = vld [vmem:[#allocation3 + $0x458] sm:$0xff]  ;;  %v249_v41 = vld [vmem:[#allocation3 + $0x450] sm:$0xff] }
 0x2a6   :  { %3456 = vmatprep.subr.mxu1 %v1795_v44  ;;  %3412 = vmatpush2.msra.mxu0 %v1625_v45  ;;  %v666_v40 = vld [vmem:[#allocation3 + $0x1158] sm:$0xff]  ;;  %v665_v44 = vld [vmem:[#allocation3 + $0x1150] sm:$0xff] }
 0x2a7   :  { %3457 = vmatpush1.msra.mxu1 %v1794_v46  ;;  %3413 = vmatprep.subr.mxu0 %v1613_v47  ;;  %v237_v45 = vld [vmem:[#allocation3 + $0x3f0] sm:$0xff]  ;;  %v236_v47 = vld [vmem:[#allocation3 + $0x3e8] sm:$0xff] }
 0x2a8   :  { %3458 = vmatprep.subr.mxu1 %v1782_v48  ;;  %3414 = vmatpush2.msra.mxu0 %v1612_v49  ;;  %v653_v46 = vld [vmem:[#allocation3 + $0x10f0] sm:$0xff]  ;;  %v652_v48 = vld [vmem:[#allocation3 + $0x10e8] sm:$0xff] }
 0x2a9   :  { %3459 = vmatpush1.msra.mxu1 %v1781_v50  ;;  %3415 = vmatprep.subr.mxu0 %v1600_v54  ;;  %v224_v49 = vld [vmem:[#allocation3 + $0x388] sm:$0xff]  ;;  %v223_v54 = vld [vmem:[#allocation3 + $0x380] sm:$0xff] }
 0x2aa   :  { %3486 = vmatprep.subr.mxu1 %v2016_v56  ;;  %3416 = vmatpush2.msra.mxu0 %v1599_v57  ;;  %v640_v50 = vld [vmem:[#allocation3 + $0x1088] sm:$0xff]  ;;  %v639_v56 = vld [vmem:[#allocation3 + $0x1080] sm:$0xff] }
 0x2ab   :  { %3487 = vmatpush2.msra.mxu1 %v2015_v59  ;;  %3417 = vmatprep.subr.mxu0 %v1587_v60  ;;  %v211_v57 = vld [vmem:[#allocation3 + $0x320] sm:$0xff]  ;;  %v210_v60 = vld [vmem:[#allocation3 + $0x318] sm:$0xff] }
 0x2ac   :  { %3488 = vmatprep.subr.mxu1 %v2003_v19  ;;  %3418 = vmatpush2.msra.mxu0 %v1586_v61  ;;  %v627_v59 = vld [vmem:[#allocation3 + $0x1020] sm:$0xff]  ;;  %v626_v19 = vld [vmem:[#allocation3 + $0x1018] sm:$0xff] }
 0x2ad   :  { %3489 = vmatpush2.msra.mxu1 %v2002_v62  ;;  %3419 = vmatprep.subr.mxu0 %v1574_v0  ;;  %v198_v61 = vld [vmem:[#allocation3 + $0x2b8] sm:$0xff]  ;;  %v197_v0 = vld [vmem:[#allocation3 + $0x2b0] sm:$0xff] }
 0x2ae   :  { %3490 = vmatprep.subr.mxu1 %v1990_v1  ;;  %3420 = vmatpush2.msra.mxu0 %v1573_v4  ;;  %v614_v62 = vld [vmem:[#allocation3 + $0xfb8] sm:$0xff]  ;;  %v613_v1 = vld [vmem:[#allocation3 + $0xfb0] sm:$0xff] }
 0x2af   :  { %3421 = vmatprep.mubr.f32.mxu0 %v5504_v53  ;;  %3491 = vmatpush2.msra.mxu1 %v1989_v5  ;;  %v185_v4 = vld [vmem:[#allocation3 + $0x250] sm:$0xff] }
 0x2b0   :  { %3422 = vmatmul.mubr.f32.vlgmr.msra.gmra.mxu0 %v5496_v22  ;;  %4993 = vmatprep.mubr.msk.f32.mxu1 %vm2076_vm0, %v5513_v51  ;;  %v601_v5 = vld [vmem:[#allocation3 + $0xf50] sm:$0xff] }
 0x2b1   :  { %3499 = vmatprep.subr.mxu0 %v315_v6  ;;  %3570 = vmatprep.subr.mxu1 %v731_v7  ;;  %v184_v6 = vld [vmem:[#allocation3 + $0x248] sm:$0xff] }
 0x2b2   :  { %3493 = vmatmul.mubr.f32.vlgmr.msra.gmra.mxu1 %v5246_v20  ;;  %3500 = vmatpush1.msra.mxu0 %v314_v8  ;;  %v600_v7 = vld [vmem:[#allocation3 + $0xf48] sm:$0xff]  ;;  %v587_v20 = vld [vmem:[#allocation3 + $0xee0] sm:$0xff] }
 0x2b3   :  { %3571 = vmatpush1.msra.mxu1 %v730_v10  ;;  %3501 = vmatprep.subr.mxu0 %v302_v15  ;;  %v172_v10 = vld [vmem:[#allocation3 + $0x1e8] sm:$0xff] }
 0x2b4   :  { %3572 = vmatprep.subr.mxu1 %v718_v18  ;;  %3502 = vmatpush1.msra.mxu0 %v301_v21  ;;  %v588_v15 = vld [vmem:[#allocation3 + $0xee8] sm:$0xff]  ;;  %v171_v18 = vld [vmem:[#allocation3 + $0x1e0] sm:$0xff] }
 0x2b5   :  { %3573 = vmatpush1.msra.mxu1 %v717_v24  ;;  %3503 = vmatprep.subr.mxu0 %v289_v26  ;;  %v159_v26 = vld [vmem:[#allocation3 + $0x180] sm:$0xff] }
 0x2b6   :  { %3574 = vmatprep.subr.mxu1 %v705_v30  ;;  %3504 = vmatpush1.msra.mxu0 %v288_v52  ;;  %v575_v30 = vld [vmem:[#allocation3 + $0xe80] sm:$0xff] }
 0x2b7   :  { %3575 = vmatpush1.msra.mxu1 %v704_v31  ;;  %3505 = vmatprep.subr.mxu0 %v276_v32  ;;  %v158_v31 = vld [vmem:[#allocation3 + $0x178] sm:$0xff] }
 0x2b8   :  { %3576 = vmatprep.subr.mxu1 %v692_v33  ;;  %3506 = vmatpush1.msra.mxu0 %v275_v58  ;;  %v574_v32 = vld [vmem:[#allocation3 + $0xe78] sm:$0xff] }
 0x2b9   :  { %3577 = vmatpush1.msra.mxu1 %v691_v34  ;;  %3507 = vmatprep.subr.mxu0 %v263_v35  ;;  %v146_v58 = vld [vmem:[#allocation3 + $0x118] sm:$0xff] }
 0x2ba   :  { %3578 = vmatprep.subr.mxu1 %v679_v36  ;;  %3508 = vmatpush1.msra.mxu0 %v262_v38  ;;  %v562_v34 = vld [vmem:[#allocation3 + $0xe18] sm:$0xff]  ;;  %v145_v36 = vld [vmem:[#allocation3 + $0x110] sm:$0xff] }
 0x2bb   :  { %3579 = vmatpush1.msra.mxu1 %v678_v39  ;;  %3509 = vmatprep.subr.mxu0 %v250_v13  ;;  %v561_v38 = vld [vmem:[#allocation3 + $0xe10] sm:$0xff] }
 0x2bc   :  { %3580 = vmatprep.subr.mxu1 %v666_v40  ;;  %3510 = vmatpush1.msra.mxu0 %v249_v41  ;;  %v133_v39 = vld [vmem:[#allocation3 + $0xb0] sm:$0xff]  ;;  %v548_v40 = vld [vmem:[#allocation3 + $0xda8] sm:$0xff] }
 0x2bd   :  { %3581 = vmatpush1.msra.mxu1 %v665_v44  ;;  %3511 = vmatprep.subr.mxu0 %v237_v45  ;;  %v549_v13 = vld [vmem:[#allocation3 + $0xdb0] sm:$0xff]  ;;  %v120_v41 = vld [vmem:[#allocation3 + $0x48] sm:$0xff]  ;;  %v119_v45 = vld [vmem:[#allocation3 + $0x40] sm:$0xff] }
 0x2be   :  { %3582 = vmatprep.subr.mxu1 %v653_v46  ;;  %3512 = vmatpush1.msra.mxu0 %v236_v47  ;;  %v536_v44 = vld [vmem:[#allocation3 + $0xd48] sm:$0xff]  ;;  %v535_v46 = vld [vmem:[#allocation3 + $0xd40] sm:$0xff] }
 0x2bf   :  { %3583 = vmatpush1.msra.mxu1 %v652_v48  ;;  %3513 = vmatprep.subr.mxu0 %v224_v49  ;;  %v523_v47 = vld [vmem:[#allocation3 + $0xce0] sm:$0xff]  ;;  %v522_v49 = vld [vmem:[#allocation3 + $0xcd8] sm:$0xff] }
 0x2c0   :  { %3584 = vmatprep.subr.mxu1 %v640_v50  ;;  %3514 = vmatpush1.msra.mxu0 %v223_v54  ;;  %v939_v48 = vld [vmem:[#allocation3 + $0x19e0] sm:$0xff]  ;;  %v938_v50 = vld [vmem:[#allocation3 + $0x19d8] sm:$0xff] }
 0x2c1   :  { %3585 = vmatpush1.msra.mxu1 %v639_v56  ;;  %3515 = vmatprep.subr.mxu0 %v211_v57  ;;  %v510_v54 = vld [vmem:[#allocation3 + $0xc78] sm:$0xff]  ;;  %v509_v57 = vld [vmem:[#allocation3 + $0xc70] sm:$0xff] }
 0x2c2   :  { %3586 = vmatprep.subr.mxu1 %v627_v59  ;;  %3516 = vmatpush1.msra.mxu0 %v210_v60  ;;  %v926_v56 = vld [vmem:[#allocation3 + $0x1978] sm:$0xff]  ;;  %v925_v59 = vld [vmem:[#allocation3 + $0x1970] sm:$0xff] }
 0x2c3   :  { %3587 = vmatpush1.msra.mxu1 %v626_v19  ;;  %3517 = vmatprep.subr.mxu0 %v198_v61  ;;  %v497_v60 = vld [vmem:[#allocation3 + $0xc10] sm:$0xff]  ;;  %v496_v61 = vld [vmem:[#allocation3 + $0xc08] sm:$0xff] }
 0x2c4   :  { %3588 = vmatprep.subr.mxu1 %v614_v62  ;;  %v5596_v8 = vpop.f32.mrf.mxu0  ;;  %3518 = vmatpush1.msra.mxu0 %v197_v0  ;;  %v913_v19 = vld [vmem:[#allocation3 + $0x1910] sm:$0xff]  ;;  %v912_v62 = vld [vmem:[#allocation3 + $0x1908] sm:$0xff] }
 0x2c5   :  { %3589 = vmatpush1.msra.mxu1 %v613_v1  ;;  %3519 = vmatprep.subr.mxu0 %v185_v4  ;;  %v484_v0 = vld [vmem:[#allocation3 + $0xba8] sm:$0xff]  ;;  %v483_v4 = vld [vmem:[#allocation3 + $0xba0] sm:$0xff] }
 0x2c6   :  { %3590 = vmatprep.subr.mxu1 %v601_v5  ;;  %v2999_v21 = vpop.f32.mrf.mxu0  ;;  %v5598_v24 = vpop.f32.mrf.mxu1  ;;  %3520 = vmatpush1.msra.mxu0 %v184_v6  ;;  %v900_v1 = vld [vmem:[#allocation3 + $0x18a8] sm:$0xff]  ;;  %v899_v5 = vld [vmem:[#allocation3 + $0x18a0] sm:$0xff] }
 0x2c7   :  { %3591 = vmatpush1.msra.mxu1 %v600_v7  ;;  %v3000_v52 = vadd.f32 %v2999_v21, %v5585_v29  ;;  %3521 = vmatprep.subr.mxu0 %v172_v10  ;;  %v132_v29 = vld [vmem:[#allocation3 + $0xa8] sm:$0xff]  ;;  %v471_v6 = vld [vmem:[#allocation3 + $0xb40] sm:$0xff]  ;;  %v470_v10 = vld [vmem:[#allocation3 + $0xb38] sm:$0xff] }
 0x2c8   :  { %3592 = vmatprep.subr.mxu1 %v588_v15  ;;  %v3070_v33 = vpop.f32.mrf.mxu1  ;;  %3522 = vmatpush1.msra.mxu0 %v171_v18  ;;  %v887_v7 = vld [vmem:[#allocation3 + $0x1840] sm:$0xff]  ;;  %v886_v15 = vld [vmem:[#allocation3 + $0x1838] sm:$0xff]  ;;  %v457_v21 = vld [vmem:[#allocation3 + $0xad0] sm:$0xff] }
 0x2c9   :  { %3593 = vmatpush1.msra.mxu1 %v587_v20  ;;  %v5601_v35 = vadd.f32 %v3070_v33, %v3000_v52  ;;  %3523 = vmatprep.subr.mxu0 %v159_v26  ;;  %v458_v18 = vld [vmem:[#allocation3 + $0xad8] sm:$0xff]  ;;  %v873_v26 = vld [vmem:[#allocation3 + $0x17d0] sm:$0xff]  ;;  %v432_v33 = vld [vmem:[#allocation3 + $0xa08] sm:$0xff] }
 0x2ca   :  { %3594 = vmatprep.subr.mxu1 %v575_v30  ;;  %3524 = vmatpush1.msra.mxu0 %v158_v31  ;;  %v874_v20 = vld [vmem:[#allocation3 + $0x17d8] sm:$0xff]  ;;  %v445_v30 = vld [vmem:[#allocation3 + $0xa70] sm:$0xff]  ;;  %v444_v31 = vld [vmem:[#allocation3 + $0xa68] sm:$0xff] }
 0x2cb   :  { %3595 = vmatpush1.msra.mxu1 %v574_v32  ;;  %3525 = vmatprep.subr.mxu0 %v146_v58  ;;  %v861_v52 = vld [vmem:[#allocation3 + $0x1770] sm:$0xff]  ;;  %v860_v32 = vld [vmem:[#allocation3 + $0x1768] sm:$0xff] }
 0x2cc   :  { %3596 = vmatprep.subr.mxu1 %v562_v34  ;;  %3526 = vmatpush1.msra.mxu0 %v145_v36  ;;  %v848_v58 = vld [vmem:[#allocation3 + $0x1708] sm:$0xff]  ;;  %v431_v34 = vld [vmem:[#allocation3 + $0xa00] sm:$0xff] }
 0x2cd   :  { %3597 = vmatpush1.msra.mxu1 %v561_v38  ;;  %3527 = vmatprep.subr.mxu0 %v133_v39  ;;  %v847_v36 = vld [vmem:[#allocation3 + $0x1700] sm:$0xff] }
 0x2ce   :  { %3598 = vmatprep.subr.mxu1 %v549_v13  ;;  %3528 = vmatpush1.msra.mxu0 %v132_v29  ;;  %v419_v38 = vld [vmem:[#allocation3 + $0x9a0] sm:$0xff]  ;;  %v418_v13 = vld [vmem:[#allocation3 + $0x998] sm:$0xff] }
 0x2cf   :  { %3599 = vmatpush1.msra.mxu1 %v548_v40  ;;  %3529 = vmatprep.subr.mxu0 %v120_v41  ;;  %v835_v39 = vld [vmem:[#allocation3 + $0x16a0] sm:$0xff]  ;;  %v834_v29 = vld [vmem:[#allocation3 + $0x1698] sm:$0xff] }
 0x2d0   :  { %3600 = vmatprep.subr.mxu1 %v536_v44  ;;  %3530 = vmatpush1.msra.mxu0 %v119_v45  ;;  %v406_v40 = vld [vmem:[#allocation3 + $0x938] sm:$0xff]  ;;  %v405_v44 = vld [vmem:[#allocation3 + $0x930] sm:$0xff] }
 0x2d1   :  { %3601 = vmatpush1.msra.mxu1 %v535_v46  ;;  %3531 = vmatprep.subr.mxu0 %v523_v47  ;;  %v822_v41 = vld [vmem:[#allocation3 + $0x1638] sm:$0xff]  ;;  %v821_v45 = vld [vmem:[#allocation3 + $0x1630] sm:$0xff] }
 0x2d2   :  { %3602 = vmatprep.subr.mxu1 %v939_v48  ;;  %3532 = vmatpush2.msra.mxu0 %v522_v49  ;;  %v393_v46 = vld [vmem:[#allocation3 + $0x8d0] sm:$0xff]  ;;  %v392_v48 = vld [vmem:[#allocation3 + $0x8c8] sm:$0xff] }
 0x2d3   :  { %3603 = vmatpush2.msra.mxu1 %v938_v50  ;;  %3533 = vmatprep.subr.mxu0 %v510_v54  ;;  %v809_v47 = vld [vmem:[#allocation3 + $0x15d0] sm:$0xff]  ;;  %v808_v49 = vld [vmem:[#allocation3 + $0x15c8] sm:$0xff] }
 0x2d4   :  { %3604 = vmatprep.subr.mxu1 %v926_v56  ;;  %3534 = vmatpush2.msra.mxu0 %v509_v57  ;;  %v380_v50 = vld [vmem:[#allocation3 + $0x868] sm:$0xff]  ;;  %v379_v56 = vld [vmem:[#allocation3 + $0x860] sm:$0xff] }
 0x2d5   :  { %3605 = vmatpush2.msra.mxu1 %v925_v59  ;;  %3535 = vmatprep.subr.mxu0 %v497_v60  ;;  %v796_v54 = vld [vmem:[#allocation3 + $0x1568] sm:$0xff]  ;;  %v795_v57 = vld [vmem:[#allocation3 + $0x1560] sm:$0xff] }
 0x2d6   :  { %3606 = vmatprep.subr.mxu1 %v913_v19  ;;  %3536 = vmatpush2.msra.mxu0 %v496_v61  ;;  %v367_v59 = vld [vmem:[#allocation3 + $0x800] sm:$0xff]  ;;  %v366_v19 = vld [vmem:[#allocation3 + $0x7f8] sm:$0xff] }
 0x2d7   :  { %3607 = vmatpush2.msra.mxu1 %v912_v62  ;;  %3537 = vmatprep.subr.mxu0 %v484_v0  ;;  %v783_v60 = vld [vmem:[#allocation3 + $0x1500] sm:$0xff]  ;;  %v782_v61 = vld [vmem:[#allocation3 + $0x14f8] sm:$0xff] }
 0x2d8   :  { %3608 = vmatprep.subr.mxu1 %v900_v1  ;;  %3538 = vmatpush2.msra.mxu0 %v483_v4  ;;  %v354_v62 = vld [vmem:[#allocation3 + $0x798] sm:$0xff]  ;;  %v353_v1 = vld [vmem:[#allocation3 + $0x790] sm:$0xff] }
 0x2d9   :  { %3609 = vmatpush2.msra.mxu1 %v899_v5  ;;  %3539 = vmatprep.subr.mxu0 %v471_v6  ;;  %v770_v0 = vld [vmem:[#allocation3 + $0x1498] sm:$0xff]  ;;  %v769_v4 = vld [vmem:[#allocation3 + $0x1490] sm:$0xff] }
 0x2da   :  { %3610 = vmatprep.subr.mxu1 %v887_v7  ;;  %3540 = vmatpush2.msra.mxu0 %v470_v10  ;;  %v341_v5 = vld [vmem:[#allocation3 + $0x730] sm:$0xff]  ;;  %v340_v7 = vld [vmem:[#allocation3 + $0x728] sm:$0xff] }
 0x2db   :  { %3611 = vmatpush2.msra.mxu1 %v886_v15  ;;  %3541 = vmatprep.subr.mxu0 %v458_v18  ;;  %v757_v6 = vld [vmem:[#allocation3 + $0x1430] sm:$0xff]  ;;  %v756_v10 = vld [vmem:[#allocation3 + $0x1428] sm:$0xff] }
 0x2dc   :  { %3612 = vmatprep.subr.mxu1 %v874_v20  ;;  %3542 = vmatpush2.msra.mxu0 %v457_v21  ;;  %v328_v18 = vld [vmem:[#allocation3 + $0x6c8] sm:$0xff]  ;;  %v327_v21 = vld [vmem:[#allocation3 + $0x6c0] sm:$0xff] }
 0x2dd   :  { %3613 = vmatpush2.msra.mxu1 %v873_v26  ;;  %3543 = vmatprep.subr.mxu0 %v445_v30  ;;  %v744_v20 = vld [vmem:[#allocation3 + $0x13c8] sm:$0xff]  ;;  %v743_v30 = vld [vmem:[#allocation3 + $0x13c0] sm:$0xff] }
 0x2de   :  { %3614 = vmatprep.subr.mxu1 %v861_v52  ;;  %3544 = vmatpush2.msra.mxu0 %v444_v31  ;;  %v1147_v31 = vld [vmem:[#allocation3 + $0x2060] sm:$0xff] }
 0x2df   :  { %3615 = vmatpush2.msra.mxu1 %v860_v32  ;;  %3545 = vmatprep.subr.mxu0 %v432_v33  ;;  %v1563_v32 = vld [vmem:[#allocation3 + $0x2d60] sm:$0xff]  ;;  %v1146_v33 = vld [vmem:[#allocation3 + $0x2058] sm:$0xff] }
 0x2e0   :  { %3616 = vmatprep.subr.mxu1 %v848_v58  ;;  %3546 = vmatpush2.msra.mxu0 %v431_v34  ;;  %v1562_v58 = vld [vmem:[#allocation3 + $0x2d58] sm:$0xff] }
 0x2e1   :  { %3617 = vmatpush2.msra.mxu1 %v847_v36  ;;  %3547 = vmatprep.subr.mxu0 %v419_v38  ;;  %v1134_v34 = vld [vmem:[#allocation3 + $0x1ff8] sm:$0xff]  ;;  %v1549_v38 = vld [vmem:[#allocation3 + $0x2cf0] sm:$0xff] }
 0x2e2   :  { %3618 = vmatprep.subr.mxu1 %v835_v39  ;;  %3548 = vmatpush2.msra.mxu0 %v418_v13  ;;  %v1550_v36 = vld [vmem:[#allocation3 + $0x2cf8] sm:$0xff]  ;;  %v1121_v39 = vld [vmem:[#allocation3 + $0x1f90] sm:$0xff] }
 0x2e3   :  { %3619 = vmatpush2.msra.mxu1 %v834_v29  ;;  %3549 = vmatprep.subr.mxu0 %v406_v40  ;;  %v1537_v13 = vld [vmem:[#allocation3 + $0x2c90] sm:$0xff]  ;;  %v1120_v29 = vld [vmem:[#allocation3 + $0x1f88] sm:$0xff] }
 0x2e4   :  { %3620 = vmatprep.subr.mxu1 %v822_v41  ;;  %3550 = vmatpush2.msra.mxu0 %v405_v44  ;;  %v1536_v40 = vld [vmem:[#allocation3 + $0x2c88] sm:$0xff] }
 0x2e5   :  { %3621 = vmatpush2.msra.mxu1 %v821_v45  ;;  %3551 = vmatprep.subr.mxu0 %v393_v46  ;;  %v1108_v41 = vld [vmem:[#allocation3 + $0x1f28] sm:$0xff]  ;;  %v1107_v45 = vld [vmem:[#allocation3 + $0x1f20] sm:$0xff] }
 0x2e6   :  { %3622 = vmatprep.subr.mxu1 %v809_v47  ;;  %3552 = vmatpush2.msra.mxu0 %v392_v48  ;;  %v1524_v44 = vld [vmem:[#allocation3 + $0x2c28] sm:$0xff]  ;;  %v1523_v46 = vld [vmem:[#allocation3 + $0x2c20] sm:$0xff] }
 0x2e7   :  { %3623 = vmatpush2.msra.mxu1 %v808_v49  ;;  %3553 = vmatprep.subr.mxu0 %v380_v50  ;;  %v1095_v47 = vld [vmem:[#allocation3 + $0x1ec0] sm:$0xff]  ;;  %v1094_v49 = vld [vmem:[#allocation3 + $0x1eb8] sm:$0xff] }
 0x2e8   :  { %3624 = vmatprep.subr.mxu1 %v796_v54  ;;  %3554 = vmatpush2.msra.mxu0 %v379_v56  ;;  %v1511_v48 = vld [vmem:[#allocation3 + $0x2bc0] sm:$0xff]  ;;  %v1510_v50 = vld [vmem:[#allocation3 + $0x2bb8] sm:$0xff] }
 0x2e9   :  { %3625 = vmatpush2.msra.mxu1 %v795_v57  ;;  %3555 = vmatprep.subr.mxu0 %v367_v59  ;;  %v1082_v54 = vld [vmem:[#allocation3 + $0x1e58] sm:$0xff]  ;;  %v1081_v57 = vld [vmem:[#allocation3 + $0x1e50] sm:$0xff] }
 0x2ea   :  { %3626 = vmatprep.subr.mxu1 %v783_v60  ;;  %3556 = vmatpush2.msra.mxu0 %v366_v19  ;;  %v1498_v56 = vld [vmem:[#allocation3 + $0x2b58] sm:$0xff]  ;;  %v1497_v59 = vld [vmem:[#allocation3 + $0x2b50] sm:$0xff] }
 0x2eb   :  { %3627 = vmatpush2.msra.mxu1 %v782_v61  ;;  %3557 = vmatprep.subr.mxu0 %v354_v62  ;;  %v1069_v60 = vld [vmem:[#allocation3 + $0x1df0] sm:$0xff]  ;;  %v1068_v61 = vld [vmem:[#allocation3 + $0x1de8] sm:$0xff] }
 0x2ec   :  { %3628 = vmatprep.subr.mxu1 %v770_v0  ;;  %v5603_v15 = vpop.f32.mrf.mxu0  ;;  %3558 = vmatpush2.msra.mxu0 %v353_v1  ;;  %v1485_v19 = vld [vmem:[#allocation3 + $0x2af0] sm:$0xff]  ;;  %v1484_v62 = vld [vmem:[#allocation3 + $0x2ae8] sm:$0xff] }
 0x2ed   :  { %3629 = vmatpush2.msra.mxu1 %v769_v4  ;;  %3559 = vmatprep.subr.mxu0 %v341_v5  ;;  %v1056_v0 = vld [vmem:[#allocation3 + $0x1d88] sm:$0xff]  ;;  %v1055_v4 = vld [vmem:[#allocation3 + $0x1d80] sm:$0xff] }
 0x2ee   :  { %3630 = vmatprep.subr.mxu1 %v757_v6  ;;  %v3141_v26 = vpop.f32.mrf.mxu0  ;;  %3560 = vmatpush2.msra.mxu0 %v340_v7  ;;  %v1472_v1 = vld [vmem:[#allocation3 + $0x2a88] sm:$0xff]  ;;  %v1471_v5 = vld [vmem:[#allocation3 + $0x2a80] sm:$0xff] }
 0x2ef   :  { %3631 = vmatpush2.msra.mxu1 %v756_v10  ;;  %v5606_v52 = vadd.f32 %v3141_v26, %v5601_v35  ;;  %3561 = vmatprep.subr.mxu0 %v328_v18  ;;  %v1133_v35 = vld [vmem:[#allocation3 + $0x1ff0] sm:$0xff]  ;;  %v1043_v6 = vld [vmem:[#allocation3 + $0x1d20] sm:$0xff]  ;;  %v1042_v10 = vld [vmem:[#allocation3 + $0x1d18] sm:$0xff] }
 0x2f0   :  { %3632 = vmatprep.subr.mxu1 %v744_v20  ;;  %3562 = vmatpush2.msra.mxu0 %v327_v21  ;;  %v1459_v7 = vld [vmem:[#allocation3 + $0x2a20] sm:$0xff]  ;;  %v1458_v18 = vld [vmem:[#allocation3 + $0x2a18] sm:$0xff]  ;;  %v1029_v26 = vld [vmem:[#allocation3 + $0x1cb0] sm:$0xff] }
 0x2f1   :  { %3563 = vmatprep.mubr.f32.mxu0 %v5479_v9  ;;  %3633 = vmatpush2.msra.mxu1 %v743_v30  ;;  %v1030_v20 = vld [vmem:[#allocation3 + $0x1cb8] sm:$0xff]  ;;  %v1445_v30 = vld [vmem:[#allocation3 + $0x29b0] sm:$0xff] }
 0x2f2   :  { %3634 = vmatprep.mubr.f32.mxu1 %v5483_v11  ;;  %3564 = vmatmul.mubr.f32.vlgmr.msra.gmra.mxu0 %v5472_v63  ;;  %v1446_v21 = vld [vmem:[#allocation3 + $0x29b8] sm:$0xff] }
 0x2f3   :  { %3635 = vmatmul.mubr.f32.vlgmr.msra.gmra.mxu1 %v5475_v2  ;;  %3641 = vmatprep.subr.mxu0 %v1147_v31  ;;  %v1017_v31 = vld [vmem:[#allocation3 + $0x1c50] sm:$0xff] }
 0x2f4   :  { %3712 = vmatprep.subr.mxu1 %v1563_v32  ;;  %3642 = vmatpush1.msra.mxu0 %v1146_v33  ;;  %v1433_v32 = vld [vmem:[#allocation3 + $0x2950] sm:$0xff]  ;;  %v1016_v33 = vld [vmem:[#allocation3 + $0x1c48] sm:$0xff] }
 0x2f5   :  { %3713 = vmatpush1.msra.mxu1 %v1562_v58  ;;  %3643 = vmatprep.subr.mxu0 %v1134_v34  ;;  %v1432_v58 = vld [vmem:[#allocation3 + $0x2948] sm:$0xff] }
 0x2f6   :  { %3714 = vmatprep.subr.mxu1 %v1550_v36  ;;  %3644 = vmatpush1.msra.mxu0 %v1133_v35  ;;  %v1004_v34 = vld [vmem:[#allocation3 + $0x1be8] sm:$0xff]  ;;  %v1003_v35 = vld [vmem:[#allocation3 + $0x1be0] sm:$0xff] }
 0x2f7   :  { %3715 = vmatpush1.msra.mxu1 %v1549_v38  ;;  %3645 = vmatprep.subr.mxu0 %v1121_v39  ;;  %v1420_v36 = vld [vmem:[#allocation3 + $0x28e8] sm:$0xff]  ;;  %v1419_v38 = vld [vmem:[#allocation3 + $0x28e0] sm:$0xff] }
 0x2f8   :  { %3716 = vmatprep.subr.mxu1 %v1537_v13  ;;  %3646 = vmatpush1.msra.mxu0 %v1120_v29  ;;  %v991_v39 = vld [vmem:[#allocation3 + $0x1b80] sm:$0xff]  ;;  %v990_v29 = vld [vmem:[#allocation3 + $0x1b78] sm:$0xff] }
 0x2f9   :  { %3717 = vmatpush1.msra.mxu1 %v1536_v40  ;;  %3647 = vmatprep.subr.mxu0 %v1108_v41  ;;  %v1407_v13 = vld [vmem:[#allocation3 + $0x2880] sm:$0xff]  ;;  %v1406_v40 = vld [vmem:[#allocation3 + $0x2878] sm:$0xff] }
 0x2fa   :  { %3718 = vmatprep.subr.mxu1 %v1524_v44  ;;  %3648 = vmatpush1.msra.mxu0 %v1107_v45  ;;  %v978_v41 = vld [vmem:[#allocation3 + $0x1b18] sm:$0xff]  ;;  %v977_v45 = vld [vmem:[#allocation3 + $0x1b10] sm:$0xff] }
 0x2fb   :  { %3719 = vmatpush1.msra.mxu1 %v1523_v46  ;;  %3649 = vmatprep.subr.mxu0 %v1095_v47  ;;  %v1394_v44 = vld [vmem:[#allocation3 + $0x2818] sm:$0xff]  ;;  %v1393_v46 = vld [vmem:[#allocation3 + $0x2810] sm:$0xff] }
 0x2fc   :  { %3720 = vmatprep.subr.mxu1 %v1511_v48  ;;  %3650 = vmatpush1.msra.mxu0 %v1094_v49  ;;  %v965_v47 = vld [vmem:[#allocation3 + $0x1ab0] sm:$0xff]  ;;  %v964_v49 = vld [vmem:[#allocation3 + $0x1aa8] sm:$0xff] }
 0x2fd   :  { %3721 = vmatpush1.msra.mxu1 %v1510_v50  ;;  %3651 = vmatprep.subr.mxu0 %v1082_v54  ;;  %v1381_v48 = vld [vmem:[#allocation3 + $0x27b0] sm:$0xff]  ;;  %v1380_v50 = vld [vmem:[#allocation3 + $0x27a8] sm:$0xff] }
 0x2fe   :  { %3722 = vmatprep.subr.mxu1 %v1498_v56  ;;  %3652 = vmatpush1.msra.mxu0 %v1081_v57  ;;  %v952_v54 = vld [vmem:[#allocation3 + $0x1a48] sm:$0xff]  ;;  %v951_v57 = vld [vmem:[#allocation3 + $0x1a40] sm:$0xff] }
 0x2ff   :  { %3723 = vmatpush1.msra.mxu1 %v1497_v59  ;;  %3653 = vmatprep.subr.mxu0 %v1069_v60  ;;  %v1368_v56 = vld [vmem:[#allocation3 + $0x2748] sm:$0xff]  ;;  %v1367_v59 = vld [vmem:[#allocation3 + $0x2740] sm:$0xff] }
 0x300   :  { %3724 = vmatprep.subr.mxu1 %v1485_v19  ;;  %3654 = vmatpush1.msra.mxu0 %v1068_v61  ;;  %v1355_v60 = vld [vmem:[#allocation3 + $0x26e0] sm:$0xff]  ;;  %v1354_v61 = vld [vmem:[#allocation3 + $0x26d8] sm:$0xff] }
 0x301   :  { %3725 = vmatpush1.msra.mxu1 %v1484_v62  ;;  %3655 = vmatprep.subr.mxu0 %v1056_v0  ;;  %v1771_v19 = vld [vmem:[#allocation3 + $0x33e0] sm:$0xff]  ;;  %v1770_v62 = vld [vmem:[#allocation3 + $0x33d8] sm:$0xff] }
 0x302   :  { %3726 = vmatprep.subr.mxu1 %v1472_v1  ;;  %3656 = vmatpush1.msra.mxu0 %v1055_v4  ;;  %v1342_v0 = vld [vmem:[#allocation3 + $0x2678] sm:$0xff]  ;;  %v1341_v4 = vld [vmem:[#allocation3 + $0x2670] sm:$0xff] }
 0x303   :  { %3727 = vmatpush1.msra.mxu1 %v1471_v5  ;;  %3657 = vmatprep.subr.mxu0 %v1043_v6  ;;  %v1758_v1 = vld [vmem:[#allocation3 + $0x3378] sm:$0xff]  ;;  %v1757_v5 = vld [vmem:[#allocation3 + $0x3370] sm:$0xff] }
 0x304   :  { %3728 = vmatprep.subr.mxu1 %v1459_v7  ;;  %3658 = vmatpush1.msra.mxu0 %v1042_v10  ;;  %v1329_v6 = vld [vmem:[#allocation3 + $0x2610] sm:$0xff]  ;;  %v1328_v10 = vld [vmem:[#allocation3 + $0x2608] sm:$0xff] }
 0x305   :  { %3729 = vmatpush1.msra.mxu1 %v1458_v18  ;;  %3659 = vmatprep.subr.mxu0 %v1030_v20  ;;  %v1745_v7 = vld [vmem:[#allocation3 + $0x3310] sm:$0xff]  ;;  %v1744_v18 = vld [vmem:[#allocation3 + $0x3308] sm:$0xff] }
 0x306   :  { %3730 = vmatprep.subr.mxu1 %v1446_v21  ;;  %3660 = vmatpush1.msra.mxu0 %v1029_v26  ;;  %v1316_v20 = vld [vmem:[#allocation3 + $0x25a8] sm:$0xff]  ;;  %v1315_v26 = vld [vmem:[#allocation3 + $0x25a0] sm:$0xff] }
 0x307   :  { %3731 = vmatpush1.msra.mxu1 %v1445_v30  ;;  %3661 = vmatprep.subr.mxu0 %v1017_v31  ;;  %v1732_v21 = vld [vmem:[#allocation3 + $0x32a8] sm:$0xff]  ;;  %v1731_v30 = vld [vmem:[#allocation3 + $0x32a0] sm:$0xff] }
 0x308   :  { %3732 = vmatprep.subr.mxu1 %v1433_v32  ;;  %3662 = vmatpush1.msra.mxu0 %v1016_v33  ;;  %v1303_v31 = vld [vmem:[#allocation3 + $0x2540] sm:$0xff]  ;;  %v1302_v33 = vld [vmem:[#allocation3 + $0x2538] sm:$0xff] }
 0x309   :  { %3733 = vmatpush1.msra.mxu1 %v1432_v58  ;;  %3663 = vmatprep.subr.mxu0 %v1004_v34  ;;  %v1719_v32 = vld [vmem:[#allocation3 + $0x3240] sm:$0xff]  ;;  %v1718_v58 = vld [vmem:[#allocation3 + $0x3238] sm:$0xff] }
 0x30a   :  { %3734 = vmatprep.subr.mxu1 %v1420_v36  ;;  %3664 = vmatpush1.msra.mxu0 %v1003_v35  ;;  %v1290_v34 = vld [vmem:[#allocation3 + $0x24d8] sm:$0xff]  ;;  %v1289_v35 = vld [vmem:[#allocation3 + $0x24d0] sm:$0xff] }
 0x30b   :  { %3735 = vmatpush1.msra.mxu1 %v1419_v38  ;;  %3665 = vmatprep.subr.mxu0 %v991_v39  ;;  %v1706_v36 = vld [vmem:[#allocation3 + $0x31d8] sm:$0xff]  ;;  %v1705_v38 = vld [vmem:[#allocation3 + $0x31d0] sm:$0xff] }
 0x30c   :  { %3736 = vmatprep.subr.mxu1 %v1407_v13  ;;  %3666 = vmatpush1.msra.mxu0 %v990_v29  ;;  %v1277_v39 = vld [vmem:[#allocation3 + $0x2470] sm:$0xff]  ;;  %v1276_v29 = vld [vmem:[#allocation3 + $0x2468] sm:$0xff] }
 0x30d   :  { %3737 = vmatpush1.msra.mxu1 %v1406_v40  ;;  %3667 = vmatprep.subr.mxu0 %v978_v41  ;;  %v1693_v13 = vld [vmem:[#allocation3 + $0x3170] sm:$0xff]  ;;  %v1692_v40 = vld [vmem:[#allocation3 + $0x3168] sm:$0xff] }
 0x30e   :  { %3738 = vmatprep.subr.mxu1 %v1394_v44  ;;  %3668 = vmatpush1.msra.mxu0 %v977_v45  ;;  %v1264_v41 = vld [vmem:[#allocation3 + $0x2408] sm:$0xff]  ;;  %v1263_v45 = vld [vmem:[#allocation3 + $0x2400] sm:$0xff] }
 0x30f   :  { %3739 = vmatpush1.msra.mxu1 %v1393_v46  ;;  %3669 = vmatprep.subr.mxu0 %v965_v47  ;;  %v1680_v44 = vld [vmem:[#allocation3 + $0x3108] sm:$0xff]  ;;  %v1679_v46 = vld [vmem:[#allocation3 + $0x3100] sm:$0xff] }
 0x310   :  { %3740 = vmatprep.subr.mxu1 %v1381_v48  ;;  %3670 = vmatpush1.msra.mxu0 %v964_v49  ;;  %v1251_v47 = vld [vmem:[#allocation3 + $0x23a0] sm:$0xff]  ;;  %v1250_v49 = vld [vmem:[#allocation3 + $0x2398] sm:$0xff] }
 0x311   :  { %3741 = vmatpush1.msra.mxu1 %v1380_v50  ;;  %3671 = vmatprep.subr.mxu0 %v952_v54  ;;  %v1667_v48 = vld [vmem:[#allocation3 + $0x30a0] sm:$0xff]  ;;  %v1666_v50 = vld [vmem:[#allocation3 + $0x3098] sm:$0xff] }
 0x312   :  { %3742 = vmatprep.subr.mxu1 %v1368_v56  ;;  %3672 = vmatpush1.msra.mxu0 %v951_v57  ;;  %v1238_v54 = vld [vmem:[#allocation3 + $0x2338] sm:$0xff]  ;;  %v1237_v57 = vld [vmem:[#allocation3 + $0x2330] sm:$0xff] }
 0x313   :  { %3743 = vmatpush1.msra.mxu1 %v1367_v59  ;;  %3673 = vmatprep.subr.mxu0 %v1355_v60  ;;  %v1654_v56 = vld [vmem:[#allocation3 + $0x3038] sm:$0xff]  ;;  %v1653_v59 = vld [vmem:[#allocation3 + $0x3030] sm:$0xff] }
 0x314   :  { %3744 = vmatprep.subr.mxu1 %v1771_v19  ;;  %3674 = vmatpush2.msra.mxu0 %v1354_v61  ;;  %v1225_v60 = vld [vmem:[#allocation3 + $0x22d0] sm:$0xff]  ;;  %v1224_v61 = vld [vmem:[#allocation3 + $0x22c8] sm:$0xff] }
 0x315   :  { %3745 = vmatpush2.msra.mxu1 %v1770_v62  ;;  %3675 = vmatprep.subr.mxu0 %v1342_v0  ;;  %v1641_v19 = vld [vmem:[#allocation3 + $0x2fd0] sm:$0xff]  ;;  %v1640_v62 = vld [vmem:[#allocation3 + $0x2fc8] sm:$0xff] }
 0x316   :  { %3746 = vmatprep.subr.mxu1 %v1758_v1  ;;  %3676 = vmatpush2.msra.mxu0 %v1341_v4  ;;  %v1212_v0 = vld [vmem:[#allocation3 + $0x2268] sm:$0xff]  ;;  %v1211_v4 = vld [vmem:[#allocation3 + $0x2260] sm:$0xff] }
 0x317   :  { %3747 = vmatpush2.msra.mxu1 %v1757_v5  ;;  %3677 = vmatprep.subr.mxu0 %v1329_v6  ;;  %v1628_v1 = vld [vmem:[#allocation3 + $0x2f68] sm:$0xff]  ;;  %v1627_v5 = vld [vmem:[#allocation3 + $0x2f60] sm:$0xff] }
 0x318   :  { %3748 = vmatprep.subr.mxu1 %v1745_v7  ;;  %3678 = vmatpush2.msra.mxu0 %v1328_v10  ;;  %v1199_v6 = vld [vmem:[#allocation3 + $0x2200] sm:$0xff]  ;;  %v1198_v10 = vld [vmem:[#allocation3 + $0x21f8] sm:$0xff] }
 0x319   :  { %3749 = vmatpush2.msra.mxu1 %v1744_v18  ;;  %3679 = vmatprep.subr.mxu0 %v1316_v20  ;;  %v1615_v7 = vld [vmem:[#allocation3 + $0x2f00] sm:$0xff]  ;;  %v1614_v18 = vld [vmem:[#allocation3 + $0x2ef8] sm:$0xff] }
 0x31a   :  { %3750 = vmatprep.subr.mxu1 %v1732_v21  ;;  %3680 = vmatpush2.msra.mxu0 %v1315_v26  ;;  %v1186_v20 = vld [vmem:[#allocation3 + $0x2198] sm:$0xff]  ;;  %v3210_v26 = vpop.f32.mrf.mxu1 }
 0x31b   :  { %3751 = vmatpush2.msra.mxu1 %v1731_v30  ;;  %3681 = vmatprep.subr.mxu0 %v1303_v31  ;;  %v1602_v21 = vld [vmem:[#allocation3 + $0x2e98] sm:$0xff]  ;;  %v1185_v30 = vld [vmem:[#allocation3 + $0x2190] sm:$0xff] }
 0x31c   :  { %3752 = vmatprep.subr.mxu1 %v1719_v32  ;;  %3682 = vmatpush2.msra.mxu0 %v1302_v33  ;;  %v1601_v31 = vld [vmem:[#allocation3 + $0x2e90] sm:$0xff] }
 0x31d   :  { %3753 = vmatpush2.msra.mxu1 %v1718_v58  ;;  %3683 = vmatprep.subr.mxu0 %v1290_v34  ;;  %v1173_v32 = vld [vmem:[#allocation3 + $0x2130] sm:$0xff]  ;;  %v1172_v58 = vld [vmem:[#allocation3 + $0x2128] sm:$0xff] }
 0x31e   :  { %3754 = vmatprep.subr.mxu1 %v1706_v36  ;;  %3684 = vmatpush2.msra.mxu0 %v1289_v35  ;;  %v1589_v33 = vld [vmem:[#allocation3 + $0x2e30] sm:$0xff]  ;;  %v1588_v34 = vld [vmem:[#allocation3 + $0x2e28] sm:$0xff] }
 0x31f   :  { %3755 = vmatpush2.msra.mxu1 %v1705_v38  ;;  %3685 = vmatprep.subr.mxu0 %v1277_v39  ;;  %v1160_v35 = vld [vmem:[#allocation3 + $0x20c8] sm:$0xff] }
 0x320   :  { %3756 = vmatprep.subr.mxu1 %v1693_v13  ;;  %3686 = vmatpush2.msra.mxu0 %v1276_v29  ;;  %v1576_v38 = vld [vmem:[#allocation3 + $0x2dc8] sm:$0xff]  ;;  %v3212_v13 = vpop.f32.mrf.mxu1  ;;  %v1159_v29 = vld [vmem:[#allocation3 + $0x20c0] sm:$0xff] }
 0x321   :  { %3757 = vmatpush2.msra.mxu1 %v1692_v40  ;;  %3687 = vmatprep.subr.mxu0 %v1264_v41  ;;  %v1575_v41 = vld [vmem:[#allocation3 + $0x2dc0] sm:$0xff] }
 0x322   :  { %3758 = vmatprep.subr.mxu1 %v1680_v44  ;;  %3688 = vmatpush2.msra.mxu0 %v1263_v45  ;;  %v1979_v45 = vld [vmem:[#allocation3 + $0x3a60] sm:$0xff] }
 0x323   :  { %3759 = vmatpush2.msra.mxu1 %v1679_v46  ;;  %3689 = vmatprep.subr.mxu0 %v1251_v47  ;;  %v317_v46 = vld [vmem:[#allocation3 + $0x670] sm:$0xff]  ;;  %v1978_v47 = vld [vmem:[#allocation3 + $0x3a58] sm:$0xff] }
 0x324   :  { %3760 = vmatprep.subr.mxu1 %v1667_v48  ;;  %3690 = vmatpush2.msra.mxu0 %v1250_v49  ;;  %v316_v48 = vld [vmem:[#allocation3 + $0x668] sm:$0xff]  ;;  %v1966_v49 = vld [vmem:[#allocation3 + $0x39f8] sm:$0xff] }
 0x325   :  { %3761 = vmatpush2.msra.mxu1 %v1666_v50  ;;  %3691 = vmatprep.subr.mxu0 %v1238_v54  ;;  %v304_v50 = vld [vmem:[#allocation3 + $0x608] sm:$0xff]  ;;  %v1965_v54 = vld [vmem:[#allocation3 + $0x39f0] sm:$0xff] }
 0x326   :  { %3762 = vmatprep.subr.mxu1 %v1654_v56  ;;  %3692 = vmatpush2.msra.mxu0 %v1237_v57  ;;  %v303_v56 = vld [vmem:[#allocation3 + $0x600] sm:$0xff]  ;;  %v1953_v57 = vld [vmem:[#allocation3 + $0x3990] sm:$0xff] }
 0x327   :  { %3763 = vmatpush2.msra.mxu1 %v1653_v59  ;;  %3693 = vmatprep.subr.mxu0 %v1225_v60  ;;  %v291_v59 = vld [vmem:[#allocation3 + $0x5a0] sm:$0xff]  ;;  %v1952_v60 = vld [vmem:[#allocation3 + $0x3988] sm:$0xff] }
 0x328   :  { %3764 = vmatprep.subr.mxu1 %v1641_v19  ;;  %3694 = vmatpush2.msra.mxu0 %v1224_v61  ;;  %v290_v19 = vld [vmem:[#allocation3 + $0x598] sm:$0xff]  ;;  %v1940_v61 = vld [vmem:[#allocation3 + $0x3928] sm:$0xff] }
 0x329   :  { %3765 = vmatpush2.msra.mxu1 %v1640_v62  ;;  %3695 = vmatprep.subr.mxu0 %v1212_v0  ;;  %v278_v62 = vld [vmem:[#allocation3 + $0x538] sm:$0xff]  ;;  %v1939_v0 = vld [vmem:[#allocation3 + $0x3920] sm:$0xff] }
 0x32a   :  { %3766 = vmatprep.subr.mxu1 %v1628_v1  ;;  %3696 = vmatpush2.msra.mxu0 %v1211_v4  ;;  %v277_v1 = vld [vmem:[#allocation3 + $0x530] sm:$0xff]  ;;  %v1927_v4 = vld [vmem:[#allocation3 + $0x38c0] sm:$0xff] }
 0x32b   :  { %3767 = vmatpush2.msra.mxu1 %v1627_v5  ;;  %3697 = vmatprep.subr.mxu0 %v1199_v6  ;;  %v265_v5 = vld [vmem:[#allocation3 + $0x4d0] sm:$0xff]  ;;  %v1926_v6 = vld [vmem:[#allocation3 + $0x38b8] sm:$0xff] }
 0x32c   :  { %3768 = vmatprep.subr.mxu1 %v1615_v7  ;;  %3698 = vmatpush2.msra.mxu0 %v1198_v10  ;;  %v264_v7 = vld [vmem:[#allocation3 + $0x4c8] sm:$0xff]  ;;  %v1914_v10 = vld [vmem:[#allocation3 + $0x3858] sm:$0xff] }
 0x32d   :  { %3769 = vmatpush2.msra.mxu1 %v1614_v18  ;;  %3699 = vmatprep.subr.mxu0 %v1186_v20  ;;  %v252_v18 = vld [vmem:[#allocation3 + $0x468] sm:$0xff]  ;;  %v1913_v20 = vld [vmem:[#allocation3 + $0x3850] sm:$0xff] }
 0x32e   :  { %3770 = vmatprep.subr.mxu1 %v1602_v21  ;;  %v3281_v36 = vpop.f32.mrf.mxu0  ;;  %3700 = vmatpush2.msra.mxu0 %v1185_v30  ;;  %v251_v21 = vld [vmem:[#allocation3 + $0x460] sm:$0xff] }
 0x32f   :  { %3771 = vmatpush2.msra.mxu1 %v1601_v31  ;;  %v5612_v39 = vadd.f32 %v3281_v36, %v3210_v26  ;;  %3701 = vmatprep.subr.mxu0 %v1173_v32  ;;  %v1901_v26 = vld [vmem:[#allocation3 + $0x37f0] sm:$0xff]  ;;  %v239_v30 = vld [vmem:[#allocation3 + $0x400] sm:$0xff]  ;;  %v1900_v31 = vld [vmem:[#allocation3 + $0x37e8] sm:$0xff] }
 0x330   :  { %3772 = vmatprep.subr.mxu1 %v1589_v33  ;;  %v3283_v40 = vpop.f32.mrf.mxu0  ;;  %3702 = vmatpush2.msra.mxu0 %v1172_v58  ;;  %v238_v32 = vld [vmem:[#allocation3 + $0x3f8] sm:$0xff]  ;;  %v1888_v33 = vld [vmem:[#allocation3 + $0x3788] sm:$0xff]  ;;  %v225_v36 = vld [vmem:[#allocation3 + $0x390] sm:$0xff] }
 0x331   :  { %3773 = vmatpush2.msra.mxu1 %v1588_v34  ;;  %v5614_v44 = vadd.f32 %v3283_v40, %v3212_v13  ;;  %3703 = vmatprep.subr.mxu0 %v1160_v35  ;;  %v226_v58 = vld [vmem:[#allocation3 + $0x398] sm:$0xff]  ;;  %v1887_v34 = vld [vmem:[#allocation3 + $0x3780] sm:$0xff] }
 0x332   :  { %3774 = vmatprep.subr.mxu1 %v1576_v38  ;;  %3704 = vmatpush2.msra.mxu0 %v1159_v29  ;;  %v1875_v35 = vld [vmem:[#allocation3 + $0x3720] sm:$0xff]  ;;  %v213_v38 = vld [vmem:[#allocation3 + $0x330] sm:$0xff]  ;;  %v1874_v13 = vld [vmem:[#allocation3 + $0x3718] sm:$0xff] }
 0x333   :  { %3705 = vmatprep.mubr.f32.mxu0 %v5500_v27  ;;  %3775 = vmatpush2.msra.mxu1 %v1575_v41  ;;  %v212_v29 = vld [vmem:[#allocation3 + $0x328] sm:$0xff]  ;;  %v1862_v40 = vld [vmem:[#allocation3 + $0x36b8] sm:$0xff] }
 0x334   :  { %3706 = vmatmul.mubr.f32.vlgmr.msra.gmra.mxu0 %v5493_v17  ;;  %3776 = vmatprep.mubr.f32.mxu1 %v5504_v53  ;;  %v200_v41 = vld [vmem:[#allocation3 + $0x2c8] sm:$0xff] }
 0x335   :  { %3783 = vmatprep.subr.mxu0 %v1979_v45  ;;  %3854 = vmatprep.subr.mxu1 %v317_v46  ;;  %v1861_v45 = vld [vmem:[#allocation3 + $0x36b0] sm:$0xff]  ;;  %v199_v46 = vld [vmem:[#allocation3 + $0x2c0] sm:$0xff] }
 0x336   :  { %3777 = vmatmul.mubr.f32.vlgmr.msra.gmra.mxu1 %v5496_v22  ;;  %3784 = vmatpush1.msra.mxu0 %v1978_v47  ;;  %v1849_v47 = vld [vmem:[#allocation3 + $0x3650] sm:$0xff] }
 0x337   :  { %3855 = vmatpush1.msra.mxu1 %v316_v48  ;;  %3785 = vmatprep.subr.mxu0 %v1966_v49  ;;  %v187_v48 = vld [vmem:[#allocation3 + $0x260] sm:$0xff]  ;;  %v1848_v49 = vld [vmem:[#allocation3 + $0x3648] sm:$0xff] }
 0x338   :  { %3856 = vmatprep.subr.mxu1 %v304_v50  ;;  %3786 = vmatpush1.msra.mxu0 %v1965_v54  ;;  %v186_v50 = vld [vmem:[#allocation3 + $0x258] sm:$0xff]  ;;  %v1836_v54 = vld [vmem:[#allocation3 + $0x35e8] sm:$0xff] }
 0x339   :  { %3857 = vmatpush1.msra.mxu1 %v303_v56  ;;  %3787 = vmatprep.subr.mxu0 %v1953_v57  ;;  %v174_v56 = vld [vmem:[#allocation3 + $0x1f8] sm:$0xff] }
 0x33a   :  { %3858 = vmatprep.subr.mxu1 %v291_v59  ;;  %3788 = vmatpush1.msra.mxu0 %v1952_v60  ;;  %v1835_v59 = vld [vmem:[#allocation3 + $0x35e0] sm:$0xff]  ;;  %v173_v60 = vld [vmem:[#allocation3 + $0x1f0] sm:$0xff] }
 0x33b   :  { %3859 = vmatpush1.msra.mxu1 %v290_v19  ;;  %3789 = vmatprep.subr.mxu0 %v1940_v61  ;;  %v1823_v61 = vld [vmem:[#allocation3 + $0x3580] sm:$0xff] }
 0x33c   :  { %3860 = vmatprep.subr.mxu1 %v278_v62  ;;  %3790 = vmatpush1.msra.mxu0 %v1939_v0  ;;  %v161_v62 = vld [vmem:[#allocation3 + $0x190] sm:$0xff] }
 0x33d   :  { %3861 = vmatpush1.msra.mxu1 %v277_v1  ;;  %3791 = vmatprep.subr.mxu0 %v1927_v4  ;;  %v1822_v1 = vld [vmem:[#allocation3 + $0x3578] sm:$0xff]  ;;  %v160_v4 = vld [vmem:[#allocation3 + $0x188] sm:$0xff] }
 0x33e   :  { %3862 = vmatprep.subr.mxu1 %v265_v5  ;;  %3792 = vmatpush1.msra.mxu0 %v1926_v6  ;;  %v1810_v6 = vld [vmem:[#allocation3 + $0x3518] sm:$0xff] }
 0x33f   :  { %3863 = vmatpush1.msra.mxu1 %v264_v7  ;;  %3793 = vmatprep.subr.mxu0 %v1914_v10  ;;  %v148_v7 = vld [vmem:[#allocation3 + $0x128] sm:$0xff]  ;;  %v147_v10 = vld [vmem:[#allocation3 + $0x120] sm:$0xff] }
 0x340   :  { %3864 = vmatprep.subr.mxu1 %v252_v18  ;;  %3794 = vmatpush1.msra.mxu0 %v1913_v20  ;;  %v1797_v18 = vld [vmem:[#allocation3 + $0x34b0] sm:$0xff]  ;;  %v135_v20 = vld [vmem:[#allocation3 + $0xc0] sm:$0xff] }
 0x341   :  { %3865 = vmatpush1.msra.mxu1 %v251_v21  ;;  %3795 = vmatprep.subr.mxu0 %v1901_v26  ;;  %v1796_v21 = vld [vmem:[#allocation3 + $0x34a8] sm:$0xff]  ;;  %v134_v26 = vld [vmem:[#allocation3 + $0xb8] sm:$0xff] }
 0x342   :  { %3866 = vmatprep.subr.mxu1 %v239_v30  ;;  %3796 = vmatpush1.msra.mxu0 %v1900_v31  ;;  %v122_v30 = vld [vmem:[#allocation3 + $0x58] sm:$0xff]  ;;  %v1783_v31 = vld [vmem:[#allocation3 + $0x3440] sm:$0xff] }
 0x343   :  { %3867 = vmatpush1.msra.mxu1 %v238_v32  ;;  %3797 = vmatprep.subr.mxu0 %v1888_v33  ;;  %v121_v32 = vld [vmem:[#allocation3 + $0x50] sm:$0xff]  ;;  %v2018_v33 = vld [vmem:[#allocation3 + $0x3b98] sm:$0xff] }
 0x344   :  { %3868 = vmatprep.subr.mxu1 %v226_v58  ;;  %3798 = vmatpush1.msra.mxu0 %v1887_v34  ;;  %v525_v58 = vld [vmem:[#allocation3 + $0xcf0] sm:$0xff] }
 0x345   :  { %3869 = vmatpush1.msra.mxu1 %v225_v36  ;;  %3799 = vmatprep.subr.mxu0 %v1875_v35  ;;  %v2017_v34 = vld [vmem:[#allocation3 + $0x3b90] sm:$0xff]  ;;  %v524_v36 = vld [vmem:[#allocation3 + $0xce8] sm:$0xff] }
 0x346   :  { %3870 = vmatprep.subr.mxu1 %v213_v38  ;;  %3800 = vmatpush1.msra.mxu0 %v1874_v13  ;;  %v2005_v35 = vld [vmem:[#allocation3 + $0x3b30] sm:$0xff]  ;;  %v512_v38 = vld [vmem:[#allocation3 + $0xc88] sm:$0xff] }
 0x347   :  { %3871 = vmatpush1.msra.mxu1 %v212_v29  ;;  %3801 = vmatprep.subr.mxu0 %v1862_v40  ;;  %v2004_v13 = vld [vmem:[#allocation3 + $0x3b28] sm:$0xff]  ;;  %v511_v29 = vld [vmem:[#allocation3 + $0xc80] sm:$0xff] }
 0x348   :  { %3872 = vmatprep.subr.mxu1 %v200_v41  ;;  %3802 = vmatpush1.msra.mxu0 %v1861_v45  ;;  %v1992_v40 = vld [vmem:[#allocation3 + $0x3ac8] sm:$0xff]  ;;  %v499_v41 = vld [vmem:[#allocation3 + $0xc20] sm:$0xff] }
 0x349   :  { %3873 = vmatpush1.msra.mxu1 %v199_v46  ;;  %v3352_v57 = vpop.f32.mrf.mxu1  ;;  %3803 = vmatprep.subr.mxu0 %v1849_v47  ;;  %v1991_v45 = vld [vmem:[#allocation3 + $0x3ac0] sm:$0xff]  ;;  %v498_v46 = vld [vmem:[#allocation3 + $0xc18] sm:$0xff] }
 0x34a   :  { %3874 = vmatprep.subr.mxu1 %v187_v48  ;;  %v5621_v19 = vadd.f32 %v3352_v57, %v5612_v39  ;;  %3804 = vmatpush1.msra.mxu0 %v1848_v49  ;;  %v1809_v39 = vld [vmem:[#allocation3 + $0x3510] sm:$0xff]  ;;  %v486_v47 = vld [vmem:[#allocation3 + $0xbb8] sm:$0xff]  ;;  %v720_v57 = vld [vmem:[#allocation3 + $0x1308] sm:$0xff] }
 0x34b   :  { %3875 = vmatpush1.msra.mxu1 %v186_v50  ;;  %v3354_v0 = vpop.f32.mrf.mxu1  ;;  %3805 = vmatprep.subr.mxu0 %v1836_v54  ;;  %v733_v48 = vld [vmem:[#allocation3 + $0x1370] sm:$0xff]  ;;  %v732_v50 = vld [vmem:[#allocation3 + $0x1368] sm:$0xff] }
 0x34c   :  { %3876 = vmatprep.subr.mxu1 %v174_v56  ;;  %v5624_v5 = vadd.f32 %v3354_v0, %v5614_v44  ;;  %3806 = vmatpush1.msra.mxu0 %v1835_v59  ;;  %v1784_v44 = vld [vmem:[#allocation3 + $0x3448] sm:$0xff]  ;;  %v485_v49 = vld [vmem:[#allocation3 + $0xbb0] sm:$0xff]  ;;  %v459_v0 = vld [vmem:[#allocation3 + $0xae0] sm:$0xff] }
 0x34d   :  { %3877 = vmatpush1.msra.mxu1 %v173_v60  ;;  %3807 = vmatprep.subr.mxu0 %v1823_v61  ;;  %v5247_v54 = vld.sshfl [vmem:[%s5848_s0 + $0x10] sm:$0x33 pattern:$0x76325410]  ;;  %v719_v60 = vld [vmem:[#allocation3 + $0x1300] sm:$0xff] }
 0x34e   :  { %3878 = vmatprep.subr.mxu1 %v161_v62  ;;  %3808 = vmatpush1.msra.mxu0 %v1822_v1  ;;  %v473_v56 = vld [vmem:[#allocation3 + $0xb50] sm:$0xff]  ;;  %v472_v59 = vld [vmem:[#allocation3 + $0xb48] sm:$0xff]  ;;  %v707_v62 = vld [vmem:[#allocation3 + $0x12a0] sm:$0xff] }
 0x34f   :  { %3879 = vmatpush1.msra.mxu1 %v160_v4  ;;  %3809 = vmatprep.subr.mxu0 %v1810_v6  ;;  %v460_v61 = vld [vmem:[#allocation3 + $0xae8] sm:$0xff]  ;;  %v706_v1 = vld [vmem:[#allocation3 + $0x1298] sm:$0xff]  ;;  %v447_v4 = vld [vmem:[#allocation3 + $0xa80] sm:$0xff] }
 0x350   :  { %3880 = vmatprep.subr.mxu1 %v148_v7  ;;  %3810 = vmatpush1.msra.mxu0 %v1809_v39  ;;  %v694_v6 = vld [vmem:[#allocation3 + $0x1238] sm:$0xff]  ;;  %v693_v39 = vld [vmem:[#allocation3 + $0x1230] sm:$0xff] }
 0x351   :  { %3881 = vmatpush1.msra.mxu1 %v147_v10  ;;  %3811 = vmatprep.subr.mxu0 %v1797_v18  ;;  %v446_v7 = vld [vmem:[#allocation3 + $0xa78] sm:$0xff]  ;;  %v681_v18 = vld [vmem:[#allocation3 + $0x11d0] sm:$0xff] }
 0x352   :  { %3882 = vmatprep.subr.mxu1 %v135_v20  ;;  %3812 = vmatpush1.msra.mxu0 %v1796_v21  ;;  %v434_v10 = vld [vmem:[#allocation3 + $0xa18] sm:$0xff]  ;;  %v433_v20 = vld [vmem:[#allocation3 + $0xa10] sm:$0xff]  ;;  %v680_v21 = vld [vmem:[#allocation3 + $0x11c8] sm:$0xff] }
 0x353   :  { %3883 = vmatpush1.msra.mxu1 %v134_v26  ;;  %3813 = vmatprep.subr.mxu0 %v1784_v44  ;;  %v421_v26 = vld [vmem:[#allocation3 + $0x9b0] sm:$0xff]  ;;  %v668_v44 = vld [vmem:[#allocation3 + $0x1168] sm:$0xff] }
 0x354   :  { %3884 = vmatprep.subr.mxu1 %v122_v30  ;;  %3814 = vmatpush1.msra.mxu0 %v1783_v31  ;;  %v420_v30 = vld [vmem:[#allocation3 + $0x9a8] sm:$0xff]  ;;  %v667_v31 = vld [vmem:[#allocation3 + $0x1160] sm:$0xff] }
 0x355   :  { %3885 = vmatpush1.msra.mxu1 %v121_v32  ;;  %3841 = vmatprep.subr.mxu0 %v2018_v33  ;;  %v408_v32 = vld [vmem:[#allocation3 + $0x948] sm:$0xff]  ;;  %v655_v33 = vld [vmem:[#allocation3 + $0x1100] sm:$0xff] }
 0x356   :  { %3886 = vmatprep.subr.mxu1 %v525_v58  ;;  %3842 = vmatpush2.msra.mxu0 %v2017_v34  ;;  %v407_v58 = vld [vmem:[#allocation3 + $0x940] sm:$0xff]  ;;  %v654_v34 = vld [vmem:[#allocation3 + $0x10f8] sm:$0xff] }
 0x357   :  { %3887 = vmatpush2.msra.mxu1 %v524_v36  ;;  %3843 = vmatprep.subr.mxu0 %v2005_v35  ;;  %v395_v36 = vld [vmem:[#allocation3 + $0x8e0] sm:$0xff]  ;;  %v642_v35 = vld [vmem:[#allocation3 + $0x1098] sm:$0xff] }
 0x358   :  { %3888 = vmatprep.subr.mxu1 %v512_v38  ;;  %3844 = vmatpush2.msra.mxu0 %v2004_v13  ;;  %v394_v38 = vld [vmem:[#allocation3 + $0x8d8] sm:$0xff]  ;;  %v641_v13 = vld [vmem:[#allocation3 + $0x1090] sm:$0xff] }
 0x359   :  { %3889 = vmatpush2.msra.mxu1 %v511_v29  ;;  %3845 = vmatprep.subr.mxu0 %v1992_v40  ;;  %v382_v29 = vld [vmem:[#allocation3 + $0x878] sm:$0xff]  ;;  %v629_v40 = vld [vmem:[#allocation3 + $0x1030] sm:$0xff] }
 0x35a   :  { %3890 = vmatprep.subr.mxu1 %v499_v41  ;;  %3846 = vmatpush2.msra.mxu0 %v1991_v45  ;;  %v381_v41 = vld [vmem:[#allocation3 + $0x870] sm:$0xff]  ;;  %v628_v45 = vld [vmem:[#allocation3 + $0x1028] sm:$0xff] }
 0x35b   :  { %4994 = vmatprep.mubr.msk.f32.mxu0 %vm2076_vm0, %v5513_v51  ;;  %3891 = vmatpush2.msra.mxu1 %v498_v46  ;;  %v369_v46 = vld [vmem:[#allocation3 + $0x810] sm:$0xff] }
 0x35c   :  { %3848 = vmatmul.mubr.f32.vlgmr.msra.gmra.mxu0 %v5247_v54  ;;  %3892 = vmatprep.subr.mxu1 %v486_v47  ;;  %v616_v47 = vld [vmem:[#allocation3 + $0xfc8] sm:$0xff]  ;;  %v603_v54 = vld [vmem:[#allocation3 + $0xf60] sm:$0xff] }
 0x35d   :  { %3925 = vmatprep.subr.mxu0 %v733_v48  ;;  %3893 = vmatpush2.msra.mxu1 %v485_v49  ;;  %v368_v48 = vld [vmem:[#allocation3 + $0x808] sm:$0xff]  ;;  %v615_v49 = vld [vmem:[#allocation3 + $0xfc0] sm:$0xff] }
 0x35e   :  { %3926 = vmatpush1.msra.mxu0 %v732_v50  ;;  %3894 = vmatprep.subr.mxu1 %v473_v56  ;;  %v356_v50 = vld [vmem:[#allocation3 + $0x7a8] sm:$0xff]  ;;  %v355_v56 = vld [vmem:[#allocation3 + $0x7a0] sm:$0xff] }
 0x35f   :  { %3927 = vmatprep.subr.mxu0 %v720_v57  ;;  %3895 = vmatpush2.msra.mxu1 %v472_v59  ;;  %v602_v57 = vld [vmem:[#allocation3 + $0xf58] sm:$0xff]  ;;  %v343_v59 = vld [vmem:[#allocation3 + $0x740] sm:$0xff] }
 0x360   :  { %3928 = vmatpush1.msra.mxu0 %v719_v60  ;;  %3896 = vmatprep.subr.mxu1 %v460_v61  ;;  %v590_v60 = vld [vmem:[#allocation3 + $0xef8] sm:$0xff] }
 0x361   :  { %3929 = vmatprep.subr.mxu0 %v707_v62  ;;  %3897 = vmatpush2.msra.mxu1 %v459_v0  ;;  %v342_v62 = vld [vmem:[#allocation3 + $0x738] sm:$0xff]  ;;  %v589_v0 = vld [vmem:[#allocation3 + $0xef0] sm:$0xff] }
 0x362   :  { %3930 = vmatpush1.msra.mxu0 %v706_v1  ;;  %3898 = vmatprep.subr.mxu1 %v447_v4  ;;  %v330_v4 = vld [vmem:[#allocation3 + $0x6d8] sm:$0xff] }
 0x363   :  { %3931 = vmatprep.subr.mxu0 %v694_v6  ;;  %3899 = vmatpush2.msra.mxu1 %v446_v7  ;;  %v577_v6 = vld [vmem:[#allocation3 + $0xe90] sm:$0xff] }
 0x364   :  { %3932 = vmatpush1.msra.mxu0 %v693_v39  ;;  %3900 = vmatprep.subr.mxu1 %v434_v10  ;;  %v329_v10 = vld [vmem:[#allocation3 + $0x6d0] sm:$0xff] }
 0x365   :  { %3933 = vmatprep.subr.mxu0 %v681_v18  ;;  %3901 = vmatpush2.msra.mxu1 %v433_v20  ;;  %v576_v18 = vld [vmem:[#allocation3 + $0xe88] sm:$0xff] }
 0x366   :  { %3934 = vmatpush1.msra.mxu0 %v680_v21  ;;  %3902 = vmatprep.subr.mxu1 %v421_v26  ;;  %v564_v26 = vld [vmem:[#allocation3 + $0xe28] sm:$0xff] }
 0x367   :  { %3935 = vmatprep.subr.mxu0 %v668_v44  ;;  %3903 = vmatpush2.msra.mxu1 %v420_v30 }
 0x368   :  { %3936 = vmatpush1.msra.mxu0 %v667_v31  ;;  %3904 = vmatprep.subr.mxu1 %v408_v32  ;;  %v563_v31 = vld [vmem:[#allocation3 + $0xe20] sm:$0xff]  ;;  %v1148_v32 = vld [vmem:[#allocation3 + $0x2068] sm:$0xff] }
 0x369   :  { %3937 = vmatprep.subr.mxu0 %v655_v33  ;;  %3905 = vmatpush2.msra.mxu1 %v407_v58  ;;  %v551_v33 = vld [vmem:[#allocation3 + $0xdc0] sm:$0xff]  ;;  %v550_v58 = vld [vmem:[#allocation3 + $0xdb8] sm:$0xff] }
 0x36a   :  { %3938 = vmatpush1.msra.mxu0 %v654_v34  ;;  %3906 = vmatprep.subr.mxu1 %v395_v36  ;;  %v1135_v34 = vld [vmem:[#allocation3 + $0x2000] sm:$0xff]  ;;  %v538_v36 = vld [vmem:[#allocation3 + $0xd58] sm:$0xff] }
 0x36b   :  { %3939 = vmatprep.subr.mxu0 %v642_v35  ;;  %3907 = vmatpush2.msra.mxu1 %v394_v38  ;;  %v1123_v35 = vld [vmem:[#allocation3 + $0x1fa0] sm:$0xff]  ;;  %v537_v38 = vld [vmem:[#allocation3 + $0xd50] sm:$0xff] }
 0x36c   :  { %3940 = vmatpush1.msra.mxu0 %v641_v13  ;;  %3908 = vmatprep.subr.mxu1 %v382_v29  ;;  %v1122_v13 = vld [vmem:[#allocation3 + $0x1f98] sm:$0xff]  ;;  %v941_v29 = vld [vmem:[#allocation3 + $0x19f0] sm:$0xff] }
 0x36d   :  { %3941 = vmatprep.subr.mxu0 %v629_v40  ;;  %3909 = vmatpush2.msra.mxu1 %v381_v41  ;;  %v1110_v40 = vld [vmem:[#allocation3 + $0x1f38] sm:$0xff]  ;;  %v940_v41 = vld [vmem:[#allocation3 + $0x19e8] sm:$0xff] }
 0x36e   :  { %3942 = vmatpush1.msra.mxu0 %v628_v45  ;;  %3910 = vmatprep.subr.mxu1 %v369_v46  ;;  %v1109_v45 = vld [vmem:[#allocation3 + $0x1f30] sm:$0xff]  ;;  %v928_v46 = vld [vmem:[#allocation3 + $0x1988] sm:$0xff] }
 0x36f   :  { %3943 = vmatprep.subr.mxu0 %v616_v47  ;;  %3911 = vmatpush2.msra.mxu1 %v368_v48  ;;  %v1097_v47 = vld [vmem:[#allocation3 + $0x1ed0] sm:$0xff]  ;;  %v927_v48 = vld [vmem:[#allocation3 + $0x1980] sm:$0xff] }
 0x370   :  { %3944 = vmatpush1.msra.mxu0 %v615_v49  ;;  %v3423_v61 = vpop.f32.mrf.mxu0  ;;  %3912 = vmatprep.subr.mxu1 %v356_v50  ;;  %v1096_v49 = vld [vmem:[#allocation3 + $0x1ec8] sm:$0xff]  ;;  %v915_v50 = vld [vmem:[#allocation3 + $0x1920] sm:$0xff] }
 0x371   :  { %3945 = vmatprep.subr.mxu0 %v603_v54  ;;  %v3424_v1 = vadd.f32 %v3423_v61, %v5621_v19  ;;  %3913 = vmatpush2.msra.mxu1 %v355_v56  ;;  %v1149_v19 = vld [vmem:[#allocation3 + $0x2070] sm:$0xff]  ;;  %v1084_v54 = vld [vmem:[#allocation3 + $0x1e68] sm:$0xff]  ;;  %v914_v56 = vld [vmem:[#allocation3 + $0x1918] sm:$0xff] }
 0x372   :  { %3946 = vmatpush1.msra.mxu0 %v602_v57  ;;  %v3425_v7 = vpop.f32.mrf.mxu0  ;;  %v3494_v39 = vpop.f32.mrf.mxu1  ;;  %3914 = vmatprep.subr.mxu1 %v343_v59  ;;  %v1083_v57 = vld [vmem:[#allocation3 + $0x1e60] sm:$0xff]  ;;  %v902_v59 = vld [vmem:[#allocation3 + $0x18b8] sm:$0xff]  ;;  %v901_v61 = vld [vmem:[#allocation3 + $0x18b0] sm:$0xff] }
 0x373   :  { %3947 = vmatprep.subr.mxu0 %v590_v60  ;;  %v3426_v20 = vadd.f32 %v3425_v7, %v5624_v5  ;;  %v5633_v21 = vadd.f32 %v3494_v39, %v3424_v1  ;;  %3915 = vmatpush2.msra.mxu1 %v342_v62  ;;  %v1136_v5 = vld [vmem:[#allocation3 + $0x2008] sm:$0xff]  ;;  %v1071_v60 = vld [vmem:[#allocation3 + $0x1e00] sm:$0xff]  ;;  %v1070_v62 = vld [vmem:[#allocation3 + $0x1df8] sm:$0xff] }
 0x374   :  { %3948 = vmatpush1.msra.mxu0 %v589_v0  ;;  %v3496_v44 = vpop.f32.mrf.mxu1  ;;  %3916 = vmatprep.subr.mxu1 %v330_v4  ;;  %v889_v0 = vld [vmem:[#allocation3 + $0x1850] sm:$0xff]  ;;  %v1058_v1 = vld [vmem:[#allocation3 + $0x1d98] sm:$0xff]  ;;  %v888_v4 = vld [vmem:[#allocation3 + $0x1848] sm:$0xff] }
 0x375   :  { %3949 = vmatprep.subr.mxu0 %v577_v6  ;;  %v5635_v30 = vadd.f32 %v3496_v44, %v3426_v20  ;;  %3917 = vmatpush2.msra.mxu1 %v329_v10  ;;  %v1057_v6 = vld [vmem:[#allocation3 + $0x1d90] sm:$0xff]  ;;  %v876_v7 = vld [vmem:[#allocation3 + $0x17e8] sm:$0xff]  ;;  %v875_v10 = vld [vmem:[#allocation3 + $0x17e0] sm:$0xff] }
 0x376   :  { %3950 = vmatpush1.msra.mxu0 %v576_v18  ;;  %3918 = vmatprep.mubr.f32.mxu1 %v5479_v9  ;;  %v1045_v39 = vld [vmem:[#allocation3 + $0x1d30] sm:$0xff]  ;;  %v1044_v18 = vld [vmem:[#allocation3 + $0x1d28] sm:$0xff]  ;;  %v863_v20 = vld [vmem:[#allocation3 + $0x1780] sm:$0xff] }
 0x377   :  { %3951 = vmatprep.subr.mxu0 %v564_v26  ;;  %3996 = vmatprep.subr.mxu1 %v1149_v19  ;;  %v1032_v26 = vld [vmem:[#allocation3 + $0x1cc8] sm:$0xff]  ;;  %v862_v44 = vld [vmem:[#allocation3 + $0x1778] sm:$0xff]  ;;  %v1031_v19 = vld [vmem:[#allocation3 + $0x1cc0] sm:$0xff] }
 0x378   :  { %3919 = vmatmul.mubr.f32.vlgmr.msra.gmra.mxu1 %v5472_v63  ;;  %3952 = vmatpush1.msra.mxu0 %v563_v31  ;;  %v850_v31 = vld [vmem:[#allocation3 + $0x1718] sm:$0xff] }
 0x379   :  { %3997 = vmatpush1.msra.mxu1 %v1148_v32  ;;  %3953 = vmatprep.subr.mxu0 %v551_v33  ;;  %v1019_v32 = vld [vmem:[#allocation3 + $0x1c60] sm:$0xff]  ;;  %v849_v33 = vld [vmem:[#allocation3 + $0x1710] sm:$0xff] }
 0x37a   :  { %3998 = vmatprep.subr.mxu1 %v1136_v5  ;;  %3954 = vmatpush1.msra.mxu0 %v550_v58  ;;  %v1018_v5 = vld [vmem:[#allocation3 + $0x1c58] sm:$0xff]  ;;  %v837_v58 = vld [vmem:[#allocation3 + $0x16b0] sm:$0xff] }
 0x37b   :  { %3999 = vmatpush1.msra.mxu1 %v1135_v34  ;;  %3955 = vmatprep.subr.mxu0 %v538_v36  ;;  %v1006_v34 = vld [vmem:[#allocation3 + $0x1bf8] sm:$0xff]  ;;  %v836_v36 = vld [vmem:[#allocation3 + $0x16a8] sm:$0xff] }
 0x37c   :  { %4000 = vmatprep.subr.mxu1 %v1123_v35  ;;  %3956 = vmatpush1.msra.mxu0 %v537_v38  ;;  %v1005_v35 = vld [vmem:[#allocation3 + $0x1bf0] sm:$0xff]  ;;  %v824_v38 = vld [vmem:[#allocation3 + $0x1648] sm:$0xff] }
 0x37d   :  { %4001 = vmatpush1.msra.mxu1 %v1122_v13  ;;  %3957 = vmatprep.subr.mxu0 %v941_v29  ;;  %v993_v13 = vld [vmem:[#allocation3 + $0x1b90] sm:$0xff]  ;;  %v823_v29 = vld [vmem:[#allocation3 + $0x1640] sm:$0xff] }
 0x37e   :  { %4002 = vmatprep.subr.mxu1 %v1110_v40  ;;  %3958 = vmatpush2.msra.mxu0 %v940_v41  ;;  %v992_v40 = vld [vmem:[#allocation3 + $0x1b88] sm:$0xff]  ;;  %v811_v41 = vld [vmem:[#allocation3 + $0x15e0] sm:$0xff] }
 0x37f   :  { %4003 = vmatpush1.msra.mxu1 %v1109_v45  ;;  %3959 = vmatprep.subr.mxu0 %v928_v46  ;;  %v980_v45 = vld [vmem:[#allocation3 + $0x1b28] sm:$0xff]  ;;  %v810_v46 = vld [vmem:[#allocation3 + $0x15d8] sm:$0xff] }
 0x380   :  { %4004 = vmatprep.subr.mxu1 %v1097_v47  ;;  %3960 = vmatpush2.msra.mxu0 %v927_v48  ;;  %v979_v47 = vld [vmem:[#allocation3 + $0x1b20] sm:$0xff]  ;;  %v798_v48 = vld [vmem:[#allocation3 + $0x1578] sm:$0xff] }
 0x381   :  { %4005 = vmatpush1.msra.mxu1 %v1096_v49  ;;  %3961 = vmatprep.subr.mxu0 %v915_v50  ;;  %v967_v49 = vld [vmem:[#allocation3 + $0x1ac0] sm:$0xff]  ;;  %v797_v50 = vld [vmem:[#allocation3 + $0x1570] sm:$0xff] }
 0x382   :  { %4006 = vmatprep.subr.mxu1 %v1084_v54  ;;  %3962 = vmatpush2.msra.mxu0 %v914_v56  ;;  %v966_v54 = vld [vmem:[#allocation3 + $0x1ab8] sm:$0xff]  ;;  %v785_v56 = vld [vmem:[#allocation3 + $0x1510] sm:$0xff] }
 0x383   :  { %4007 = vmatpush1.msra.mxu1 %v1083_v57  ;;  %3963 = vmatprep.subr.mxu0 %v902_v59  ;;  %v954_v57 = vld [vmem:[#allocation3 + $0x1a58] sm:$0xff]  ;;  %v784_v59 = vld [vmem:[#allocation3 + $0x1508] sm:$0xff] }
 0x384   :  { %4008 = vmatprep.subr.mxu1 %v1071_v60  ;;  %3964 = vmatpush2.msra.mxu0 %v901_v61  ;;  %v953_v60 = vld [vmem:[#allocation3 + $0x1a50] sm:$0xff]  ;;  %v772_v61 = vld [vmem:[#allocation3 + $0x14a8] sm:$0xff] }
 0x385   :  { %4009 = vmatpush1.msra.mxu1 %v1070_v62  ;;  %3965 = vmatprep.subr.mxu0 %v889_v0  ;;  %v1357_v62 = vld [vmem:[#allocation3 + $0x26f0] sm:$0xff]  ;;  %v771_v0 = vld [vmem:[#allocation3 + $0x14a0] sm:$0xff] }
 0x386   :  { %4010 = vmatprep.subr.mxu1 %v1058_v1  ;;  %3966 = vmatpush2.msra.mxu0 %v888_v4  ;;  %v1356_v1 = vld [vmem:[#allocation3 + $0x26e8] sm:$0xff]  ;;  %v759_v4 = vld [vmem:[#allocation3 + $0x1440] sm:$0xff] }
 0x387   :  { %4011 = vmatpush1.msra.mxu1 %v1057_v6  ;;  %3967 = vmatprep.subr.mxu0 %v876_v7  ;;  %v1344_v6 = vld [vmem:[#allocation3 + $0x2688] sm:$0xff]  ;;  %v758_v7 = vld [vmem:[#allocation3 + $0x1438] sm:$0xff] }
 0x388   :  { %4012 = vmatprep.subr.mxu1 %v1045_v39  ;;  %3968 = vmatpush2.msra.mxu0 %v875_v10  ;;  %v1343_v39 = vld [vmem:[#allocation3 + $0x2680] sm:$0xff]  ;;  %v746_v10 = vld [vmem:[#allocation3 + $0x13d8] sm:$0xff] }
 0x389   :  { %4013 = vmatpush1.msra.mxu1 %v1044_v18  ;;  %3969 = vmatprep.subr.mxu0 %v863_v20  ;;  %v1331_v18 = vld [vmem:[#allocation3 + $0x2620] sm:$0xff]  ;;  %v745_v20 = vld [vmem:[#allocation3 + $0x13d0] sm:$0xff] }
 0x38a   :  { %4014 = vmatprep.subr.mxu1 %v1032_v26  ;;  %3970 = vmatpush2.msra.mxu0 %v862_v44  ;;  %v1330_v26 = vld [vmem:[#allocation3 + $0x2618] sm:$0xff] }
 0x38b   :  { %4015 = vmatpush1.msra.mxu1 %v1031_v19  ;;  %3971 = vmatprep.subr.mxu0 %v850_v31  ;;  %v1318_v44 = vld [vmem:[#allocation3 + $0x25b8] sm:$0xff]  ;;  %v1565_v19 = vld [vmem:[#allocation3 + $0x2d70] sm:$0xff] }
 0x38c   :  { %4016 = vmatprep.subr.mxu1 %v1019_v32  ;;  %3972 = vmatpush2.msra.mxu0 %v849_v33  ;;  %v1317_v31 = vld [vmem:[#allocation3 + $0x25b0] sm:$0xff]  ;;  %v1564_v32 = vld [vmem:[#allocation3 + $0x2d68] sm:$0xff] }
 0x38d   :  { %4017 = vmatpush1.msra.mxu1 %v1018_v5  ;;  %3973 = vmatprep.subr.mxu0 %v837_v58  ;;  %v1305_v33 = vld [vmem:[#allocation3 + $0x2550] sm:$0xff]  ;;  %v1552_v5 = vld [vmem:[#allocation3 + $0x2d08] sm:$0xff] }
 0x38e   :  { %4018 = vmatprep.subr.mxu1 %v1006_v34  ;;  %3974 = vmatpush2.msra.mxu0 %v836_v36  ;;  %v1304_v58 = vld [vmem:[#allocation3 + $0x2548] sm:$0xff]  ;;  %v1551_v34 = vld [vmem:[#allocation3 + $0x2d00] sm:$0xff] }
 0x38f   :  { %4019 = vmatpush1.msra.mxu1 %v1005_v35  ;;  %3975 = vmatprep.subr.mxu0 %v824_v38  ;;  %v1292_v36 = vld [vmem:[#allocation3 + $0x24e8] sm:$0xff]  ;;  %v1539_v35 = vld [vmem:[#allocation3 + $0x2ca0] sm:$0xff] }
 0x390   :  { %4020 = vmatprep.subr.mxu1 %v993_v13  ;;  %3976 = vmatpush2.msra.mxu0 %v823_v29  ;;  %v1291_v38 = vld [vmem:[#allocation3 + $0x24e0] sm:$0xff]  ;;  %v1538_v13 = vld [vmem:[#allocation3 + $0x2c98] sm:$0xff] }
 0x391   :  { %4021 = vmatpush1.msra.mxu1 %v992_v40  ;;  %3977 = vmatprep.subr.mxu0 %v811_v41  ;;  %v1279_v29 = vld [vmem:[#allocation3 + $0x2480] sm:$0xff]  ;;  %v1526_v40 = vld [vmem:[#allocation3 + $0x2c38] sm:$0xff] }
 0x392   :  { %4022 = vmatprep.subr.mxu1 %v980_v45  ;;  %3978 = vmatpush2.msra.mxu0 %v810_v46  ;;  %v1278_v41 = vld [vmem:[#allocation3 + $0x2478] sm:$0xff]  ;;  %v1525_v45 = vld [vmem:[#allocation3 + $0x2c30] sm:$0xff] }
 0x393   :  { %4023 = vmatpush1.msra.mxu1 %v979_v47  ;;  %3979 = vmatprep.subr.mxu0 %v798_v48  ;;  %v1266_v46 = vld [vmem:[#allocation3 + $0x2418] sm:$0xff]  ;;  %v1513_v47 = vld [vmem:[#allocation3 + $0x2bd0] sm:$0xff] }
 0x394   :  { %4024 = vmatprep.subr.mxu1 %v967_v49  ;;  %3980 = vmatpush2.msra.mxu0 %v797_v50  ;;  %v1265_v48 = vld [vmem:[#allocation3 + $0x2410] sm:$0xff]  ;;  %v1512_v49 = vld [vmem:[#allocation3 + $0x2bc8] sm:$0xff] }
 0x395   :  { %4025 = vmatpush1.msra.mxu1 %v966_v54  ;;  %3981 = vmatprep.subr.mxu0 %v785_v56  ;;  %v1253_v50 = vld [vmem:[#allocation3 + $0x23b0] sm:$0xff]  ;;  %v1500_v54 = vld [vmem:[#allocation3 + $0x2b68] sm:$0xff] }
 0x396   :  { %4026 = vmatprep.subr.mxu1 %v954_v57  ;;  %3982 = vmatpush2.msra.mxu0 %v784_v59  ;;  %v1252_v56 = vld [vmem:[#allocation3 + $0x23a8] sm:$0xff]  ;;  %v1499_v57 = vld [vmem:[#allocation3 + $0x2b60] sm:$0xff] }
 0x397   :  { %4027 = vmatpush1.msra.mxu1 %v953_v60  ;;  %3983 = vmatprep.subr.mxu0 %v772_v61  ;;  %v1240_v59 = vld [vmem:[#allocation3 + $0x2348] sm:$0xff]  ;;  %v1487_v60 = vld [vmem:[#allocation3 + $0x2b00] sm:$0xff] }
 0x398   :  { %4028 = vmatprep.subr.mxu1 %v1357_v62  ;;  %3984 = vmatpush2.msra.mxu0 %v771_v0  ;;  %v1239_v61 = vld [vmem:[#allocation3 + $0x2340] sm:$0xff]  ;;  %v1486_v62 = vld [vmem:[#allocation3 + $0x2af8] sm:$0xff] }
 0x399   :  { %4029 = vmatpush2.msra.mxu1 %v1356_v1  ;;  %3985 = vmatprep.subr.mxu0 %v759_v4  ;;  %v1227_v0 = vld [vmem:[#allocation3 + $0x22e0] sm:$0xff]  ;;  %v1474_v1 = vld [vmem:[#allocation3 + $0x2a98] sm:$0xff] }
 0x39a   :  { %4030 = vmatprep.subr.mxu1 %v1344_v6  ;;  %3986 = vmatpush2.msra.mxu0 %v758_v7  ;;  %v1226_v4 = vld [vmem:[#allocation3 + $0x22d8] sm:$0xff]  ;;  %v1473_v6 = vld [vmem:[#allocation3 + $0x2a90] sm:$0xff] }
 0x39b   :  { %4031 = vmatpush2.msra.mxu1 %v1343_v39  ;;  %3987 = vmatprep.subr.mxu0 %v746_v10  ;;  %v1214_v7 = vld [vmem:[#allocation3 + $0x2278] sm:$0xff]  ;;  %v1461_v39 = vld [vmem:[#allocation3 + $0x2a30] sm:$0xff] }
 0x39c   :  { %4032 = vmatprep.subr.mxu1 %v1331_v18  ;;  %3988 = vmatpush2.msra.mxu0 %v745_v20  ;;  %v1213_v10 = vld [vmem:[#allocation3 + $0x2270] sm:$0xff]  ;;  %v1460_v18 = vld [vmem:[#allocation3 + $0x2a28] sm:$0xff] }
 0x39d   :  { %3989 = vmatprep.mubr.f32.mxu0 %v5483_v11  ;;  %4033 = vmatpush2.msra.mxu1 %v1330_v26  ;;  %v1201_v20 = vld [vmem:[#allocation3 + $0x2210] sm:$0xff]  ;;  %v1448_v26 = vld [vmem:[#allocation3 + $0x29c8] sm:$0xff] }
 0x39e   :  { %3990 = vmatmul.mubr.f32.vlgmr.msra.gmra.mxu0 %v5475_v2  ;;  %4034 = vmatprep.subr.mxu1 %v1318_v44  ;;  %v1200_v44 = vld [vmem:[#allocation3 + $0x2208] sm:$0xff] }
 0x39f   :  { %4067 = vmatprep.subr.mxu0 %v1565_v19  ;;  %4035 = vmatpush2.msra.mxu1 %v1317_v31  ;;  %v1447_v19 = vld [vmem:[#allocation3 + $0x29c0] sm:$0xff]  ;;  %v1188_v31 = vld [vmem:[#allocation3 + $0x21a8] sm:$0xff] }
 0x3a0   :  { %4068 = vmatpush1.msra.mxu0 %v1564_v32  ;;  %4036 = vmatprep.subr.mxu1 %v1305_v33  ;;  %v1435_v32 = vld [vmem:[#allocation3 + $0x2960] sm:$0xff] }
 0x3a1   :  { %4069 = vmatprep.subr.mxu0 %v1552_v5  ;;  %4037 = vmatpush2.msra.mxu1 %v1304_v58  ;;  %v1187_v33 = vld [vmem:[#allocation3 + $0x21a0] sm:$0xff]  ;;  %v1434_v5 = vld [vmem:[#allocation3 + $0x2958] sm:$0xff] }
 0x3a2   :  { %4070 = vmatpush1.msra.mxu0 %v1551_v34  ;;  %4038 = vmatprep.subr.mxu1 %v1292_v36  ;;  %v1175_v58 = vld [vmem:[#allocation3 + $0x2140] sm:$0xff]  ;;  %v1422_v34 = vld [vmem:[#allocation3 + $0x28f8] sm:$0xff] }
 0x3a3   :  { %4071 = vmatprep.subr.mxu0 %v1539_v35  ;;  %4039 = vmatpush2.msra.mxu1 %v1291_v38  ;;  %v1174_v36 = vld [vmem:[#allocation3 + $0x2138] sm:$0xff]  ;;  %v1421_v35 = vld [vmem:[#allocation3 + $0x28f0] sm:$0xff] }
 0x3a4   :  { %4072 = vmatpush1.msra.mxu0 %v1538_v13  ;;  %4040 = vmatprep.subr.mxu1 %v1279_v29  ;;  %v1162_v29 = vld [vmem:[#allocation3 + $0x20d8] sm:$0xff] }
 0x3a5   :  { %4073 = vmatprep.subr.mxu0 %v1526_v40  ;;  %4041 = vmatpush2.msra.mxu1 %v1278_v41  ;;  %v1409_v40 = vld [vmem:[#allocation3 + $0x2890] sm:$0xff] }
 0x3a6   :  { %4074 = vmatpush1.msra.mxu0 %v1525_v45  ;;  %4042 = vmatprep.subr.mxu1 %v1266_v46  ;;  %v1161_v45 = vld [vmem:[#allocation3 + $0x20d0] sm:$0xff] }
 0x3a7   :  { %4075 = vmatprep.subr.mxu0 %v1513_v47  ;;  %4043 = vmatpush2.msra.mxu1 %v1265_v48  ;;  %v1408_v48 = vld [vmem:[#allocation3 + $0x2888] sm:$0xff] }
 0x3a8   :  { %4076 = vmatpush1.msra.mxu0 %v1512_v49  ;;  %4044 = vmatprep.subr.mxu1 %v1253_v50  ;;  %v1396_v50 = vld [vmem:[#allocation3 + $0x2828] sm:$0xff] }
 0x3a9   :  { %4077 = vmatprep.subr.mxu0 %v1500_v54  ;;  %4045 = vmatpush2.msra.mxu1 %v1252_v56  ;;  %v1981_v54 = vld [vmem:[#allocation3 + $0x3a70] sm:$0xff]  ;;  %v1395_v56 = vld [vmem:[#allocation3 + $0x2820] sm:$0xff] }
 0x3aa   :  { %4078 = vmatpush1.msra.mxu0 %v1499_v57  ;;  %4046 = vmatprep.subr.mxu1 %v1240_v59  ;;  %v1980_v57 = vld [vmem:[#allocation3 + $0x3a68] sm:$0xff]  ;;  %v1383_v59 = vld [vmem:[#allocation3 + $0x27c0] sm:$0xff] }
 0x3ab   :  { %4079 = vmatprep.subr.mxu0 %v1487_v60  ;;  %4047 = vmatpush2.msra.mxu1 %v1239_v61  ;;  %v1968_v60 = vld [vmem:[#allocation3 + $0x3a08] sm:$0xff]  ;;  %v1382_v61 = vld [vmem:[#allocation3 + $0x27b8] sm:$0xff] }
 0x3ac   :  { %4080 = vmatpush1.msra.mxu0 %v1486_v62  ;;  %4048 = vmatprep.subr.mxu1 %v1227_v0  ;;  %v1967_v62 = vld [vmem:[#allocation3 + $0x3a00] sm:$0xff]  ;;  %v1370_v0 = vld [vmem:[#allocation3 + $0x2758] sm:$0xff] }
 0x3ad   :  { %4081 = vmatprep.subr.mxu0 %v1474_v1  ;;  %4049 = vmatpush2.msra.mxu1 %v1226_v4  ;;  %v1955_v1 = vld [vmem:[#allocation3 + $0x39a0] sm:$0xff]  ;;  %v1369_v4 = vld [vmem:[#allocation3 + $0x2750] sm:$0xff] }
 0x3ae   :  { %4082 = vmatpush1.msra.mxu0 %v1473_v6  ;;  %4050 = vmatprep.subr.mxu1 %v1214_v7  ;;  %v1954_v6 = vld [vmem:[#allocation3 + $0x3998] sm:$0xff]  ;;  %v1773_v7 = vld [vmem:[#allocation3 + $0x33f0] sm:$0xff] }
 0x3af   :  { %4083 = vmatprep.subr.mxu0 %v1461_v39  ;;  %4051 = vmatpush2.msra.mxu1 %v1213_v10  ;;  %v1942_v39 = vld [vmem:[#allocation3 + $0x3938] sm:$0xff]  ;;  %v1772_v10 = vld [vmem:[#allocation3 + $0x33e8] sm:$0xff] }
 0x3b0   :  { %4084 = vmatpush1.msra.mxu0 %v1460_v18  ;;  %4052 = vmatprep.subr.mxu1 %v1201_v20  ;;  %v1941_v18 = vld [vmem:[#allocation3 + $0x3930] sm:$0xff]  ;;  %v1760_v20 = vld [vmem:[#allocation3 + $0x3388] sm:$0xff] }
 0x3b1   :  { %4085 = vmatprep.subr.mxu0 %v1448_v26  ;;  %4053 = vmatpush2.msra.mxu1 %v1200_v44  ;;  %v1929_v26 = vld [vmem:[#allocation3 + $0x38d0] sm:$0xff]  ;;  %v1759_v44 = vld [vmem:[#allocation3 + $0x3380] sm:$0xff] }
 0x3b2   :  { %4086 = vmatpush1.msra.mxu0 %v1447_v19  ;;  %4054 = vmatprep.subr.mxu1 %v1188_v31  ;;  %v3565_v38 = vpop.f32.mrf.mxu0  ;;  %v1928_v19 = vld [vmem:[#allocation3 + $0x38c8] sm:$0xff]  ;;  %v1747_v31 = vld [vmem:[#allocation3 + $0x3320] sm:$0xff] }
 0x3b3   :  { %4087 = vmatprep.subr.mxu0 %v1435_v32  ;;  %v3636_v13 = vpop.f32.mrf.mxu1  ;;  %4055 = vmatpush2.msra.mxu1 %v1187_v33  ;;  %v1916_v32 = vld [vmem:[#allocation3 + $0x3868] sm:$0xff]  ;;  %v1746_v33 = vld [vmem:[#allocation3 + $0x3318] sm:$0xff] }
 0x3b4   :  { %4088 = vmatpush1.msra.mxu0 %v1434_v5  ;;  %v5641_v41 = vadd.f32 %v3636_v13, %v3565_v38  ;;  %4056 = vmatprep.subr.mxu1 %v1175_v58  ;;  %v3567_v46 = vpop.f32.mrf.mxu0  ;;  %v1915_v5 = vld [vmem:[#allocation3 + $0x3860] sm:$0xff]  ;;  %v1734_v58 = vld [vmem:[#allocation3 + $0x32b8] sm:$0xff]  ;;  %v1721_v38 = vld [vmem:[#allocation3 + $0x3250] sm:$0xff] }
 0x3b5   :  { %4089 = vmatprep.subr.mxu0 %v1422_v34  ;;  %v3638_v47 = vpop.f32.mrf.mxu1  ;;  %4057 = vmatpush2.msra.mxu1 %v1174_v36  ;;  %v1903_v34 = vld [vmem:[#allocation3 + $0x3800] sm:$0xff]  ;;  %v1733_v36 = vld [vmem:[#allocation3 + $0x32b0] sm:$0xff]  ;;  %v1890_v13 = vld [vmem:[#allocation3 + $0x3798] sm:$0xff] }
 0x3b6   :  { %4090 = vmatpush1.msra.mxu0 %v1421_v35  ;;  %v5643_v49 = vadd.f32 %v3638_v47, %v3567_v46  ;;  %4058 = vmatprep.subr.mxu1 %v1162_v29  ;;  %v1902_v35 = vld [vmem:[#allocation3 + $0x37f8] sm:$0xff]  ;;  %v1720_v29 = vld [vmem:[#allocation3 + $0x3248] sm:$0xff]  ;;  %v1877_v46 = vld [vmem:[#allocation3 + $0x3730] sm:$0xff] }
 0x3b7   :  { %4091 = vmatprep.subr.mxu0 %v1409_v40  ;;  %4059 = vmatpush2.msra.mxu1 %v1161_v45  ;;  %v1889_v40 = vld [vmem:[#allocation3 + $0x3790] sm:$0xff]  ;;  %v1708_v45 = vld [vmem:[#allocation3 + $0x31e8] sm:$0xff]  ;;  %v1707_v47 = vld [vmem:[#allocation3 + $0x31e0] sm:$0xff] }
 0x3b8   :  { %4060 = vmatprep.mubr.f32.mxu1 %v5500_v27  ;;  %4092 = vmatpush1.msra.mxu0 %v1408_v48  ;;  %v1876_v48 = vld [vmem:[#allocation3 + $0x3728] sm:$0xff] }
 0x3b9   :  { %4061 = vmatmul.mubr.f32.vlgmr.msra.gmra.mxu1 %v5493_v17  ;;  %4093 = vmatprep.subr.mxu0 %v1396_v50  ;;  %v1695_v50 = vld [vmem:[#allocation3 + $0x3180] sm:$0xff] }
 0x3ba   :  { %4138 = vmatprep.subr.mxu1 %v1981_v54  ;;  %4094 = vmatpush1.msra.mxu0 %v1395_v56  ;;  %v1864_v54 = vld [vmem:[#allocation3 + $0x36c8] sm:$0xff]  ;;  %v1694_v56 = vld [vmem:[#allocation3 + $0x3178] sm:$0xff] }
 0x3bb   :  { %4139 = vmatpush1.msra.mxu1 %v1980_v57  ;;  %4095 = vmatprep.subr.mxu0 %v1383_v59  ;;  %v1863_v57 = vld [vmem:[#allocation3 + $0x36c0] sm:$0xff]  ;;  %v1682_v59 = vld [vmem:[#allocation3 + $0x3118] sm:$0xff] }
 0x3bc   :  { %4140 = vmatprep.subr.mxu1 %v1968_v60  ;;  %4096 = vmatpush1.msra.mxu0 %v1382_v61  ;;  %v1851_v60 = vld [vmem:[#allocation3 + $0x3660] sm:$0xff]  ;;  %v1681_v61 = vld [vmem:[#allocation3 + $0x3110] sm:$0xff] }
 0x3bd   :  { %4141 = vmatpush1.msra.mxu1 %v1967_v62  ;;  %4097 = vmatprep.subr.mxu0 %v1370_v0  ;;  %v1850_v62 = vld [vmem:[#allocation3 + $0x3658] sm:$0xff]  ;;  %v1669_v0 = vld [vmem:[#allocation3 + $0x30b0] sm:$0xff] }
 0x3be   :  { %4142 = vmatprep.subr.mxu1 %v1955_v1  ;;  %4098 = vmatpush1.msra.mxu0 %v1369_v4  ;;  %v1838_v1 = vld [vmem:[#allocation3 + $0x35f8] sm:$0xff]  ;;  %v1668_v4 = vld [vmem:[#allocation3 + $0x30a8] sm:$0xff] }
 0x3bf   :  { %4143 = vmatpush1.msra.mxu1 %v1954_v6  ;;  %4099 = vmatprep.subr.mxu0 %v1773_v7  ;;  %v1837_v6 = vld [vmem:[#allocation3 + $0x35f0] sm:$0xff]  ;;  %v1656_v7 = vld [vmem:[#allocation3 + $0x3048] sm:$0xff] }
 0x3c0   :  { %4144 = vmatprep.subr.mxu1 %v1942_v39  ;;  %4100 = vmatpush2.msra.mxu0 %v1772_v10  ;;  %v1825_v39 = vld [vmem:[#allocation3 + $0x3590] sm:$0xff]  ;;  %v1655_v10 = vld [vmem:[#allocation3 + $0x3040] sm:$0xff] }
 0x3c1   :  { %4145 = vmatpush1.msra.mxu1 %v1941_v18  ;;  %4101 = vmatprep.subr.mxu0 %v1760_v20  ;;  %v1824_v18 = vld [vmem:[#allocation3 + $0x3588] sm:$0xff]  ;;  %v1643_v20 = vld [vmem:[#allocation3 + $0x2fe0] sm:$0xff] }
 0x3c2   :  { %4146 = vmatprep.subr.mxu1 %v1929_v26  ;;  %4102 = vmatpush2.msra.mxu0 %v1759_v44  ;;  %v1812_v26 = vld [vmem:[#allocation3 + $0x3528] sm:$0xff]  ;;  %v1642_v44 = vld [vmem:[#allocation3 + $0x2fd8] sm:$0xff] }
 0x3c3   :  { %4147 = vmatpush1.msra.mxu1 %v1928_v19  ;;  %4103 = vmatprep.subr.mxu0 %v1747_v31  ;;  %v1811_v19 = vld [vmem:[#allocation3 + $0x3520] sm:$0xff]  ;;  %v1630_v31 = vld [vmem:[#allocation3 + $0x2f78] sm:$0xff] }
 0x3c4   :  { %4148 = vmatprep.subr.mxu1 %v1916_v32  ;;  %4104 = vmatpush2.msra.mxu0 %v1746_v33  ;;  %v1799_v32 = vld [vmem:[#allocation3 + $0x34c0] sm:$0xff]  ;;  %v1629_v33 = vld [vmem:[#allocation3 + $0x2f70] sm:$0xff] }
 0x3c5   :  { %4149 = vmatpush1.msra.mxu1 %v1915_v5  ;;  %4105 = vmatprep.subr.mxu0 %v1734_v58  ;;  %v1798_v5 = vld [vmem:[#allocation3 + $0x34b8] sm:$0xff]  ;;  %v1617_v58 = vld [vmem:[#allocation3 + $0x2f10] sm:$0xff] }
 0x3c6   :  { %4150 = vmatprep.subr.mxu1 %v1903_v34  ;;  %4106 = vmatpush2.msra.mxu0 %v1733_v36  ;;  %v1786_v34 = vld [vmem:[#allocation3 + $0x3458] sm:$0xff]  ;;  %v1616_v36 = vld [vmem:[#allocation3 + $0x2f08] sm:$0xff] }
 0x3c7   :  { %4151 = vmatpush1.msra.mxu1 %v1902_v35  ;;  %4107 = vmatprep.subr.mxu0 %v1721_v38  ;;  %v1785_v35 = vld [vmem:[#allocation3 + $0x3450] sm:$0xff]  ;;  %v1604_v38 = vld [vmem:[#allocation3 + $0x2ea8] sm:$0xff] }
 0x3c8   :  { %4152 = vmatprep.subr.mxu1 %v1890_v13  ;;  %4108 = vmatpush2.msra.mxu0 %v1720_v29  ;;  %v2020_v13 = vld [vmem:[#allocation3 + $0x3ba8] sm:$0xff]  ;;  %v1603_v29 = vld [vmem:[#allocation3 + $0x2ea0] sm:$0xff] }
 0x3c9   :  { %4153 = vmatpush1.msra.mxu1 %v1889_v40  ;;  %4109 = vmatprep.subr.mxu0 %v1708_v45  ;;  %v2019_v40 = vld [vmem:[#allocation3 + $0x3ba0] sm:$0xff] }
 0x3ca   :  { %4154 = vmatprep.subr.mxu1 %v1877_v46  ;;  %4110 = vmatpush2.msra.mxu0 %v1707_v47  ;;  %v1591_v45 = vld [vmem:[#allocation3 + $0x2e40] sm:$0xff]  ;;  %v1590_v47 = vld [vmem:[#allocation3 + $0x2e38] sm:$0xff] }
 0x3cb   :  { %4155 = vmatpush1.msra.mxu1 %v1876_v48  ;;  %4111 = vmatprep.subr.mxu0 %v1695_v50  ;;  %v2007_v46 = vld [vmem:[#allocation3 + $0x3b40] sm:$0xff]  ;;  %v2006_v48 = vld [vmem:[#allocation3 + $0x3b38] sm:$0xff] }
 0x3cc   :  { %4156 = vmatprep.subr.mxu1 %v1864_v54  ;;  %4112 = vmatpush2.msra.mxu0 %v1694_v56  ;;  %v1578_v50 = vld [vmem:[#allocation3 + $0x2dd8] sm:$0xff]  ;;  %v1577_v56 = vld [vmem:[#allocation3 + $0x2dd0] sm:$0xff] }
 0x3cd   :  { %4157 = vmatpush1.msra.mxu1 %v1863_v57  ;;  %4113 = vmatprep.subr.mxu0 %v1682_v59  ;;  %v1994_v54 = vld [vmem:[#allocation3 + $0x3ad8] sm:$0xff]  ;;  %v1993_v57 = vld [vmem:[#allocation3 + $0x3ad0] sm:$0xff] }
 0x3ce   :  { %4158 = vmatprep.subr.mxu1 %v1851_v60  ;;  %4114 = vmatpush2.msra.mxu0 %v1681_v61  ;;  %v526_v59 = vld [vmem:[#allocation3 + $0xcf8] sm:$0xff] }
 0x3cf   :  { %4159 = vmatpush1.msra.mxu1 %v1850_v62  ;;  %4115 = vmatprep.subr.mxu0 %v1669_v0  ;;  %v942_v60 = vld [vmem:[#allocation3 + $0x19f8] sm:$0xff]  ;;  %v513_v0 = vld [vmem:[#allocation3 + $0xc90] sm:$0xff] }
 0x3d0   :  { %4160 = vmatprep.subr.mxu1 %v1838_v1  ;;  %4116 = vmatpush2.msra.mxu0 %v1668_v4  ;;  %v318_v61 = vld [vmem:[#allocation3 + $0x678] sm:$0xff]  ;;  %v929_v1 = vld [vmem:[#allocation3 + $0x1990] sm:$0xff] }
 0x3d1   :  { %4161 = vmatpush1.msra.mxu1 %v1837_v6  ;;  %4117 = vmatprep.subr.mxu0 %v1656_v7  ;;  %v734_v62 = vld [vmem:[#allocation3 + $0x1378] sm:$0xff]  ;;  %v5654_v4 = vld.sshfl [vmem:[%s5848_s0 + $0x10] sm:$0x33 pattern:$0x76325410]  ;;  %s5389_s0 = smov 112  }
 0x3d2   :  { %4162 = vmatprep.subr.mxu1 %v1825_v39  ;;  %4118 = vmatpush2.msra.mxu0 %v1655_v10  ;;  %v305_v6 = vld [vmem:[#allocation3 + $0x610] sm:$0xff]  ;;  %v500_v39 = vld [vmem:[#allocation3 + $0xc28] sm:$0xff] }
 0x3d3   :  { %4163 = vmatpush1.msra.mxu1 %v1824_v18  ;;  %4119 = vmatprep.subr.mxu0 %v1643_v20  ;;  %v721_v7 = vld [vmem:[#allocation3 + $0x1310] sm:$0xff]  ;;  %v916_v10 = vld [vmem:[#allocation3 + $0x1928] sm:$0xff] }
 0x3d4   :  { %4164 = vmatprep.subr.mxu1 %v1812_v26  ;;  %4120 = vmatpush2.msra.mxu0 %v1642_v44  ;;  %v292_v18 = vld [vmem:[#allocation3 + $0x5a8] sm:$0xff]  ;;  %v487_v26 = vld [vmem:[#allocation3 + $0xbc0] sm:$0xff] }
 0x3d5   :  { %4165 = vmatpush1.msra.mxu1 %v1811_v19  ;;  %4121 = vmatprep.subr.mxu0 %v1630_v31  ;;  %v708_v20 = vld [vmem:[#allocation3 + $0x12a8] sm:$0xff]  ;;  %v903_v44 = vld [vmem:[#allocation3 + $0x18c0] sm:$0xff] }
 0x3d6   :  { %4166 = vmatprep.subr.mxu1 %v1799_v32  ;;  %4122 = vmatpush2.msra.mxu0 %v1629_v33  ;;  %v279_v19 = vld [vmem:[#allocation3 + $0x540] sm:$0xff]  ;;  %v474_v32 = vld [vmem:[#allocation3 + $0xb58] sm:$0xff] }
 0x3d7   :  { %4167 = vmatpush1.msra.mxu1 %v1798_v5  ;;  %4123 = vmatprep.subr.mxu0 %v1617_v58  ;;  %v695_v31 = vld [vmem:[#allocation3 + $0x1240] sm:$0xff]  ;;  %v890_v33 = vld [vmem:[#allocation3 + $0x1858] sm:$0xff] }
 0x3d8   :  { %4168 = vmatprep.subr.mxu1 %v1786_v34  ;;  %4124 = vmatpush2.msra.mxu0 %v1616_v36  ;;  %v266_v5 = vld [vmem:[#allocation3 + $0x4d8] sm:$0xff]  ;;  %v461_v34 = vld [vmem:[#allocation3 + $0xaf0] sm:$0xff] }
 0x3d9   :  { %4169 = vmatpush1.msra.mxu1 %v1785_v35  ;;  %4125 = vmatprep.subr.mxu0 %v1604_v38  ;;  %v682_v58 = vld [vmem:[#allocation3 + $0x11d8] sm:$0xff]  ;;  %v877_v36 = vld [vmem:[#allocation3 + $0x17f0] sm:$0xff] }
 0x3da   :  { %4196 = vmatprep.subr.mxu1 %v2020_v13  ;;  %4126 = vmatpush2.msra.mxu0 %v1603_v29  ;;  %v253_v35 = vld [vmem:[#allocation3 + $0x470] sm:$0xff]  ;;  %v448_v13 = vld [vmem:[#allocation3 + $0xa88] sm:$0xff] }
 0x3db   :  { %4197 = vmatpush2.msra.mxu1 %v2019_v40  ;;  %4127 = vmatprep.subr.mxu0 %v1591_v45  ;;  %v669_v38 = vld [vmem:[#allocation3 + $0x1170] sm:$0xff]  ;;  %v864_v29 = vld [vmem:[#allocation3 + $0x1788] sm:$0xff] }
 0x3dc   :  { %4198 = vmatprep.subr.mxu1 %v2007_v46  ;;  %4128 = vmatpush2.msra.mxu0 %v1590_v47  ;;  %v240_v40 = vld [vmem:[#allocation3 + $0x408] sm:$0xff]  ;;  %v435_v46 = vld [vmem:[#allocation3 + $0xa20] sm:$0xff] }
 0x3dd   :  { %4199 = vmatpush2.msra.mxu1 %v2006_v48  ;;  %4129 = vmatprep.subr.mxu0 %v1578_v50  ;;  %v656_v45 = vld [vmem:[#allocation3 + $0x1108] sm:$0xff]  ;;  %v851_v47 = vld [vmem:[#allocation3 + $0x1720] sm:$0xff] }
 0x3de   :  { %4200 = vmatprep.subr.mxu1 %v1994_v54  ;;  %4130 = vmatpush2.msra.mxu0 %v1577_v56  ;;  %v227_v48 = vld [vmem:[#allocation3 + $0x3a0] sm:$0xff]  ;;  %v422_v54 = vld [vmem:[#allocation3 + $0x9b8] sm:$0xff] }
 0x3df   :  { %4131 = vmatprep.mubr.f32.mxu0 %v5504_v53  ;;  %4201 = vmatpush2.msra.mxu1 %v1993_v57  ;;  %v643_v50 = vld [vmem:[#allocation3 + $0x10a0] sm:$0xff]  ;;  %v838_v56 = vld [vmem:[#allocation3 + $0x16b8] sm:$0xff] }
 0x3e0   :  { %4132 = vmatmul.mubr.f32.vlgmr.msra.gmra.mxu0 %v5496_v22  ;;  %4995 = vmatprep.mubr.msk.f32.mxu1 %vm2076_vm0, %v5513_v51  ;;  %v214_v57 = vld [vmem:[#allocation3 + $0x338] sm:$0xff] }
 0x3e1   :  { %5003 = vmatprep.subr.mxu0 %v526_v59  ;;  %5038 = vmatprep.subr.mxu1 %v942_v60  ;;  %v630_v59 = vld [vmem:[#allocation3 + $0x1038] sm:$0xff]  ;;  %v409_v60 = vld [vmem:[#allocation3 + $0x950] sm:$0xff] }
 0x3e2   :  { %4203 = vmatmul.mubr.f32.vlgmr.msra.gmra.mxu1 %v5654_v4  ;;  %5004 = vmatpush3.msra.mxu0 %v318_v61  ;;  %v825_v61 = vld [vmem:[#allocation3 + $0x1650] sm:$0xff] }
 0x3e3   :  { %5039 = vmatpush3.msra.mxu1 %v734_v62  ;;  %5005 = vmatprep.subr.mxu0 %v513_v0  ;;  %v201_v62 = vld [vmem:[#allocation3 + $0x2d0] sm:$0xff] }
 0x3e4   :  { %5040 = vmatprep.subr.mxu1 %v929_v1  ;;  %5006 = vmatpush3.msra.mxu0 %v305_v6  ;;  %v617_v0 = vld [vmem:[#allocation3 + $0xfd0] sm:$0xff]  ;;  %v396_v1 = vld [vmem:[#allocation3 + $0x8e8] sm:$0xff] }
 0x3e5   :  { %5041 = vmatpush3.msra.mxu1 %v721_v7  ;;  %5007 = vmatprep.subr.mxu0 %v500_v39  ;;  %v812_v6 = vld [vmem:[#allocation3 + $0x15e8] sm:$0xff] }
 0x3e6   :  { %5042 = vmatprep.subr.mxu1 %v916_v10  ;;  %5008 = vmatpush3.msra.mxu0 %v292_v18  ;;  %v188_v7 = vld [vmem:[#allocation3 + $0x268] sm:$0xff]  ;;  %v383_v18 = vld [vmem:[#allocation3 + $0x880] sm:$0xff] }
 0x3e7   :  { %5043 = vmatpush3.msra.mxu1 %v708_v20  ;;  %5009 = vmatprep.subr.mxu0 %v487_v26  ;;  %v604_v39 = vld [vmem:[#allocation3 + $0xf68] sm:$0xff]  ;;  %v799_v20 = vld [vmem:[#allocation3 + $0x1580] sm:$0xff] }
 0x3e8   :  { %5044 = vmatprep.subr.mxu1 %v903_v44  ;;  %5010 = vmatpush3.msra.mxu0 %v279_v19  ;;  %v175_v44 = vld [vmem:[#allocation3 + $0x200] sm:$0xff] }
 0x3e9   :  { %5045 = vmatpush3.msra.mxu1 %v695_v31  ;;  %5011 = vmatprep.subr.mxu0 %v474_v32  ;;  %v591_v19 = vld [vmem:[#allocation3 + $0xf00] sm:$0xff] }
 0x3ea   :  { %5046 = vmatprep.subr.mxu1 %v890_v33  ;;  %5012 = vmatpush3.msra.mxu0 %v266_v5  ;;  %v370_v33 = vld [vmem:[#allocation3 + $0x818] sm:$0xff] }
 0x3eb   :  { %5047 = vmatpush3.msra.mxu1 %v682_v58  ;;  %5013 = vmatprep.subr.mxu0 %v461_v34  ;;  %v786_v5 = vld [vmem:[#allocation3 + $0x1518] sm:$0xff] }
 0x3ec   :  { %5048 = vmatprep.subr.mxu1 %v877_v36  ;;  %5014 = vmatpush3.msra.mxu0 %v253_v35  ;;  %v162_v36 = vld [vmem:[#allocation3 + $0x198] sm:$0xff] }
 0x3ed   :  { %5049 = vmatpush3.msra.mxu1 %v669_v38  ;;  %5015 = vmatprep.subr.mxu0 %v448_v13  ;;  %v578_v35 = vld [vmem:[#allocation3 + $0xe98] sm:$0xff]  ;;  %v773_v13 = vld [vmem:[#allocation3 + $0x14b0] sm:$0xff] }
 0x3ee   :  { %5050 = vmatprep.subr.mxu1 %v864_v29  ;;  %5016 = vmatpush3.msra.mxu0 %v240_v40  ;;  %v149_v40 = vld [vmem:[#allocation3 + $0x130] sm:$0xff] }
 0x3ef   :  { %5051 = vmatpush3.msra.mxu1 %v656_v45  ;;  %5017 = vmatprep.subr.mxu0 %v435_v46  ;;  %v565_v45 = vld [vmem:[#allocation3 + $0xe30] sm:$0xff]  ;;  %v760_v46 = vld [vmem:[#allocation3 + $0x1448] sm:$0xff] }
 0x3f0   :  { %5052 = vmatprep.subr.mxu1 %v851_v47  ;;  %5018 = vmatpush3.msra.mxu0 %v227_v48  ;;  %v136_v47 = vld [vmem:[#allocation3 + $0xc8] sm:$0xff] }
 0x3f1   :  { %5053 = vmatpush3.msra.mxu1 %v643_v50  ;;  %5019 = vmatprep.subr.mxu0 %v422_v54  ;;  %v552_v48 = vld [vmem:[#allocation3 + $0xdc8] sm:$0xff]  ;;  %v331_v50 = vld [vmem:[#allocation3 + $0x6e0] sm:$0xff] }
 0x3f2   :  { %5054 = vmatprep.subr.mxu1 %v838_v56  ;;  %5020 = vmatpush3.msra.mxu0 %v214_v57  ;;  %v747_v54 = vld [vmem:[#allocation3 + $0x13e0] sm:$0xff] }
 0x3f3   :  { %5055 = vmatpush3.msra.mxu1 %v630_v59  ;;  %5021 = vmatprep.subr.mxu0 %v409_v60  ;;  %v123_v56 = vld [vmem:[#allocation3 + $0x60] sm:$0xff]  ;;  %v1358_v59 = vld [vmem:[#allocation3 + $0x26f8] sm:$0xff] }
 0x3f4   :  { %5056 = vmatprep.subr.mxu1 %v825_v61  ;;  %v3707_v10 = vpop.f32.mrf.mxu0  ;;  %5022 = vmatpush3.msra.mxu0 %v201_v62  ;;  %v539_v57 = vld [vmem:[#allocation3 + $0xd60] sm:$0xff]  ;;  %v1774_v60 = vld [vmem:[#allocation3 + $0x33f8] sm:$0xff] }
 0x3f5   :  { %5057 = vmatpush3.msra.mxu1 %v617_v0  ;;  %v3708_v26 = vadd.f32 %v3707_v10, %v5641_v41  ;;  %5023 = vmatprep.subr.mxu0 %v396_v1  ;;  %v357_v41 = vld [vmem:[#allocation3 + $0x7b0] sm:$0xff]  ;;  %v1150_v61 = vld [vmem:[#allocation3 + $0x2078] sm:$0xff]  ;;  %v1124_v10 = vld [vmem:[#allocation3 + $0x1fa8] sm:$0xff] }
 0x3f6   :  { %5058 = vmatprep.subr.mxu1 %v812_v6  ;;  %v3709_v31 = vpop.f32.mrf.mxu0  ;;  %v3778_v32 = vpop.f32.mrf.mxu1  ;;  %5024 = vmatpush3.msra.mxu0 %v188_v7  ;;  %v1566_v62 = vld [vmem:[#allocation3 + $0x2d78] sm:$0xff]  ;;  %v1345_v0 = vld [vmem:[#allocation3 + $0x2690] sm:$0xff] }
 0x3f7   :  { %5059 = vmatpush3.msra.mxu1 %v604_v39  ;;  %v3710_v58 = vadd.f32 %v3709_v31, %v5643_v49  ;;  %v5659_v34 = vadd.f32 %v3778_v32, %v3708_v26  ;;  %5025 = vmatprep.subr.mxu0 %v383_v18  ;;  %v344_v49 = vld [vmem:[#allocation3 + $0x748] sm:$0xff]  ;;  %v1761_v1 = vld [vmem:[#allocation3 + $0x3390] sm:$0xff]  ;;  %v1319_v18 = vld [vmem:[#allocation3 + $0x25c0] sm:$0xff] }
 0x3f8   :  { %5060 = vmatprep.subr.mxu1 %v799_v20  ;;  %v3780_v38 = vpop.f32.mrf.mxu1  ;;  %5026 = vmatpush3.msra.mxu0 %v175_v44  ;;  %v1137_v6 = vld [vmem:[#allocation3 + $0x2010] sm:$0xff]  ;;  %v1748_v39 = vld [vmem:[#allocation3 + $0x3328] sm:$0xff]  ;;  %v1527_v20 = vld [vmem:[#allocation3 + $0x2c40] sm:$0xff] }
 0x3f9   :  { %5061 = vmatpush3.msra.mxu1 %v591_v19  ;;  %v5661_v29 = vadd.f32 %v3780_v38, %v3710_v58  ;;  %5027 = vmatprep.subr.mxu0 %v370_v33  ;;  %v1553_v7 = vld [vmem:[#allocation3 + $0x2d10] sm:$0xff]  ;;  %v1306_v26 = vld [vmem:[#allocation3 + $0x2558] sm:$0xff]  ;;  %v1072_v38 = vld [vmem:[#allocation3 + $0x1e08] sm:$0xff] }
 0x3fa   :  { %5062 = vmatprep.subr.mxu1 %v786_v5  ;;  %5028 = vmatpush3.msra.mxu0 %v162_v36  ;;  %v1722_v44 = vld [vmem:[#allocation3 + $0x3258] sm:$0xff]  ;;  %v1293_v32 = vld [vmem:[#allocation3 + $0x24f0] sm:$0xff]  ;;  %v1280_v36 = vld [vmem:[#allocation3 + $0x2488] sm:$0xff] }
 0x3fb   :  { %5063 = vmatpush3.msra.mxu1 %v578_v35  ;;  %5029 = vmatprep.subr.mxu0 %v357_v41  ;;  %v1098_v19 = vld [vmem:[#allocation3 + $0x1ed8] sm:$0xff]  ;;  %v1709_v33 = vld [vmem:[#allocation3 + $0x31f0] sm:$0xff]  ;;  %v1696_v35 = vld [vmem:[#allocation3 + $0x3188] sm:$0xff] }
 0x3fc   :  { %5064 = vmatprep.subr.mxu1 %v773_v13  ;;  %5030 = vmatpush3.msra.mxu0 %v149_v40  ;;  %v1514_v31 = vld [vmem:[#allocation3 + $0x2bd8] sm:$0xff]  ;;  %v1085_v5 = vld [vmem:[#allocation3 + $0x1e70] sm:$0xff]  ;;  %v1488_v41 = vld [vmem:[#allocation3 + $0x2b08] sm:$0xff] }
 0x3fd   :  { %5065 = vmatpush3.msra.mxu1 %v565_v45  ;;  %5031 = vmatprep.subr.mxu0 %v344_v49  ;;  %v1501_v58 = vld [vmem:[#allocation3 + $0x2b70] sm:$0xff]  ;;  %v1267_v13 = vld [vmem:[#allocation3 + $0x2420] sm:$0xff] }
 0x3fe   :  { %5066 = vmatprep.subr.mxu1 %v760_v46  ;;  %5032 = vmatpush3.msra.mxu0 %v136_v47  ;;  %v1683_v40 = vld [vmem:[#allocation3 + $0x3120] sm:$0xff]  ;;  %v1254_v46 = vld [vmem:[#allocation3 + $0x23b8] sm:$0xff] }
 0x3ff   :  { %5067 = vmatpush3.msra.mxu1 %v552_v48  ;;  %5033 = vmatprep.subr.mxu0 %v331_v50  ;;  %v1059_v45 = vld [vmem:[#allocation3 + $0x1da0] sm:$0xff]  ;;  %v1670_v47 = vld [vmem:[#allocation3 + $0x30b8] sm:$0xff] }
 0x400   :  { %5068 = vmatprep.subr.mxu1 %v747_v54  ;;  %5034 = vmatpush3.msra.mxu0 %v123_v56  ;;  %v1475_v49 = vld [vmem:[#allocation3 + $0x2aa0] sm:$0xff]  ;;  %v1046_v48 = vld [vmem:[#allocation3 + $0x1d38] sm:$0xff]  ;;  %v1241_v54 = vld [vmem:[#allocation3 + $0x2350] sm:$0xff] }
 0x401   :  { %4273 = vmatprep.mubr.f32.mxu0 %v5479_v9  ;;  %5069 = vmatpush3.msra.mxu1 %v539_v57  ;;  %v1332_v9 = vld [vmem:[#allocation3 + $0x2628] sm:$0xff]  ;;  %v1462_v50 = vld [vmem:[#allocation3 + $0x2a38] sm:$0xff]  ;;  %v1657_v56 = vld [vmem:[#allocation3 + $0x3050] sm:$0xff] }
 0x402   :  { %4343 = vmatprep.mubr.f32.mxu1 %v5483_v11  ;;  %4274 = vmatmul.mubr.f32.vlgmr.msra.gmra.mxu0 %v5472_v63  ;;  %v1540_v11 = vld [vmem:[#allocation3 + $0x2ca8] sm:$0xff]  ;;  %v1735_v63 = vld [vmem:[#allocation3 + $0x32c0] sm:$0xff]  ;;  %v1033_v57 = vld [vmem:[#allocation3 + $0x1cd0] sm:$0xff] }
 0x403   :  { %4344 = vmatmul.mubr.f32.vlgmr.msra.gmra.mxu1 %v5475_v2  ;;  %5073 = vmatprep.subr.mxu0 %v1358_v59  ;;  %v1111_v2 = vld [vmem:[#allocation3 + $0x1f40] sm:$0xff]  ;;  %v1449_v59 = vld [vmem:[#allocation3 + $0x29d0] sm:$0xff] }
 0x404   :  { %5108 = vmatprep.subr.mxu1 %v1774_v60  ;;  %5074 = vmatpush3.msra.mxu0 %v1150_v61  ;;  %v1228_v60 = vld [vmem:[#allocation3 + $0x22e8] sm:$0xff] }
 0x405   :  { %5109 = vmatpush3.msra.mxu1 %v1566_v62  ;;  %5075 = vmatprep.subr.mxu0 %v1345_v0  ;;  %v1644_v61 = vld [vmem:[#allocation3 + $0x2fe8] sm:$0xff] }
 0x406   :  { %5110 = vmatprep.subr.mxu1 %v1761_v1  ;;  %5076 = vmatpush3.msra.mxu0 %v1137_v6  ;;  %v1020_v62 = vld [vmem:[#allocation3 + $0x1c68] sm:$0xff]  ;;  %v1215_v1 = vld [vmem:[#allocation3 + $0x2280] sm:$0xff] }
 0x407   :  { %5111 = vmatpush3.msra.mxu1 %v1553_v7  ;;  %5077 = vmatprep.subr.mxu0 %v1332_v9  ;;  %v1436_v0 = vld [vmem:[#allocation3 + $0x2968] sm:$0xff]  ;;  %v1631_v6 = vld [vmem:[#allocation3 + $0x2f80] sm:$0xff] }
 0x408   :  { %5112 = vmatprep.subr.mxu1 %v1748_v39  ;;  %5078 = vmatpush3.msra.mxu0 %v1124_v10  ;;  %v1007_v7 = vld [vmem:[#allocation3 + $0x1c00] sm:$0xff]  ;;  %v1202_v39 = vld [vmem:[#allocation3 + $0x2218] sm:$0xff] }
 0x409   :  { %5113 = vmatpush3.msra.mxu1 %v1540_v11  ;;  %5079 = vmatprep.subr.mxu0 %v1319_v18  ;;  %v1423_v9 = vld [vmem:[#allocation3 + $0x2900] sm:$0xff]  ;;  %v1618_v10 = vld [vmem:[#allocation3 + $0x2f18] sm:$0xff] }
 0x40a   :  { %5114 = vmatprep.subr.mxu1 %v1735_v63  ;;  %5080 = vmatpush3.msra.mxu0 %v1111_v2  ;;  %v994_v11 = vld [vmem:[#allocation3 + $0x1b98] sm:$0xff]  ;;  %v1189_v63 = vld [vmem:[#allocation3 + $0x21b0] sm:$0xff] }
 0x40b   :  { %5115 = vmatpush3.msra.mxu1 %v1527_v20  ;;  %5081 = vmatprep.subr.mxu0 %v1306_v26  ;;  %v1410_v18 = vld [vmem:[#allocation3 + $0x2898] sm:$0xff]  ;;  %v1605_v2 = vld [vmem:[#allocation3 + $0x2eb0] sm:$0xff] }
 0x40c   :  { %5116 = vmatprep.subr.mxu1 %v1722_v44  ;;  %5082 = vmatpush3.msra.mxu0 %v1098_v19  ;;  %v981_v20 = vld [vmem:[#allocation3 + $0x1b30] sm:$0xff]  ;;  %v1176_v19 = vld [vmem:[#allocation3 + $0x2148] sm:$0xff] }
 0x40d   :  { %5117 = vmatpush3.msra.mxu1 %v1514_v31  ;;  %5083 = vmatprep.subr.mxu0 %v1293_v32  ;;  %v1397_v26 = vld [vmem:[#allocation3 + $0x2830] sm:$0xff]  ;;  %v1592_v31 = vld [vmem:[#allocation3 + $0x2e48] sm:$0xff] }
 0x40e   :  { %5118 = vmatprep.subr.mxu1 %v1709_v33  ;;  %5084 = vmatpush3.msra.mxu0 %v1085_v5  ;;  %v968_v33 = vld [vmem:[#allocation3 + $0x1ac8] sm:$0xff] }
 0x40f   :  { %5119 = vmatpush3.msra.mxu1 %v1501_v58  ;;  %5085 = vmatprep.subr.mxu0 %v1280_v36  ;;  %v1163_v58 = vld [vmem:[#allocation3 + $0x20e0] sm:$0xff]  ;;  %v1384_v36 = vld [vmem:[#allocation3 + $0x27c8] sm:$0xff] }
 0x410   :  { %5120 = vmatprep.subr.mxu1 %v1696_v35  ;;  %5086 = vmatpush3.msra.mxu0 %v1072_v38  ;;  %v955_v38 = vld [vmem:[#allocation3 + $0x1a60] sm:$0xff] }
 0x411   :  { %5121 = vmatpush3.msra.mxu1 %v1488_v41  ;;  %5087 = vmatprep.subr.mxu0 %v1267_v13  ;;  %v1579_v41 = vld [vmem:[#allocation3 + $0x2de0] sm:$0xff]  ;;  %v1982_v13 = vld [vmem:[#allocation3 + $0x3a78] sm:$0xff] }
 0x412   :  { %5122 = vmatprep.subr.mxu1 %v1683_v40  ;;  %5088 = vmatpush3.msra.mxu0 %v1059_v45  ;;  %v5388_v40 = vmov 0.0   ;;  %v1930_v45 = vld [vmem:[#allocation3 + $0x38d8] sm:$0xff] }
 0x413   :  { %5123 = vmatpush3.msra.mxu1 %v1475_v49  ;;  %5089 = vmatprep.subr.mxu0 %v1254_v46  ;;  %v1878_v49 = vld [vmem:[#allocation3 + $0x3738] sm:$0xff]  ;;  %v1865_v46 = vld [vmem:[#allocation3 + $0x36d0] sm:$0xff] }
 0x414   :  { %5124 = vmatprep.subr.mxu1 %v1670_v47  ;;  %5090 = vmatpush3.msra.mxu0 %v1046_v48  ;;  %v1852_v47 = vld [vmem:[#allocation3 + $0x3668] sm:$0xff]  ;;  %v1839_v48 = vld [vmem:[#allocation3 + $0x3600] sm:$0xff] }
 0x415   :  { %5125 = vmatpush3.msra.mxu1 %v1462_v50  ;;  %5091 = vmatprep.subr.mxu0 %v1241_v54  ;;  %v1826_v50 = vld [vmem:[#allocation3 + $0x3598] sm:$0xff]  ;;  %v1813_v54 = vld [vmem:[#allocation3 + $0x3530] sm:$0xff] }
 0x416   :  { %5126 = vmatprep.subr.mxu1 %v1657_v56  ;;  %5092 = vmatpush3.msra.mxu0 %v1033_v57  ;;  %v1800_v56 = vld [vmem:[#allocation3 + $0x34c8] sm:$0xff]  ;;  %v1787_v57 = vld [vmem:[#allocation3 + $0x3460] sm:$0xff] }
 0x417   :  { %5127 = vmatpush3.msra.mxu1 %v1449_v59  ;;  %5093 = vmatprep.subr.mxu0 %v1228_v60  ;;  %v2021_v59 = vld [vmem:[#allocation3 + $0x3bb0] sm:$0xff]  ;;  %v2008_v60 = vld [vmem:[#allocation3 + $0x3b48] sm:$0xff] }
 0x418   :  { %5128 = vmatprep.subr.mxu1 %v1644_v61  ;;  %5094 = vmatpush3.msra.mxu0 %v1020_v62  ;;  %v1995_v61 = vld [vmem:[#allocation3 + $0x3ae0] sm:$0xff] }
 0x419   :  { %5129 = vmatpush3.msra.mxu1 %v1436_v0  ;;  %5095 = vmatprep.subr.mxu0 %v1215_v1 }
 0x41a   :  { %5130 = vmatprep.subr.mxu1 %v1631_v6  ;;  %5096 = vmatpush3.msra.mxu0 %v1007_v7 }
 0x41b   :  { %5131 = vmatpush3.msra.mxu1 %v1423_v9  ;;  %5097 = vmatprep.subr.mxu0 %v1202_v39 }
 0x41c   :  { %5132 = vmatprep.subr.mxu1 %v1618_v10  ;;  %v3849_v44 = vpop.f32.mrf.mxu0  ;;  %5098 = vmatpush3.msra.mxu0 %v994_v11 }
 0x41d   :  { %5133 = vmatpush3.msra.mxu1 %v1410_v18  ;;  %v5668_v32 = vadd.f32 %v3849_v44, %v5659_v34  ;;  %5099 = vmatprep.subr.mxu0 %v1189_v63  ;;  %v1371_v34 = vld [vmem:[#allocation3 + $0x2760] sm:$0xff]  ;;  %v2927_v44 = vadd.f32 %v5583_v14, %v5581_v12 }
 0x41e   :  { %5134 = vmatprep.subr.mxu1 %v1605_v2  ;;  %v3851_v5 = vpop.f32.mrf.mxu0  ;;  %5100 = vmatpush3.msra.mxu0 %v981_v20 }
 0x41f   :  { %5135 = vmatpush3.msra.mxu1 %v1397_v26  ;;  %v5671_v35 = vadd.f32 %v3851_v5, %v5661_v29  ;;  %5101 = vmatprep.subr.mxu0 %v1176_v19  ;;  %v1969_v29 = vld [vmem:[#allocation3 + $0x3a10] sm:$0xff]  ;;  %v2574_v5 = vadd.f32 %v5566_v16, %v5556_v42 }
 0x420   :  { %5136 = vmatprep.subr.mxu1 %v1592_v31  ;;  %5102 = vmatpush3.msra.mxu0 %v968_v33  ;;  %v2998_v33 = vadd.f32 %v5596_v8, %v2927_v44  ;;  %v4665_v44 = vld [vmem:[#allocation7 + $0x28] sm:$0xff] }
 0x421   :  { %4413 = vmatprep.mubr.f32.mxu0 %v5500_v27  ;;  %5103 = vmatprep.subr.mxu0 %v1163_v58  ;;  %v1956_v27 = vld [vmem:[#allocation3 + $0x39a8] sm:$0xff] }
 0x422   :  { %5137 = vmatpush3.msra.mxu1 %v1384_v36  ;;  %5104 = vmatpush3.msra.mxu0 %v955_v38  ;;  %v2645_v36 = vadd.f32 %v5568_v25, %v2574_v5  ;;  %v3069_v38 = vadd.f32 %v5598_v24, %v2998_v33  ;;  %v4678_v33 = vld [vmem:[#allocation7 + $0x90] sm:$0xff] }
 0x423   :  { %5138 = vmatprep.subr.mxu1 %v1579_v41  ;;  %4414 = vmatmul.mubr.f32.vlgmr.msra.gmra.mxu0 %v5493_v17  ;;  %v1943_v17 = vld [vmem:[#allocation3 + $0x3940] sm:$0xff]  ;;  %v4662_v5 = vld [vmem:[#allocation7 + $0x10] sm:$0xff] }
 0x424   :  { %4489 = vmatprep.subr.mxu0 %v5388_v40  ;;  %5139 = vmatpush3.msra.mxu1 %v1371_v34  ;;  %v2716_v12 = vadd.f32 %v5577_v55, %v2645_v36  ;;  %v3140_v14 = vadd.f32 %v5603_v15, %v3069_v38  ;;  %v4661_v36 = vld [vmem:[#allocation7 + $0x8] sm:$0xff]  ;;  %v4676_v38 = vld [vmem:[#allocation7 + $0x80] sm:$0xff] }
 0x425   :  { %4483 = vmatprep.mubr.f32.mxu1 %v5504_v53  ;;  %4490 = vmatpush1.msra.mxu0 %v1982_v13  ;;  %v1917_v53 = vld [vmem:[#allocation3 + $0x3870] sm:$0xff] }
 0x426   :  { %4484 = vmatmul.mubr.f32.vlgmr.msra.gmra.mxu1 %v5496_v22  ;;  %4491 = vmatprep.subr.mxu0 %v5388_v40  ;;  %v1904_v22 = vld [vmem:[#allocation3 + $0x3808] sm:$0xff]  ;;  %v5713_v8 = vadd.f32 %v5579_v3, %v2716_v12  ;;  %v4660_v12 = vld [vmem:[#allocation7] sm:$0xff] }
 0x427   :  { %4996 = vmatprep.mubr.msk.f32.mxu0 %vm2076_vm0, %v5513_v51  ;;  %4492 = vmatpush1.msra.mxu0 %v1969_v29  ;;  %v1891_v51 = vld [vmem:[#allocation3 + $0x37a0] sm:$0xff] }
 0x428   :  { %4493 = vmatprep.subr.mxu0 %v5388_v40 }
 0x429   :  { %4494 = vmatpush1.msra.mxu0 %v1956_v27 }
 0x42a   :  { %4495 = vmatprep.subr.mxu0 %v5388_v40 }
 0x42b   :  { %4496 = vmatpush1.msra.mxu0 %v1943_v17 }
 0x42c   :  { %4497 = vmatprep.subr.mxu0 %v5388_v40 }
 0x42d   :  { %4498 = vmatpush1.msra.mxu0 %v1930_v45 }
 0x42e   :  { %4499 = vmatprep.subr.mxu0 %v5388_v40 }
 0x42f   :  { %4500 = vmatpush1.msra.mxu0 %v1917_v53 }
 0x430   :  { %4501 = vmatprep.subr.mxu0 %v5388_v40 }
 0x431   :  { %4502 = vmatpush1.msra.mxu0 %v1904_v22 }
 0x432   :  { %4503 = vmatprep.subr.mxu0 %v5388_v40 }
 0x433   :  { %4504 = vmatpush1.msra.mxu0 %v1891_v51 }
 0x434   :  { %4505 = vmatprep.subr.mxu0 %v5388_v40 }
 0x435   :  { %4506 = vmatpush1.msra.mxu0 %v1878_v49 }
 0x436   :  { %4507 = vmatprep.subr.mxu0 %v5388_v40 }
 0x437   :  { %4508 = vmatpush1.msra.mxu0 %v1865_v46  ;;  %v4691_v46 = vld [vmem:[#allocation7 + $0xf8] sm:$0xff] }
 0x438   :  { %4509 = vmatprep.subr.mxu0 %v5388_v40  ;;  %v3920_v62 = vpop.f32.mrf.mxu1  ;;  %5143 = vmatprep.subr.mxu1 %v4691_v46 }
 0x439   :  { %4510 = vmatpush1.msra.mxu0 %v1852_v47  ;;  %v4675_v47 = vld [vmem:[#allocation7 + $0x78] sm:$0xff] }
 0x43a   :  { %4511 = vmatprep.subr.mxu0 %v5388_v40  ;;  %v3922_v0 = vpop.f32.mrf.mxu1  ;;  %5144 = vmatpush3.msra.mxu1 %v4675_v47 }
 0x43b   :  { %4512 = vmatpush1.msra.mxu0 %v1839_v48  ;;  %v4690_v48 = vld [vmem:[#allocation7 + $0xf0] sm:$0xff] }
 0x43c   :  { %4513 = vmatprep.subr.mxu0 %v5388_v40  ;;  %5145 = vmatprep.subr.mxu1 %v4690_v48 }
 0x43d   :  { %4514 = vmatpush1.msra.mxu0 %v1826_v50  ;;  %v4674_v50 = vld [vmem:[#allocation7 + $0x70] sm:$0xff] }
 0x43e   :  { %4515 = vmatprep.subr.mxu0 %v5388_v40  ;;  %5146 = vmatpush3.msra.mxu1 %v4674_v50 }
 0x43f   :  { %4516 = vmatpush1.msra.mxu0 %v1813_v54  ;;  %v4689_v54 = vld [vmem:[#allocation7 + $0xe8] sm:$0xff] }
 0x440   :  { %4517 = vmatprep.subr.mxu0 %v5388_v40  ;;  %5147 = vmatprep.subr.mxu1 %v4689_v54 }
 0x441   :  { %4518 = vmatpush1.msra.mxu0 %v1800_v56  ;;  %v4673_v56 = vld [vmem:[#allocation7 + $0x68] sm:$0xff] }
 0x442   :  { %4519 = vmatprep.subr.mxu0 %v5388_v40  ;;  %5148 = vmatpush3.msra.mxu1 %v4673_v56 }
 0x443   :  { %4520 = vmatpush1.msra.mxu0 %v1787_v57  ;;  %v4688_v57 = vld [vmem:[#allocation7 + $0xe0] sm:$0xff] }
 0x444   :  { %4547 = vmatprep.subr.mxu0 %v5388_v40  ;;  %5149 = vmatprep.subr.mxu1 %v4688_v57 }
 0x445   :  { %4548 = vmatpush2.msra.mxu0 %v2021_v59  ;;  %v4672_v59 = vld [vmem:[#allocation7 + $0x60] sm:$0xff] }
 0x446   :  { %4549 = vmatprep.subr.mxu0 %v5388_v40  ;;  %5150 = vmatpush3.msra.mxu1 %v4672_v59 }
 0x447   :  { %4550 = vmatpush2.msra.mxu0 %v2008_v60 }
 0x448   :  { %4551 = vmatprep.subr.mxu0 %v5388_v40 }
 0x449   :  { %4552 = vmatpush2.msra.mxu0 %v1995_v61  ;;  %v4687_v61 = vld [vmem:[#allocation7 + $0xd8] sm:$0xff] }
 0x44a   :  { %4554 = vmatmul.mubr.f32.vlgmr.msra.gmra.mxu0 %v5654_v4  ;;  %5194 = vmatprep.subr.mxu0 %v5388_v40 }
 0x44b   :  { %5151 = vmatprep.subr.mxu1 %v4687_v61  ;;  %5224 = vmatprep.mubr.msk.f32.mxu0 %vm5391_vm4, %v5388_v40 }
 0x45e   :  { %v3991_v1 = vpop.f32.mrf.mxu0 }
 0x45f   :  { %v3992_v9 = vadd.f32 %v3991_v1, %v3920_v62  ;;  %v4671_v62 = vld [vmem:[#allocation7 + $0x58] sm:$0xff]  ;;  %v4670_v1 = vld [vmem:[#allocation7 + $0x50] sm:$0xff] }
 0x460   :  { %v3993_v7 = vpop.f32.mrf.mxu0  ;;  %5152 = vmatpush3.msra.mxu1 %v4671_v62 }
 0x461   :  { %v3994_v10 = vadd.f32 %v3993_v7, %v3922_v0  ;;  %v4686_v0 = vld [vmem:[#allocation7 + $0xd0] sm:$0xff]  ;;  %v4685_v7 = vld [vmem:[#allocation7 + $0xc8] sm:$0xff] }
 0x462   :  { %5153 = vmatprep.subr.mxu1 %v4686_v0 }
 0x463   :  { %5154 = vmatpush3.msra.mxu1 %v4670_v1 }
 0x464   :  { %5155 = vmatprep.subr.mxu1 %v4685_v7  ;;  %v4706_v7 = vld [vmem:[#allocation7 + $0x170] sm:$0xff] }
 0x479   :  { %v4062_v6 = vpop.f32.mrf.mxu1 }
 0x47a   :  { %v4063_v11 = vadd.f32 %v4062_v6, %v3992_v9 }
 0x47b   :  { %v4064_v39 = vpop.f32.mrf.mxu1 }
 0x47c   :  { %v4065_v63 = vadd.f32 %v4064_v39, %v3994_v10  ;;  %v4684_v10 = vld [vmem:[#allocation7 + $0xc0] sm:$0xff] }
 0x4a0   :  { %v4133_v18 = vpop.f32.mrf.mxu0 }
 0x4a1   :  { %v4134_v2 = vadd.f32 %v4133_v18, %v4063_v11  ;;  %v4668_v11 = vld [vmem:[#allocation7 + $0x40] sm:$0xff]  ;;  %v4683_v18 = vld [vmem:[#allocation7 + $0xb8] sm:$0xff] }
 0x4a2   :  { %v4135_v20 = vpop.f32.mrf.mxu0  ;;  %v4204_v26 = vpop.f32.mrf.mxu1 }
 0x4a3   :  { %v4136_v4 = vadd.f32 %v4135_v20, %v4065_v63  ;;  %v4205_v19 = vadd.f32 %v4204_v26, %v4134_v2  ;;  %v4667_v63 = vld [vmem:[#allocation7 + $0x38] sm:$0xff]  ;;  %v4682_v2 = vld [vmem:[#allocation7 + $0xb0] sm:$0xff]  ;;  %v4681_v26 = vld [vmem:[#allocation7 + $0xa8] sm:$0xff] }
 0x4a4   :  { %v4206_v31 = vpop.f32.mrf.mxu1  ;;  %v4666_v20 = vld [vmem:[#allocation7 + $0x30] sm:$0xff] }
 0x4a5   :  { %4589 = vrot.lane.b32.xlu0 %v4205_v19, %s5389_s0  ;;  %v4207_v58 = vadd.f32 %v4206_v31, %v4136_v4  ;;  %v4664_v4 = vld [vmem:[#allocation7 + $0x20] sm:$0xff]  ;;  %v4679_v19 = vld [vmem:[#allocation7 + $0x98] sm:$0xff] }
 0x4a6   :  { %v4663_v31 = vld [vmem:[#allocation7 + $0x18] sm:$0xff] }
 0x4a9   :  { %4591 = vrot.lane.b32.xlu0 %v4207_v58, %s5389_s0  ;;  %v4677_v58 = vld [vmem:[#allocation7 + $0x88] sm:$0xff] }
 0x4ad   :  { %4565 = vrot.lane.b32.xlu0 %v3140_v14, %s5389_s0 }
 0x4b1   :  { %4563 = vrot.lane.b32.xlu0 %v5713_v8, %s5389_s0 }
 0x4c2   :  { %v5035_v42 = vpop.f32.mrf.mxu0 }
 0x4c3   :  { %v5070_v16 = vpop.f32.mrf.mxu1 }
 0x4c4   :  { %v5036_v41 = vpop.f32.mrf.mxu0 }
 0x4c5   :  { %v5071_v34 = vpop.f32.mrf.mxu1  ;;  %v5037_v29 = vadd.f32 %v5036_v41, %v5035_v42 }
 0x4c6   :  { %v5072_v27 = vadd.f32 %v5071_v34, %v5070_v16 }
 0x4c8   :  { %v4346_v15 = vadd.f32 %v5072_v27, %v5037_v29  ;;  %v4638_v27 = vsub.s32 1, %v5463_v43 }
 0x4e3   :  { %v5105_v25 = vpop.f32.mrf.mxu0 }
 0x4e5   :  { %v5106_v24 = vpop.f32.mrf.mxu0 }
 0x4e6   :  { %v5140_v13 = vpop.f32.mrf.mxu1  ;;  %v5107_v55 = vadd.f32 %v5106_v24, %v5105_v25 }
 0x4e8   :  { %v5141_v17 = vpop.f32.mrf.mxu1  ;;  %v4416_v45 = vadd.f32 %v5107_v55, %v4346_v15 }
 0x4e9   :  { %v5142_v53 = vadd.f32 %v5141_v17, %v5140_v13  ;;  %v5745_v17 = vld [vmem:[#allocation5] sm:$0xf] }
 0x4eb   :  { %v4486_v22 = vadd.f32 %v5142_v53, %v4416_v45  ;;  %v4639_v53 = vrot.slane %v5745_v17, %v4638_v27  ;;  %v4867_v27 = vld [vmem:[%s5853_s5 + $0x28] sm:$0xff] }
 0x50a   :  { %v4555_v3 = vpop.f32.mrf.mxu0 }
 0x50b   :  { %v4556_v51 = vadd.f32 %v4555_v3, %v4486_v22 }
 0x50c   :  { %v4557_v49 = vpop.f32.mrf.mxu0 }
 0x50d   :  { %4593 = vrot.lane.b32.xlu1 %v4556_v51, %s5389_s0  ;;  %v4646_v49 = vsub.s32 3, %v5463_v43 }
 0x511   :  { %4587 = vrot.lane.b32.xlu1 %v5671_v35, %s5389_s0 }
 0x515   :  { %4567 = vrot.lane.b32.xlu1 %v5606_v52, %s5389_s0  ;;  %v4669_v52 = vld [vmem:[#allocation7 + $0x48] sm:$0xff] }
 0x516   :  { %5156 = vmatpush3.msra.mxu1 %v4669_v52  ;;  %v4705_v52 = vld [vmem:[#allocation7 + $0x168] sm:$0xff] }
 0x517   :  { %v5722_v60 = vpop.permute.xlu0 %4589  ;;  %5157 = vmatprep.subr.mxu1 %v4684_v10  ;;  %v4702_v10 = vld [vmem:[#allocation7 + $0x150] sm:$0xff] }
 0x518   :  { %5158 = vmatpush3.msra.mxu1 %v4668_v11  ;;  %v4701_v11 = vld [vmem:[#allocation7 + $0x148] sm:$0xff] }
 0x519   :  { %5159 = vmatprep.subr.mxu1 %v4683_v18  ;;  %v4700_v18 = vld [vmem:[#allocation7 + $0x140] sm:$0xff] }
 0x51a   :  { %5160 = vmatpush3.msra.mxu1 %v4667_v63  ;;  %v4699_v63 = vld [vmem:[#allocation7 + $0x138] sm:$0xff] }
 0x51b   :  { %v4592_v6 = vpop.permute.xlu0 %4591  ;;  %5161 = vmatprep.subr.mxu1 %v4682_v2  ;;  %v4698_v2 = vld [vmem:[#allocation7 + $0x130] sm:$0xff] }
 0x51c   :  { %v4596_v9 = vsel %vm4571_vm1, %v5722_v60, %v4592_v6  ;;  %5162 = vmatpush3.msra.mxu1 %v4666_v20  ;;  %v4697_v20 = vld [vmem:[#allocation7 + $0x128] sm:$0xff] }
 0x51d   :  { %v4603_v39 = vmax.f32 %v5635_v30, %v4596_v9  ;;  %5163 = vmatprep.subr.mxu1 %v4681_v26  ;;  %v4680_v30 = vld [vmem:[#allocation7 + $0xa0] sm:$0xff] }
 0x51e   :  { %5164 = vmatpush3.msra.mxu1 %v4665_v44  ;;  %v4696_v26 = vld [vmem:[#allocation7 + $0x120] sm:$0xff] }
 0x51f   :  { %4612 = vrot.lane.b32.xlu1 %v4603_v39, %s5390_s12  ;;  %5165 = vmatprep.subr.mxu1 %v4680_v30  ;;  %v4566_v13 = vpop.permute.xlu0 %4565  ;;  %v4703_v39 = vld [vmem:[#allocation7 + $0x158] sm:$0xff]  ;;  %v4642_v30 = vsub.s32 2, %v5463_v43 }
 0x520   :  { %5166 = vmatpush3.msra.mxu1 %v4664_v4  ;;  %v4695_v4 = vld [vmem:[#allocation7 + $0x118] sm:$0xff] }
 0x521   :  { %5167 = vmatprep.subr.mxu1 %v4679_v19 }
 0x522   :  { %5168 = vmatpush3.msra.mxu1 %v4663_v31 }
 0x523   :  { %5169 = vmatprep.subr.mxu1 %v4678_v33  ;;  %v4694_v33 = vld [vmem:[#allocation7 + $0x110] sm:$0xff] }
 0x524   :  { %5170 = vmatpush3.msra.mxu1 %v4662_v5  ;;  %v4643_v5 = vrot.slane %v5745_v17, %v4642_v30 }
 0x525   :  { %5171 = vmatprep.subr.mxu1 %v4677_v58 }
 0x526   :  { %5172 = vmatpush3.msra.mxu1 %v4661_v36  ;;  %v4693_v36 = vld [vmem:[#allocation7 + $0x108] sm:$0xff] }
 0x527   :  { %5173 = vmatprep.subr.mxu1 %v4676_v38 }
 0x528   :  { %5174 = vmatpush3.msra.mxu1 %v4660_v12  ;;  %v4709_v12 = vld [vmem:[#allocation7 + $0x188] sm:$0xff] }
 0x529   :  { %4791 = vmatprep.subr.mxu1 %v5388_v40 }
 0x57f   :  { %v4594_v14 = vpop.permute.xlu1 %4593 }
 0x580   :  { %v4597_v42 = vsel %vm4571_vm1, %v4592_v6, %v4594_v14  ;;  %v4605_v24 = vmax.f32 %v5671_v35, %v4594_v14  ;;  %v4634_v35 = vsub.s32 0, %v5463_v43  ;;  %v4707_v6 = vld [vmem:[#allocation7 + $0x178] sm:$0xff]  ;;  %v4692_v43 = vld [vmem:[#allocation7 + $0x100] sm:$0xff] }
 0x581   :  { %v4604_v16 = vmax.f32 %v5668_v32, %v4597_v42  ;;  %v4564_v32 = vpop.permute.xlu0 %4563  ;;  %v4876_v42 = vld [vmem:[%s5853_s5 + $0x70] sm:$0xff] }
 0x582   :  { %v4572_v22 = vsel %vm4571_vm1, %v4564_v32, %v4566_v13  ;;  %v4635_v47 = vrot.slane %v5745_v17, %v4634_v35  ;;  %5195 = vmatpush3.msra.mxu0 %v4876_v42  ;;  %v4868_v32 = vld [vmem:[%s5853_s5 + $0x30] sm:$0xff] }
 0x583   :  { %v4588_v41 = vpop.permute.xlu1 %4587  ;;  %4614 = vrot.lane.b32.xlu0 %v4604_v16, %s5390_s12  ;;  %v4579_v46 = vmax.f32 %v5541_v23, %v4572_v22  ;;  %v4875_v16 = vld [vmem:[%s5853_s5 + $0x68] sm:$0xff]  ;;  %5196 = vmatprep.subr.mxu0 %v5388_v40 }
 0x584   :  { %v4595_v25 = vsel %vm4571_vm1, %v4588_v41, %v5722_v60  ;;  %v4647_v60 = vrot.slane %v5745_v17, %v4646_v49  ;;  %v4874_v41 = vld [vmem:[%s5853_s5 + $0x60] sm:$0xff]  ;;  %5197 = vmatpush3.msra.mxu0 %v4875_v16  ;;  %v4865_v17 = vld [vmem:[%s5853_s5 + $0x18] sm:$0xff] }
 0x585   :  { %v4602_v34 = vmax.f32 %v5633_v21, %v4595_v25  ;;  %5198 = vmatprep.subr.mxu0 %v5388_v40  ;;  %v4873_v25 = vld [vmem:[%s5853_s5 + $0x58] sm:$0xff] }
 0x586   :  { %5199 = vmatpush3.msra.mxu0 %v4874_v41 }
 0x587   :  { %4610 = vrot.lane.b32.xlu1 %v4602_v34, %s5390_s12  ;;  %4569 = vrot.lane.b32.xlu0 %v5633_v21, %s5389_s0  ;;  %v5740_v29 = vpop.permute.xlu1 %4567  ;;  %v4872_v34 = vld [vmem:[%s5853_s5 + $0x50] sm:$0xff] }
 0x588   :  { %v4573_v55 = vsel %vm4571_vm1, %v4566_v13, %v5740_v29  ;;  %5200 = vmatprep.subr.mxu0 %v5388_v40  ;;  %v4870_v13 = vld [vmem:[%s5853_s5 + $0x40] sm:$0xff] }
 0x589   :  { %v4580_v15 = vmax.f32 %v5544_v28, %v4573_v55  ;;  %5201 = vmatpush3.msra.mxu0 %v4873_v25  ;;  %v4866_v55 = vld [vmem:[%s5853_s5 + $0x20] sm:$0xff] }
 0x58a   :  { %5202 = vmatprep.subr.mxu0 %v5388_v40 }
 0x58b   :  { %4616 = vrot.lane.b32.xlu1 %v4605_v24, %s5390_s12  ;;  %v4871_v24 = vld [vmem:[%s5853_s5 + $0x48] sm:$0xff]  ;;  %5203 = vmatpush3.msra.mxu0 %v4872_v34 }
 0x58c   :  { %5204 = vmatprep.subr.mxu0 %v5388_v40 }
 0x58d   :  { %5205 = vmatpush3.msra.mxu0 %v4871_v24 }
 0x58e   :  { %5206 = vmatprep.subr.mxu0 %v5388_v40 }
 0x58f   :  { %5207 = vmatpush3.msra.mxu0 %v4870_v13 }
 0x590   :  { %5208 = vmatprep.subr.mxu0 %v5388_v40 }
 0x591   :  { %v4613_v45 = vpop.permute.xlu1 %4612 }
 0x5f5   :  { %v5748_v21 = vpop.permute.xlu0 %4614 }
 0x5f6   :  { %v4620_v3 = vsel %vm4618_vm2, %v4613_v45, %v5748_v21 }
 0x5f7   :  { %v4627_v51 = vmax.f32 %v4580_v15, %v4620_v3  ;;  %v4864_v15 = vld [vmem:[%s5853_s5 + $0x10] sm:$0xff]  ;;  %v4997_v3 = vld [vmem:[#allocation8] ss:$0 sm:$0xff] }
 0x5f9   :  { %v4611_v28 = vpop.permute.xlu1 %4610  ;;  %v4570_v48 = vpop.permute.xlu0 %4569  ;;  %v4653_v50 = vadd.f32 %v4639_v53, %v4627_v51 }
 0x5fa   :  { %v4619_v54 = vsel %vm4618_vm2, %v4611_v28, %v4613_v45  ;;  %v4582_v59 = vmax.f32 %v5713_v8, %v4570_v48  ;;  %v4704_v8 = vld [vmem:[#allocation7 + $0x160] sm:$0xff]  ;;  %v4574_v44 = vsel %vm4571_vm1, %v5740_v29, %v4570_v48  ;;  %v4863_v45 = vld [vmem:[%s5853_s5 + $0x8] sm:$0xff] }
 0x5fb   :  { %v4626_v56 = vmax.f32 %v4579_v46, %v4619_v54  ;;  %v4657_v57 = vmax.f32 %v4653_v50, 0.0  ;;  %v4581_v31 = vmax.f32 %v5571_v37, %v4574_v44  ;;  %v4708_v37 = vld [vmem:[#allocation7 + $0x180] sm:$0xff]  ;;  %v4999_v48 = vld [vmem:[#allocation10] ss:$0 sm:$0xff] }
 0x5fc   :  { %v4869_v29 = vld [vmem:[%s5853_s5 + $0x38] sm:$0xff] }
 0x5fd   :  { %v4652_v61 = vadd.f32 %v4635_v47, %v4626_v56  ;;  %v4617_v62 = vpop.permute.xlu1 %4616  ;;  %4785 = vmatprep.mubr.f32.mxu1 %v4657_v57  ;;  %5209 = vmatpush3.msra.mxu0 %v4869_v29  ;;  %v5001_v57 = vld [vmem:[#allocation11] ss:$0 sm:$0xff] }
 0x5fe   :  { %v4629_v0 = vmax.f32 %v4582_v59, %v4617_v62  ;;  %v4621_v19 = vsel %vm4618_vm2, %v5748_v21, %v4617_v62  ;;  %5210 = vmatprep.subr.mxu0 %v5388_v40  ;;  %v4862_v21 = vld [vmem:[%s5853_s5] sm:$0xff] }
 0x5ff   :  { %v4656_v1 = vmax.f32 %v4652_v61, 0.0  ;;  %v4628_v58 = vmax.f32 %v4581_v31, %v4621_v19  ;;  %5211 = vmatpush3.msra.mxu0 %v4868_v32  ;;  %v5002_v61 = vld [vmem:[#allocation2] ss:$0 sm:$0xff] }
 0x600   :  { %v4655_v23 = vadd.f32 %v4647_v60, %v4629_v0  ;;  %5212 = vmatprep.subr.mxu0 %v5388_v40 }
 0x601   :  { %4786 = vmatmul.mubr.f32.vlgmr.msra.gmra.mxu1 %v4656_v1  ;;  %v4654_v38 = vadd.f32 %v4643_v5, %v4628_v58  ;;  %5213 = vmatpush3.msra.mxu0 %v4867_v27 }
 0x602   :  { %v4659_v9 = vmax.f32 %v4655_v23, 0.0  ;;  %4792 = vmatpush1.msra.mxu1 %v4707_v6  ;;  %5214 = vmatprep.subr.mxu0 %v5388_v40 }
 0x603   :  { %4793 = vmatprep.subr.mxu1 %v5388_v40  ;;  %v4658_v14 = vmax.f32 %v4654_v38, 0.0  ;;  %5215 = vmatpush3.msra.mxu0 %v4866_v55 }
 0x604   :  { %4794 = vmatpush1.msra.mxu1 %v4706_v7  ;;  %4998 = vmatprep.mubr.msk.f32.mxu1 %vm4717_vm3, %v4659_v9 }
 0x605   :  { %4795 = vmatprep.subr.mxu1 %v5388_v40  ;;  %5216 = vmatprep.subr.mxu0 %v5388_v40 }
 0x606   :  { %4796 = vmatpush1.msra.mxu1 %v4705_v52  ;;  %5217 = vmatpush3.msra.mxu0 %v4865_v17 }
 0x607   :  { %4797 = vmatprep.subr.mxu1 %v5388_v40  ;;  %5218 = vmatprep.subr.mxu0 %v5388_v40 }
 0x608   :  { %4798 = vmatpush1.msra.mxu1 %v4704_v8  ;;  %5219 = vmatpush3.msra.mxu0 %v4864_v15 }
 0x609   :  { %4799 = vmatprep.subr.mxu1 %v5388_v40  ;;  %5220 = vmatprep.subr.mxu0 %v5388_v40 }
 0x60a   :  { %4800 = vmatpush1.msra.mxu1 %v4703_v39  ;;  %5221 = vmatpush3.msra.mxu0 %v4863_v45 }
 0x60b   :  { %4801 = vmatprep.subr.mxu1 %v5388_v40  ;;  %5222 = vmatprep.subr.mxu0 %v5388_v40 }
 0x60c   :  { %4802 = vmatpush1.msra.mxu1 %v4702_v10  ;;  %5223 = vmatpush3.msra.mxu0 %v4862_v21 }
 0x60d   :  { %4803 = vmatprep.subr.mxu1 %v5388_v40 }
 0x60e   :  { %4804 = vmatpush1.msra.mxu1 %v4701_v11 }
 0x60f   :  { %4805 = vmatprep.subr.mxu1 %v5388_v40 }
 0x610   :  { %4806 = vmatpush1.msra.mxu1 %v4700_v18 }
 0x611   :  { %4807 = vmatprep.subr.mxu1 %v5388_v40 }
 0x612   :  { %4808 = vmatpush1.msra.mxu1 %v4699_v63 }
 0x613   :  { %4809 = vmatprep.subr.mxu1 %v5388_v40 }
 0x614   :  { %4810 = vmatpush1.msra.mxu1 %v4698_v2 }
 0x615   :  { %4811 = vmatprep.subr.mxu1 %v5388_v40 }
 0x616   :  { %4812 = vmatpush1.msra.mxu1 %v4697_v20 }
 0x617   :  { %4813 = vmatprep.subr.mxu1 %v5388_v40 }
 0x618   :  { %4814 = vmatpush1.msra.mxu1 %v4696_v26 }
 0x619   :  { %4815 = vmatprep.subr.mxu1 %v5388_v40 }
 0x61a   :  { %4816 = vmatpush1.msra.mxu1 %v4695_v4 }
 0x61b   :  { %4817 = vmatprep.subr.mxu1 %v5388_v40 }
 0x61c   :  { %4818 = vmatpush1.msra.mxu1 %v4694_v33 }
 0x61d   :  { %4819 = vmatprep.subr.mxu1 %v5388_v40 }
 0x61e   :  { %4820 = vmatpush1.msra.mxu1 %v4693_v36 }
 0x61f   :  { %4821 = vmatprep.subr.mxu1 %v5388_v40 }
 0x620   :  { %4822 = vmatpush1.msra.mxu1 %v4692_v43 }
 0x621   :  { %4851 = vmatprep.subr.mxu1 %v5388_v40 }
 0x622   :  { %4852 = vmatpush2.msra.mxu1 %v4709_v12 }
 0x623   :  { %4853 = vmatprep.subr.mxu1 %v5388_v40 }
 0x624   :  { %4854 = vmatpush2.msra.mxu1 %v4708_v37 }
 0x625   :  { %4856 = vmatmul.mubr.f32.vlgmr.msra.gmra.mxu1 %v4658_v14 }
 0x6c1   :  { %v5175_v35 = vpop.f32.mrf.mxu1 }
 0x6c3   :  { %v5176_v53 = vpop.f32.mrf.mxu1 }
 0x6c4   :  { %v5177_v22 = vadd.f32 %v5176_v53, %v5175_v35 }
 0x6c6   :  { %v4788_v51 = vadd.f32 %v5177_v22, %v4997_v3 }
 0x6e5   :  { %v4857_v49 = vpop.f32.mrf.mxu1 }
 0x6e6   :  { %v4858_v46 = vadd.f32 %v4857_v49, %v4788_v51 }
 0x6e7   :  { %v4859_v47 = vpop.f32.mrf.mxu1 }
 0x6e8   :  { %v4861_v28 = vmax.f32 %v4858_v46, 0.0 }
 0x6ea   :  { %5225 = vmatmul.mubr.msk.f32.vlgmr.msra.gmra.mxu0 %vm4884_vm5, %v4861_v28 }
 0x7aa   :  { %v4954_v50 = vpop.f32.mrf.mxu0 }
 0x7ab   :  { %v4955_v54 = vadd.f32 %v4999_v48, %v4954_v50 }
 0x7ac   :  { %v5226_v56 = vpop.f32.mrf.mxu0 }
 0x7ad   :  { %v4958_v59 = vmax.f32 %v4955_v54, 0.0 }
 0x7af   :  { %v4966_v60 = vmul.f32 %v5001_v57, %v4958_v59 }
 0x7b1   :  { %v4968_v40 = vsel %vm4967_vm6, %v4966_v60, 0.0 }
 0x7b2   :  { %4969 = vadd.xlane.f32.xlu0 %v4968_v40 }
 0x83b   :  { %v4970_v62 = vpop.xlane.xlu0 %4969 }
 0x83c   :  { %v4978_v0 = vadd.f32 %v5002_v61, %v4970_v62 }
 0x83e   :  { %4980 = vst.msk [vmem:[%s5857_s9] sm:$0x3] %vm4979_vm7, %v4978_v0 }
 0x83f   :  { %4985 = vsyncpa [#allocation4], 1 }
 0x840   :  { %4986 = vsyncpa [#allocation6], 1 }
 0x841   :  { %4987 = vsyncpa [#allocation9], 1 }
 0x842   :  { %4988 = vsyncpa [#allocation12], 1 }

</bundles_post_ra>
